<compile_context>
chip_gen: v7x
topology: tpu7x:2x2x1
jax: 0.10.0
libtpu: 0.0.40
codegen_flags: <defaults>
</compile_context>

<pallas_src>
import math
from functools import partial

import jax
import jax.numpy as jnp
from jax import lax
from jax.experimental import pallas as pl
from jax.experimental.pallas import tpu as pltpu


def _round_up(x, m):
    return ((x + m - 1) // m) * m


# ---------------------------------------------------------------------------
# Pallas kernel: fused classifier head (K-tiled reduction over conv1 input)
#   x   : [N_pad, K_pad]      flattened pooled ROI features (bf16, zero padded)
#   w1t : [K_pad, 1024]       conv1 weight, BN1 scale folded in       (bf16)
#   o1  : [1, 1024]           conv1 bias + BN1 offset folded          (f32)
#   w2t : [1024, 1024]        conv2 (1x1) weight, BN2 scale folded in (bf16)
#   o2  : [1, 1024]           conv2 bias + BN2 offset folded          (f32)
#   wh  : [1024, OUT_PAD]     [class | bbox | zeros] fused head       (bf16)
#   bh  : [1, OUT_PAD]        [bc    | bb   | zeros] fused head bias  (f32)
# output:
#   out : [N_pad, OUT_PAD]    cols [0,NC)=logits, [NC,5NC)=bbox, [5NC,6NC)=probs
# ---------------------------------------------------------------------------
def _classifier_head_kernel(x_ref, w1_ref, o1_ref, w2_ref, o2_ref,
                            wh_ref, bh_ref, out_ref, acc_ref, *, num_classes):
    nc = num_classes
    k = pl.program_id(0)

    @pl.when(k == 0)
    def _():
        acc_ref[...] = jnp.zeros_like(acc_ref)

    # conv1 (kernel_size == pool window) as a K-tiled bf16 matmul on the MXU,
    # accumulated in f32. Bias + BN1 are folded into w1/o1.
    acc_ref[...] += jnp.dot(x_ref[...], w1_ref[...],
                            preferred_element_type=jnp.float32)

    @pl.when(k == pl.num_programs(0) - 1)
    def _():
        h1 = jnp.maximum(acc_ref[...] + o1_ref[...], 0.0)          # BN1 + ReLU

        # conv2 (1x1) as matmul, BN2 folded, ReLU
        h2 = jnp.dot(h1.astype(jnp.bfloat16), w2_ref[...],
                     preferred_element_type=jnp.float32) + o2_ref[...]
        h2 = jnp.maximum(h2, 0.0)

        # single fused head matmul: cols [0,nc)=class logits, [nc,5nc)=bbox
        h = jnp.dot(h2.astype(jnp.bfloat16), wh_ref[...],
                    preferred_element_type=jnp.float32) + bh_ref[...]

        # softmax over the class-logit columns only
        col = lax.broadcasted_iota(jnp.int32, h.shape, 1)
        logit_mask = col < nc
        m = jnp.max(jnp.where(logit_mask, h, -jnp.inf), axis=-1, keepdims=True)
        e = jnp.exp(jnp.where(logit_mask, h - m, jnp.float32(-1e30)))
        denom = jnp.sum(e, axis=-1, keepdims=True)
        probs = e * pl.reciprocal(denom, approx=True)               # EUP divide

        # pack probs into lanes [5nc, 6nc) so we emit ONE lane-dense store
        probs_shifted = pltpu.roll(probs, shift=5 * nc, axis=1)
        out_ref[...] = jnp.where(col >= 5 * nc, probs_shifted, h)


def classifier_head_pallas(x_flat, params, *, num_classes, tk):
    n, k_raw = x_flat.shape
    k_pad, hidden = params["w1t"].shape
    out_pad = params["wh"].shape[1]
    num_k = k_pad // tk
    n_pad = _round_up(max(n, 1), 8)

    # zero-pad rows to a sublane multiple and K to the tiled/padded width
    x = jnp.pad(x_flat, ((0, n_pad - n), (0, k_pad - k_raw))).astype(jnp.bfloat16)

    args = (x, params["w1t"], params["o1"], params["w2t"], params["o2"],
            params["wh"], params["bh"])

    # Per-generation VMEM budget: size from actual operands (double-buffered)
    # + headroom, capped at 3/4 of physical VMEM (v7x only has 64 MiB / TC).
    in_bytes = sum(int(a.size) * a.dtype.itemsize for a in args)
    out_bytes = n_pad * out_pad * 4
    scratch_bytes = n_pad * hidden * 4
    needed = 2 * in_bytes + 2 * out_bytes + scratch_bytes + (8 << 20)
    try:
        cap = int(pltpu.get_tpu_info().vmem_capacity_bytes) * 3 // 4
    except Exception:
        cap = 48 << 20
    vmem_limit = int(max(min(needed, cap), 16 << 20))

    grid_spec = pltpu.PrefetchScalarGridSpec(
        num_scalar_prefetch=0,
        grid=(num_k,),                                     # reduction over K
        in_specs=[
            pl.BlockSpec((n_pad, tk), lambda kk: (0, kk)),     # x  tile
            pl.BlockSpec((tk, hidden), lambda kk: (kk, 0)),    # w1 tile
            pl.BlockSpec((1, hidden), lambda kk: (0, 0)),      # o1
            pl.BlockSpec((hidden, hidden), lambda kk: (0, 0)),  # w2
            pl.BlockSpec((1, hidden), lambda kk: (0, 0)),      # o2
            pl.BlockSpec((hidden, out_pad), lambda kk: (0, 0)),  # wh
            pl.BlockSpec((1, out_pad), lambda kk: (0, 0)),     # bh
        ],
        out_specs=pl.BlockSpec((n_pad, out_pad), lambda kk: (0, 0)),
        scratch_shapes=[pltpu.VMEM((n_pad, hidden), jnp.float32)],
    )

    out = pl.pallas_call(
        partial(_classifier_head_kernel, num_classes=num_classes),
        out_shape=jax.ShapeDtypeStruct((n_pad, out_pad), jnp.float32),
        grid_spec=grid_spec,
        compiler_params=pltpu.CompilerParams(
            # K axis is a reduction; if a ROI grid axis is added later, mark it
            # "parallel" so v7x shards it across its two TensorCores.
            dimension_semantics=("arbitrary",),
            vmem_limit_bytes=vmem_limit,
        ),
    )(*args)

    nc = num_classes
    logits = out[:n, :nc]
    bbox = out[:n, nc:5 * nc].reshape(n, nc, 4)
    probs = out[:n, 5 * nc:6 * nc]
    return logits, probs, bbox


# ---------------------------------------------------------------------------
# ROI align glue (plain JAX): per-box pyramid-level assignment + bilinear
# crop-and-resize. Levels are padded to a common spatial size and stacked so
# each box is gathered ONCE from its assigned level (level-indexed gather),
# matching the original per-level CropFunction + re-sort semantics.
# ---------------------------------------------------------------------------
def roi_align_jax(boxes, feature_maps, pool_size, image_shape):
    # boxes: [N, 4] normalized (y1, x1, y2, x2); feature_maps: list of [C,H,W]
    y1, x1, y2, x2 = boxes[:, 0], boxes[:, 1], boxes[:, 2], boxes[:, 3]
    h = y2 - y1
    w = x2 - x1
    image_area = float(image_shape[0]) * float(image_shape[1])
    scale = 224.0 / math.sqrt(image_area)
    roi_level = 4.0 + jnp.log2(jnp.sqrt(jnp.maximum(h * w, 1e-12)) / scale)
    roi_level = jnp.clip(jnp.round(roi_level).astype(jnp.int32), 2, 5)
    lvl = roi_level - 2                                     # [N] in 0..3

    hs = jnp.array([f.shape[1] for f in feature_maps], jnp.float32)
    ws = jnp.array([f.shape[2] for f in feature_maps], jnp.float32)
    h_max = max(f.shape[1] for f in feature_maps)
    w_max = max(f.shape[2] for f in feature_maps)
    stacked = jnp.stack([
        jnp.pad(f, ((0, 0), (0, h_max - f.shape[1]), (0, w_max - f.shape[2])))
        for f in feature_maps])                             # [4, C, Hmax, Wmax]

    p = pool_size
    h_l = hs[lvl]                                           # [N]
    w_l = ws[lvl]
    t = jnp.arange(p, dtype=jnp.float32) / max(p - 1, 1)
    ys = (y1[:, None] + (y2 - y1)[:, None] * t[None, :]) * (h_l[:, None] - 1.0)
    xs = (x1[:, None] + (x2 - x1)[:, None] * t[None, :]) * (w_l[:, None] - 1.0)

    y0f = jnp.floor(ys)
    x0f = jnp.floor(xs)
    hmax_i = (h_l.astype(jnp.int32) - 1)[:, None]
    wmax_i = (w_l.astype(jnp.int32) - 1)[:, None]
    y0 = jnp.clip(y0f.astype(jnp.int32), 0, hmax_i)
    y1i = jnp.clip(y0 + 1, 0, hmax_i)
    x0 = jnp.clip(x0f.astype(jnp.int32), 0, wmax_i)
    x1i = jnp.clip(x0 + 1, 0, wmax_i)
    wy = (ys - y0f)[:, :, None, None]                       # [N, p, 1, 1]
    wx = (xs - x0f)[:, None, :, None]                       # [N, 1, p, 1]

    lv = lvl[:, None, None]

    def gather(yi, xi):
        # advanced indexing -> [N, p, p, C]
        return stacked[lv, :, yi[:, :, None], xi[:, None, :]]

    v00 = gather(y0, x0)
    v01 = gather(y0, x1i)
    v10 = gather(y1i, x0)
    v11 = gather(y1i, x1i)
    out = (v00 * (1.0 - wy) * (1.0 - wx) + v01 * (1.0 - wy) * wx
           + v10 * wy * (1.0 - wx) + v11 * wy * wx)         # [N, p, p, C]
    return jnp.transpose(out, (0, 3, 1, 2))                 # [N, C, p, p]


# ---------------------------------------------------------------------------
# Module wrapper with deterministic parameter initialization
# ---------------------------------------------------------------------------
class ClassifierPallas:
    def __init__(self, depth, pool_size, image_shape, num_classes, key):
        self.depth = depth
        self.pool_size = pool_size
        self.image_shape = image_shape
        self.num_classes = num_classes

        k = jax.random.split(key, 16)
        kk = depth * pool_size * pool_size
        eps = 0.001
        hidden = 1024

        # conv1: [1024, depth, pool, pool]; conv2 (1x1): [1024, 1024]
        w1 = jax.random.normal(k[0], (hidden, depth, pool_size, pool_size),
                               jnp.float32) * 0.02
        b1 = jax.random.normal(k[1], (hidden,), jnp.float32) * 0.01
        w2 = jax.random.normal(k[2], (hidden, hidden), jnp.float32) * 0.02
        b2 = jax.random.normal(k[3], (hidden,), jnp.float32) * 0.01
        # bn1 / bn2 (inference running stats)
        g1 = 1.0 + 0.1 * jax.random.normal(k[4], (hidden,), jnp.float32)
        be1 = 0.1 * jax.random.normal(k[5], (hidden,), jnp.float32)
        m1 = 0.1 * jax.random.normal(k[6], (hidden,), jnp.float32)
        v1 = jax.random.uniform(k[7], (hidden,), jnp.float32, minval=0.5, maxval=1.5)
        g2 = 1.0 + 0.1 * jax.random.normal(k[8], (hidden,), jnp.float32)
        be2 = 0.1 * jax.random.normal(k[9], (hidden,), jnp.float32)
        m2 = 0.1 * jax.random.normal(k[10], (hidden,), jnp.float32)
        v2 = jax.random.uniform(k[11], (hidden,), jnp.float32, minval=0.5, maxval=1.5)
        # linear_class: [NC, 1024]; linear_bbox: [4*NC, 1024]
        wc = jax.random.normal(k[12], (num_classes, hidden), jnp.float32) * 0.02
        bc = jax.random.normal(k[13], (num_classes,), jnp.float32) * 0.01
        wb = jax.random.normal(k[14], (4 * num_classes, hidden), jnp.float32) * 0.02
        bb = jax.random.normal(k[15], (4 * num_classes,), jnp.float32) * 0.01

        # fold conv bias + inference BN into weight scale / additive offset
        s1 = g1 / jnp.sqrt(v1 + eps)
        o1 = (b1 - m1) * s1 + be1
        s2 = g2 / jnp.sqrt(v2 + eps)
        o2 = (b2 - m2) * s2 + be2
        w1f = (w1 * s1[:, None, None, None]).reshape(hidden, kk).T    # [K, 1024]
        w2f = (w2 * s2[:, None]).T                                    # [1024, 1024]

        # K tiling: ~2048-wide reduction tiles, 128-aligned, zero padded
        num_k = max(1, math.ceil(kk / 2048))
        tk = _round_up(math.ceil(kk / num_k), 128)
        k_pad = tk * num_k
        self.tk = tk
        w1p = jnp.zeros((k_pad, hidden), jnp.float32).at[:kk, :].set(w1f)

        # fused class+bbox head, padded to a lane-dense 128 multiple:
        # cols [0,NC)=class, [NC,5NC)=bbox, [5NC,6NC)=probs slot (zero weights)
        out_pad = _round_up(6 * num_classes, 128)
        wh = jnp.zeros((hidden, out_pad), jnp.float32)
        wh = wh.at[:, :num_classes].set(wc.T)
        wh = wh.at[:, num_classes:5 * num_classes].set(wb.T)
        bh = jnp.zeros((1, out_pad), jnp.float32)
        bh = bh.at[0, :num_classes].set(bc)
        bh = bh.at[0, num_classes:5 * num_classes].set(bb)

        # bf16 weights halve the HBM->VMEM DMA; MXU accumulates in f32
        self.params = dict(
            w1t=w1p.astype(jnp.bfloat16),
            o1=o1.reshape(1, hidden),
            w2t=w2f.astype(jnp.bfloat16),
            o2=o2.reshape(1, hidden),
            wh=wh.astype(jnp.bfloat16),
            bh=bh,
        )

    def __call__(self, feature_maps, rois):
        # rois: [1, num_boxes, 4] normalized; feature_maps: list of [1, C, H, W]
        boxes = rois[0]
        fmaps = [f[0] for f in feature_maps]
        pooled = roi_align_jax(boxes, fmaps, self.pool_size, self.image_shape)
        x_flat = pooled.reshape(pooled.shape[0], -1)      # [N, depth*pool*pool]
        logits, probs, bbox = classifier_head_pallas(
            x_flat, self.params, num_classes=self.num_classes, tk=self.tk)
        return [logits, probs, bbox]


if __name__ == "__main__":
    key = jax.random.PRNGKey(0)
    k_box, k_f2, k_f3, k_f4, k_f5, k_params = jax.random.split(key, 6)

    depth = 32
    pool_size = 7
    image_shape = (128, 128, 3)
    num_classes = 8
    num_boxes = 8

    # normalized boxes (y1, x1, y2, x2), y1<y2 and x1<x2
    pts = jax.random.uniform(k_box, (num_boxes, 2, 2), jnp.float32)
    lo = jnp.min(pts, axis=1)
    hi = jnp.max(pts, axis=1) + 1e-2
    rois = jnp.concatenate([lo[:, 0:1], lo[:, 1:2], hi[:, 0:1], hi[:, 1:2]],
                           axis=1)[None]                    # [1, N, 4]

    # feature pyramid P2..P5, NCHW with batch 1
    feature_maps = [
        jax.random.normal(k_f2, (1, depth, 32, 32), jnp.float32),
        jax.random.normal(k_f3, (1, depth, 16, 16), jnp.float32),
        jax.random.normal(k_f4, (1, depth, 8, 8), jnp.float32),
        jax.random.normal(k_f5, (1, depth, 4, 4), jnp.float32),
    ]

    model = ClassifierPallas(depth, pool_size, image_shape, num_classes, k_params)
    logits, probs, bbox = model(feature_maps, rois)
    jax.block_until_ready((logits, probs, bbox))

    assert logits.shape == (num_boxes, num_classes)
    assert probs.shape == (num_boxes, num_classes)
    assert bbox.shape == (num_boxes, num_classes, 4)
    assert bool(jnp.all(jnp.isfinite(logits)))
    # softmax rows must normalize (approx reciprocal -> loose tolerance)
    assert bool(jnp.all(jnp.abs(jnp.sum(probs, axis=-1) - 1.0) < 5e-2))
    print("KERNEL_OK")
</pallas_src>

<mosaic_0001>
module attributes {stable_mosaic.version = 11 : i64} {
  func.func @_classifier_head_kernel(%arg0: i32, %arg1: memref<8x1664xbf16, #tpu.memory_space<vmem>>, %arg2: memref<1664x1024xbf16, #tpu.memory_space<vmem>>, %arg3: memref<1x1024xf32, #tpu.memory_space<vmem>>, %arg4: memref<1024x1024xbf16, #tpu.memory_space<vmem>>, %arg5: memref<1x1024xf32, #tpu.memory_space<vmem>>, %arg6: memref<1024x128xbf16, #tpu.memory_space<vmem>>, %arg7: memref<1x128xf32, #tpu.memory_space<vmem>>, %arg8: memref<8x128xf32, #tpu.memory_space<vmem>>, %arg9: memref<8x1024xf32, #tpu.memory_space<vmem>>) attributes {dimension_semantics = [#tpu.dimension_semantics<arbitrary>], iteration_bounds = array<i64: 1>, scalar_prefetch = 0 : i64, scratch_operands = 1 : i64, tpu.core_type = #tpu.core_type<tc>, window_params = [{transform_indices = @transform_0, window_bounds = array<i64: 8, 1664>}, {transform_indices = @transform_1, window_bounds = array<i64: 1664, 1024>}, {pipeline_mode = #tpu.pipeline_mode<synchronous>, transform_indices = @transform_2, window_bounds = array<i64: 1, 1024>}, {pipeline_mode = #tpu.pipeline_mode<synchronous>, transform_indices = @transform_3, window_bounds = array<i64: 1024, 1024>}, {pipeline_mode = #tpu.pipeline_mode<synchronous>, transform_indices = @transform_4, window_bounds = array<i64: 1, 1024>}, {pipeline_mode = #tpu.pipeline_mode<synchronous>, transform_indices = @transform_5, window_bounds = array<i64: 1024, 128>}, {pipeline_mode = #tpu.pipeline_mode<synchronous>, transform_indices = @transform_6, window_bounds = array<i64: 1, 128>}, {pipeline_mode = #tpu.pipeline_mode<synchronous>, transform_indices = @transform_7, window_bounds = array<i64: 8, 128>}]} {
    %c0_i32 = arith.constant 0 : i32
    %0 = arith.cmpi eq, %arg0, %c0_i32 : i32
    %1 = arith.extui %0 : i1 to i32
    %c0_i32_0 = arith.constant 0 : i32
    %2 = arith.cmpi ne, %1, %c0_i32_0 : i32
    scf.if %2 {
      %cst_10 = arith.constant 0.000000e+00 : f32
      %12 = vector.broadcast %cst_10 : f32 to vector<8x1024xf32>
      %c0_11 = arith.constant 0 : index
      %c0_12 = arith.constant 0 : index
      %13 = vector.load %arg9[%c0_11, %c0_12] : memref<8x1024xf32, #tpu.memory_space<vmem>>, vector<8x1024xf32>
      tpu.vector_store %arg9[%c0_11, %c0_12], %12 {strides = array<i32>} : memref<8x1024xf32, #tpu.memory_space<vmem>>, vector<8x1024xf32>,
    } else {
    }
    %c0 = arith.constant 0 : index
    %c0_1 = arith.constant 0 : index
    %3 = vector.load %arg9[%c0, %c0_1] : memref<8x1024xf32, #tpu.memory_space<vmem>>, vector<8x1024xf32>
    %c0_2 = arith.constant 0 : index
    %c0_3 = arith.constant 0 : index
    %4 = vector.load %arg1[%c0_2, %c0_3] : memref<8x1664xbf16, #tpu.memory_space<vmem>>, vector<8x1664xbf16>
    %c0_4 = arith.constant 0 : index
    %c0_5 = arith.constant 0 : index
    %5 = vector.load %arg2[%c0_4, %c0_5] : memref<1664x1024xbf16, #tpu.memory_space<vmem>>, vector<1664x1024xbf16>
    %cst = arith.constant dense<0.000000e+00> : vector<8x1024xf32>
    %6 = tpu.matmul %4, %5, %cst {dimension_numbers = #tpu.dot_dimension_numbers<[1], [0], [0], [1], [0, 0, 1, 1], [], []>} : vector<8x1664xbf16>, vector<1664x1024xbf16>, vector<8x1024xf32> -> vector<8x1024xf32>
    %7 = arith.addf %3, %6 : vector<8x1024xf32>
    %c0_6 = arith.constant 0 : index
    %c0_7 = arith.constant 0 : index
    %8 = vector.load %arg9[%c0_6, %c0_7] : memref<8x1024xf32, #tpu.memory_space<vmem>>, vector<8x1024xf32>
    tpu.vector_store %arg9[%c0_6, %c0_7], %7 {strides = array<i32>} : memref<8x1024xf32, #tpu.memory_space<vmem>>, vector<8x1024xf32>,
    %c0_i32_8 = arith.constant 0 : i32
    %9 = arith.cmpi eq, %arg0, %c0_i32_8 : i32
    %10 = arith.extui %9 : i1 to i32
    %c0_i32_9 = arith.constant 0 : i32
    %11 = arith.cmpi ne, %10, %c0_i32_9 : i32
    scf.if %11 {
      %c0_10 = arith.constant 0 : index
      %c0_11 = arith.constant 0 : index
      %12 = vector.load %arg9[%c0_10, %c0_11] : memref<8x1024xf32, #tpu.memory_space<vmem>>, vector<8x1024xf32>
      %c0_12 = arith.constant 0 : index
      %c0_13 = arith.constant 0 : index
      %13 = vector.load %arg3[%c0_12, %c0_13] : memref<1x1024xf32, #tpu.memory_space<vmem>>, vector<1x1024xf32>
      %14 = vector.broadcast %13 : vector<1x1024xf32> to vector<8x1024xf32>
      %15 = arith.addf %12, %14 : vector<8x1024xf32>
      %cst_14 = arith.constant 0.000000e+00 : f32
      %16 = vector.broadcast %cst_14 : f32 to vector<8x1024xf32>
      %17 = arith.maximumf %15, %16 : vector<8x1024xf32>
      %18 = arith.truncf %17 : vector<8x1024xf32> to vector<8x1024xbf16>
      %c0_15 = arith.constant 0 : index
      %c0_16 = arith.constant 0 : index
      %19 = vector.load %arg4[%c0_15, %c0_16] : memref<1024x1024xbf16, #tpu.memory_space<vmem>>, vector<1024x1024xbf16>
      %cst_17 = arith.constant dense<0.000000e+00> : vector<8x1024xf32>
      %20 = tpu.matmul %18, %19, %cst_17 {dimension_numbers = #tpu.dot_dimension_numbers<[1], [0], [0], [1], [0, 0, 1, 1], [], []>} : vector<8x1024xbf16>, vector<1024x1024xbf16>, vector<8x1024xf32> -> vector<8x1024xf32>
      %c0_18 = arith.constant 0 : index
      %c0_19 = arith.constant 0 : index
      %21 = vector.load %arg5[%c0_18, %c0_19] : memref<1x1024xf32, #tpu.memory_space<vmem>>, vector<1x1024xf32>
      %22 = vector.broadcast %21 : vector<1x1024xf32> to vector<8x1024xf32>
      %23 = arith.addf %20, %22 : vector<8x1024xf32>
      %cst_20 = arith.constant 0.000000e+00 : f32
      %24 = vector.broadcast %cst_20 : f32 to vector<8x1024xf32>
      %25 = arith.maximumf %23, %24 : vector<8x1024xf32>
      %26 = arith.truncf %25 : vector<8x1024xf32> to vector<8x1024xbf16>
      %c0_21 = arith.constant 0 : index
      %c0_22 = arith.constant 0 : index
      %27 = vector.load %arg6[%c0_21, %c0_22] : memref<1024x128xbf16, #tpu.memory_space<vmem>>, vector<1024x128xbf16>
      %cst_23 = arith.constant dense<0.000000e+00> : vector<8x128xf32>
      %28 = tpu.matmul %26, %27, %cst_23 {dimension_numbers = #tpu.dot_dimension_numbers<[1], [0], [0], [1], [0, 0, 1, 1], [], []>} : vector<8x1024xbf16>, vector<1024x128xbf16>, vector<8x128xf32> -> vector<8x128xf32>
      %c0_24 = arith.constant 0 : index
      %c0_25 = arith.constant 0 : index
      %29 = vector.load %arg7[%c0_24, %c0_25] : memref<1x128xf32, #tpu.memory_space<vmem>>, vector<1x128xf32>
      %30 = vector.broadcast %29 : vector<1x128xf32> to vector<8x128xf32>
      %31 = arith.addf %28, %30 : vector<8x128xf32>
      %32 = tpu.iota {dimensions = array<i32: 1>} : vector<8x128xi32>
      %c8_i32 = arith.constant 8 : i32
      %33 = vector.broadcast %c8_i32 : i32 to vector<8x128xi32>
      %34 = arith.cmpi slt, %32, %33 : vector<8x128xi32>
      %cst_26 = arith.constant 0xFF800000 : f32
      %35 = vector.broadcast %cst_26 : f32 to vector<8x128xf32>
      %36 = arith.select %34, %31, %35 : vector<8x128xi1>, vector<8x128xf32>
      %cst_27 = arith.constant dense<0xFF800000> : vector<8xf32>
      %37 = vector.multi_reduction <maximumf>, %36, %cst_27 [1] : vector<8x128xf32> to vector<8xf32>
      %38 = vector.shape_cast %37 : vector<8xf32> to vector<8x1xf32>
      %39 = vector.broadcast %38 : vector<8x1xf32> to vector<8x128xf32>
      %40 = arith.subf %31, %39 : vector<8x128xf32>
      %cst_28 = arith.constant -1.000000e+30 : f32
      %41 = vector.broadcast %cst_28 : f32 to vector<8x128xf32>
      %42 = arith.select %34, %40, %41 : vector<8x128xi1>, vector<8x128xf32>
      %43 = math.exp %42 : vector<8x128xf32>
      %cst_29 = arith.constant dense<0.000000e+00> : vector<8xf32>
      %44 = vector.multi_reduction <add>, %43, %cst_29 [1] : vector<8x128xf32> to vector<8xf32>
      %45 = vector.shape_cast %44 : vector<8xf32> to vector<8x1xf32>
      %46 = tpu.reciprocal %45 {approx = true} : vector<8x1xf32> -> vector<8x1xf32>
      %47 = vector.broadcast %46 : vector<8x1xf32> to vector<8x128xf32>
      %48 = arith.mulf %43, %47 : vector<8x128xf32>
      %c40_i32 = arith.constant 40 : i32
      %49 = tpu.dynamic_rotate %48 by %c40_i32 dim 1 : vector<8x128xf32>, i32 -> vector<8x128xf32>
      %c40_i32_30 = arith.constant 40 : i32
      %50 = vector.broadcast %c40_i32_30 : i32 to vector<8x128xi32>
      %51 = arith.cmpi sge, %32, %50 : vector<8x128xi32>
      %52 = arith.select %51, %49, %31 : vector<8x128xi1>, vector<8x128xf32>
      %c0_31 = arith.constant 0 : index
      %c0_32 = arith.constant 0 : index
      %53 = vector.load %arg8[%c0_31, %c0_32] : memref<8x128xf32, #tpu.memory_space<vmem>>, vector<8x128xf32>
      tpu.vector_store %arg8[%c0_31, %c0_32], %52 {strides = array<i32>} : memref<8x128xf32, #tpu.memory_space<vmem>>, vector<8x128xf32>,
    } else {
    }
    return
  }
  func.func @transform_0(%arg0: i32) -> (i32, i32) {
    %c0_i32 = arith.constant 0 : i32
    %c0_i32_0 = arith.constant 0 : i32
    return %c0_i32, %arg0 : i32, i32
  }
  func.func @transform_1(%arg0: i32) -> (i32, i32) {
    %c0_i32 = arith.constant 0 : i32
    %c0_i32_0 = arith.constant 0 : i32
    return %arg0, %c0_i32 : i32, i32
  }
  func.func @transform_2(%arg0: i32) -> (i32, i32) {
    %c0_i32 = arith.constant 0 : i32
    %c0_i32_0 = arith.constant 0 : i32
    %c0_i32_1 = arith.constant 0 : i32
    return %c0_i32, %c0_i32_0 : i32, i32
  }
  func.func @transform_3(%arg0: i32) -> (i32, i32) {
    %c0_i32 = arith.constant 0 : i32
    %c0_i32_0 = arith.constant 0 : i32
    %c0_i32_1 = arith.constant 0 : i32
    return %c0_i32, %c0_i32_0 : i32, i32
  }
  func.func @transform_4(%arg0: i32) -> (i32, i32) {
    %c0_i32 = arith.constant 0 : i32
    %c0_i32_0 = arith.constant 0 : i32
    %c0_i32_1 = arith.constant 0 : i32
    return %c0_i32, %c0_i32_0 : i32, i32
  }
  func.func @transform_5(%arg0: i32) -> (i32, i32) {
    %c0_i32 = arith.constant 0 : i32
    %c0_i32_0 = arith.constant 0 : i32
    %c0_i32_1 = arith.constant 0 : i32
    return %c0_i32, %c0_i32_0 : i32, i32
  }
  func.func @transform_6(%arg0: i32) -> (i32, i32) {
    %c0_i32 = arith.constant 0 : i32
    %c0_i32_0 = arith.constant 0 : i32
    %c0_i32_1 = arith.constant 0 : i32
    return %c0_i32, %c0_i32_0 : i32, i32
  }
  func.func @transform_7(%arg0: i32) -> (i32, i32) {
    %c0_i32 = arith.constant 0 : i32
    %c0_i32_0 = arith.constant 0 : i32
    %c0_i32_1 = arith.constant 0 : i32
    return %c0_i32, %c0_i32_0 : i32, i32
  }
}

</mosaic_0001>

<bundles_post_ra>
// kernel: tpu_custom_call.1
= control target key start
LH: loop header
LB: loop body
LE: loop exit
PB: predicated region body
PF: predicated region fallthrough
CT: control target
= control target key end

     0   :  { %12 = vsyncpa [#allocation4], 0  ;;  %s13279_s0 = inlined_call_operand.hbm [shape: bf16[8,1664], index: 0, kind: input, shape index: {}]   ;;  %s13280_s1 = inlined_call_operand.hbm [shape: bf16[1664,1024], index: 1, kind: input, shape index: {}]   ;;  %s13281_s2 = inlined_call_operand.hbm [shape: f32[1,1024], index: 2, kind: input, shape index: {}]   ;;  %s13282_s3 = inlined_call_operand.hbm [shape: bf16[1024,1024], index: 3, kind: input, shape index: {}]   ;;  %s13283_s4 = inlined_call_operand.hbm [shape: f32[1,1024], index: 4, kind: input, shape index: {}]   ;;  %s13284_s5 = inlined_call_operand.hbm [shape: bf16[1024,128], index: 5, kind: input, shape index: {}]   ;;  %s13285_s6 = inlined_call_operand.hbm [shape: f32[1,128], index: 6, kind: input, shape index: {}]   ;;  %s13286_s7 = inlined_call_operand.hbm [shape: f32[8,128], index: 7, kind: output, shape index: {}]  }
   0x1   :  { %13 = vsyncpa [#allocation7], 0 }
   0x2   :  { %14 = vsyncpa [#allocation10], 0 }
   0x3   :  { %15 = vsyncpa [#allocation13], 0 }
   0x4   :  { %16 = vsyncpa [#allocation5], 0  ;;  %s12774_s24 = smov [#allocation6]   ;;  %s12588_s28 = scalar_lea.hbm %s13280_s1, 106496 }
   0x5   :  { %s32_s25 = sshll.u32 %s12774_s24, 4  ;;  %p12589_p0 = scmp.ne.s32.totalorder %s13280_s1, %s12588_s28  ;;  %s33_s25 = int_to_ptr.vmem [resolvable:$true] %s32_s25 }
   0x6   :  { %p12592_p1 = scmp.lt.u32.totalorder %s12588_s28, %s13280_s1 }
   0x8   :  { %p12594_p2 = pnand %p12592_p1, %p12589_p0 }
   0xa   :  { %12597 = shalt.err (!%p12594_p2)
}
   0xb   :  { %s12598_s10 = scalar_lea.vmem %s33_s25, 106496  ;;  %p12603_p4 = scmp.lt.s32.totalorder %s33_s25, %s33_s25 }
   0xc   :  { %p12599_p3 = scmp.ne.s32.totalorder %s33_s25, %s12598_s10  ;;  %p12604_p5 = scmp.lt.s32.totalorder %s12598_s10, %s12598_s10 }
   0xe   :  { %p12605_p6 = por %p12604_p5, %p12603_p4 }
  0x10   :  { %p12606_p7 = pnand %p12605_p6, %p12599_p3 }
  0x12   :  { %12609 = shalt.err (!%p12606_p7)
}
  0x13   :  { %s12775_s11 = smov 512   ;;  %s12776_s12 = smov 32  }
  0x14   :  { %38 = dma.hbm_to_vmem [thread:$0]  %s13280_s1, 106496, %s33_s25, [#allocation7], %s12775_s11, %s12775_s11, %s12776_s12  }
  0x15   :  { %s12777_s15 = smov [#allocation9]   ;;  %s12778_s17 = smov [#allocation12]  }
  0x16   :  { %s54_s16 = sshll.u32 %s12777_s15, 4  ;;  %s76_s18 = sshll.u32 %s12778_s17, 4  ;;  %s55_s16 = int_to_ptr.vmem [resolvable:$true] %s54_s16  ;;  %s77_s18 = int_to_ptr.vmem [resolvable:$true] %s76_s18 }
  0x17   :  { %s12610_s21 = scalar_lea.hbm %s13282_s3, 65536 }
  0x18   :  { %p12611_p8 = scmp.ne.s32.totalorder %s13282_s3, %s12610_s21  ;;  %p12614_p9 = scmp.lt.u32.totalorder %s12610_s21, %s13282_s3 }
  0x1a   :  { %p12616_p10 = pnand %p12614_p9, %p12611_p8 }
  0x1c   :  { %12619 = shalt.err (!%p12616_p10)
}
  0x1d   :  { %s12620_s1 = scalar_lea.vmem %s55_s16, 65536  ;;  %p12625_p12 = scmp.lt.s32.totalorder %s55_s16, %s55_s16 }
  0x1e   :  { %p12621_p11 = scmp.ne.s32.totalorder %s55_s16, %s12620_s1  ;;  %p12626_p13 = scmp.lt.s32.totalorder %s12620_s1, %s12620_s1 }
  0x20   :  { %p12627_p0 = por %p12626_p13, %p12625_p12 }
  0x22   :  { %p12628_p1 = pnand %p12627_p0, %p12621_p11 }
  0x24   :  { %12631 = shalt.err (!%p12628_p1)
}
  0x25   :  { %60 = dma.hbm_to_vmem [thread:$0]  %s13282_s3, 65536, %s55_s16, [#allocation10], %s12775_s11, %s12775_s11, %s12776_s12  }
  0x26   :  { %s12632_s30 = scalar_lea.hbm %s13284_s5, 8192 }
  0x27   :  { %p12633_p2 = scmp.ne.s32.totalorder %s13284_s5, %s12632_s30  ;;  %p12636_p3 = scmp.lt.u32.totalorder %s12632_s30, %s13284_s5 }
  0x29   :  { %p12638_p4 = pnand %p12636_p3, %p12633_p2 }
  0x2b   :  { %12641 = shalt.err (!%p12638_p4)
}
  0x2c   :  { %s12642_s14 = scalar_lea.vmem %s77_s18, 8192  ;;  %p12647_p6 = scmp.lt.s32.totalorder %s77_s18, %s77_s18 }
  0x2d   :  { %p12643_p5 = scmp.ne.s32.totalorder %s77_s18, %s12642_s14  ;;  %p12648_p7 = scmp.lt.s32.totalorder %s12642_s14, %s12642_s14 }
  0x2f   :  { %p12649_p8 = por %p12648_p7, %p12647_p6 }
  0x31   :  { %p12650_p9 = pnand %p12649_p8, %p12643_p5 }
  0x33   :  { %12653 = shalt.err (!%p12650_p9)
}
  0x34   :  { %s12779_s3 = smov 64   ;;  %s12780_s11 = smov 4  }
  0x35   :  { %82 = dma.hbm_to_vmem [thread:$0]  %s13284_s5, 8192, %s77_s18, [#allocation13], %s12779_s3, %s12779_s3, %s12780_s11  }
  0x36   :  { %s12781_s16 = smov [#allocation3]   ;;  %s12782_s19 = smov [#allocation8]  }
  0x37   :  { %s23_s17 = sshll.u32 %s12781_s16, 4  ;;  %s45_s20 = sshll.u32 %s12782_s19, 4  ;;  %s24_s17 = int_to_ptr.vmem [resolvable:$true] %s23_s17  ;;  %s46_s20 = int_to_ptr.vmem [resolvable:$true] %s45_s20 }
  0x38   :  { %s12654_s23 = scalar_lea.hbm %s13279_s0, 832 }
  0x39   :  { %p12655_p10 = scmp.ne.s32.totalorder %s13279_s0, %s12654_s23  ;;  %p12658_p11 = scmp.lt.u32.totalorder %s12654_s23, %s13279_s0 }
  0x3b   :  { %p12660_p12 = pnand %p12658_p11, %p12655_p10 }
  0x3d   :  { %12663 = shalt.err (!%p12660_p12)
}
  0x3e   :  { %s12664_s5 = scalar_lea.vmem %s24_s17, 832  ;;  %p12669_p0 = scmp.lt.s32.totalorder %s24_s17, %s24_s17 }
  0x3f   :  { %p12665_p13 = scmp.ne.s32.totalorder %s24_s17, %s12664_s5  ;;  %p12670_p1 = scmp.lt.s32.totalorder %s12664_s5, %s12664_s5 }
  0x41   :  { %p12671_p2 = por %p12670_p1, %p12669_p0 }
  0x43   :  { %p12672_p3 = pnand %p12671_p2, %p12665_p13 }
  0x45   :  { %12675 = shalt.err (!%p12672_p3)
}
  0x46   :  { %26 = dma.hbm_to_vmem [thread:$0]  %s13279_s0, 832, %s24_s17, [#allocation4]  }
  0x47   :  { %s12676_s30 = scalar_lea.hbm %s13281_s2, 128 }
  0x48   :  { %p12677_p4 = scmp.ne.s32.totalorder %s13281_s2, %s12676_s30  ;;  %p12680_p5 = scmp.lt.u32.totalorder %s12676_s30, %s13281_s2 }
  0x4a   :  { %p12682_p6 = pnand %p12680_p5, %p12677_p4 }
  0x4c   :  { %12685 = shalt.err (!%p12682_p6)
}
  0x4d   :  { %s12686_s14 = scalar_lea.vmem %s46_s20, 128  ;;  %p12691_p8 = scmp.lt.s32.totalorder %s46_s20, %s46_s20 }
  0x4e   :  { %p12687_p7 = scmp.ne.s32.totalorder %s46_s20, %s12686_s14  ;;  %p12692_p9 = scmp.lt.s32.totalorder %s12686_s14, %s12686_s14 }
  0x50   :  { %p12693_p10 = por %p12692_p9, %p12691_p8 }
  0x52   :  { %p12694_p11 = pnand %p12693_p10, %p12687_p7 }
  0x54   :  { %12697 = shalt.err (!%p12694_p11)
}
  0x55   :  { %48 = dma.hbm_to_vmem [thread:$0]  %s13281_s2, 128, %s46_s20, [#allocation7]  }
  0x56   :  { %s12783_s11 = smov [#allocation11]   ;;  %s12784_s15 = smov [#allocation14]  }
  0x57   :  { %s67_s12 = sshll.u32 %s12783_s11, 4  ;;  %s89_s16 = sshll.u32 %s12784_s15, 4  ;;  %s68_s12 = int_to_ptr.vmem [resolvable:$true] %s67_s12  ;;  %s90_s16 = int_to_ptr.vmem [resolvable:$true] %s89_s16 }
  0x58   :  { %s12698_s21 = scalar_lea.hbm %s13283_s4, 128 }
  0x59   :  { %p12699_p12 = scmp.ne.s32.totalorder %s13283_s4, %s12698_s21  ;;  %p12702_p13 = scmp.lt.u32.totalorder %s12698_s21, %s13283_s4 }
  0x5b   :  { %p12704_p0 = pnand %p12702_p13, %p12699_p12 }
  0x5d   :  { %12707 = shalt.err (!%p12704_p0)
}
  0x5e   :  { %s12708_s2 = scalar_lea.vmem %s68_s12, 128  ;;  %p12713_p2 = scmp.lt.s32.totalorder %s68_s12, %s68_s12 }
  0x5f   :  { %p12709_p1 = scmp.ne.s32.totalorder %s68_s12, %s12708_s2  ;;  %p12714_p3 = scmp.lt.s32.totalorder %s12708_s2, %s12708_s2 }
  0x61   :  { %p12715_p4 = por %p12714_p3, %p12713_p2 }
  0x63   :  { %p12716_p5 = pnand %p12715_p4, %p12709_p1 }
  0x65   :  { %12719 = shalt.err (!%p12716_p5)
}
  0x66   :  { %70 = dma.hbm_to_vmem [thread:$0]  %s13283_s4, 128, %s68_s12, [#allocation10]  }
  0x67   :  { %s12720_s18 = scalar_lea.hbm %s13285_s6, 16 }
  0x68   :  { %p12721_p6 = scmp.ne.s32.totalorder %s13285_s6, %s12720_s18  ;;  %p12724_p7 = scmp.lt.u32.totalorder %s12720_s18, %s13285_s6 }
  0x6a   :  { %p12726_p8 = pnand %p12724_p7, %p12721_p6 }
  0x6c   :  { %12729 = shalt.err (!%p12726_p8)
}
  0x6d   :  { %s12730_s8 = scalar_lea.vmem %s90_s16, 16  ;;  %s12734_s9 = scalar_lea.vmem %s90_s16, 32 }
  0x6e   :  { %p12731_p9 = scmp.ne.s32.totalorder %s90_s16, %s12730_s8  ;;  %p12735_p10 = scmp.lt.s32.totalorder %s90_s16, %s90_s16 }
  0x6f   :  { %p12736_p11 = scmp.lt.s32.totalorder %s12734_s9, %s12730_s8 }
  0x71   :  { %p12737_p12 = por %p12736_p11, %p12735_p10 }
  0x73   :  { %p12738_p13 = pnand %p12737_p12, %p12731_p9 }
  0x75   :  { %12741 = shalt.err (!%p12738_p13)
}
  0x76   :  { %92 = dma.hbm_to_vmem [thread:$0]  %s13285_s6, 16, %s90_s16, [#allocation13]  }
  0x77   :  { %12764 = dma.done.wait [#allocation4], 832  }
  0x78   :  { %12765 = vsyncadd [#allocation4], 4294966464 }
  0x79   :  { %12766 = dma.done.wait [#allocation7], 106624  }
  0x7a   :  { %12767 = vsyncadd [#allocation7], 4294860672 }
  0x7b   :  { %12768 = dma.done.wait [#allocation10], 65664  }
  0x7c   :  { %12769 = vsyncadd [#allocation10], 4294901632 }
  0x7d   :  { %12770 = dma.done.wait [#allocation13], 8208  }
  0x7e   :  { %12771 = vsyncadd [#allocation13], 4294959088  ;;  %v142_v0 = vld [vmem:[#allocation6] sm:$0xff]  ;;  %v12912_v53 = vld [vmem:[#allocation3] sm:$0xff]  ;;  %s12786_s6 = smov 40   ;;  %s12787_s13 = smov [#allocation15]  }
  0x7f   :  { %v146_v1 = vld [vmem:[#allocation6 + $0x20] sm:$0xff]  ;;  %v12914_v54 = vld [vmem:[#allocation3 + $0x8] sm:$0xff]  ;;  %v12918_v58 = vcombine.high %v12912_v53, %v12912_v53  ;;  %s10911_s14 = sshll.u32 %s12787_s13, 4  ;;  %s10912_s14 = int_to_ptr.vmem [resolvable:$true] %s10911_s14 }
  0x80   :  { %v270_v2 = vld [vmem:[#allocation6 + $0x400] sm:$0xff]  ;;  %v10937_v3 = vcombine.high %v142_v0, %v146_v1  ;;  %v10936_v5 = vcombine.low %v142_v0, %v146_v1  ;;  %v12922_v59 = vcombine.high %v12914_v54, %v12914_v54  ;;  %s12742_s0 = scalar_lea.vmem %s10912_s14, 128  ;;  %p12747_p1 = scmp.lt.s32.totalorder %s10912_s14, %s10912_s14 }
  0x81   :  { %v274_v4 = vld [vmem:[#allocation6 + $0x420] sm:$0xff]  ;;  %5212 = vmatprep.mubr.bf16.mxu0 %v12918_v58  ;;  %p12743_p0 = scmp.ne.s32.totalorder %s10912_s14, %s12742_s0  ;;  %p12748_p2 = scmp.lt.s32.totalorder %s12742_s0, %s12742_s0 }
  0x82   :  { %v150_v6 = vld [vmem:[#allocation6 + $0x40] sm:$0xff]  ;;  %v11065_v8 = vcombine.high %v270_v2, %v274_v4  ;;  %v11064_v9 = vcombine.low %v270_v2, %v274_v4  ;;  %5180 = vmatprep.subr.bf16.mxu0 %v10937_v3  ;;  %5253 = vmatprep.mubr.bf16.mxu1 %v12922_v59 }
  0x83   :  { %v154_v7 = vld [vmem:[#allocation6 + $0x60] sm:$0xff]  ;;  %5181 = vmatpush1.bf16.msra.mxu0 %v10936_v5  ;;  %p12749_p3 = por %p12748_p2, %p12747_p1 }
  0x84   :  { %v10945_v10 = vcombine.high %v150_v6, %v154_v7  ;;  %v278_v11 = vld [vmem:[#allocation6 + $0x440] sm:$0xff]  ;;  %5221 = vmatprep.subr.bf16.mxu1 %v11065_v8  ;;  %v10944_v18 = vcombine.low %v150_v6, %v154_v7 }
  0x85   :  { %v282_v12 = vld [vmem:[#allocation6 + $0x460] sm:$0xff]  ;;  %5222 = vmatpush1.bf16.msra.mxu1 %v11064_v9  ;;  %p12750_p4 = pnand %p12749_p3, %p12743_p0 }
  0x86   :  { %v158_v13 = vld [vmem:[#allocation6 + $0x80] sm:$0xff]  ;;  %v11073_v14 = vcombine.high %v278_v11, %v282_v12  ;;  %5182 = vmatprep.subr.bf16.mxu0 %v10945_v10  ;;  %v11072_v19 = vcombine.low %v278_v11, %v282_v12 }
  0x87   :  { %v162_v15 = vld [vmem:[#allocation6 + $0xa0] sm:$0xff]  ;;  %5183 = vmatpush1.bf16.msra.mxu0 %v10944_v18 }
  0x88   :  { %v286_v16 = vld [vmem:[#allocation6 + $0x480] sm:$0xff]  ;;  %v10953_v20 = vcombine.high %v158_v13, %v162_v15  ;;  %5223 = vmatprep.subr.bf16.mxu1 %v11073_v14  ;;  %v10952_v26 = vcombine.low %v158_v13, %v162_v15 }
  0x89   :  { %v290_v17 = vld [vmem:[#allocation6 + $0x4a0] sm:$0xff]  ;;  %5224 = vmatpush1.bf16.msra.mxu1 %v11072_v19 }
  0x8a   :  { %v11081_v21 = vcombine.high %v286_v16, %v290_v17  ;;  %v166_v22 = vld [vmem:[#allocation6 + $0xc0] sm:$0xff]  ;;  %5184 = vmatprep.subr.bf16.mxu0 %v10953_v20  ;;  %v11080_v27 = vcombine.low %v286_v16, %v290_v17 }
  0x8b   :  { %v170_v23 = vld [vmem:[#allocation6 + $0xe0] sm:$0xff]  ;;  %5185 = vmatpush1.bf16.msra.mxu0 %v10952_v26 }
  0x8c   :  { %v294_v24 = vld [vmem:[#allocation6 + $0x4c0] sm:$0xff]  ;;  %v10961_v28 = vcombine.high %v166_v22, %v170_v23  ;;  %5225 = vmatprep.subr.bf16.mxu1 %v11081_v21  ;;  %v10960_v34 = vcombine.low %v166_v22, %v170_v23 }
  0x8d   :  { %v298_v25 = vld [vmem:[#allocation6 + $0x4e0] sm:$0xff]  ;;  %5226 = vmatpush1.bf16.msra.mxu1 %v11080_v27 }
  0x8e   :  { %v11089_v29 = vcombine.high %v294_v24, %v298_v25  ;;  %v174_v30 = vld [vmem:[#allocation6 + $0x100] sm:$0xff]  ;;  %5186 = vmatprep.subr.bf16.mxu0 %v10961_v28  ;;  %v11088_v35 = vcombine.low %v294_v24, %v298_v25 }
  0x8f   :  { %v178_v31 = vld [vmem:[#allocation6 + $0x120] sm:$0xff]  ;;  %5187 = vmatpush1.bf16.msra.mxu0 %v10960_v34 }
  0x90   :  { %v302_v32 = vld [vmem:[#allocation6 + $0x500] sm:$0xff]  ;;  %v10969_v36 = vcombine.high %v174_v30, %v178_v31  ;;  %5227 = vmatprep.subr.bf16.mxu1 %v11089_v29  ;;  %v10968_v42 = vcombine.low %v174_v30, %v178_v31 }
  0x91   :  { %v306_v33 = vld [vmem:[#allocation6 + $0x520] sm:$0xff]  ;;  %5228 = vmatpush1.bf16.msra.mxu1 %v11088_v35 }
  0x92   :  { %v11097_v37 = vcombine.high %v302_v32, %v306_v33  ;;  %v182_v38 = vld [vmem:[#allocation6 + $0x140] sm:$0xff]  ;;  %5188 = vmatprep.subr.bf16.mxu0 %v10969_v36  ;;  %v11096_v43 = vcombine.low %v302_v32, %v306_v33 }
  0x93   :  { %v186_v39 = vld [vmem:[#allocation6 + $0x160] sm:$0xff]  ;;  %5189 = vmatpush1.bf16.msra.mxu0 %v10968_v42 }
  0x94   :  { %v310_v40 = vld [vmem:[#allocation6 + $0x540] sm:$0xff]  ;;  %v10977_v44 = vcombine.high %v182_v38, %v186_v39  ;;  %5229 = vmatprep.subr.bf16.mxu1 %v11097_v37  ;;  %v10976_v50 = vcombine.low %v182_v38, %v186_v39 }
  0x95   :  { %v314_v41 = vld [vmem:[#allocation6 + $0x560] sm:$0xff]  ;;  %5230 = vmatpush1.bf16.msra.mxu1 %v11096_v43 }
  0x96   :  { %v11105_v45 = vcombine.high %v310_v40, %v314_v41  ;;  %v190_v46 = vld [vmem:[#allocation6 + $0x180] sm:$0xff]  ;;  %5190 = vmatprep.subr.bf16.mxu0 %v10977_v44  ;;  %v11104_v51 = vcombine.low %v310_v40, %v314_v41 }
  0x97   :  { %v194_v47 = vld [vmem:[#allocation6 + $0x1a0] sm:$0xff]  ;;  %5191 = vmatpush1.bf16.msra.mxu0 %v10976_v50 }
  0x98   :  { %v318_v48 = vld [vmem:[#allocation6 + $0x580] sm:$0xff]  ;;  %v10985_v52 = vcombine.high %v190_v46, %v194_v47  ;;  %5231 = vmatprep.subr.bf16.mxu1 %v11105_v45  ;;  %v10984_v62 = vcombine.low %v190_v46, %v194_v47 }
  0x99   :  { %v322_v49 = vld [vmem:[#allocation6 + $0x5a0] sm:$0xff]  ;;  %5232 = vmatpush1.bf16.msra.mxu1 %v11104_v51 }
  0x9a   :  { %v11113_v55 = vcombine.high %v318_v48, %v322_v49  ;;  %v198_v56 = vld [vmem:[#allocation6 + $0x1c0] sm:$0xff]  ;;  %5192 = vmatprep.subr.bf16.mxu0 %v10985_v52  ;;  %v11112_v63 = vcombine.low %v318_v48, %v322_v49 }
  0x9b   :  { %v202_v57 = vld [vmem:[#allocation6 + $0x1e0] sm:$0xff]  ;;  %5193 = vmatpush1.bf16.msra.mxu0 %v10984_v62 }
  0x9c   :  { %v326_v60 = vld [vmem:[#allocation6 + $0x5c0] sm:$0xff]  ;;  %v10993_v0 = vcombine.high %v198_v56, %v202_v57  ;;  %5233 = vmatprep.subr.bf16.mxu1 %v11113_v55  ;;  %v10992_v6 = vcombine.low %v198_v56, %v202_v57 }
  0x9d   :  { %v330_v61 = vld [vmem:[#allocation6 + $0x5e0] sm:$0xff]  ;;  %5234 = vmatpush1.bf16.msra.mxu1 %v11112_v63 }
  0x9e   :  { %v11121_v1 = vcombine.high %v326_v60, %v330_v61  ;;  %v206_v2 = vld [vmem:[#allocation6 + $0x200] sm:$0xff]  ;;  %5194 = vmatprep.subr.bf16.mxu0 %v10993_v0  ;;  %v11120_v7 = vcombine.low %v326_v60, %v330_v61 }
  0x9f   :  { %v210_v3 = vld [vmem:[#allocation6 + $0x220] sm:$0xff]  ;;  %5195 = vmatpush1.bf16.msra.mxu0 %v10992_v6 }
  0xa0   :  { %v334_v4 = vld [vmem:[#allocation6 + $0x600] sm:$0xff]  ;;  %v11001_v8 = vcombine.high %v206_v2, %v210_v3  ;;  %5235 = vmatprep.subr.bf16.mxu1 %v11121_v1  ;;  %v11000_v14 = vcombine.low %v206_v2, %v210_v3 }
  0xa1   :  { %v338_v5 = vld [vmem:[#allocation6 + $0x620] sm:$0xff]  ;;  %5236 = vmatpush1.bf16.msra.mxu1 %v11120_v7 }
  0xa2   :  { %v11129_v9 = vcombine.high %v334_v4, %v338_v5  ;;  %v214_v10 = vld [vmem:[#allocation6 + $0x240] sm:$0xff]  ;;  %5196 = vmatprep.subr.bf16.mxu0 %v11001_v8  ;;  %v11128_v15 = vcombine.low %v334_v4, %v338_v5 }
  0xa3   :  { %v218_v11 = vld [vmem:[#allocation6 + $0x260] sm:$0xff]  ;;  %5197 = vmatpush1.bf16.msra.mxu0 %v11000_v14 }
  0xa4   :  { %v342_v12 = vld [vmem:[#allocation6 + $0x640] sm:$0xff]  ;;  %v11009_v16 = vcombine.high %v214_v10, %v218_v11  ;;  %5237 = vmatprep.subr.bf16.mxu1 %v11129_v9  ;;  %v11008_v22 = vcombine.low %v214_v10, %v218_v11 }
  0xa5   :  { %v346_v13 = vld [vmem:[#allocation6 + $0x660] sm:$0xff]  ;;  %5238 = vmatpush1.bf16.msra.mxu1 %v11128_v15 }
  0xa6   :  { %v11137_v17 = vcombine.high %v342_v12, %v346_v13  ;;  %v222_v18 = vld [vmem:[#allocation6 + $0x280] sm:$0xff]  ;;  %5198 = vmatprep.subr.bf16.mxu0 %v11009_v16  ;;  %v11136_v23 = vcombine.low %v342_v12, %v346_v13  ;;  %v12928_v16 = vcombine.low %v12912_v53, %v12912_v53 }
  0xa7   :  { %v226_v19 = vld [vmem:[#allocation6 + $0x2a0] sm:$0xff]  ;;  %5199 = vmatpush1.bf16.msra.mxu0 %v11008_v22 }
  0xa8   :  { %v350_v20 = vld [vmem:[#allocation6 + $0x680] sm:$0xff]  ;;  %v11017_v24 = vcombine.high %v222_v18, %v226_v19  ;;  %5239 = vmatprep.subr.bf16.mxu1 %v11137_v17  ;;  %v11016_v30 = vcombine.low %v222_v18, %v226_v19 }
  0xa9   :  { %v354_v21 = vld [vmem:[#allocation6 + $0x6a0] sm:$0xff]  ;;  %5240 = vmatpush1.bf16.msra.mxu1 %v11136_v23 }
  0xaa   :  { %v11145_v25 = vcombine.high %v350_v20, %v354_v21  ;;  %v230_v26 = vld [vmem:[#allocation6 + $0x2c0] sm:$0xff]  ;;  %5200 = vmatprep.subr.bf16.mxu0 %v11017_v24  ;;  %v11144_v31 = vcombine.low %v350_v20, %v354_v21  ;;  %v12934_v20 = vcombine.low %v12914_v54, %v12914_v54 }
  0xab   :  { %v234_v27 = vld [vmem:[#allocation6 + $0x2e0] sm:$0xff]  ;;  %5201 = vmatpush1.bf16.msra.mxu0 %v11016_v30 }
  0xac   :  { %v358_v28 = vld [vmem:[#allocation6 + $0x6c0] sm:$0xff]  ;;  %v11025_v32 = vcombine.high %v230_v26, %v234_v27  ;;  %5241 = vmatprep.subr.bf16.mxu1 %v11145_v25  ;;  %v11024_v38 = vcombine.low %v230_v26, %v234_v27 }
  0xad   :  { %v362_v29 = vld [vmem:[#allocation6 + $0x6e0] sm:$0xff]  ;;  %5242 = vmatpush1.bf16.msra.mxu1 %v11144_v31 }
  0xae   :  { %v11153_v33 = vcombine.high %v358_v28, %v362_v29  ;;  %v238_v34 = vld [vmem:[#allocation6 + $0x300] sm:$0xff]  ;;  %5202 = vmatprep.subr.bf16.mxu0 %v11025_v32  ;;  %v11152_v39 = vcombine.low %v358_v28, %v362_v29 }
  0xaf   :  { %v242_v35 = vld [vmem:[#allocation6 + $0x320] sm:$0xff]  ;;  %5203 = vmatpush1.bf16.msra.mxu0 %v11024_v38 }
  0xb0   :  { %v366_v36 = vld [vmem:[#allocation6 + $0x700] sm:$0xff]  ;;  %v11033_v40 = vcombine.high %v238_v34, %v242_v35  ;;  %5243 = vmatprep.subr.bf16.mxu1 %v11153_v33  ;;  %v11032_v46 = vcombine.low %v238_v34, %v242_v35 }
  0xb1   :  { %v370_v37 = vld [vmem:[#allocation6 + $0x720] sm:$0xff]  ;;  %5244 = vmatpush1.bf16.msra.mxu1 %v11152_v39 }
  0xb2   :  { %v11161_v41 = vcombine.high %v366_v36, %v370_v37  ;;  %v246_v42 = vld [vmem:[#allocation6 + $0x340] sm:$0xff]  ;;  %5204 = vmatprep.subr.bf16.mxu0 %v11033_v40  ;;  %v11160_v47 = vcombine.low %v366_v36, %v370_v37 }
  0xb3   :  { %v250_v43 = vld [vmem:[#allocation6 + $0x360] sm:$0xff]  ;;  %5205 = vmatpush1.bf16.msra.mxu0 %v11032_v46 }
  0xb4   :  { %v374_v44 = vld [vmem:[#allocation6 + $0x740] sm:$0xff]  ;;  %v11041_v48 = vcombine.high %v246_v42, %v250_v43  ;;  %5245 = vmatprep.subr.bf16.mxu1 %v11161_v41  ;;  %v11040_v56 = vcombine.low %v246_v42, %v250_v43 }
  0xb5   :  { %v378_v45 = vld [vmem:[#allocation6 + $0x760] sm:$0xff]  ;;  %5246 = vmatpush1.bf16.msra.mxu1 %v11160_v47 }
  0xb6   :  { %v11169_v49 = vcombine.high %v374_v44, %v378_v45  ;;  %v254_v50 = vld [vmem:[#allocation6 + $0x380] sm:$0xff]  ;;  %5206 = vmatprep.subr.bf16.mxu0 %v11041_v48  ;;  %v11168_v57 = vcombine.low %v374_v44, %v378_v45 }
  0xb7   :  { %v258_v51 = vld [vmem:[#allocation6 + $0x3a0] sm:$0xff]  ;;  %5207 = vmatpush1.bf16.msra.mxu0 %v11040_v56 }
  0xb8   :  { %v382_v52 = vld [vmem:[#allocation6 + $0x780] sm:$0xff]  ;;  %v11049_v60 = vcombine.high %v254_v50, %v258_v51  ;;  %5247 = vmatprep.subr.bf16.mxu1 %v11169_v49  ;;  %v11048_v2 = vcombine.low %v254_v50, %v258_v51 }
  0xb9   :  { %v386_v55 = vld [vmem:[#allocation6 + $0x7a0] sm:$0xff]  ;;  %5248 = vmatpush1.bf16.msra.mxu1 %v11168_v57 }
  0xba   :  { %v11177_v61 = vcombine.high %v382_v52, %v386_v55  ;;  %v262_v62 = vld [vmem:[#allocation6 + $0x3c0] sm:$0xff]  ;;  %5208 = vmatprep.subr.bf16.mxu0 %v11049_v60  ;;  %v11176_v3 = vcombine.low %v382_v52, %v386_v55 }
  0xbb   :  { %v266_v63 = vld [vmem:[#allocation6 + $0x3e0] sm:$0xff]  ;;  %5209 = vmatpush1.bf16.msra.mxu0 %v11048_v2 }
  0xbc   :  { %v390_v0 = vld [vmem:[#allocation6 + $0x7c0] sm:$0xff]  ;;  %v11057_v4 = vcombine.high %v262_v62, %v266_v63  ;;  %5249 = vmatprep.subr.bf16.mxu1 %v11177_v61  ;;  %v11056_v10 = vcombine.low %v262_v62, %v266_v63 }
  0xbd   :  { %v394_v1 = vld [vmem:[#allocation6 + $0x7e0] sm:$0xff]  ;;  %5250 = vmatpush1.bf16.msra.mxu1 %v11176_v3 }
  0xbe   :  { %v11185_v5 = vcombine.high %v390_v0, %v394_v1  ;;  %v398_v6 = vld [vmem:[#allocation6 + $0x800] sm:$0xff]  ;;  %5210 = vmatprep.subr.bf16.mxu0 %v11057_v4  ;;  %v11184_v11 = vcombine.low %v390_v0, %v394_v1 }
  0xbf   :  { %v402_v7 = vld [vmem:[#allocation6 + $0x820] sm:$0xff]  ;;  %5211 = vmatpush1.bf16.msra.mxu0 %v11056_v10 }
  0xc0   :  { %v526_v8 = vld [vmem:[#allocation6 + $0xc00] sm:$0xff]  ;;  %v11193_v12 = vcombine.high %v398_v6, %v402_v7  ;;  %5251 = vmatprep.subr.bf16.mxu1 %v11185_v5  ;;  %v11192_v21 = vcombine.low %v398_v6, %v402_v7 }
  0xc1   :  { %v530_v9 = vld [vmem:[#allocation6 + $0xc20] sm:$0xff]  ;;  %5252 = vmatpush1.bf16.msra.mxu1 %v11184_v11 }
  0xc2   :  { %v11321_v13 = vcombine.high %v526_v8, %v530_v9  ;;  %v406_v14 = vld [vmem:[#allocation6 + $0x840] sm:$0xff]  ;;  %5262 = vmatprep.subr.bf16.mxu0 %v11193_v12  ;;  %v11320_v23 = vcombine.low %v526_v8, %v530_v9  ;;  %5213 = vmatmul.mubr.bf16.vlgmr.msra.gmra.mrb[0].mxu0 %v12928_v16 }
  0xc3   :  { %v410_v15 = vld [vmem:[#allocation6 + $0x860] sm:$0xff]  ;;  %5263 = vmatpush1.bf16.msra.mxu0 %v11192_v21 }
  0xc4   :  { %v534_v17 = vld [vmem:[#allocation6 + $0xc40] sm:$0xff]  ;;  %v11201_v24 = vcombine.high %v406_v14, %v410_v15  ;;  %5303 = vmatprep.subr.bf16.mxu1 %v11321_v13  ;;  %5254 = vmatmul.mubr.bf16.vlgmr.msra.gmra.mrb[0].mxu1 %v12934_v20  ;;  %v11200_v30 = vcombine.low %v406_v14, %v410_v15 }
  0xc5   :  { %v538_v18 = vld [vmem:[#allocation6 + $0xc60] sm:$0xff]  ;;  %5304 = vmatpush1.bf16.msra.mxu1 %v11320_v23 }
  0xc6   :  { %v12930_v19 = vld [vmem:[#allocation3 + $0x10] sm:$0xff]  ;;  %v12936_v22 = vld [vmem:[#allocation3 + $0x18] sm:$0xff]  ;;  %v11329_v25 = vcombine.high %v534_v17, %v538_v18  ;;  %5264 = vmatprep.subr.bf16.mxu0 %v11201_v24  ;;  %v11328_v31 = vcombine.low %v534_v17, %v538_v18 }
  0xc7   :  { %v414_v53 = vld [vmem:[#allocation6 + $0x880] sm:$0xff]  ;;  %v12940_v28 = vcombine.high %v12930_v19, %v12930_v19  ;;  %v12945_v29 = vcombine.high %v12936_v22, %v12936_v22  ;;  %5265 = vmatpush1.bf16.msra.mxu0 %v11200_v30 }
  0xc8   :  { %v418_v26 = vld [vmem:[#allocation6 + $0x8a0] sm:$0xff]  ;;  %5305 = vmatprep.subr.bf16.mxu1 %v11329_v25 }
  0xc9   :  { %v542_v27 = vld [vmem:[#allocation6 + $0xc80] sm:$0xff]  ;;  %v11209_v32 = vcombine.high %v414_v53, %v418_v26  ;;  %5294 = vmatprep.mubr.bf16.mxu0 %v12940_v28  ;;  %5335 = vmatprep.mubr.bf16.mxu1 %v12945_v29  ;;  %v11208_v38 = vcombine.low %v414_v53, %v418_v26 }
  0xca   :  { %v546_v54 = vld [vmem:[#allocation6 + $0xca0] sm:$0xff]  ;;  %5306 = vmatpush1.bf16.msra.mxu1 %v11328_v31 }
  0xcb   :  { %v422_v33 = vld [vmem:[#allocation6 + $0x8c0] sm:$0xff]  ;;  %v11337_v36 = vcombine.high %v542_v27, %v546_v54  ;;  %5266 = vmatprep.subr.bf16.mxu0 %v11209_v32  ;;  %v11336_v39 = vcombine.low %v542_v27, %v546_v54 }
  0xcc   :  { %v426_v34 = vld [vmem:[#allocation6 + $0x8e0] sm:$0xff]  ;;  %5267 = vmatpush1.bf16.msra.mxu0 %v11208_v38 }
  0xcd   :  { %v550_v35 = vld [vmem:[#allocation6 + $0xcc0] sm:$0xff]  ;;  %v11217_v40 = vcombine.high %v422_v33, %v426_v34  ;;  %5307 = vmatprep.subr.bf16.mxu1 %v11337_v36  ;;  %v11216_v46 = vcombine.low %v422_v33, %v426_v34 }
  0xce   :  { %v554_v37 = vld [vmem:[#allocation6 + $0xce0] sm:$0xff]  ;;  %5308 = vmatpush1.bf16.msra.mxu1 %v11336_v39 }
  0xcf   :  { %v430_v41 = vld [vmem:[#allocation6 + $0x900] sm:$0xff]  ;;  %v11345_v44 = vcombine.high %v550_v35, %v554_v37  ;;  %5268 = vmatprep.subr.bf16.mxu0 %v11217_v40  ;;  %v11344_v47 = vcombine.low %v550_v35, %v554_v37 }
  0xd0   :  { %v434_v42 = vld [vmem:[#allocation6 + $0x920] sm:$0xff]  ;;  %5269 = vmatpush1.bf16.msra.mxu0 %v11216_v46 }
  0xd1   :  { %v558_v43 = vld [vmem:[#allocation6 + $0xd00] sm:$0xff]  ;;  %v11225_v48 = vcombine.high %v430_v41, %v434_v42  ;;  %5309 = vmatprep.subr.bf16.mxu1 %v11345_v44  ;;  %v11224_v56 = vcombine.low %v430_v41, %v434_v42 }
  0xd2   :  { %v562_v45 = vld [vmem:[#allocation6 + $0xd20] sm:$0xff]  ;;  %5310 = vmatpush1.bf16.msra.mxu1 %v11344_v47 }
  0xd3   :  { %v438_v49 = vld [vmem:[#allocation6 + $0x940] sm:$0xff]  ;;  %v11353_v52 = vcombine.high %v558_v43, %v562_v45  ;;  %5270 = vmatprep.subr.bf16.mxu0 %v11225_v48  ;;  %v11352_v57 = vcombine.low %v558_v43, %v562_v45 }
  0xd4   :  { %v442_v50 = vld [vmem:[#allocation6 + $0x960] sm:$0xff]  ;;  %5271 = vmatpush1.bf16.msra.mxu0 %v11224_v56 }
  0xd5   :  { %v566_v51 = vld [vmem:[#allocation6 + $0xd40] sm:$0xff]  ;;  %v11233_v60 = vcombine.high %v438_v49, %v442_v50  ;;  %5311 = vmatprep.subr.bf16.mxu1 %v11353_v52  ;;  %v11232_v2 = vcombine.low %v438_v49, %v442_v50 }
  0xd6   :  { %v570_v55 = vld [vmem:[#allocation6 + $0xd60] sm:$0xff]  ;;  %5312 = vmatpush1.bf16.msra.mxu1 %v11352_v57 }
  0xd7   :  { %v446_v61 = vld [vmem:[#allocation6 + $0x980] sm:$0xff]  ;;  %v11361_v0 = vcombine.high %v566_v51, %v570_v55  ;;  %5272 = vmatprep.subr.bf16.mxu0 %v11233_v60  ;;  %v11360_v3 = vcombine.low %v566_v51, %v570_v55 }
  0xd8   :  { %v450_v62 = vld [vmem:[#allocation6 + $0x9a0] sm:$0xff]  ;;  %5273 = vmatpush1.bf16.msra.mxu0 %v11232_v2 }
  0xd9   :  { %v574_v63 = vld [vmem:[#allocation6 + $0xd80] sm:$0xff]  ;;  %v11241_v4 = vcombine.high %v446_v61, %v450_v62  ;;  %5313 = vmatprep.subr.bf16.mxu1 %v11361_v0  ;;  %v11240_v10 = vcombine.low %v446_v61, %v450_v62 }
  0xda   :  { %v578_v1 = vld [vmem:[#allocation6 + $0xda0] sm:$0xff]  ;;  %5314 = vmatpush1.bf16.msra.mxu1 %v11360_v3 }
  0xdb   :  { %v454_v5 = vld [vmem:[#allocation6 + $0x9c0] sm:$0xff]  ;;  %v11369_v8 = vcombine.high %v574_v63, %v578_v1  ;;  %5274 = vmatprep.subr.bf16.mxu0 %v11241_v4  ;;  %v11368_v11 = vcombine.low %v574_v63, %v578_v1 }
  0xdc   :  { %v458_v6 = vld [vmem:[#allocation6 + $0x9e0] sm:$0xff]  ;;  %5275 = vmatpush1.bf16.msra.mxu0 %v11240_v10 }
  0xdd   :  { %v582_v7 = vld [vmem:[#allocation6 + $0xdc0] sm:$0xff]  ;;  %v11249_v12 = vcombine.high %v454_v5, %v458_v6  ;;  %5315 = vmatprep.subr.bf16.mxu1 %v11369_v8  ;;  %v11248_v21 = vcombine.low %v454_v5, %v458_v6 }
  0xde   :  { %v586_v9 = vld [vmem:[#allocation6 + $0xde0] sm:$0xff]  ;;  %5316 = vmatpush1.bf16.msra.mxu1 %v11368_v11 }
  0xdf   :  { %v462_v13 = vld [vmem:[#allocation6 + $0xa00] sm:$0xff]  ;;  %v11377_v17 = vcombine.high %v582_v7, %v586_v9  ;;  %5276 = vmatprep.subr.bf16.mxu0 %v11249_v12  ;;  %v11376_v23 = vcombine.low %v582_v7, %v586_v9 }
  0xe0   :  { %v466_v14 = vld [vmem:[#allocation6 + $0xa20] sm:$0xff]  ;;  %5277 = vmatpush1.bf16.msra.mxu0 %v11248_v21 }
  0xe1   :  { %v590_v15 = vld [vmem:[#allocation6 + $0xe00] sm:$0xff]  ;;  %v11257_v24 = vcombine.high %v462_v13, %v466_v14  ;;  %5317 = vmatprep.subr.bf16.mxu1 %v11377_v17  ;;  %v11256_v30 = vcombine.low %v462_v13, %v466_v14 }
  0xe2   :  { %v594_v18 = vld [vmem:[#allocation6 + $0xe20] sm:$0xff]  ;;  %5318 = vmatpush1.bf16.msra.mxu1 %v11376_v23 }
  0xe3   :  { %v470_v25 = vld [vmem:[#allocation6 + $0xa40] sm:$0xff]  ;;  %v11385_v27 = vcombine.high %v590_v15, %v594_v18  ;;  %5278 = vmatprep.subr.bf16.mxu0 %v11257_v24  ;;  %v11384_v31 = vcombine.low %v590_v15, %v594_v18 }
  0xe4   :  { %v474_v53 = vld [vmem:[#allocation6 + $0xa60] sm:$0xff]  ;;  %5279 = vmatpush1.bf16.msra.mxu0 %v11256_v30 }
  0xe5   :  { %v598_v26 = vld [vmem:[#allocation6 + $0xe40] sm:$0xff]  ;;  %v11265_v32 = vcombine.high %v470_v25, %v474_v53  ;;  %5319 = vmatprep.subr.bf16.mxu1 %v11385_v27  ;;  %v11264_v38 = vcombine.low %v470_v25, %v474_v53 }
  0xe6   :  { %v602_v54 = vld [vmem:[#allocation6 + $0xe60] sm:$0xff]  ;;  %5320 = vmatpush1.bf16.msra.mxu1 %v11384_v31 }
  0xe7   :  { %v478_v33 = vld [vmem:[#allocation6 + $0xa80] sm:$0xff]  ;;  %v11393_v35 = vcombine.high %v598_v26, %v602_v54  ;;  %5280 = vmatprep.subr.bf16.mxu0 %v11265_v32  ;;  %v11392_v39 = vcombine.low %v598_v26, %v602_v54 }
  0xe8   :  { %v482_v34 = vld [vmem:[#allocation6 + $0xaa0] sm:$0xff]  ;;  %5281 = vmatpush1.bf16.msra.mxu0 %v11264_v38 }
  0xe9   :  { %v606_v36 = vld [vmem:[#allocation6 + $0xe80] sm:$0xff]  ;;  %v11273_v40 = vcombine.high %v478_v33, %v482_v34  ;;  %5321 = vmatprep.subr.bf16.mxu1 %v11393_v35  ;;  %v11272_v46 = vcombine.low %v478_v33, %v482_v34 }
  0xea   :  { %v610_v37 = vld [vmem:[#allocation6 + $0xea0] sm:$0xff]  ;;  %5322 = vmatpush1.bf16.msra.mxu1 %v11392_v39  ;;  %v12952_v39 = vld [vmem:[#allocation3 + $0x28] sm:$0xff] }
  0xeb   :  { %v486_v41 = vld [vmem:[#allocation6 + $0xac0] sm:$0xff]  ;;  %v11401_v44 = vcombine.high %v606_v36, %v610_v37  ;;  %5282 = vmatprep.subr.bf16.mxu0 %v11273_v40  ;;  %v11400_v47 = vcombine.low %v606_v36, %v610_v37  ;;  %v12950_v37 = vld [vmem:[#allocation3 + $0x20] sm:$0xff]  ;;  %v12956_v40 = vcombine.low %v12930_v19, %v12930_v19 }
  0xec   :  { %v490_v42 = vld [vmem:[#allocation6 + $0xae0] sm:$0xff]  ;;  %5283 = vmatpush1.bf16.msra.mxu0 %v11272_v46  ;;  %v12964_v19 = vcombine.high %v12950_v37, %v12950_v37 }
  0xed   :  { %v614_v43 = vld [vmem:[#allocation6 + $0xec0] sm:$0xff]  ;;  %v11281_v48 = vcombine.high %v486_v41, %v490_v42  ;;  %5323 = vmatprep.subr.bf16.mxu1 %v11401_v44  ;;  %v11280_v56 = vcombine.low %v486_v41, %v490_v42  ;;  %v12960_v41 = vcombine.low %v12936_v22, %v12936_v22  ;;  %v12969_v22 = vcombine.high %v12952_v39, %v12952_v39 }
  0xee   :  { %v618_v45 = vld [vmem:[#allocation6 + $0xee0] sm:$0xff]  ;;  %5324 = vmatpush1.bf16.msra.mxu1 %v11400_v47 }
  0xef   :  { %v494_v49 = vld [vmem:[#allocation6 + $0xb00] sm:$0xff]  ;;  %v11409_v52 = vcombine.high %v614_v43, %v618_v45  ;;  %5284 = vmatprep.subr.bf16.mxu0 %v11281_v48  ;;  %v11408_v57 = vcombine.low %v614_v43, %v618_v45 }
  0xf0   :  { %v498_v50 = vld [vmem:[#allocation6 + $0xb20] sm:$0xff]  ;;  %5285 = vmatpush1.bf16.msra.mxu0 %v11280_v56 }
  0xf1   :  { %v622_v51 = vld [vmem:[#allocation6 + $0xf00] sm:$0xff]  ;;  %v11289_v60 = vcombine.high %v494_v49, %v498_v50  ;;  %5325 = vmatprep.subr.bf16.mxu1 %v11409_v52  ;;  %v11288_v2 = vcombine.low %v494_v49, %v498_v50 }
  0xf2   :  { %v626_v55 = vld [vmem:[#allocation6 + $0xf20] sm:$0xff]  ;;  %5326 = vmatpush1.bf16.msra.mxu1 %v11408_v57 }
  0xf3   :  { %v502_v61 = vld [vmem:[#allocation6 + $0xb40] sm:$0xff]  ;;  %v11417_v0 = vcombine.high %v622_v51, %v626_v55  ;;  %5286 = vmatprep.subr.bf16.mxu0 %v11289_v60  ;;  %v11416_v3 = vcombine.low %v622_v51, %v626_v55 }
  0xf4   :  { %v506_v62 = vld [vmem:[#allocation6 + $0xb60] sm:$0xff]  ;;  %5287 = vmatpush1.bf16.msra.mxu0 %v11288_v2 }
  0xf5   :  { %v630_v63 = vld [vmem:[#allocation6 + $0xf40] sm:$0xff]  ;;  %v11297_v4 = vcombine.high %v502_v61, %v506_v62  ;;  %5327 = vmatprep.subr.bf16.mxu1 %v11417_v0  ;;  %v11296_v10 = vcombine.low %v502_v61, %v506_v62 }
  0xf6   :  { %v634_v1 = vld [vmem:[#allocation6 + $0xf60] sm:$0xff]  ;;  %5328 = vmatpush1.bf16.msra.mxu1 %v11416_v3 }
  0xf7   :  { %v510_v5 = vld [vmem:[#allocation6 + $0xb80] sm:$0xff]  ;;  %v11425_v8 = vcombine.high %v630_v63, %v634_v1  ;;  %5288 = vmatprep.subr.bf16.mxu0 %v11297_v4  ;;  %v11424_v11 = vcombine.low %v630_v63, %v634_v1 }
  0xf8   :  { %v514_v6 = vld [vmem:[#allocation6 + $0xba0] sm:$0xff]  ;;  %5289 = vmatpush1.bf16.msra.mxu0 %v11296_v10 }
  0xf9   :  { %v638_v7 = vld [vmem:[#allocation6 + $0xf80] sm:$0xff]  ;;  %v11305_v12 = vcombine.high %v510_v5, %v514_v6  ;;  %5329 = vmatprep.subr.bf16.mxu1 %v11425_v8  ;;  %v11304_v21 = vcombine.low %v510_v5, %v514_v6 }
  0xfa   :  { %v642_v9 = vld [vmem:[#allocation6 + $0xfa0] sm:$0xff]  ;;  %5330 = vmatpush1.bf16.msra.mxu1 %v11424_v11 }
  0xfb   :  { %v518_v13 = vld [vmem:[#allocation6 + $0xbc0] sm:$0xff]  ;;  %v11433_v17 = vcombine.high %v638_v7, %v642_v9  ;;  %5290 = vmatprep.subr.bf16.mxu0 %v11305_v12  ;;  %v11432_v23 = vcombine.low %v638_v7, %v642_v9 }
  0xfc   :  { %v522_v14 = vld [vmem:[#allocation6 + $0xbe0] sm:$0xff]  ;;  %5291 = vmatpush1.bf16.msra.mxu0 %v11304_v21 }
  0xfd   :  { %v646_v15 = vld [vmem:[#allocation6 + $0xfc0] sm:$0xff]  ;;  %v11313_v24 = vcombine.high %v518_v13, %v522_v14  ;;  %5331 = vmatprep.subr.bf16.mxu1 %v11433_v17  ;;  %v11312_v30 = vcombine.low %v518_v13, %v522_v14 }
  0xfe   :  { %v650_v18 = vld [vmem:[#allocation6 + $0xfe0] sm:$0xff]  ;;  %5332 = vmatpush1.bf16.msra.mxu1 %v11432_v23 }
  0xff   :  { %v654_v25 = vld [vmem:[#allocation6 + $0x1000] sm:$0xff]  ;;  %v11441_v27 = vcombine.high %v646_v15, %v650_v18  ;;  %5292 = vmatprep.subr.bf16.mxu0 %v11313_v24  ;;  %v11440_v33 = vcombine.low %v646_v15, %v650_v18 }
 0x100   :  { %v658_v53 = vld [vmem:[#allocation6 + $0x1020] sm:$0xff]  ;;  %5293 = vmatpush1.bf16.msra.mxu0 %v11312_v30 }
 0x101   :  { %v782_v26 = vld [vmem:[#allocation6 + $0x1400] sm:$0xff]  ;;  %v11449_v34 = vcombine.high %v654_v25, %v658_v53  ;;  %5333 = vmatprep.subr.bf16.mxu1 %v11441_v27  ;;  %v11448_v42 = vcombine.low %v654_v25, %v658_v53 }
 0x102   :  { %v786_v54 = vld [vmem:[#allocation6 + $0x1420] sm:$0xff]  ;;  %5334 = vmatpush1.bf16.msra.mxu1 %v11440_v33 }
 0x103   :  { %v662_v31 = vld [vmem:[#allocation6 + $0x1040] sm:$0xff]  ;;  %v11577_v38 = vcombine.high %v782_v26, %v786_v54  ;;  %5344 = vmatprep.subr.bf16.mxu0 %v11449_v34  ;;  %v11576_v43 = vcombine.low %v782_v26, %v786_v54  ;;  %5295 = vmatmul.mubr.bf16.vlgmr.msra.gmra.mrb[4].mxu0 %v12956_v40 }
 0x104   :  { %v666_v32 = vld [vmem:[#allocation6 + $0x1060] sm:$0xff]  ;;  %5345 = vmatpush1.bf16.msra.mxu0 %v11448_v42  ;;  %5376 = vmatprep.mubr.bf16.mxu0 %v12964_v19 }
 0x105   :  { %v790_v35 = vld [vmem:[#allocation6 + $0x1440] sm:$0xff]  ;;  %v11457_v44 = vcombine.high %v662_v31, %v666_v32  ;;  %5385 = vmatprep.subr.bf16.mxu1 %v11577_v38  ;;  %5336 = vmatmul.mubr.bf16.vlgmr.msra.gmra.mrb[4].mxu1 %v12960_v41  ;;  %v11456_v50 = vcombine.low %v662_v31, %v666_v32 }
 0x106   :  { %v794_v36 = vld [vmem:[#allocation6 + $0x1460] sm:$0xff]  ;;  %5386 = vmatpush1.bf16.msra.mxu1 %v11576_v43  ;;  %5417 = vmatprep.mubr.bf16.mxu1 %v12969_v22 }
 0x107   :  { %v670_v45 = vld [vmem:[#allocation6 + $0x1080] sm:$0xff]  ;;  %v11585_v48 = vcombine.high %v790_v35, %v794_v36  ;;  %5346 = vmatprep.subr.bf16.mxu0 %v11457_v44  ;;  %v11584_v51 = vcombine.low %v790_v35, %v794_v36 }
 0x108   :  { %v674_v46 = vld [vmem:[#allocation6 + $0x10a0] sm:$0xff]  ;;  %5347 = vmatpush1.bf16.msra.mxu0 %v11456_v50 }
 0x109   :  { %v798_v47 = vld [vmem:[#allocation6 + $0x1480] sm:$0xff]  ;;  %v11465_v52 = vcombine.high %v670_v45, %v674_v46  ;;  %5387 = vmatprep.subr.bf16.mxu1 %v11585_v48  ;;  %v11464_v62 = vcombine.low %v670_v45, %v674_v46 }
 0x10a   :  { %v802_v49 = vld [vmem:[#allocation6 + $0x14a0] sm:$0xff]  ;;  %5388 = vmatpush1.bf16.msra.mxu1 %v11584_v51 }
 0x10b   :  { %v11593_v55 = vcombine.high %v798_v47, %v802_v49  ;;  %v678_v56 = vld [vmem:[#allocation6 + $0x10c0] sm:$0xff]  ;;  %5348 = vmatprep.subr.bf16.mxu0 %v11465_v52  ;;  %v11592_v63 = vcombine.low %v798_v47, %v802_v49 }
 0x10c   :  { %v682_v57 = vld [vmem:[#allocation6 + $0x10e0] sm:$0xff]  ;;  %5349 = vmatpush1.bf16.msra.mxu0 %v11464_v62 }
 0x10d   :  { %v806_v60 = vld [vmem:[#allocation6 + $0x14c0] sm:$0xff]  ;;  %v11473_v0 = vcombine.high %v678_v56, %v682_v57  ;;  %5389 = vmatprep.subr.bf16.mxu1 %v11593_v55  ;;  %v11472_v6 = vcombine.low %v678_v56, %v682_v57 }
 0x10e   :  { %v810_v61 = vld [vmem:[#allocation6 + $0x14e0] sm:$0xff]  ;;  %5390 = vmatpush1.bf16.msra.mxu1 %v11592_v63 }
 0x10f   :  { %v11601_v1 = vcombine.high %v806_v60, %v810_v61  ;;  %v686_v2 = vld [vmem:[#allocation6 + $0x1100] sm:$0xff]  ;;  %5350 = vmatprep.subr.bf16.mxu0 %v11473_v0  ;;  %v11600_v7 = vcombine.low %v806_v60, %v810_v61 }
 0x110   :  { %v690_v3 = vld [vmem:[#allocation6 + $0x1120] sm:$0xff]  ;;  %5351 = vmatpush1.bf16.msra.mxu0 %v11472_v6 }
 0x111   :  { %v814_v4 = vld [vmem:[#allocation6 + $0x1500] sm:$0xff]  ;;  %v11481_v8 = vcombine.high %v686_v2, %v690_v3  ;;  %5391 = vmatprep.subr.bf16.mxu1 %v11601_v1  ;;  %v11480_v14 = vcombine.low %v686_v2, %v690_v3 }
 0x112   :  { %v818_v5 = vld [vmem:[#allocation6 + $0x1520] sm:$0xff]  ;;  %5392 = vmatpush1.bf16.msra.mxu1 %v11600_v7 }
 0x113   :  { %v11609_v9 = vcombine.high %v814_v4, %v818_v5  ;;  %v694_v10 = vld [vmem:[#allocation6 + $0x1140] sm:$0xff]  ;;  %5352 = vmatprep.subr.bf16.mxu0 %v11481_v8  ;;  %v11608_v15 = vcombine.low %v814_v4, %v818_v5 }
 0x114   :  { %v698_v11 = vld [vmem:[#allocation6 + $0x1160] sm:$0xff]  ;;  %5353 = vmatpush1.bf16.msra.mxu0 %v11480_v14 }
 0x115   :  { %v822_v12 = vld [vmem:[#allocation6 + $0x1540] sm:$0xff]  ;;  %v11489_v17 = vcombine.high %v694_v10, %v698_v11  ;;  %5393 = vmatprep.subr.bf16.mxu1 %v11609_v9  ;;  %v11488_v53 = vcombine.low %v694_v10, %v698_v11 }
 0x116   :  { %v826_v13 = vld [vmem:[#allocation6 + $0x1560] sm:$0xff]  ;;  %5394 = vmatpush1.bf16.msra.mxu1 %v11608_v15 }
 0x117   :  { %v11617_v18 = vcombine.high %v822_v12, %v826_v13  ;;  %v702_v21 = vld [vmem:[#allocation6 + $0x1180] sm:$0xff]  ;;  %5354 = vmatprep.subr.bf16.mxu0 %v11489_v17  ;;  %v11616_v26 = vcombine.low %v822_v12, %v826_v13 }
 0x118   :  { %v706_v23 = vld [vmem:[#allocation6 + $0x11a0] sm:$0xff]  ;;  %5355 = vmatpush1.bf16.msra.mxu0 %v11488_v53 }
 0x119   :  { %v830_v24 = vld [vmem:[#allocation6 + $0x1580] sm:$0xff]  ;;  %v11497_v27 = vcombine.high %v702_v21, %v706_v23  ;;  %5395 = vmatprep.subr.bf16.mxu1 %v11617_v18  ;;  %v11496_v34 = vcombine.low %v702_v21, %v706_v23 }
 0x11a   :  { %v834_v25 = vld [vmem:[#allocation6 + $0x15a0] sm:$0xff]  ;;  %5396 = vmatpush1.bf16.msra.mxu1 %v11616_v26 }
 0x11b   :  { %v11625_v54 = vcombine.high %v830_v24, %v834_v25  ;;  %v710_v30 = vld [vmem:[#allocation6 + $0x11c0] sm:$0xff]  ;;  %5356 = vmatprep.subr.bf16.mxu0 %v11497_v27  ;;  %v11624_v35 = vcombine.low %v830_v24, %v834_v25 }
 0x11c   :  { %v714_v31 = vld [vmem:[#allocation6 + $0x11e0] sm:$0xff]  ;;  %5357 = vmatpush1.bf16.msra.mxu0 %v11496_v34 }
 0x11d   :  { %v838_v32 = vld [vmem:[#allocation6 + $0x15c0] sm:$0xff]  ;;  %v11505_v36 = vcombine.high %v710_v30, %v714_v31  ;;  %5397 = vmatprep.subr.bf16.mxu1 %v11625_v54  ;;  %v11504_v46 = vcombine.low %v710_v30, %v714_v31 }
 0x11e   :  { %v842_v33 = vld [vmem:[#allocation6 + $0x15e0] sm:$0xff]  ;;  %5398 = vmatpush1.bf16.msra.mxu1 %v11624_v35 }
 0x11f   :  { %v11633_v38 = vcombine.high %v838_v32, %v842_v33  ;;  %v718_v42 = vld [vmem:[#allocation6 + $0x1200] sm:$0xff]  ;;  %5358 = vmatprep.subr.bf16.mxu0 %v11505_v36  ;;  %v11632_v47 = vcombine.low %v838_v32, %v842_v33 }
 0x120   :  { %v722_v43 = vld [vmem:[#allocation6 + $0x1220] sm:$0xff]  ;;  %5359 = vmatpush1.bf16.msra.mxu0 %v11504_v46 }
 0x121   :  { %v846_v44 = vld [vmem:[#allocation6 + $0x1600] sm:$0xff]  ;;  %v11513_v48 = vcombine.high %v718_v42, %v722_v43  ;;  %5399 = vmatprep.subr.bf16.mxu1 %v11633_v38  ;;  %v11512_v56 = vcombine.low %v718_v42, %v722_v43 }
 0x122   :  { %v850_v45 = vld [vmem:[#allocation6 + $0x1620] sm:$0xff]  ;;  %5400 = vmatpush1.bf16.msra.mxu1 %v11632_v47 }
 0x123   :  { %v11641_v49 = vcombine.high %v846_v44, %v850_v45  ;;  %v726_v50 = vld [vmem:[#allocation6 + $0x1240] sm:$0xff]  ;;  %5360 = vmatprep.subr.bf16.mxu0 %v11513_v48  ;;  %v11640_v57 = vcombine.low %v846_v44, %v850_v45 }
 0x124   :  { %v730_v51 = vld [vmem:[#allocation6 + $0x1260] sm:$0xff]  ;;  %5361 = vmatpush1.bf16.msra.mxu0 %v11512_v56 }
 0x125   :  { %v854_v52 = vld [vmem:[#allocation6 + $0x1640] sm:$0xff]  ;;  %v11521_v60 = vcombine.high %v726_v50, %v730_v51  ;;  %5401 = vmatprep.subr.bf16.mxu1 %v11641_v49  ;;  %v11520_v2 = vcombine.low %v726_v50, %v730_v51 }
 0x126   :  { %v858_v55 = vld [vmem:[#allocation6 + $0x1660] sm:$0xff]  ;;  %5402 = vmatpush1.bf16.msra.mxu1 %v11640_v57 }
 0x127   :  { %v11649_v61 = vcombine.high %v854_v52, %v858_v55  ;;  %v734_v62 = vld [vmem:[#allocation6 + $0x1280] sm:$0xff]  ;;  %5362 = vmatprep.subr.bf16.mxu0 %v11521_v60  ;;  %v11648_v3 = vcombine.low %v854_v52, %v858_v55  ;;  %v143_v60 = vld [vmem:[#allocation6 + $0x8] sm:$0xff] }
 0x128   :  { %v738_v63 = vld [vmem:[#allocation6 + $0x12a0] sm:$0xff]  ;;  %5363 = vmatpush1.bf16.msra.mxu0 %v11520_v2 }
 0x129   :  { %v862_v0 = vld [vmem:[#allocation6 + $0x1680] sm:$0xff]  ;;  %v11529_v4 = vcombine.high %v734_v62, %v738_v63  ;;  %5403 = vmatprep.subr.bf16.mxu1 %v11649_v61  ;;  %v11528_v10 = vcombine.low %v734_v62, %v738_v63  ;;  %v147_v61 = vld [vmem:[#allocation6 + $0x28] sm:$0xff] }
 0x12a   :  { %v866_v1 = vld [vmem:[#allocation6 + $0x16a0] sm:$0xff]  ;;  %5404 = vmatpush1.bf16.msra.mxu1 %v11648_v3 }
 0x12b   :  { %v11657_v5 = vcombine.high %v862_v0, %v866_v1  ;;  %v742_v6 = vld [vmem:[#allocation6 + $0x12c0] sm:$0xff]  ;;  %5364 = vmatprep.subr.bf16.mxu0 %v11529_v4  ;;  %v11656_v11 = vcombine.low %v862_v0, %v866_v1  ;;  %v10939_v1 = vcombine.high %v143_v60, %v147_v61  ;;  %v12976_v4 = vcombine.low %v12950_v37, %v12950_v37  ;;  %v159_v37 = vld [vmem:[#allocation6 + $0x88] sm:$0xff] }
 0x12c   :  { %v746_v7 = vld [vmem:[#allocation6 + $0x12e0] sm:$0xff]  ;;  %5365 = vmatpush1.bf16.msra.mxu0 %v11528_v10 }
 0x12d   :  { %v870_v8 = vld [vmem:[#allocation6 + $0x16c0] sm:$0xff]  ;;  %v11537_v12 = vcombine.high %v742_v6, %v746_v7  ;;  %5405 = vmatprep.subr.bf16.mxu1 %v11657_v5  ;;  %v11536_v21 = vcombine.low %v742_v6, %v746_v7  ;;  %v151_v5 = vld [vmem:[#allocation6 + $0x48] sm:$0xff]  ;;  %v12980_v7 = vcombine.low %v12952_v39, %v12952_v39 }
 0x12e   :  { %v874_v9 = vld [vmem:[#allocation6 + $0x16e0] sm:$0xff]  ;;  %5406 = vmatpush1.bf16.msra.mxu1 %v11656_v11  ;;  %v155_v6 = vld [vmem:[#allocation6 + $0x68] sm:$0xff] }
 0x12f   :  { %v11665_v13 = vcombine.high %v870_v8, %v874_v9  ;;  %v750_v14 = vld [vmem:[#allocation6 + $0x1300] sm:$0xff]  ;;  %5366 = vmatprep.subr.bf16.mxu0 %v11537_v12  ;;  %v11664_v23 = vcombine.low %v870_v8, %v874_v9  ;;  %v10938_v9 = vcombine.low %v143_v60, %v147_v61  ;;  %v10947_v11 = vcombine.high %v151_v5, %v155_v6 }
 0x130   :  { %v754_v15 = vld [vmem:[#allocation6 + $0x1320] sm:$0xff]  ;;  %5367 = vmatpush1.bf16.msra.mxu0 %v11536_v21  ;;  %v10946_v39 = vcombine.low %v151_v5, %v155_v6 }
 0x131   :  { %v878_v17 = vld [vmem:[#allocation6 + $0x1700] sm:$0xff]  ;;  %v11545_v24 = vcombine.high %v750_v14, %v754_v15  ;;  %5407 = vmatprep.subr.bf16.mxu1 %v11665_v13  ;;  %v11544_v30 = vcombine.low %v750_v14, %v754_v15  ;;  %v163_v14 = vld [vmem:[#allocation6 + $0xa8] sm:$0xff] }
 0x132   :  { %v882_v18 = vld [vmem:[#allocation6 + $0x1720] sm:$0xff]  ;;  %5408 = vmatpush1.bf16.msra.mxu1 %v11664_v23 }
 0x133   :  { %v11673_v25 = vcombine.high %v878_v17, %v882_v18  ;;  %v758_v53 = vld [vmem:[#allocation6 + $0x1340] sm:$0xff]  ;;  %5368 = vmatprep.subr.bf16.mxu0 %v11545_v24  ;;  %v11672_v31 = vcombine.low %v878_v17, %v882_v18  ;;  %v10955_v18 = vcombine.high %v159_v37, %v163_v14  ;;  %v12785_v24 = vmov 0  }
 0x134   :  { %v762_v26 = vld [vmem:[#allocation6 + $0x1360] sm:$0xff]  ;;  %5369 = vmatpush1.bf16.msra.mxu0 %v11544_v30 }
 0x135   :  { %v886_v27 = vld [vmem:[#allocation6 + $0x1740] sm:$0xff]  ;;  %v11553_v32 = vcombine.high %v758_v53, %v762_v26  ;;  %5409 = vmatprep.subr.bf16.mxu1 %v11673_v25  ;;  %v11552_v42 = vcombine.low %v758_v53, %v762_v26  ;;  %v167_v25 = vld [vmem:[#allocation6 + $0xc8] sm:$0xff] }
 0x136   :  { %v890_v54 = vld [vmem:[#allocation6 + $0x1760] sm:$0xff]  ;;  %5410 = vmatpush1.bf16.msra.mxu1 %v11672_v31  ;;  %v171_v53 = vld [vmem:[#allocation6 + $0xe8] sm:$0xff] }
 0x137   :  { %v11681_v33 = vcombine.high %v886_v27, %v890_v54  ;;  %v766_v34 = vld [vmem:[#allocation6 + $0x1380] sm:$0xff]  ;;  %5370 = vmatprep.subr.bf16.mxu0 %v11553_v32  ;;  %v11680_v43 = vcombine.low %v886_v27, %v890_v54  ;;  %v10954_v27 = vcombine.low %v159_v37, %v163_v14  ;;  %v10963_v30 = vcombine.high %v167_v25, %v171_v53 }
 0x138   :  { %v770_v35 = vld [vmem:[#allocation6 + $0x13a0] sm:$0xff]  ;;  %5371 = vmatpush1.bf16.msra.mxu0 %v11552_v42 }
 0x139   :  { %v894_v36 = vld [vmem:[#allocation6 + $0x1780] sm:$0xff]  ;;  %v11561_v44 = vcombine.high %v766_v34, %v770_v35  ;;  %5411 = vmatprep.subr.bf16.mxu1 %v11681_v33  ;;  %v11560_v50 = vcombine.low %v766_v34, %v770_v35  ;;  %v175_v33 = vld [vmem:[#allocation6 + $0x108] sm:$0xff] }
 0x13a   :  { %v898_v38 = vld [vmem:[#allocation6 + $0x17a0] sm:$0xff]  ;;  %5412 = vmatpush1.bf16.msra.mxu1 %v11680_v43  ;;  %v179_v34 = vld [vmem:[#allocation6 + $0x128] sm:$0xff] }
 0x13b   :  { %v11689_v45 = vcombine.high %v894_v36, %v898_v38  ;;  %v774_v46 = vld [vmem:[#allocation6 + $0x13c0] sm:$0xff]  ;;  %5372 = vmatprep.subr.bf16.mxu0 %v11561_v44  ;;  %v11688_v51 = vcombine.low %v894_v36, %v898_v38  ;;  %v10962_v36 = vcombine.low %v167_v25, %v171_v53  ;;  %v10971_v42 = vcombine.high %v175_v33, %v179_v34 }
 0x13c   :  { %v778_v47 = vld [vmem:[#allocation6 + $0x13e0] sm:$0xff]  ;;  %5373 = vmatpush1.bf16.msra.mxu0 %v11560_v50 }
 0x13d   :  { %v902_v48 = vld [vmem:[#allocation6 + $0x17c0] sm:$0xff]  ;;  %v11569_v52 = vcombine.high %v774_v46, %v778_v47  ;;  %5413 = vmatprep.subr.bf16.mxu1 %v11689_v45  ;;  %v11568_v62 = vcombine.low %v774_v46, %v778_v47  ;;  %v183_v45 = vld [vmem:[#allocation6 + $0x148] sm:$0xff] }
 0x13e   :  { %v906_v49 = vld [vmem:[#allocation6 + $0x17e0] sm:$0xff]  ;;  %5414 = vmatpush1.bf16.msra.mxu1 %v11688_v51  ;;  %v187_v46 = vld [vmem:[#allocation6 + $0x168] sm:$0xff] }
 0x13f   :  { %v11697_v55 = vcombine.high %v902_v48, %v906_v49  ;;  %v910_v56 = vld [vmem:[#allocation6 + $0x1800] sm:$0xff]  ;;  %5374 = vmatprep.subr.bf16.mxu0 %v11569_v52  ;;  %v11696_v63 = vcombine.low %v902_v48, %v906_v49  ;;  %v10970_v48 = vcombine.low %v175_v33, %v179_v34  ;;  %v10979_v50 = vcombine.high %v183_v45, %v187_v46 }
 0x140   :  { %v914_v57 = vld [vmem:[#allocation6 + $0x1820] sm:$0xff]  ;;  %5375 = vmatpush1.bf16.msra.mxu0 %v11568_v62  ;;  %v10978_v60 = vcombine.low %v183_v45, %v187_v46 }
 0x141   :  { %v11705_v0 = vcombine.high %v910_v56, %v914_v57  ;;  %5415 = vmatprep.subr.bf16.mxu1 %v11697_v55  ;;  %v918_v2 = vld [vmem:[#allocation6 + $0x1840] sm:$0xff]  ;;  %v11704_v8 = vcombine.low %v910_v56, %v914_v57  ;;  %v191_v55 = vld [vmem:[#allocation6 + $0x188] sm:$0xff] }
 0x142   :  { %v922_v3 = vld [vmem:[#allocation6 + $0x1860] sm:$0xff]  ;;  %5416 = vmatpush1.bf16.msra.mxu1 %v11696_v63  ;;  %v195_v56 = vld [vmem:[#allocation6 + $0x1a8] sm:$0xff] }
 0x143   :  { %5426 = vmatprep.subr.bf16.mxu0 %v11705_v0  ;;  %v11713_v10 = vcombine.high %v918_v2, %v922_v3  ;;  %5467 = vmatprep.subr.bf16.mxu1 %v10939_v1  ;;  %v926_v12 = vld [vmem:[#allocation6 + $0x1880] sm:$0xff]  ;;  %v11712_v15 = vcombine.low %v918_v2, %v922_v3  ;;  %v10987_v62 = vcombine.high %v191_v55, %v195_v56  ;;  %v199_v1 = vld [vmem:[#allocation6 + $0x1c8] sm:$0xff] }
 0x144   :  { %v930_v13 = vld [vmem:[#allocation6 + $0x18a0] sm:$0xff]  ;;  %5377 = vmatmul.mubr.bf16.vlgmr.msra.gmra.mrb[8].mxu0 %v12976_v4  ;;  %v203_v2 = vld [vmem:[#allocation6 + $0x1e8] sm:$0xff]  ;;  %v10986_v5 = vcombine.low %v191_v55, %v195_v56 }
 0x145   :  { %5418 = vmatmul.mubr.bf16.vlgmr.msra.gmra.mrb[8].mxu1 %v12980_v7  ;;  %5427 = vmatpush1.bf16.msra.mxu0 %v11704_v8  ;;  %v11721_v17 = vcombine.high %v926_v12, %v930_v13  ;;  %v934_v21 = vld [vmem:[#allocation6 + $0x18c0] sm:$0xff]  ;;  %v11720_v26 = vcombine.low %v926_v12, %v930_v13  ;;  %v10995_v8 = vcombine.high %v199_v1, %v203_v2  ;;  %v211_v12 = vld [vmem:[#allocation6 + $0x228] sm:$0xff] }
 0x146   :  { %5468 = vmatpush1.bf16.msra.mxu1 %v10938_v9  ;;  %5428 = vmatprep.subr.bf16.mxu0 %v11713_v10  ;;  %v938_v23 = vld [vmem:[#allocation6 + $0x18e0] sm:$0xff]  ;;  %v271_v9 = vld [vmem:[#allocation6 + $0x408] sm:$0xff]  ;;  %v10994_v37 = vcombine.low %v199_v1, %v203_v2 }
 0x147   :  { %5469 = vmatprep.subr.bf16.mxu1 %v10947_v11  ;;  %5458 = vmatprep.mubr.bf16.mxu0 %v12785_v24  ;;  %v11729_v54 = vcombine.high %v934_v21, %v938_v23  ;;  %v942_v31 = vld [vmem:[#allocation6 + $0x1900] sm:$0xff]  ;;  %v11728_v35 = vcombine.low %v934_v21, %v938_v23  ;;  %v275_v10 = vld [vmem:[#allocation6 + $0x428] sm:$0xff] }
 0x148   :  { %5499 = vmatprep.mubr.bf16.mxu1 %v12918_v58  ;;  %v946_v32 = vld [vmem:[#allocation6 + $0x1920] sm:$0xff]  ;;  %v207_v11 = vld [vmem:[#allocation6 + $0x208] sm:$0xff]  ;;  %v11067_v14 = vcombine.high %v271_v9, %v275_v10  ;;  %v11066_v25 = vcombine.low %v271_v9, %v275_v10 }
 0x149   :  { %5429 = vmatpush1.bf16.msra.mxu0 %v11712_v15  ;;  %v11737_v38 = vcombine.high %v942_v31, %v946_v32  ;;  %v950_v43 = vld [vmem:[#allocation6 + $0x1940] sm:$0xff]  ;;  %v11736_v47 = vcombine.low %v942_v31, %v946_v32  ;;  %v11003_v15 = vcombine.high %v207_v11, %v211_v12  ;;  %v215_v21 = vld [vmem:[#allocation6 + $0x248] sm:$0xff]  ;;  %v11002_v53 = vcombine.low %v207_v11, %v211_v12 }
 0x14a   :  { %5470 = vmatpush1.bf16.msra.mxu1 %v10946_v39  ;;  %5430 = vmatprep.subr.bf16.mxu0 %v11721_v17  ;;  %v954_v44 = vld [vmem:[#allocation6 + $0x1960] sm:$0xff]  ;;  %v279_v39 = vld [vmem:[#allocation6 + $0x448] sm:$0xff] }
 0x14b   :  { %5471 = vmatprep.subr.bf16.mxu1 %v10955_v18  ;;  %v11745_v49 = vcombine.high %v950_v43, %v954_v44  ;;  %v958_v51 = vld [vmem:[#allocation6 + $0x1980] sm:$0xff]  ;;  %v11744_v57 = vcombine.low %v950_v43, %v954_v44  ;;  %v283_v17 = vld [vmem:[#allocation6 + $0x468] sm:$0xff]  ;;  %v12515_v18 = vld [vmem:[#allocation3 + $0x30] ss:$0 sps:$4 sm:$0xff]  }
 0x14c   :  { %v962_v52 = vld [vmem:[#allocation6 + $0x19a0] sm:$0xff]  ;;  %v219_v23 = vld [vmem:[#allocation6 + $0x268] sm:$0xff]  ;;  %v11074_v33 = vcombine.low %v279_v39, %v283_v17 }
 0x14d   :  { %5431 = vmatpush1.bf16.msra.mxu0 %v11720_v26  ;;  %v11753_v61 = vcombine.high %v958_v51, %v962_v52  ;;  %v966_v63 = vld [vmem:[#allocation6 + $0x19c0] sm:$0xff]  ;;  %v11752_v3 = vcombine.low %v958_v51, %v962_v52  ;;  %v11075_v26 = vcombine.high %v279_v39, %v283_v17  ;;  %v223_v31 = vld [vmem:[#allocation6 + $0x288] sm:$0xff]  ;;  %v11010_v34 = vcombine.low %v215_v21, %v219_v23 }
 0x14e   :  { %5472 = vmatpush1.bf16.msra.mxu1 %v10954_v27  ;;  %5432 = vmatprep.subr.bf16.mxu0 %v11729_v54  ;;  %v970_v0 = vld [vmem:[#allocation6 + $0x19e0] sm:$0xff]  ;;  %v11011_v27 = vcombine.high %v215_v21, %v219_v23  ;;  %v287_v54 = vld [vmem:[#allocation6 + $0x488] sm:$0xff] }
 0x14f   :  { %5473 = vmatprep.subr.bf16.mxu1 %v10963_v30  ;;  %v11761_v6 = vcombine.high %v966_v63, %v970_v0  ;;  %v11760_v13 = vcombine.low %v966_v63, %v970_v0  ;;  %v291_v30 = vld [vmem:[#allocation6 + $0x4a8] sm:$0xff] }
 0x150   :  { %v227_v32 = vld [vmem:[#allocation6 + $0x2a8] sm:$0xff]  ;;  %v11082_v45 = vcombine.low %v287_v54, %v291_v30 }
 0x151   :  { %5433 = vmatpush1.bf16.msra.mxu0 %v11728_v35  ;;  %v11083_v35 = vcombine.high %v287_v54, %v291_v30  ;;  %v231_v43 = vld [vmem:[#allocation6 + $0x2c8] sm:$0xff]  ;;  %v11018_v46 = vcombine.low %v223_v31, %v227_v32 }
 0x152   :  { %5474 = vmatpush1.bf16.msra.mxu1 %v10962_v36  ;;  %5434 = vmatprep.subr.bf16.mxu0 %v11737_v38  ;;  %v11019_v36 = vcombine.high %v223_v31, %v227_v32  ;;  %v295_v38 = vld [vmem:[#allocation6 + $0x4c8] sm:$0xff] }
 0x153   :  { %5475 = vmatprep.subr.bf16.mxu1 %v10971_v42  ;;  %v299_v42 = vld [vmem:[#allocation6 + $0x4e8] sm:$0xff] }
 0x154   :  { %v235_v44 = vld [vmem:[#allocation6 + $0x2e8] sm:$0xff]  ;;  %v11090_v55 = vcombine.low %v295_v38, %v299_v42 }
 0x155   :  { %5435 = vmatpush1.bf16.msra.mxu0 %v11736_v47  ;;  %v11091_v47 = vcombine.high %v295_v38, %v299_v42  ;;  %v239_v51 = vld [vmem:[#allocation6 + $0x308] sm:$0xff]  ;;  %v11026_v56 = vcombine.low %v231_v43, %v235_v44 }
 0x156   :  { %5476 = vmatpush1.bf16.msra.mxu1 %v10970_v48  ;;  %5436 = vmatprep.subr.bf16.mxu0 %v11745_v49  ;;  %v11027_v48 = vcombine.high %v231_v43, %v235_v44  ;;  %v303_v49 = vld [vmem:[#allocation6 + $0x508] sm:$0xff] }
 0x157   :  { %5477 = vmatprep.subr.bf16.mxu1 %v10979_v50  ;;  %v307_v50 = vld [vmem:[#allocation6 + $0x528] sm:$0xff] }
 0x158   :  { %v243_v52 = vld [vmem:[#allocation6 + $0x328] sm:$0xff]  ;;  %v11098_v1 = vcombine.low %v303_v49, %v307_v50 }
 0x159   :  { %5437 = vmatpush1.bf16.msra.mxu0 %v11744_v57  ;;  %v11099_v57 = vcombine.high %v303_v49, %v307_v50  ;;  %v247_v63 = vld [vmem:[#allocation6 + $0x348] sm:$0xff]  ;;  %v11034_v2 = vcombine.low %v239_v51, %v243_v52 }
 0x15a   :  { %5478 = vmatpush1.bf16.msra.mxu1 %v10978_v60  ;;  %5438 = vmatprep.subr.bf16.mxu0 %v11753_v61  ;;  %v11035_v60 = vcombine.high %v239_v51, %v243_v52  ;;  %v311_v61 = vld [vmem:[#allocation6 + $0x548] sm:$0xff] }
 0x15b   :  { %5479 = vmatprep.subr.bf16.mxu1 %v10987_v62  ;;  %v315_v62 = vld [vmem:[#allocation6 + $0x568] sm:$0xff] }
 0x15c   :  { %v251_v0 = vld [vmem:[#allocation6 + $0x368] sm:$0xff]  ;;  %v11106_v11 = vcombine.low %v311_v61, %v315_v62 }
 0x15d   :  { %5439 = vmatpush1.bf16.msra.mxu0 %v11752_v3  ;;  %v11107_v3 = vcombine.high %v311_v61, %v315_v62  ;;  %v255_v9 = vld [vmem:[#allocation6 + $0x388] sm:$0xff]  ;;  %v11042_v12 = vcombine.low %v247_v63, %v251_v0 }
 0x15e   :  { %5480 = vmatpush1.bf16.msra.mxu1 %v10986_v5  ;;  %5440 = vmatprep.subr.bf16.mxu0 %v11761_v6  ;;  %v11043_v5 = vcombine.high %v247_v63, %v251_v0  ;;  %v319_v6 = vld [vmem:[#allocation6 + $0x588] sm:$0xff] }
 0x15f   :  { %5481 = vmatprep.subr.bf16.mxu1 %v10995_v8  ;;  %v323_v8 = vld [vmem:[#allocation6 + $0x5a8] sm:$0xff] }
 0x160   :  { %v259_v10 = vld [vmem:[#allocation6 + $0x3a8] sm:$0xff] }
 0x161   :  { %5441 = vmatpush1.bf16.msra.mxu0 %v11760_v13  ;;  %v11115_v13 = vcombine.high %v319_v6, %v323_v8  ;;  %v263_v39 = vld [vmem:[#allocation6 + $0x3c8] sm:$0xff]  ;;  %v11050_v21 = vcombine.low %v255_v9, %v259_v10 }
 0x162   :  { %5482 = vmatpush1.bf16.msra.mxu1 %v10994_v37  ;;  %5508 = vmatprep.subr.bf16.mxu0 %v11067_v14  ;;  %v11051_v37 = vcombine.high %v255_v9, %v259_v10  ;;  %v327_v14 = vld [vmem:[#allocation6 + $0x5c8] sm:$0xff] }
 0x163   :  { %5483 = vmatprep.subr.bf16.mxu1 %v11003_v15  ;;  %v331_v15 = vld [vmem:[#allocation6 + $0x5e8] sm:$0xff] }
 0x164   :  { %5459 = vmatmul.mubr.bf16.vlgmr.msra.gmra.mrb[12].mxu0 %v12515_v18  ;;  %v267_v17 = vld [vmem:[#allocation6 + $0x3e8] sm:$0xff]  ;;  %v11114_v18 = vcombine.low %v319_v6, %v323_v8  ;;  %v11123_v23 = vcombine.high %v327_v14, %v331_v15  ;;  %v11122_v30 = vcombine.low %v327_v14, %v331_v15 }
 0x165   :  { %5509 = vmatpush1.bf16.msra.mxu0 %v11066_v25  ;;  %5540 = vmatprep.mubr.bf16.mxu0 %v12922_v59  ;;  %v11059_v25 = vcombine.high %v263_v39, %v267_v17  ;;  %v403_v54 = vld [vmem:[#allocation6 + $0x828] sm:$0xff]  ;;  %v11058_v31 = vcombine.low %v263_v39, %v267_v17 }
 0x166   :  { %5484 = vmatpush1.bf16.msra.mxu1 %v11002_v53  ;;  %5510 = vmatprep.subr.bf16.mxu0 %v11075_v26  ;;  %v335_v53 = vld [vmem:[#allocation6 + $0x608] sm:$0xff] }
 0x167   :  { %5485 = vmatprep.subr.bf16.mxu1 %v11011_v27  ;;  %v339_v26 = vld [vmem:[#allocation6 + $0x628] sm:$0xff] }
 0x168   :  { %v399_v27 = vld [vmem:[#allocation6 + $0x808] sm:$0xff]  ;;  %v11131_v32 = vcombine.high %v335_v53, %v339_v26  ;;  %v11130_v42 = vcombine.low %v335_v53, %v339_v26 }
 0x169   :  { %5511 = vmatpush1.bf16.msra.mxu0 %v11074_v33  ;;  %v11195_v33 = vcombine.high %v399_v27, %v403_v54  ;;  %v411_v38 = vld [vmem:[#allocation6 + $0x868] sm:$0xff]  ;;  %v11194_v43 = vcombine.low %v399_v27, %v403_v54 }
 0x16a   :  { %5486 = vmatpush1.bf16.msra.mxu1 %v11010_v34  ;;  %5512 = vmatprep.subr.bf16.mxu0 %v11083_v35  ;;  %v343_v34 = vld [vmem:[#allocation6 + $0x648] sm:$0xff] }
 0x16b   :  { %5487 = vmatprep.subr.bf16.mxu1 %v11019_v36  ;;  %v347_v35 = vld [vmem:[#allocation6 + $0x668] sm:$0xff] }
 0x16c   :  { %v407_v36 = vld [vmem:[#allocation6 + $0x848] sm:$0xff]  ;;  %v11139_v44 = vcombine.high %v343_v34, %v347_v35  ;;  %v11138_v50 = vcombine.low %v343_v34, %v347_v35 }
 0x16d   :  { %5513 = vmatpush1.bf16.msra.mxu0 %v11082_v45  ;;  %v11203_v45 = vcombine.high %v407_v36, %v411_v38  ;;  %v419_v49 = vld [vmem:[#allocation6 + $0x8a8] sm:$0xff]  ;;  %v11202_v51 = vcombine.low %v407_v36, %v411_v38 }
 0x16e   :  { %5488 = vmatpush1.bf16.msra.mxu1 %v11018_v46  ;;  %5514 = vmatprep.subr.bf16.mxu0 %v11091_v47  ;;  %v351_v46 = vld [vmem:[#allocation6 + $0x688] sm:$0xff] }
 0x16f   :  { %5489 = vmatprep.subr.bf16.mxu1 %v11027_v48  ;;  %v355_v47 = vld [vmem:[#allocation6 + $0x6a8] sm:$0xff] }
 0x170   :  { %v415_v48 = vld [vmem:[#allocation6 + $0x888] sm:$0xff]  ;;  %v11147_v52 = vcombine.high %v351_v46, %v355_v47  ;;  %v11146_v62 = vcombine.low %v351_v46, %v355_v47 }
 0x171   :  { %5515 = vmatpush1.bf16.msra.mxu0 %v11090_v55  ;;  %v11211_v55 = vcombine.high %v415_v48, %v419_v49  ;;  %v427_v61 = vld [vmem:[#allocation6 + $0x8e8] sm:$0xff]  ;;  %v11210_v63 = vcombine.low %v415_v48, %v419_v49 }
 0x172   :  { %5490 = vmatpush1.bf16.msra.mxu1 %v11026_v56  ;;  %5516 = vmatprep.subr.bf16.mxu0 %v11099_v57  ;;  %v359_v56 = vld [vmem:[#allocation6 + $0x6c8] sm:$0xff] }
 0x173   :  { %5491 = vmatprep.subr.bf16.mxu1 %v11035_v60  ;;  %v363_v57 = vld [vmem:[#allocation6 + $0x6e8] sm:$0xff] }
 0x174   :  { %v423_v60 = vld [vmem:[#allocation6 + $0x8c8] sm:$0xff]  ;;  %v11155_v0 = vcombine.high %v359_v56, %v363_v57  ;;  %v11154_v8 = vcombine.low %v359_v56, %v363_v57 }
 0x175   :  { %5517 = vmatpush1.bf16.msra.mxu0 %v11098_v1  ;;  %v11219_v1 = vcombine.high %v423_v60, %v427_v61  ;;  %v435_v6 = vld [vmem:[#allocation6 + $0x928] sm:$0xff]  ;;  %v11218_v9 = vcombine.low %v423_v60, %v427_v61 }
 0x176   :  { %5492 = vmatpush1.bf16.msra.mxu1 %v11034_v2  ;;  %5518 = vmatprep.subr.bf16.mxu0 %v11107_v3  ;;  %v367_v2 = vld [vmem:[#allocation6 + $0x708] sm:$0xff] }
 0x177   :  { %5493 = vmatprep.subr.bf16.mxu1 %v11043_v5  ;;  %v371_v3 = vld [vmem:[#allocation6 + $0x728] sm:$0xff] }
 0x178   :  { %v431_v5 = vld [vmem:[#allocation6 + $0x908] sm:$0xff]  ;;  %v11163_v10 = vcombine.high %v367_v2, %v371_v3  ;;  %v11162_v15 = vcombine.low %v367_v2, %v371_v3 }
 0x179   :  { %5519 = vmatpush1.bf16.msra.mxu0 %v11106_v11  ;;  %v11227_v11 = vcombine.high %v431_v5, %v435_v6  ;;  %v443_v14 = vld [vmem:[#allocation6 + $0x968] sm:$0xff]  ;;  %v11226_v39 = vcombine.low %v431_v5, %v435_v6 }
 0x17a   :  { %5494 = vmatpush1.bf16.msra.mxu1 %v11042_v12  ;;  %5520 = vmatprep.subr.bf16.mxu0 %v11115_v13  ;;  %v375_v12 = vld [vmem:[#allocation6 + $0x748] sm:$0xff] }
 0x17b   :  { %5495 = vmatprep.subr.bf16.mxu1 %v11051_v37  ;;  %v379_v13 = vld [vmem:[#allocation6 + $0x768] sm:$0xff] }
 0x17c   :  { %v439_v37 = vld [vmem:[#allocation6 + $0x948] sm:$0xff]  ;;  %v11171_v17 = vcombine.high %v375_v12, %v379_v13  ;;  %v11170_v26 = vcombine.low %v375_v12, %v379_v13 }
 0x17d   :  { %5521 = vmatpush1.bf16.msra.mxu0 %v11114_v18  ;;  %v11235_v18 = vcombine.high %v439_v37, %v443_v14  ;;  %v451_v53 = vld [vmem:[#allocation6 + $0x9a8] sm:$0xff]  ;;  %v11234_v27 = vcombine.low %v439_v37, %v443_v14 }
 0x17e   :  { %5496 = vmatpush1.bf16.msra.mxu1 %v11050_v21  ;;  %5522 = vmatprep.subr.bf16.mxu0 %v11123_v23  ;;  %v383_v21 = vld [vmem:[#allocation6 + $0x788] sm:$0xff] }
 0x17f   :  { %5497 = vmatprep.subr.bf16.mxu1 %v11059_v25  ;;  %v387_v23 = vld [vmem:[#allocation6 + $0x7a8] sm:$0xff] }
 0x180   :  { %v447_v25 = vld [vmem:[#allocation6 + $0x988] sm:$0xff]  ;;  %v11179_v54 = vcombine.high %v383_v21, %v387_v23 }
 0x181   :  { %5523 = vmatpush1.bf16.msra.mxu0 %v11122_v30  ;;  %v455_v36 = vld [vmem:[#allocation6 + $0x9c8] sm:$0xff]  ;;  %v11242_v49 = vcombine.low %v447_v25, %v451_v53 }
 0x182   :  { %5498 = vmatpush1.bf16.msra.mxu1 %v11058_v31  ;;  %5524 = vmatprep.subr.bf16.mxu0 %v11131_v32  ;;  %v11243_v31 = vcombine.high %v447_v25, %v451_v53  ;;  %v391_v32 = vld [vmem:[#allocation6 + $0x7c8] sm:$0xff] }
 0x183   :  { %5549 = vmatprep.subr.bf16.mxu1 %v11195_v33  ;;  %v395_v33 = vld [vmem:[#allocation6 + $0x7e8] sm:$0xff] }
 0x184   :  { %v459_v38 = vld [vmem:[#allocation6 + $0x9e8] sm:$0xff]  ;;  %v11186_v61 = vcombine.low %v391_v32, %v395_v33 }
 0x185   :  { %5500 = vmatmul.mubr.bf16.vlgmr.msra.gmra.mrb[12].mxu1 %v12928_v16  ;;  %5525 = vmatpush1.bf16.msra.mxu0 %v11130_v42  ;;  %v531_v56 = vld [vmem:[#allocation6 + $0xc28] sm:$0xff] }
 0x186   :  { %5550 = vmatpush1.bf16.msra.mxu1 %v11194_v43  ;;  %5526 = vmatprep.subr.bf16.mxu0 %v11139_v44  ;;  %v463_v57 = vld [vmem:[#allocation6 + $0xa08] sm:$0xff] }
 0x187   :  { %5551 = vmatprep.subr.bf16.mxu1 %v11203_v45  ;;  %5581 = vmatprep.mubr.bf16.mxu1 %v12940_v28  ;;  %v11178_v45 = vcombine.low %v383_v21, %v387_v23  ;;  %v467_v60 = vld [vmem:[#allocation6 + $0xa28] sm:$0xff] }
 0x188   :  { %v539_v2 = vld [vmem:[#allocation6 + $0xc68] sm:$0xff] }
 0x189   :  { %5527 = vmatpush1.bf16.msra.mxu0 %v11138_v50  ;;  %v11187_v50 = vcombine.high %v391_v32, %v395_v33  ;;  %v471_v3 = vld [vmem:[#allocation6 + $0xa48] sm:$0xff] }
 0x18a   :  { %5552 = vmatpush1.bf16.msra.mxu1 %v11202_v51  ;;  %5528 = vmatprep.subr.bf16.mxu0 %v11147_v52  ;;  %v11251_v52 = vcombine.high %v455_v36, %v459_v38  ;;  %v475_v5 = vld [vmem:[#allocation6 + $0xa68] sm:$0xff] }
 0x18b   :  { %5553 = vmatprep.subr.bf16.mxu1 %v11211_v55  ;;  %v527_v55 = vld [vmem:[#allocation6 + $0xc08] sm:$0xff] }
 0x18c   :  { %v11322_v6 = vcombine.low %v527_v55, %v531_v56  ;;  %v547_v12 = vld [vmem:[#allocation6 + $0xca8] sm:$0xff] }
 0x18d   :  { %5529 = vmatpush1.bf16.msra.mxu0 %v11146_v62  ;;  %v11250_v62 = vcombine.low %v455_v36, %v459_v38  ;;  %v479_v13 = vld [vmem:[#allocation6 + $0xa88] sm:$0xff] }
 0x18e   :  { %5554 = vmatpush1.bf16.msra.mxu1 %v11210_v63  ;;  %5530 = vmatprep.subr.bf16.mxu0 %v11155_v0  ;;  %v11323_v63 = vcombine.high %v527_v55, %v531_v56  ;;  %v11259_v0 = vcombine.high %v463_v57, %v467_v60  ;;  %v483_v37 = vld [vmem:[#allocation6 + $0xaa8] sm:$0xff] }
 0x18f   :  { %5555 = vmatprep.subr.bf16.mxu1 %v11219_v1  ;;  %v535_v1 = vld [vmem:[#allocation6 + $0xc48] sm:$0xff] }
 0x190   :  { %v11330_v14 = vcombine.low %v535_v1, %v539_v2  ;;  %v555_v21 = vld [vmem:[#allocation6 + $0xce8] sm:$0xff] }
 0x191   :  { %5531 = vmatpush1.bf16.msra.mxu0 %v11154_v8  ;;  %v11258_v8 = vcombine.low %v463_v57, %v467_v60  ;;  %v487_v23 = vld [vmem:[#allocation6 + $0xac8] sm:$0xff] }
 0x192   :  { %5556 = vmatpush1.bf16.msra.mxu1 %v11218_v9  ;;  %5532 = vmatprep.subr.bf16.mxu0 %v11163_v10  ;;  %v11331_v9 = vcombine.high %v535_v1, %v539_v2  ;;  %v11267_v10 = vcombine.high %v471_v3, %v475_v5  ;;  %v491_v25 = vld [vmem:[#allocation6 + $0xae8] sm:$0xff] }
 0x193   :  { %5557 = vmatprep.subr.bf16.mxu1 %v11227_v11  ;;  %v543_v11 = vld [vmem:[#allocation6 + $0xc88] sm:$0xff] }
 0x194   :  { %v11338_v53 = vcombine.low %v543_v11, %v547_v12  ;;  %v495_v32 = vld [vmem:[#allocation6 + $0xb08] sm:$0xff] }
 0x195   :  { %5533 = vmatpush1.bf16.msra.mxu0 %v11162_v15  ;;  %v5214_v30 = vpop.f32.mrb[0].mxu0  ;;  %v11266_v15 = vcombine.low %v471_v3, %v475_v5  ;;  %v499_v33 = vld [vmem:[#allocation6 + $0xb28] sm:$0xff] }
 0x196   :  { %5558 = vmatpush1.bf16.msra.mxu1 %v11226_v39  ;;  %5534 = vmatprep.subr.bf16.mxu0 %v11171_v17  ;;  %v5216_v35 = vpop.f32.mrb[1].mxu0  ;;  %v11339_v39 = vcombine.high %v543_v11, %v547_v12  ;;  %v11275_v17 = vcombine.high %v479_v13, %v483_v37  ;;  %v11291_v38 = vcombine.high %v495_v32, %v499_v33  ;;  %v579_v55 = vld [vmem:[#allocation6 + $0xda8] sm:$0xff] }
 0x197   :  { %5559 = vmatprep.subr.bf16.mxu1 %v11235_v18  ;;  %v5255_v34 = vpop.f32.mrb[0].mxu1  ;;  %v5218_v44 = vpop.f32.mrb[2].mxu0  ;;  %v551_v18 = vld [vmem:[#allocation6 + $0xcc8] sm:$0xff] }
 0x198   :  { %v12989_v42 = vadd.f32 %v5255_v34, %v5214_v30  ;;  %v5257_v43 = vpop.f32.mrb[1].mxu1  ;;  %v5219_v48 = vpop.f32.mrb[3].mxu0  ;;  %v559_v30 = vld [vmem:[#allocation6 + $0xd08] sm:$0xff]  ;;  %v11346_v34 = vcombine.low %v551_v18, %v555_v21 }
 0x199   :  { %5535 = vmatpush1.bf16.msra.mxu0 %v11170_v26  ;;  %v12991_v46 = vadd.f32 %v5257_v43, %v5216_v35  ;;  %v5259_v47 = vpop.f32.mrb[2].mxu1  ;;  %v11274_v26 = vcombine.low %v479_v13, %v483_v37  ;;  %v11282_v35 = vcombine.low %v487_v23, %v491_v25  ;;  %v567_v43 = vld [vmem:[#allocation6 + $0xd48] sm:$0xff] }
 0x19a   :  { %5560 = vmatpush1.bf16.msra.mxu1 %v11234_v27  ;;  %5536 = vmatprep.subr.bf16.mxu0 %v11179_v54  ;;  %v5260_v51 = vpop.f32.mrb[3].mxu1  ;;  %v11347_v27 = vcombine.high %v551_v18, %v555_v21  ;;  %v11283_v54 = vcombine.high %v487_v23, %v491_v25  ;;  %v571_v44 = vld [vmem:[#allocation6 + $0xd68] sm:$0xff] }
 0x19b   :  { %5561 = vmatprep.subr.bf16.mxu1 %v11243_v31  ;;  %v563_v31 = vld [vmem:[#allocation6 + $0xd28] sm:$0xff]  ;;  %v11362_v60 = vcombine.low %v567_v43, %v571_v44 }
 0x19c   :  { %v11355_v36 = vcombine.high %v559_v30, %v563_v31  ;;  %v507_v47 = vld [vmem:[#allocation6 + $0xb68] sm:$0xff]  ;;  %v11354_v48 = vcombine.low %v559_v30, %v563_v31 }
 0x19d   :  { %5537 = vmatpush1.bf16.msra.mxu0 %v11178_v45  ;;  %v503_v45 = vld [vmem:[#allocation6 + $0xb48] sm:$0xff] }
 0x19e   :  { %5562 = vmatpush1.bf16.msra.mxu1 %v11242_v49  ;;  %5538 = vmatprep.subr.bf16.mxu0 %v11187_v50  ;;  %v11290_v49 = vcombine.low %v495_v32, %v499_v33  ;;  %v11363_v50 = vcombine.high %v567_v43, %v571_v44  ;;  %v11299_v51 = vcombine.high %v503_v45, %v507_v47  ;;  %v511_v56 = vld [vmem:[#allocation6 + $0xb88] sm:$0xff] }
 0x19f   :  { %5563 = vmatprep.subr.bf16.mxu1 %v11251_v52  ;;  %v575_v52 = vld [vmem:[#allocation6 + $0xd88] sm:$0xff] }
 0x1a0   :  { %v515_v57 = vld [vmem:[#allocation6 + $0xba8] sm:$0xff]  ;;  %v11370_v5 = vcombine.low %v575_v52, %v579_v55 }
 0x1a1   :  { %5539 = vmatpush1.bf16.msra.mxu0 %v11186_v61  ;;  %v11298_v61 = vcombine.low %v503_v45, %v507_v47  ;;  %v587_v1 = vld [vmem:[#allocation6 + $0xde8] sm:$0xff] }
 0x1a2   :  { %5564 = vmatpush1.bf16.msra.mxu1 %v11250_v62  ;;  %5590 = vmatprep.subr.bf16.mxu0 %v11323_v63  ;;  %v11371_v62 = vcombine.high %v575_v52, %v579_v55  ;;  %v11307_v63 = vcombine.high %v511_v56, %v515_v57  ;;  %v519_v2 = vld [vmem:[#allocation6 + $0xbc8] sm:$0xff] }
 0x1a3   :  { %5565 = vmatprep.subr.bf16.mxu1 %v11259_v0  ;;  %v583_v0 = vld [vmem:[#allocation6 + $0xdc8] sm:$0xff] }
 0x1a4   :  { %5541 = vmatmul.mubr.bf16.vlgmr.msra.gmra.mrb[16].mxu0 %v12934_v20  ;;  %v523_v3 = vld [vmem:[#allocation6 + $0xbe8] sm:$0xff]  ;;  %v11378_v37 = vcombine.low %v583_v0, %v587_v1 }
 0x1a5   :  { %5591 = vmatpush1.bf16.msra.mxu0 %v11322_v6  ;;  %5622 = vmatprep.mubr.bf16.mxu0 %v12945_v29  ;;  %v11306_v6 = vcombine.low %v511_v56, %v515_v57  ;;  %v595_v11 = vld [vmem:[#allocation6 + $0xe28] sm:$0xff] }
 0x1a6   :  { %5566 = vmatpush1.bf16.msra.mxu1 %v11258_v8  ;;  %5592 = vmatprep.subr.bf16.mxu0 %v11331_v9  ;;  %v11379_v8 = vcombine.high %v583_v0, %v587_v1  ;;  %v11315_v9 = vcombine.high %v519_v2, %v523_v3  ;;  %v655_v12 = vld [vmem:[#allocation6 + $0x1008] sm:$0xff] }
 0x1a7   :  { %5567 = vmatprep.subr.bf16.mxu1 %v11267_v10  ;;  %v591_v10 = vld [vmem:[#allocation6 + $0xe08] sm:$0xff] }
 0x1a8   :  { %v659_v13 = vld [vmem:[#allocation6 + $0x1028] sm:$0xff]  ;;  %v11386_v25 = vcombine.low %v591_v10, %v595_v11 }
 0x1a9   :  { %5593 = vmatpush1.bf16.msra.mxu0 %v11330_v14  ;;  %v11314_v14 = vcombine.low %v519_v2, %v523_v3  ;;  %v603_v18 = vld [vmem:[#allocation6 + $0xe68] sm:$0xff] }
 0x1aa   :  { %5568 = vmatpush1.bf16.msra.mxu1 %v11266_v15  ;;  %5594 = vmatprep.subr.bf16.mxu0 %v11339_v39  ;;  %v11387_v15 = vcombine.high %v591_v10, %v595_v11  ;;  %v11451_v39 = vcombine.high %v655_v12, %v659_v13  ;;  %v663_v21 = vld [vmem:[#allocation6 + $0x1048] sm:$0xff] }
 0x1ab   :  { %5569 = vmatprep.subr.bf16.mxu1 %v11275_v17  ;;  %v599_v17 = vld [vmem:[#allocation6 + $0xe48] sm:$0xff] }
 0x1ac   :  { %v667_v23 = vld [vmem:[#allocation6 + $0x1068] sm:$0xff]  ;;  %v11394_v33 = vcombine.low %v599_v17, %v603_v18 }
 0x1ad   :  { %5595 = vmatpush1.bf16.msra.mxu0 %v11338_v53  ;;  %v11450_v53 = vcombine.low %v655_v12, %v659_v13  ;;  %v611_v30 = vld [vmem:[#allocation6 + $0xea8] sm:$0xff] }
 0x1ae   :  { %5570 = vmatpush1.bf16.msra.mxu1 %v11274_v26  ;;  %5596 = vmatprep.subr.bf16.mxu0 %v11347_v27  ;;  %v11395_v26 = vcombine.high %v599_v17, %v603_v18  ;;  %v11459_v27 = vcombine.high %v663_v21, %v667_v23  ;;  %v671_v31 = vld [vmem:[#allocation6 + $0x1088] sm:$0xff] }
 0x1af   :  { %5571 = vmatprep.subr.bf16.mxu1 %v11283_v54  ;;  %v607_v54 = vld [vmem:[#allocation6 + $0xe88] sm:$0xff] }
 0x1b0   :  { %v675_v32 = vld [vmem:[#allocation6 + $0x10a8] sm:$0xff]  ;;  %v11402_v47 = vcombine.low %v607_v54, %v611_v30 }
 0x1b1   :  { %5597 = vmatpush1.bf16.msra.mxu0 %v11346_v34  ;;  %v11458_v34 = vcombine.low %v663_v21, %v667_v23  ;;  %v619_v43 = vld [vmem:[#allocation6 + $0xee8] sm:$0xff] }
 0x1b2   :  { %5572 = vmatpush1.bf16.msra.mxu1 %v11282_v35  ;;  %5598 = vmatprep.subr.bf16.mxu0 %v11355_v36  ;;  %v11403_v35 = vcombine.high %v607_v54, %v611_v30  ;;  %v11467_v36 = vcombine.high %v671_v31, %v675_v32  ;;  %v679_v44 = vld [vmem:[#allocation6 + $0x10c8] sm:$0xff] }
 0x1b3   :  { %5573 = vmatprep.subr.bf16.mxu1 %v11291_v38  ;;  %v615_v38 = vld [vmem:[#allocation6 + $0xec8] sm:$0xff] }
 0x1b4   :  { %v683_v45 = vld [vmem:[#allocation6 + $0x10e8] sm:$0xff]  ;;  %v11410_v57 = vcombine.low %v615_v38, %v619_v43 }
 0x1b5   :  { %5599 = vmatpush1.bf16.msra.mxu0 %v11354_v48  ;;  %v11466_v48 = vcombine.low %v671_v31, %v675_v32  ;;  %v627_v52 = vld [vmem:[#allocation6 + $0xf28] sm:$0xff] }
 0x1b6   :  { %5574 = vmatpush1.bf16.msra.mxu1 %v11290_v49  ;;  %5600 = vmatprep.subr.bf16.mxu0 %v11363_v50  ;;  %v11411_v49 = vcombine.high %v615_v38, %v619_v43  ;;  %v11475_v50 = vcombine.high %v679_v44, %v683_v45  ;;  %v687_v55 = vld [vmem:[#allocation6 + $0x1108] sm:$0xff] }
 0x1b7   :  { %5575 = vmatprep.subr.bf16.mxu1 %v11299_v51  ;;  %v623_v51 = vld [vmem:[#allocation6 + $0xf08] sm:$0xff] }
 0x1b8   :  { %v691_v56 = vld [vmem:[#allocation6 + $0x1128] sm:$0xff]  ;;  %v11418_v3 = vcombine.low %v623_v51, %v627_v52 }
 0x1b9   :  { %5601 = vmatpush1.bf16.msra.mxu0 %v11362_v60  ;;  %v11474_v60 = vcombine.low %v679_v44, %v683_v45  ;;  %v635_v0 = vld [vmem:[#allocation6 + $0xf68] sm:$0xff] }
 0x1ba   :  { %5576 = vmatpush1.bf16.msra.mxu1 %v11298_v61  ;;  %5602 = vmatprep.subr.bf16.mxu0 %v11371_v62  ;;  %v11419_v61 = vcombine.high %v623_v51, %v627_v52  ;;  %v11483_v62 = vcombine.high %v687_v55, %v691_v56  ;;  %v695_v1 = vld [vmem:[#allocation6 + $0x1148] sm:$0xff] }
 0x1bb   :  { %5577 = vmatprep.subr.bf16.mxu1 %v11307_v63  ;;  %v631_v63 = vld [vmem:[#allocation6 + $0xf48] sm:$0xff] }
 0x1bc   :  { %v699_v2 = vld [vmem:[#allocation6 + $0x1168] sm:$0xff]  ;;  %v11426_v13 = vcombine.low %v631_v63, %v635_v0 }
 0x1bd   :  { %5603 = vmatpush1.bf16.msra.mxu0 %v11370_v5  ;;  %v11482_v5 = vcombine.low %v687_v55, %v691_v56  ;;  %v643_v10 = vld [vmem:[#allocation6 + $0xfa8] sm:$0xff] }
 0x1be   :  { %5578 = vmatpush1.bf16.msra.mxu1 %v11306_v6  ;;  %5604 = vmatprep.subr.bf16.mxu0 %v11379_v8  ;;  %v11427_v6 = vcombine.high %v631_v63, %v635_v0  ;;  %v11491_v8 = vcombine.high %v695_v1, %v699_v2  ;;  %v703_v11 = vld [vmem:[#allocation6 + $0x1188] sm:$0xff] }
 0x1bf   :  { %5579 = vmatprep.subr.bf16.mxu1 %v11315_v9  ;;  %v639_v9 = vld [vmem:[#allocation6 + $0xf88] sm:$0xff] }
 0x1c0   :  { %v707_v12 = vld [vmem:[#allocation6 + $0x11a8] sm:$0xff]  ;;  %v11434_v31 = vcombine.low %v639_v9, %v643_v10 }
 0x1c1   :  { %5605 = vmatpush1.bf16.msra.mxu0 %v11378_v37  ;;  %v11490_v37 = vcombine.low %v695_v1, %v699_v2  ;;  %v647_v17 = vld [vmem:[#allocation6 + $0xfc8] sm:$0xff] }
 0x1c2   :  { %5580 = vmatpush1.bf16.msra.mxu1 %v11314_v14  ;;  %5606 = vmatprep.subr.bf16.mxu0 %v11387_v15  ;;  %v11435_v14 = vcombine.high %v639_v9, %v643_v10  ;;  %v651_v18 = vld [vmem:[#allocation6 + $0xfe8] sm:$0xff] }
 0x1c3   :  { %5631 = vmatprep.subr.bf16.mxu1 %v11451_v39  ;;  %v11499_v39 = vcombine.high %v703_v11, %v707_v12  ;;  %v783_v44 = vld [vmem:[#allocation6 + $0x1408] sm:$0xff] }
 0x1c4   :  { %v787_v45 = vld [vmem:[#allocation6 + $0x1428] sm:$0xff] }
 0x1c5   :  { %5582 = vmatmul.mubr.bf16.vlgmr.msra.gmra.mrb[16].mxu1 %v12956_v40  ;;  %5607 = vmatpush1.bf16.msra.mxu0 %v11386_v25  ;;  %v791_v52 = vld [vmem:[#allocation6 + $0x1448] sm:$0xff] }
 0x1c6   :  { %5632 = vmatpush1.bf16.msra.mxu1 %v11450_v53  ;;  %5608 = vmatprep.subr.bf16.mxu0 %v11395_v26  ;;  %v711_v53 = vld [vmem:[#allocation6 + $0x11c8] sm:$0xff] }
 0x1c7   :  { %5633 = vmatprep.subr.bf16.mxu1 %v11459_v27  ;;  %5663 = vmatprep.mubr.bf16.mxu1 %v12964_v19  ;;  %v715_v26 = vld [vmem:[#allocation6 + $0x11e8] sm:$0xff] }
 0x1c8   :  { %v11507_v43 = vcombine.high %v711_v53, %v715_v26  ;;  %v795_v55 = vld [vmem:[#allocation6 + $0x1468] sm:$0xff] }
 0x1c9   :  { %5609 = vmatpush1.bf16.msra.mxu0 %v11394_v33  ;;  %v727_v56 = vld [vmem:[#allocation6 + $0x1248] sm:$0xff] }
 0x1ca   :  { %5634 = vmatpush1.bf16.msra.mxu1 %v11458_v34  ;;  %5610 = vmatprep.subr.bf16.mxu0 %v11403_v35  ;;  %v11498_v35 = vcombine.low %v703_v11, %v707_v12  ;;  %v799_v0 = vld [vmem:[#allocation6 + $0x1488] sm:$0xff] }
 0x1cb   :  { %5635 = vmatprep.subr.bf16.mxu1 %v11467_v36  ;;  %v11443_v36 = vcombine.high %v647_v17, %v651_v18  ;;  %v803_v1 = vld [vmem:[#allocation6 + $0x14a8] sm:$0xff] }
 0x1cc   :  { %v735_v2 = vld [vmem:[#allocation6 + $0x1288] sm:$0xff] }
 0x1cd   :  { %5611 = vmatpush1.bf16.msra.mxu0 %v11402_v47  ;;  %v723_v47 = vld [vmem:[#allocation6 + $0x1228] sm:$0xff] }
 0x1ce   :  { %5636 = vmatpush1.bf16.msra.mxu1 %v11466_v48  ;;  %5612 = vmatprep.subr.bf16.mxu0 %v11411_v49  ;;  %v11442_v48 = vcombine.low %v647_v17, %v651_v18  ;;  %v11506_v49 = vcombine.low %v711_v53, %v715_v26  ;;  %v807_v10 = vld [vmem:[#allocation6 + $0x14c8] sm:$0xff] }
 0x1cf   :  { %5637 = vmatprep.subr.bf16.mxu1 %v11475_v50  ;;  %v11579_v50 = vcombine.high %v783_v44, %v787_v45  ;;  %v811_v11 = vld [vmem:[#allocation6 + $0x14e8] sm:$0xff] }
 0x1d0   :  { %v743_v12 = vld [vmem:[#allocation6 + $0x12c8] sm:$0xff] }
 0x1d1   :  { %5613 = vmatpush1.bf16.msra.mxu0 %v11410_v57  ;;  %v731_v57 = vld [vmem:[#allocation6 + $0x1268] sm:$0xff] }
 0x1d2   :  { %5638 = vmatpush1.bf16.msra.mxu1 %v11474_v60  ;;  %5614 = vmatprep.subr.bf16.mxu0 %v11419_v61  ;;  %v11578_v60 = vcombine.low %v783_v44, %v787_v45  ;;  %v11523_v63 = vcombine.high %v727_v56, %v731_v57  ;;  %v815_v17 = vld [vmem:[#allocation6 + $0x1508] sm:$0xff] }
 0x1d3   :  { %5639 = vmatprep.subr.bf16.mxu1 %v11483_v62  ;;  %v11587_v62 = vcombine.high %v791_v52, %v795_v55  ;;  %v819_v18 = vld [vmem:[#allocation6 + $0x1528] sm:$0xff] }
 0x1d4   :  { %v11611_v26 = vcombine.high %v815_v17, %v819_v18  ;;  %v835_v44 = vld [vmem:[#allocation6 + $0x15a8] sm:$0xff] }
 0x1d5   :  { %5615 = vmatpush1.bf16.msra.mxu0 %v11418_v3  ;;  %v739_v3 = vld [vmem:[#allocation6 + $0x12a8] sm:$0xff] }
 0x1d6   :  { %5640 = vmatpush1.bf16.msra.mxu1 %v11482_v5  ;;  %5616 = vmatprep.subr.bf16.mxu0 %v11427_v6  ;;  %v5296_v15 = vpop.f32.mrb[4].mxu0  ;;  %v11586_v5 = vcombine.low %v791_v52, %v795_v55  ;;  %v11522_v6 = vcombine.low %v727_v56, %v731_v57  ;;  %v11531_v9 = vcombine.high %v735_v2, %v739_v3  ;;  %v767_v45 = vld [vmem:[#allocation6 + $0x1388] sm:$0xff] }
 0x1d7   :  { %5641 = vmatprep.subr.bf16.mxu1 %v11491_v8  ;;  %v5297_v21 = vadd.f32 %v5296_v15, %v12989_v42  ;;  %v5298_v25 = vpop.f32.mrb[5].mxu0  ;;  %v11595_v8 = vcombine.high %v799_v0, %v803_v1  ;;  %v11603_v15 = vcombine.high %v807_v10, %v811_v11  ;;  %v843_v52 = vld [vmem:[#allocation6 + $0x15e8] sm:$0xff] }
 0x1d8   :  { %v5337_v23 = vpop.f32.mrb[4].mxu1  ;;  %v5299_v27 = vadd.f32 %v5298_v25, %v12991_v46  ;;  %v5300_v30 = vpop.f32.mrb[6].mxu0  ;;  %v719_v46 = vld [vmem:[#allocation6 + $0x1208] sm:$0xff]  ;;  %v11602_v25 = vcombine.low %v807_v10, %v811_v11 }
 0x1d9   :  { %v5339_v54 = vpop.f32.mrb[5].mxu1  ;;  %5617 = vmatpush1.bf16.msra.mxu0 %v11426_v13  ;;  %v12999_v32 = vadd.f32 %v5337_v23, %v5297_v21  ;;  %v5301_v34 = vpop.f32.mrb[7].mxu0  ;;  %v11515_v51 = vcombine.high %v719_v46, %v723_v47  ;;  %v11514_v61 = vcombine.low %v719_v46, %v723_v47  ;;  %v747_v13 = vld [vmem:[#allocation6 + $0x12e8] sm:$0xff] }
 0x1da   :  { %v5341_v33 = vpop.f32.mrb[6].mxu1  ;;  %5642 = vmatpush1.bf16.msra.mxu1 %v11490_v37  ;;  %5618 = vmatprep.subr.bf16.mxu0 %v11435_v14  ;;  %v13001_v38 = vadd.f32 %v5339_v54, %v5299_v27  ;;  %v11594_v37 = vcombine.low %v799_v0, %v803_v1  ;;  %v11530_v14 = vcombine.low %v735_v2, %v739_v3  ;;  %v751_v21 = vld [vmem:[#allocation6 + $0x1308] sm:$0xff] }
 0x1db   :  { %v5342_v42 = vpop.f32.mrb[7].mxu1  ;;  %5643 = vmatprep.subr.bf16.mxu1 %v11499_v39  ;;  %v11539_v39 = vcombine.high %v743_v12, %v747_v13  ;;  %v755_v23 = vld [vmem:[#allocation6 + $0x1328] sm:$0xff]  ;;  %v11538_v53 = vcombine.low %v743_v12, %v747_v13  ;;  %v11610_v34 = vcombine.low %v815_v17, %v819_v18 }
 0x1dc   :  { %v11547_v27 = vcombine.high %v751_v21, %v755_v23  ;;  %v823_v54 = vld [vmem:[#allocation6 + $0x1548] sm:$0xff] }
 0x1dd   :  { %5619 = vmatpush1.bf16.msra.mxu0 %v11434_v31  ;;  %v827_v30 = vld [vmem:[#allocation6 + $0x1568] sm:$0xff] }
 0x1de   :  { %5644 = vmatpush1.bf16.msra.mxu1 %v11498_v35  ;;  %5620 = vmatprep.subr.bf16.mxu0 %v11443_v36  ;;  %v759_v31 = vld [vmem:[#allocation6 + $0x1348] sm:$0xff]  ;;  %v11546_v35 = vcombine.low %v751_v21, %v755_v23  ;;  %v11619_v36 = vcombine.high %v823_v54, %v827_v30  ;;  %v11618_v47 = vcombine.low %v823_v54, %v827_v30 }
 0x1df   :  { %5645 = vmatprep.subr.bf16.mxu1 %v11507_v43  ;;  %v763_v33 = vld [vmem:[#allocation6 + $0x1368] sm:$0xff] }
 0x1e0   :  { %v11555_v42 = vcombine.high %v759_v31, %v763_v33  ;;  %v831_v43 = vld [vmem:[#allocation6 + $0x1588] sm:$0xff] }
 0x1e1   :  { %5621 = vmatpush1.bf16.msra.mxu0 %v11442_v48  ;;  %v771_v46 = vld [vmem:[#allocation6 + $0x13a8] sm:$0xff]  ;;  %v11554_v48 = vcombine.low %v759_v31, %v763_v33  ;;  %v11626_v57 = vcombine.low %v831_v43, %v835_v44 }
 0x1e2   :  { %5646 = vmatpush1.bf16.msra.mxu1 %v11506_v49  ;;  %5672 = vmatprep.subr.bf16.mxu0 %v11579_v50  ;;  %v11627_v49 = vcombine.high %v831_v43, %v835_v44  ;;  %v11563_v50 = vcombine.high %v767_v45, %v771_v46  ;;  %v775_v55 = vld [vmem:[#allocation6 + $0x13c8] sm:$0xff] }
 0x1e3   :  { %5647 = vmatprep.subr.bf16.mxu1 %v11515_v51  ;;  %v839_v51 = vld [vmem:[#allocation6 + $0x15c8] sm:$0xff] }
 0x1e4   :  { %5623 = vmatmul.mubr.bf16.vlgmr.msra.gmra.mrb[20].mxu0 %v12960_v41  ;;  %v779_v56 = vld [vmem:[#allocation6 + $0x13e8] sm:$0xff]  ;;  %v11634_v3 = vcombine.low %v839_v51, %v843_v52 }
 0x1e5   :  { %5673 = vmatpush1.bf16.msra.mxu0 %v11578_v60  ;;  %5704 = vmatprep.mubr.bf16.mxu0 %v12969_v22  ;;  %v11562_v60 = vcombine.low %v767_v45, %v771_v46  ;;  %v851_v0 = vld [vmem:[#allocation6 + $0x1628] sm:$0xff] }
 0x1e6   :  { %5648 = vmatpush1.bf16.msra.mxu1 %v11514_v61  ;;  %5674 = vmatprep.subr.bf16.mxu0 %v11587_v62  ;;  %v11635_v61 = vcombine.high %v839_v51, %v843_v52  ;;  %v11571_v62 = vcombine.high %v775_v55, %v779_v56  ;;  %v911_v1 = vld [vmem:[#allocation6 + $0x1808] sm:$0xff] }
 0x1e7   :  { %5649 = vmatprep.subr.bf16.mxu1 %v11523_v63  ;;  %v847_v63 = vld [vmem:[#allocation6 + $0x1608] sm:$0xff] }
 0x1e8   :  { %v915_v2 = vld [vmem:[#allocation6 + $0x1828] sm:$0xff]  ;;  %v11642_v13 = vcombine.low %v847_v63, %v851_v0 }
 0x1e9   :  { %5675 = vmatpush1.bf16.msra.mxu0 %v11586_v5  ;;  %v11570_v5 = vcombine.low %v775_v55, %v779_v56  ;;  %v859_v10 = vld [vmem:[#allocation6 + $0x1668] sm:$0xff] }
 0x1ea   :  { %5650 = vmatpush1.bf16.msra.mxu1 %v11522_v6  ;;  %5676 = vmatprep.subr.bf16.mxu0 %v11595_v8  ;;  %v11643_v6 = vcombine.high %v847_v63, %v851_v0  ;;  %v11707_v8 = vcombine.high %v911_v1, %v915_v2  ;;  %v919_v11 = vld [vmem:[#allocation6 + $0x1848] sm:$0xff] }
 0x1eb   :  { %5651 = vmatprep.subr.bf16.mxu1 %v11531_v9  ;;  %v855_v9 = vld [vmem:[#allocation6 + $0x1648] sm:$0xff] }
 0x1ec   :  { %v923_v12 = vld [vmem:[#allocation6 + $0x1868] sm:$0xff]  ;;  %v11650_v23 = vcombine.low %v855_v9, %v859_v10 }
 0x1ed   :  { %5677 = vmatpush1.bf16.msra.mxu0 %v11594_v37  ;;  %v11706_v37 = vcombine.low %v911_v1, %v915_v2  ;;  %v867_v17 = vld [vmem:[#allocation6 + $0x16a8] sm:$0xff] }
 0x1ee   :  { %5652 = vmatpush1.bf16.msra.mxu1 %v11530_v14  ;;  %5678 = vmatprep.subr.bf16.mxu0 %v11603_v15  ;;  %v11651_v14 = vcombine.high %v855_v9, %v859_v10  ;;  %v11715_v15 = vcombine.high %v919_v11, %v923_v12  ;;  %v927_v18 = vld [vmem:[#allocation6 + $0x1888] sm:$0xff] }
 0x1ef   :  { %5653 = vmatprep.subr.bf16.mxu1 %v11539_v39  ;;  %v863_v39 = vld [vmem:[#allocation6 + $0x1688] sm:$0xff] }
 0x1f0   :  { %v931_v21 = vld [vmem:[#allocation6 + $0x18a8] sm:$0xff]  ;;  %v11658_v33 = vcombine.low %v863_v39, %v867_v17 }
 0x1f1   :  { %5679 = vmatpush1.bf16.msra.mxu0 %v11602_v25  ;;  %v11714_v25 = vcombine.low %v919_v11, %v923_v12  ;;  %v875_v54 = vld [vmem:[#allocation6 + $0x16e8] sm:$0xff] }
 0x1f2   :  { %5654 = vmatpush1.bf16.msra.mxu1 %v11538_v53  ;;  %5680 = vmatprep.subr.bf16.mxu0 %v11611_v26  ;;  %v11659_v53 = vcombine.high %v863_v39, %v867_v17  ;;  %v11723_v26 = vcombine.high %v927_v18, %v931_v21  ;;  %v935_v30 = vld [vmem:[#allocation6 + $0x18c8] sm:$0xff] }
 0x1f3   :  { %5655 = vmatprep.subr.bf16.mxu1 %v11547_v27  ;;  %v871_v27 = vld [vmem:[#allocation6 + $0x16c8] sm:$0xff] }
 0x1f4   :  { %v939_v31 = vld [vmem:[#allocation6 + $0x18e8] sm:$0xff]  ;;  %v11666_v46 = vcombine.low %v871_v27, %v875_v54 }
 0x1f5   :  { %5681 = vmatpush1.bf16.msra.mxu0 %v11610_v34  ;;  %v11722_v34 = vcombine.low %v927_v18, %v931_v21  ;;  %v883_v43 = vld [vmem:[#allocation6 + $0x1728] sm:$0xff] }
 0x1f6   :  { %5656 = vmatpush1.bf16.msra.mxu1 %v11546_v35  ;;  %5682 = vmatprep.subr.bf16.mxu0 %v11619_v36  ;;  %v11667_v35 = vcombine.high %v871_v27, %v875_v54  ;;  %v11731_v36 = vcombine.high %v935_v30, %v939_v31  ;;  %v943_v44 = vld [vmem:[#allocation6 + $0x1908] sm:$0xff] }
 0x1f7   :  { %5657 = vmatprep.subr.bf16.mxu1 %v11555_v42  ;;  %v879_v42 = vld [vmem:[#allocation6 + $0x1708] sm:$0xff] }
 0x1f8   :  { %v947_v45 = vld [vmem:[#allocation6 + $0x1928] sm:$0xff]  ;;  %v11674_v56 = vcombine.low %v879_v42, %v883_v43 }
 0x1f9   :  { %5683 = vmatpush1.bf16.msra.mxu0 %v11618_v47  ;;  %v11730_v47 = vcombine.low %v935_v30, %v939_v31  ;;  %v891_v51 = vld [vmem:[#allocation6 + $0x1768] sm:$0xff]  ;;  %v144_v30 = vld [vmem:[#allocation6 + $0x10] sm:$0xff] }
 0x1fa   :  { %5658 = vmatpush1.bf16.msra.mxu1 %v11554_v48  ;;  %5684 = vmatprep.subr.bf16.mxu0 %v11627_v49  ;;  %v11675_v48 = vcombine.high %v879_v42, %v883_v43  ;;  %v11739_v49 = vcombine.high %v943_v44, %v947_v45  ;;  %v951_v52 = vld [vmem:[#allocation6 + $0x1948] sm:$0xff]  ;;  %v148_v31 = vld [vmem:[#allocation6 + $0x30] sm:$0xff] }
 0x1fb   :  { %5659 = vmatprep.subr.bf16.mxu1 %v11563_v50  ;;  %v887_v50 = vld [vmem:[#allocation6 + $0x1748] sm:$0xff]  ;;  %v152_v43 = vld [vmem:[#allocation6 + $0x50] sm:$0xff] }
 0x1fc   :  { %v955_v55 = vld [vmem:[#allocation6 + $0x1968] sm:$0xff]  ;;  %v11682_v2 = vcombine.low %v887_v50, %v891_v51 }
 0x1fd   :  { %5685 = vmatpush1.bf16.msra.mxu0 %v11626_v57  ;;  %v11738_v57 = vcombine.low %v943_v44, %v947_v45  ;;  %v899_v63 = vld [vmem:[#allocation6 + $0x17a8] sm:$0xff]  ;;  %v156_v44 = vld [vmem:[#allocation6 + $0x70] sm:$0xff] }
 0x1fe   :  { %5660 = vmatpush1.bf16.msra.mxu1 %v11562_v60  ;;  %5686 = vmatprep.subr.bf16.mxu0 %v11635_v61  ;;  %v11683_v60 = vcombine.high %v887_v50, %v891_v51  ;;  %v11747_v61 = vcombine.high %v951_v52, %v955_v55  ;;  %v959_v0 = vld [vmem:[#allocation6 + $0x1988] sm:$0xff]  ;;  %v280_v45 = vld [vmem:[#allocation6 + $0x450] sm:$0xff] }
 0x1ff   :  { %5661 = vmatprep.subr.bf16.mxu1 %v11571_v62  ;;  %v895_v62 = vld [vmem:[#allocation6 + $0x1788] sm:$0xff]  ;;  %v160_v51 = vld [vmem:[#allocation6 + $0x90] sm:$0xff] }
 0x200   :  { %v963_v1 = vld [vmem:[#allocation6 + $0x19a8] sm:$0xff]  ;;  %v11690_v18 = vcombine.low %v895_v62, %v899_v63 }
 0x201   :  { %5687 = vmatpush1.bf16.msra.mxu0 %v11634_v3  ;;  %v11746_v3 = vcombine.low %v951_v52, %v955_v55  ;;  %v903_v9 = vld [vmem:[#allocation6 + $0x17c8] sm:$0xff]  ;;  %v164_v52 = vld [vmem:[#allocation6 + $0xb0] sm:$0xff] }
 0x202   :  { %5662 = vmatpush1.bf16.msra.mxu1 %v11570_v5  ;;  %5688 = vmatprep.subr.bf16.mxu0 %v11643_v6  ;;  %v11691_v5 = vcombine.high %v895_v62, %v899_v63  ;;  %v907_v10 = vld [vmem:[#allocation6 + $0x17e8] sm:$0xff]  ;;  %v288_v55 = vld [vmem:[#allocation6 + $0x490] sm:$0xff]  ;;  %v10957_v62 = vcombine.high %v160_v51, %v164_v52 }
 0x203   :  { %5713 = vmatprep.subr.bf16.mxu1 %v11707_v8  ;;  %v11755_v8 = vcombine.high %v959_v0, %v963_v1 }
 0x205   :  { %5664 = vmatmul.mubr.bf16.vlgmr.msra.gmra.mrb[20].mxu1 %v12976_v4  ;;  %5689 = vmatpush1.bf16.msra.mxu0 %v11642_v13 }
 0x206   :  { %5714 = vmatpush1.bf16.msra.mxu1 %v11706_v37  ;;  %5690 = vmatprep.subr.bf16.mxu0 %v11651_v14  ;;  %v967_v37 = vld [vmem:[#allocation6 + $0x19c8] sm:$0xff] }
 0x207   :  { %5715 = vmatprep.subr.bf16.mxu1 %v11715_v15  ;;  %5745 = vmatprep.mubr.bf16.mxu1 %v12785_v24  ;;  %v971_v14 = vld [vmem:[#allocation6 + $0x19e8] sm:$0xff] }
 0x208   :  { %v11763_v54 = vcombine.high %v967_v37, %v971_v14 }
 0x209   :  { %5691 = vmatpush1.bf16.msra.mxu0 %v11650_v23 }
 0x20a   :  { %5716 = vmatpush1.bf16.msra.mxu1 %v11714_v25  ;;  %5692 = vmatprep.subr.bf16.mxu0 %v11659_v53  ;;  %v11754_v53 = vcombine.low %v959_v0, %v963_v1  ;;  %v168_v0 = vld [vmem:[#allocation6 + $0xd0] sm:$0xff] }
 0x20b   :  { %5717 = vmatprep.subr.bf16.mxu1 %v11723_v26  ;;  %v11699_v26 = vcombine.high %v903_v9, %v907_v10  ;;  %v172_v1 = vld [vmem:[#allocation6 + $0xf0] sm:$0xff] }
 0x20d   :  { %5693 = vmatpush1.bf16.msra.mxu0 %v11658_v33  ;;  %v276_v33 = vld [vmem:[#allocation6 + $0x430] sm:$0xff] }
 0x20e   :  { %5718 = vmatpush1.bf16.msra.mxu1 %v11722_v34  ;;  %5694 = vmatprep.subr.bf16.mxu0 %v11667_v35  ;;  %v11698_v34 = vcombine.low %v903_v9, %v907_v10  ;;  %v11762_v35 = vcombine.low %v967_v37, %v971_v14  ;;  %v176_v10 = vld [vmem:[#allocation6 + $0x110] sm:$0xff]  ;;  %v10964_v37 = vcombine.low %v168_v0, %v172_v1 }
 0x20f   :  { %5719 = vmatprep.subr.bf16.mxu1 %v11731_v36  ;;  %v10941_v36 = vcombine.high %v144_v30, %v148_v31 }
 0x211   :  { %5695 = vmatpush1.bf16.msra.mxu0 %v11666_v46  ;;  %v284_v46 = vld [vmem:[#allocation6 + $0x470] sm:$0xff] }
 0x212   :  { %5720 = vmatpush1.bf16.msra.mxu1 %v11730_v47  ;;  %5696 = vmatprep.subr.bf16.mxu0 %v11675_v48  ;;  %v10940_v47 = vcombine.low %v144_v30, %v148_v31  ;;  %v11077_v50 = vcombine.high %v280_v45, %v284_v46  ;;  %v192_v30 = vld [vmem:[#allocation6 + $0x190] sm:$0xff] }
 0x213   :  { %5721 = vmatprep.subr.bf16.mxu1 %v11739_v49  ;;  %v10949_v49 = vcombine.high %v152_v43, %v156_v44  ;;  %v196_v31 = vld [vmem:[#allocation6 + $0x1b0] sm:$0xff] }
 0x215   :  { %5697 = vmatpush1.bf16.msra.mxu0 %v11674_v56  ;;  %v292_v56 = vld [vmem:[#allocation6 + $0x4b0] sm:$0xff] }
 0x216   :  { %5722 = vmatpush1.bf16.msra.mxu1 %v11738_v57  ;;  %5698 = vmatprep.subr.bf16.mxu0 %v11683_v60  ;;  %v12584_v57 = vld [vmem:[#allocation3 + $0x30] ss:$0 sps:$4 sm:$0xff]   ;;  %v10948_v60 = vcombine.low %v152_v43, %v156_v44  ;;  %v11085_v63 = vcombine.high %v288_v55, %v292_v56  ;;  %v200_v44 = vld [vmem:[#allocation6 + $0x1d0] sm:$0xff] }
 0x217   :  { %v5378_v6 = vpop.f32.mrb[8].mxu0  ;;  %5723 = vmatprep.subr.bf16.mxu1 %v11747_v61  ;;  %v11076_v61 = vcombine.low %v280_v45, %v284_v46  ;;  %v204_v45 = vld [vmem:[#allocation6 + $0x1f0] sm:$0xff] }
 0x218   :  { %v5379_v11 = vadd.f32 %v5378_v6, %v12999_v32  ;;  %v5419_v12 = vpop.f32.mrb[8].mxu1  ;;  %v5380_v13 = vpop.f32.mrb[9].mxu0  ;;  %v11084_v6 = vcombine.low %v288_v55, %v292_v56 }
 0x219   :  { %v5381_v15 = vadd.f32 %v5380_v13, %v13001_v38  ;;  %v5421_v39 = vpop.f32.mrb[9].mxu1  ;;  %v5382_v17 = vpop.f32.mrb[10].mxu0  ;;  %5699 = vmatpush1.bf16.msra.mxu0 %v11682_v2  ;;  %v272_v38 = vld [vmem:[#allocation6 + $0x410] sm:$0xff] }
 0x21a   :  { %v13009_v21 = vadd.f32 %v5419_v12, %v5379_v11  ;;  %v5423_v23 = vpop.f32.mrb[10].mxu1  ;;  %5724 = vmatpush1.bf16.msra.mxu1 %v11746_v3  ;;  %v5383_v25 = vpop.f32.mrb[11].mxu0  ;;  %5700 = vmatprep.subr.bf16.mxu0 %v11691_v5  ;;  %v11069_v42 = vcombine.high %v272_v38, %v276_v33  ;;  %v11068_v48 = vcombine.low %v272_v38, %v276_v33  ;;  %v296_v2 = vld [vmem:[#allocation6 + $0x4d0] sm:$0xff] }
 0x21b   :  { %v13011_v27 = vadd.f32 %v5421_v39, %v5381_v15  ;;  %v5424_v32 = vpop.f32.mrb[11].mxu1  ;;  %5725 = vmatprep.subr.bf16.mxu1 %v11755_v8  ;;  %v300_v3 = vld [vmem:[#allocation6 + $0x4f0] sm:$0xff]  ;;  %v10956_v5 = vcombine.low %v160_v51, %v164_v52  ;;  %v10965_v8 = vcombine.high %v168_v0, %v172_v1  ;;  %v10988_v52 = vcombine.low %v192_v30, %v196_v31 }
 0x21c   :  { %v11093_v9 = vcombine.high %v296_v2, %v300_v3  ;;  %v180_v11 = vld [vmem:[#allocation6 + $0x130] sm:$0xff]  ;;  %v11092_v14 = vcombine.low %v296_v2, %v300_v3  ;;  %v10996_v0 = vcombine.low %v200_v44, %v204_v45 }
 0x21d   :  { %5701 = vmatpush1.bf16.msra.mxu0 %v11690_v18  ;;  %v304_v12 = vld [vmem:[#allocation6 + $0x510] sm:$0xff]  ;;  %v10973_v15 = vcombine.high %v176_v10, %v180_v11 }
 0x21e   :  { %5726 = vmatpush1.bf16.msra.mxu1 %v11754_v53  ;;  %5702 = vmatprep.subr.bf16.mxu0 %v11699_v26  ;;  %v308_v13 = vld [vmem:[#allocation6 + $0x530] sm:$0xff]  ;;  %v10972_v53 = vcombine.low %v176_v10, %v180_v11 }
 0x21f   :  { %5727 = vmatprep.subr.bf16.mxu1 %v11763_v54  ;;  %v11101_v39 = vcombine.high %v304_v12, %v308_v13  ;;  %v184_v17 = vld [vmem:[#allocation6 + $0x150] sm:$0xff]  ;;  %v11100_v26 = vcombine.low %v304_v12, %v308_v13 }
 0x220   :  { %v188_v18 = vld [vmem:[#allocation6 + $0x170] sm:$0xff] }
 0x221   :  { %5703 = vmatpush1.bf16.msra.mxu0 %v11698_v34  ;;  %v312_v23 = vld [vmem:[#allocation6 + $0x550] sm:$0xff]  ;;  %v10981_v32 = vcombine.high %v184_v17, %v188_v18  ;;  %v10980_v34 = vcombine.low %v184_v17, %v188_v18 }
 0x222   :  { %5728 = vmatpush1.bf16.msra.mxu1 %v11762_v35  ;;  %5754 = vmatprep.subr.bf16.mxu0 %v10941_v36  ;;  %v316_v25 = vld [vmem:[#allocation6 + $0x570] sm:$0xff]  ;;  %v10989_v36 = vcombine.high %v192_v30, %v196_v31 }
 0x223   :  { %5795 = vmatprep.subr.bf16.mxu1 %v11069_v42  ;;  %v11109_v54 = vcombine.high %v312_v23, %v316_v25  ;;  %v320_v38 = vld [vmem:[#allocation6 + $0x590] sm:$0xff]  ;;  %v11108_v35 = vcombine.low %v312_v23, %v316_v25 }
 0x224   :  { %5705 = vmatmul.mubr.bf16.vlgmr.msra.gmra.mrb[24].mxu0 %v12980_v7  ;;  %v324_v33 = vld [vmem:[#allocation6 + $0x5b0] sm:$0xff] }
 0x225   :  { %5746 = vmatmul.mubr.bf16.vlgmr.msra.gmra.mrb[24].mxu1 %v12584_v57  ;;  %5755 = vmatpush1.bf16.msra.mxu0 %v10940_v47  ;;  %v11117_v43 = vcombine.high %v320_v38, %v324_v33  ;;  %v11116_v56 = vcombine.low %v320_v38, %v324_v33  ;;  %v10997_v57 = vcombine.high %v200_v44, %v204_v45  ;;  %v216_v3 = vld [vmem:[#allocation6 + $0x250] sm:$0xff] }
 0x226   :  { %5796 = vmatpush1.bf16.msra.mxu1 %v11068_v48  ;;  %5756 = vmatprep.subr.bf16.mxu0 %v10949_v49  ;;  %v328_v48 = vld [vmem:[#allocation6 + $0x5d0] sm:$0xff] }
 0x227   :  { %5797 = vmatprep.subr.bf16.mxu1 %v11077_v50  ;;  %5786 = vmatprep.mubr.bf16.mxu0 %v12918_v58  ;;  %v332_v49 = vld [vmem:[#allocation6 + $0x5f0] sm:$0xff] }
 0x228   :  { %5827 = vmatprep.mubr.bf16.mxu1 %v12922_v59  ;;  %v224_v13 = vld [vmem:[#allocation6 + $0x290] sm:$0xff] }
 0x229   :  { %5757 = vmatpush1.bf16.msra.mxu0 %v10948_v60  ;;  %v11125_v60 = vcombine.high %v328_v48, %v332_v49  ;;  %v232_v25 = vld [vmem:[#allocation6 + $0x2d0] sm:$0xff] }
 0x22a   :  { %5798 = vmatpush1.bf16.msra.mxu1 %v11076_v61  ;;  %5758 = vmatprep.subr.bf16.mxu0 %v10957_v62  ;;  %v208_v61 = vld [vmem:[#allocation6 + $0x210] sm:$0xff] }
 0x22b   :  { %5799 = vmatprep.subr.bf16.mxu1 %v11085_v63  ;;  %v212_v62 = vld [vmem:[#allocation6 + $0x230] sm:$0xff] }
 0x22c   :  { %v340_v63 = vld [vmem:[#allocation6 + $0x630] sm:$0xff]  ;;  %v11005_v1 = vcombine.high %v208_v61, %v212_v62 }
 0x22d   :  { %5759 = vmatpush1.bf16.msra.mxu0 %v10956_v5  ;;  %v220_v5 = vld [vmem:[#allocation6 + $0x270] sm:$0xff] }
 0x22e   :  { %5800 = vmatpush1.bf16.msra.mxu1 %v11084_v6  ;;  %5760 = vmatprep.subr.bf16.mxu0 %v10965_v8  ;;  %v344_v6 = vld [vmem:[#allocation6 + $0x650] sm:$0xff]  ;;  %v11013_v11 = vcombine.high %v216_v3, %v220_v5 }
 0x22f   :  { %5801 = vmatprep.subr.bf16.mxu1 %v11093_v9  ;;  %v348_v8 = vld [vmem:[#allocation6 + $0x670] sm:$0xff]  ;;  %v11004_v9 = vcombine.low %v208_v61, %v212_v62 }
 0x230   :  { %v11141_v12 = vcombine.high %v344_v6, %v348_v8  ;;  %v11140_v17 = vcombine.low %v344_v6, %v348_v8  ;;  %v240_v33 = vld [vmem:[#allocation6 + $0x310] sm:$0xff] }
 0x231   :  { %5761 = vmatpush1.bf16.msra.mxu0 %v10964_v37  ;;  %v228_v37 = vld [vmem:[#allocation6 + $0x2b0] sm:$0xff] }
 0x232   :  { %5802 = vmatpush1.bf16.msra.mxu1 %v11092_v14  ;;  %5762 = vmatprep.subr.bf16.mxu0 %v10973_v15  ;;  %v352_v14 = vld [vmem:[#allocation6 + $0x690] sm:$0xff]  ;;  %v11021_v18 = vcombine.high %v224_v13, %v228_v37 }
 0x233   :  { %5803 = vmatprep.subr.bf16.mxu1 %v11101_v39  ;;  %v356_v15 = vld [vmem:[#allocation6 + $0x6b0] sm:$0xff]  ;;  %v11012_v39 = vcombine.low %v216_v3, %v220_v5 }
 0x234   :  { %v11149_v23 = vcombine.high %v352_v14, %v356_v15  ;;  %v11148_v30 = vcombine.low %v352_v14, %v356_v15  ;;  %v260_v61 = vld [vmem:[#allocation6 + $0x3b0] sm:$0xff] }
 0x235   :  { %5763 = vmatpush1.bf16.msra.mxu0 %v10972_v53  ;;  %v236_v53 = vld [vmem:[#allocation6 + $0x2f0] sm:$0xff] }
 0x236   :  { %5804 = vmatpush1.bf16.msra.mxu1 %v11100_v26  ;;  %5764 = vmatprep.subr.bf16.mxu0 %v10981_v32  ;;  %v360_v26 = vld [vmem:[#allocation6 + $0x6d0] sm:$0xff]  ;;  %v11029_v31 = vcombine.high %v232_v25, %v236_v53 }
 0x237   :  { %v5460_v42 = vpop.f32.mrb[12].mxu0  ;;  %5805 = vmatprep.subr.bf16.mxu1 %v11109_v54  ;;  %v364_v32 = vld [vmem:[#allocation6 + $0x6f0] sm:$0xff]  ;;  %v11020_v54 = vcombine.low %v224_v13, %v228_v37 }
 0x238   :  { %v13017_v46 = vadd.f32 %v5460_v42, %v13009_v21  ;;  %v5462_v47 = vpop.f32.mrb[13].mxu0  ;;  %v336_v21 = vld [vmem:[#allocation6 + $0x610] sm:$0xff]  ;;  %v11157_v38 = vcombine.high %v360_v26, %v364_v32  ;;  %v11028_v42 = vcombine.low %v232_v25, %v236_v53 }
 0x239   :  { %v13020_v50 = vadd.f32 %v5462_v47, %v13011_v27  ;;  %v5464_v51 = vpop.f32.mrb[14].mxu0  ;;  %5765 = vmatpush1.bf16.msra.mxu0 %v10980_v34  ;;  %v11124_v27 = vcombine.low %v328_v48, %v332_v49  ;;  %v11133_v2 = vcombine.high %v336_v21, %v340_v63  ;;  %v11132_v10 = vcombine.low %v336_v21, %v340_v63  ;;  %v244_v34 = vld [vmem:[#allocation6 + $0x330] sm:$0xff] }
 0x23a   :  { %5806 = vmatpush1.bf16.msra.mxu1 %v11108_v35  ;;  %v5465_v55 = vpop.f32.mrb[15].mxu0  ;;  %5766 = vmatprep.subr.bf16.mxu0 %v10989_v36  ;;  %v368_v35 = vld [vmem:[#allocation6 + $0x710] sm:$0xff]  ;;  %v11037_v44 = vcombine.high %v240_v33, %v244_v34 }
 0x23b   :  { %5807 = vmatprep.subr.bf16.mxu1 %v11117_v43  ;;  %v372_v36 = vld [vmem:[#allocation6 + $0x730] sm:$0xff]  ;;  %v11156_v43 = vcombine.low %v360_v26, %v364_v32 }
 0x23c   :  { %v11165_v45 = vcombine.high %v368_v35, %v372_v36  ;;  %v248_v47 = vld [vmem:[#allocation6 + $0x350] sm:$0xff]  ;;  %v11164_v55 = vcombine.low %v368_v35, %v372_v36 }
 0x23d   :  { %5767 = vmatpush1.bf16.msra.mxu0 %v10988_v52  ;;  %v252_v48 = vld [vmem:[#allocation6 + $0x370] sm:$0xff]  ;;  %v11036_v52 = vcombine.low %v240_v33, %v244_v34 }
 0x23e   :  { %5808 = vmatpush1.bf16.msra.mxu1 %v11116_v56  ;;  %5768 = vmatprep.subr.bf16.mxu0 %v10997_v57  ;;  %v376_v49 = vld [vmem:[#allocation6 + $0x750] sm:$0xff]  ;;  %v11045_v56 = vcombine.high %v248_v47, %v252_v48  ;;  %v11044_v63 = vcombine.low %v248_v47, %v252_v48 }
 0x23f   :  { %5809 = vmatprep.subr.bf16.mxu1 %v11125_v60  ;;  %v380_v51 = vld [vmem:[#allocation6 + $0x770] sm:$0xff] }
 0x240   :  { %v11173_v57 = vcombine.high %v376_v49, %v380_v51  ;;  %v256_v60 = vld [vmem:[#allocation6 + $0x390] sm:$0xff] }
 0x241   :  { %5769 = vmatpush1.bf16.msra.mxu0 %v10996_v0  ;;  %v384_v62 = vld [vmem:[#allocation6 + $0x790] sm:$0xff]  ;;  %v11172_v0 = vcombine.low %v376_v49, %v380_v51 }
 0x242   :  { %5810 = vmatpush1.bf16.msra.mxu1 %v11124_v27  ;;  %5770 = vmatprep.subr.bf16.mxu0 %v11005_v1  ;;  %v388_v21 = vld [vmem:[#allocation6 + $0x7b0] sm:$0xff]  ;;  %v11053_v27 = vcombine.high %v256_v60, %v260_v61 }
 0x243   :  { %5811 = vmatprep.subr.bf16.mxu1 %v11133_v2  ;;  %v11181_v1 = vcombine.high %v384_v62, %v388_v21  ;;  %v264_v2 = vld [vmem:[#allocation6 + $0x3d0] sm:$0xff] }
 0x244   :  { %v268_v3 = vld [vmem:[#allocation6 + $0x3f0] sm:$0xff] }
 0x245   :  { %5771 = vmatpush1.bf16.msra.mxu0 %v11004_v9  ;;  %v392_v6 = vld [vmem:[#allocation6 + $0x7d0] sm:$0xff]  ;;  %v11061_v13 = vcombine.high %v264_v2, %v268_v3 }
 0x246   :  { %5812 = vmatpush1.bf16.msra.mxu1 %v11132_v10  ;;  %5772 = vmatprep.subr.bf16.mxu0 %v11013_v11  ;;  %v396_v8 = vld [vmem:[#allocation6 + $0x7f0] sm:$0xff]  ;;  %v11052_v10 = vcombine.low %v256_v60, %v260_v61 }
 0x247   :  { %5813 = vmatprep.subr.bf16.mxu1 %v11141_v12  ;;  %v11180_v12 = vcombine.low %v384_v62, %v388_v21  ;;  %v11189_v14 = vcombine.high %v392_v6, %v396_v8  ;;  %v400_v15 = vld [vmem:[#allocation6 + $0x810] sm:$0xff]  ;;  %v11188_v25 = vcombine.low %v392_v6, %v396_v8 }
 0x248   :  { %v408_v32 = vld [vmem:[#allocation6 + $0x850] sm:$0xff] }
 0x249   :  { %5773 = vmatpush1.bf16.msra.mxu0 %v11012_v39  ;;  %v404_v39 = vld [vmem:[#allocation6 + $0x830] sm:$0xff] }
 0x24a   :  { %5814 = vmatpush1.bf16.msra.mxu1 %v11140_v17  ;;  %5774 = vmatprep.subr.bf16.mxu0 %v11021_v18  ;;  %v528_v17 = vld [vmem:[#allocation6 + $0xc10] sm:$0xff]  ;;  %v11197_v53 = vcombine.high %v400_v15, %v404_v39 }
 0x24b   :  { %5815 = vmatprep.subr.bf16.mxu1 %v11149_v23  ;;  %v532_v18 = vld [vmem:[#allocation6 + $0xc30] sm:$0xff]  ;;  %v11060_v23 = vcombine.low %v264_v2, %v268_v3 }
 0x24c   :  { %v11325_v26 = vcombine.high %v528_v17, %v532_v18  ;;  %v11324_v33 = vcombine.low %v528_v17, %v532_v18  ;;  %v416_v36 = vld [vmem:[#allocation6 + $0x890] sm:$0xff] }
 0x24d   :  { %5775 = vmatpush1.bf16.msra.mxu0 %v11020_v54  ;;  %v412_v54 = vld [vmem:[#allocation6 + $0x870] sm:$0xff] }
 0x24e   :  { %5816 = vmatpush1.bf16.msra.mxu1 %v11148_v30  ;;  %5776 = vmatprep.subr.bf16.mxu0 %v11029_v31  ;;  %v536_v30 = vld [vmem:[#allocation6 + $0xc50] sm:$0xff]  ;;  %v11205_v34 = vcombine.high %v408_v32, %v412_v54 }
 0x24f   :  { %5817 = vmatprep.subr.bf16.mxu1 %v11157_v38  ;;  %v540_v31 = vld [vmem:[#allocation6 + $0xc70] sm:$0xff]  ;;  %v11196_v38 = vcombine.low %v400_v15, %v404_v39 }
 0x250   :  { %v11333_v35 = vcombine.high %v536_v30, %v540_v31  ;;  %v11332_v47 = vcombine.low %v536_v30, %v540_v31  ;;  %v424_v51 = vld [vmem:[#allocation6 + $0x8d0] sm:$0xff] }
 0x251   :  { %5777 = vmatpush1.bf16.msra.mxu0 %v11028_v42  ;;  %v420_v42 = vld [vmem:[#allocation6 + $0x8b0] sm:$0xff] }
 0x252   :  { %5818 = vmatpush1.bf16.msra.mxu1 %v11156_v43  ;;  %5778 = vmatprep.subr.bf16.mxu0 %v11037_v44  ;;  %v544_v43 = vld [vmem:[#allocation6 + $0xc90] sm:$0xff]  ;;  %v11213_v48 = vcombine.high %v416_v36, %v420_v42 }
 0x253   :  { %5819 = vmatprep.subr.bf16.mxu1 %v11165_v45  ;;  %v548_v44 = vld [vmem:[#allocation6 + $0xcb0] sm:$0xff]  ;;  %v11204_v45 = vcombine.low %v408_v32, %v412_v54 }
 0x254   :  { %v11341_v49 = vcombine.high %v544_v43, %v548_v44  ;;  %v11340_v60 = vcombine.low %v544_v43, %v548_v44  ;;  %v432_v21 = vld [vmem:[#allocation6 + $0x910] sm:$0xff] }
 0x255   :  { %5779 = vmatpush1.bf16.msra.mxu0 %v11036_v52  ;;  %v428_v52 = vld [vmem:[#allocation6 + $0x8f0] sm:$0xff] }
 0x256   :  { %5820 = vmatpush1.bf16.msra.mxu1 %v11164_v55  ;;  %5780 = vmatprep.subr.bf16.mxu0 %v11045_v56  ;;  %v552_v55 = vld [vmem:[#allocation6 + $0xcd0] sm:$0xff]  ;;  %v11221_v61 = vcombine.high %v424_v51, %v428_v52 }
 0x257   :  { %5821 = vmatprep.subr.bf16.mxu1 %v11173_v57  ;;  %v556_v56 = vld [vmem:[#allocation6 + $0xcf0] sm:$0xff]  ;;  %v11212_v57 = vcombine.low %v416_v36, %v420_v42 }
 0x258   :  { %v13022_v5 = vpop.f32.mrb[12].mxu1  ;;  %v11349_v62 = vcombine.high %v552_v55, %v556_v56  ;;  %v11348_v2 = vcombine.low %v552_v55, %v556_v56  ;;  %v440_v8 = vld [vmem:[#allocation6 + $0x950] sm:$0xff] }
 0x259   :  { %v13024_v9 = vpop.f32.mrb[13].mxu1  ;;  %5781 = vmatpush1.bf16.msra.mxu0 %v11044_v63  ;;  %v436_v63 = vld [vmem:[#allocation6 + $0x930] sm:$0xff] }
 0x25a   :  { %v5505_v11 = vpop.f32.mrb[14].mxu1  ;;  %5822 = vmatpush1.bf16.msra.mxu1 %v11172_v0  ;;  %5782 = vmatprep.subr.bf16.mxu0 %v11053_v27  ;;  %v560_v0 = vld [vmem:[#allocation6 + $0xd10] sm:$0xff]  ;;  %v11229_v3 = vcombine.high %v432_v21, %v436_v63 }
 0x25b   :  { %v5506_v37 = vpop.f32.mrb[15].mxu1  ;;  %5823 = vmatprep.subr.bf16.mxu1 %v11181_v1  ;;  %v564_v27 = vld [vmem:[#allocation6 + $0xd30] sm:$0xff]  ;;  %v11220_v1 = vcombine.low %v424_v51, %v428_v52 }
 0x25c   :  { %v11357_v6 = vcombine.high %v560_v0, %v564_v27  ;;  %v568_v11 = vld [vmem:[#allocation6 + $0xd50] sm:$0xff]  ;;  %v11356_v37 = vcombine.low %v560_v0, %v564_v27 }
 0x25d   :  { %5783 = vmatpush1.bf16.msra.mxu0 %v11052_v10  ;;  %v444_v10 = vld [vmem:[#allocation6 + $0x970] sm:$0xff] }
 0x25e   :  { %5824 = vmatpush1.bf16.msra.mxu1 %v11180_v12  ;;  %5784 = vmatprep.subr.bf16.mxu0 %v11061_v13  ;;  %v572_v12 = vld [vmem:[#allocation6 + $0xd70] sm:$0xff]  ;;  %v11228_v13 = vcombine.low %v432_v21, %v436_v63 }
 0x25f   :  { %5825 = vmatprep.subr.bf16.mxu1 %v11189_v14  ;;  %v11237_v14 = vcombine.high %v440_v8, %v444_v10  ;;  %v11365_v15 = vcombine.high %v568_v11, %v572_v12  ;;  %v448_v39 = vld [vmem:[#allocation6 + $0x990] sm:$0xff] }
 0x260   :  { %v452_v17 = vld [vmem:[#allocation6 + $0x9b0] sm:$0xff] }
 0x261   :  { %5785 = vmatpush1.bf16.msra.mxu0 %v11060_v23  ;;  %v576_v18 = vld [vmem:[#allocation6 + $0xd90] sm:$0xff]  ;;  %v11244_v43 = vcombine.low %v448_v39, %v452_v17 }
 0x262   :  { %5826 = vmatpush1.bf16.msra.mxu1 %v11188_v25  ;;  %5836 = vmatprep.subr.bf16.mxu0 %v11197_v53  ;;  %v580_v23 = vld [vmem:[#allocation6 + $0xdb0] sm:$0xff]  ;;  %v11236_v25 = vcombine.low %v440_v8, %v444_v10  ;;  %v11364_v53 = vcombine.low %v568_v11, %v572_v12 }
 0x263   :  { %5877 = vmatprep.subr.bf16.mxu1 %v11325_v26  ;;  %v11245_v26 = vcombine.high %v448_v39, %v452_v17  ;;  %v11373_v54 = vcombine.high %v576_v18, %v580_v23  ;;  %v456_v30 = vld [vmem:[#allocation6 + $0x9d0] sm:$0xff] }
 0x264   :  { %5787 = vmatmul.mubr.bf16.vlgmr.msra.gmra.mrb[28].mxu0 %v12928_v16  ;;  %v460_v31 = vld [vmem:[#allocation6 + $0x9f0] sm:$0xff] }
 0x265   :  { %5828 = vmatmul.mubr.bf16.vlgmr.msra.gmra.mrb[28].mxu1 %v12934_v20  ;;  %5837 = vmatpush1.bf16.msra.mxu0 %v11196_v38  ;;  %v468_v51 = vld [vmem:[#allocation6 + $0xa30] sm:$0xff]  ;;  %v11252_v55 = vcombine.low %v456_v30, %v460_v31 }
 0x266   :  { %5878 = vmatpush1.bf16.msra.mxu1 %v11324_v33  ;;  %5838 = vmatprep.subr.bf16.mxu0 %v11205_v34  ;;  %v584_v34 = vld [vmem:[#allocation6 + $0xdd0] sm:$0xff] }
 0x267   :  { %5879 = vmatprep.subr.bf16.mxu1 %v11333_v35  ;;  %5868 = vmatprep.mubr.bf16.mxu0 %v12940_v28  ;;  %v588_v35 = vld [vmem:[#allocation6 + $0xdf0] sm:$0xff] }
 0x268   :  { %5909 = vmatprep.mubr.bf16.mxu1 %v12945_v29  ;;  %v596_v52 = vld [vmem:[#allocation6 + $0xe30] sm:$0xff] }
 0x269   :  { %5839 = vmatpush1.bf16.msra.mxu0 %v11204_v45  ;;  %v11372_v45 = vcombine.low %v576_v18, %v580_v23  ;;  %v604_v21 = vld [vmem:[#allocation6 + $0xe70] sm:$0xff] }
 0x26a   :  { %5880 = vmatpush1.bf16.msra.mxu1 %v11332_v47  ;;  %5840 = vmatprep.subr.bf16.mxu0 %v11213_v48  ;;  %v11253_v47 = vcombine.high %v456_v30, %v460_v31  ;;  %v11381_v48 = vcombine.high %v584_v34, %v588_v35  ;;  %v612_v8 = vld [vmem:[#allocation6 + $0xeb0] sm:$0xff] }
 0x26b   :  { %5881 = vmatprep.subr.bf16.mxu1 %v11341_v49  ;;  %v464_v49 = vld [vmem:[#allocation6 + $0xa10] sm:$0xff] }
 0x26c   :  { %v11261_v56 = vcombine.high %v464_v49, %v468_v51  ;;  %v11260_v63 = vcombine.low %v464_v49, %v468_v51  ;;  %v620_v39 = vld [vmem:[#allocation6 + $0xef0] sm:$0xff] }
 0x26d   :  { %5841 = vmatpush1.bf16.msra.mxu0 %v11212_v57  ;;  %v512_v51 = vld [vmem:[#allocation6 + $0xb90] sm:$0xff] }
 0x26e   :  { %5882 = vmatpush1.bf16.msra.mxu1 %v11340_v60  ;;  %5842 = vmatprep.subr.bf16.mxu0 %v11221_v61  ;;  %v472_v60 = vld [vmem:[#allocation6 + $0xa50] sm:$0xff] }
 0x26f   :  { %5883 = vmatprep.subr.bf16.mxu1 %v11349_v62  ;;  %v476_v61 = vld [vmem:[#allocation6 + $0xa70] sm:$0xff] }
 0x270   :  { %v600_v62 = vld [vmem:[#allocation6 + $0xe50] sm:$0xff]  ;;  %v11269_v27 = vcombine.high %v472_v60, %v476_v61  ;;  %v11268_v10 = vcombine.low %v472_v60, %v476_v61 }
 0x271   :  { %5843 = vmatpush1.bf16.msra.mxu0 %v11220_v1  ;;  %v11397_v1 = vcombine.high %v600_v62, %v604_v21  ;;  %v11396_v11 = vcombine.low %v600_v62, %v604_v21  ;;  %v520_v61 = vld [vmem:[#allocation6 + $0xbd0] sm:$0xff] }
 0x272   :  { %5884 = vmatpush1.bf16.msra.mxu1 %v11348_v2  ;;  %5844 = vmatprep.subr.bf16.mxu0 %v11229_v3  ;;  %v480_v2 = vld [vmem:[#allocation6 + $0xa90] sm:$0xff] }
 0x273   :  { %5885 = vmatprep.subr.bf16.mxu1 %v11357_v6  ;;  %v484_v3 = vld [vmem:[#allocation6 + $0xab0] sm:$0xff] }
 0x274   :  { %v608_v6 = vld [vmem:[#allocation6 + $0xe90] sm:$0xff]  ;;  %v11277_v12 = vcombine.high %v480_v2, %v484_v3  ;;  %v11276_v17 = vcombine.low %v480_v2, %v484_v3 }
 0x275   :  { %5845 = vmatpush1.bf16.msra.mxu0 %v11228_v13  ;;  %v11405_v13 = vcombine.high %v608_v6, %v612_v8  ;;  %v11404_v18 = vcombine.low %v608_v6, %v612_v8  ;;  %v524_v62 = vld [vmem:[#allocation6 + $0xbf0] sm:$0xff] }
 0x276   :  { %5886 = vmatpush1.bf16.msra.mxu1 %v11356_v37  ;;  %5846 = vmatprep.subr.bf16.mxu0 %v11237_v14  ;;  %v488_v37 = vld [vmem:[#allocation6 + $0xad0] sm:$0xff] }
 0x277   :  { %v5542_v32 = vpop.f32.mrb[16].mxu0  ;;  %5887 = vmatprep.subr.bf16.mxu1 %v11365_v15  ;;  %v492_v14 = vld [vmem:[#allocation6 + $0xaf0] sm:$0xff] }
 0x278   :  { %v13031_v38 = vadd.f32 %v5542_v32, %v13022_v5  ;;  %v5544_v33 = vpop.f32.mrb[17].mxu0  ;;  %v592_v5 = vld [vmem:[#allocation6 + $0xe10] sm:$0xff]  ;;  %v11285_v23 = vcombine.high %v488_v37, %v492_v14  ;;  %v11284_v30 = vcombine.low %v488_v37, %v492_v14 }
 0x279   :  { %v13034_v36 = vadd.f32 %v5544_v33, %v13024_v9  ;;  %v5546_v42 = vpop.f32.mrb[18].mxu0  ;;  %5847 = vmatpush1.bf16.msra.mxu0 %v11236_v25  ;;  %v11380_v9 = vcombine.low %v584_v34, %v588_v35  ;;  %v11389_v57 = vcombine.high %v592_v5, %v596_v52  ;;  %v11388_v0 = vcombine.low %v592_v5, %v596_v52  ;;  %v616_v15 = vld [vmem:[#allocation6 + $0xed0] sm:$0xff] }
 0x27a   :  { %5888 = vmatpush1.bf16.msra.mxu1 %v11364_v53  ;;  %v5547_v44 = vpop.f32.mrb[19].mxu0  ;;  %5848 = vmatprep.subr.bf16.mxu0 %v11245_v26  ;;  %v11413_v25 = vcombine.high %v616_v15, %v620_v39  ;;  %v496_v53 = vld [vmem:[#allocation6 + $0xb10] sm:$0xff]  ;;  %v11412_v31 = vcombine.low %v616_v15, %v620_v39 }
 0x27b   :  { %5889 = vmatprep.subr.bf16.mxu1 %v11373_v54  ;;  %v500_v26 = vld [vmem:[#allocation6 + $0xb30] sm:$0xff] }
 0x27c   :  { %v624_v32 = vld [vmem:[#allocation6 + $0xf10] sm:$0xff]  ;;  %v11293_v33 = vcombine.high %v496_v53, %v500_v26 }
 0x27d   :  { %5849 = vmatpush1.bf16.msra.mxu0 %v11244_v43  ;;  %v628_v54 = vld [vmem:[#allocation6 + $0xf30] sm:$0xff] }
 0x27e   :  { %5890 = vmatpush1.bf16.msra.mxu1 %v11372_v45  ;;  %5850 = vmatprep.subr.bf16.mxu0 %v11253_v47  ;;  %v11421_v34 = vcombine.high %v624_v32, %v628_v54  ;;  %v504_v35 = vld [vmem:[#allocation6 + $0xb50] sm:$0xff]  ;;  %v11292_v45 = vcombine.low %v496_v53, %v500_v26  ;;  %v11420_v47 = vcombine.low %v624_v32, %v628_v54 }
 0x27f   :  { %5891 = vmatprep.subr.bf16.mxu1 %v11381_v48  ;;  %v508_v42 = vld [vmem:[#allocation6 + $0xb70] sm:$0xff] }
 0x280   :  { %v632_v43 = vld [vmem:[#allocation6 + $0xf50] sm:$0xff]  ;;  %v11301_v48 = vcombine.high %v504_v35, %v508_v42 }
 0x281   :  { %5851 = vmatpush1.bf16.msra.mxu0 %v11252_v55  ;;  %v636_v44 = vld [vmem:[#allocation6 + $0xf70] sm:$0xff] }
 0x282   :  { %5892 = vmatpush1.bf16.msra.mxu1 %v11380_v9  ;;  %5852 = vmatprep.subr.bf16.mxu0 %v11261_v56  ;;  %v11429_v49 = vcombine.high %v632_v43, %v636_v44  ;;  %v516_v5 = vld [vmem:[#allocation6 + $0xbb0] sm:$0xff]  ;;  %v11300_v9 = vcombine.low %v504_v35, %v508_v42  ;;  %v11428_v56 = vcombine.low %v632_v43, %v636_v44 }
 0x283   :  { %5893 = vmatprep.subr.bf16.mxu1 %v11389_v57  ;;  %v640_v52 = vld [vmem:[#allocation6 + $0xf90] sm:$0xff]  ;;  %v11309_v57 = vcombine.high %v512_v51, %v516_v5  ;;  %v11308_v2 = vcombine.low %v512_v51, %v516_v5 }
 0x284   :  { %v644_v55 = vld [vmem:[#allocation6 + $0xfb0] sm:$0xff] }
 0x285   :  { %5853 = vmatpush1.bf16.msra.mxu0 %v11260_v63  ;;  %v11437_v60 = vcombine.high %v640_v52, %v644_v55  ;;  %v648_v63 = vld [vmem:[#allocation6 + $0xfd0] sm:$0xff]  ;;  %v11436_v8 = vcombine.low %v640_v52, %v644_v55 }
 0x286   :  { %5894 = vmatpush1.bf16.msra.mxu1 %v11388_v0  ;;  %5854 = vmatprep.subr.bf16.mxu0 %v11269_v27  ;;  %v652_v0 = vld [vmem:[#allocation6 + $0xff0] sm:$0xff] }
 0x287   :  { %5895 = vmatprep.subr.bf16.mxu1 %v11397_v1  ;;  %v660_v37 = vld [vmem:[#allocation6 + $0x1030] sm:$0xff]  ;;  %v11444_v39 = vcombine.low %v648_v63, %v652_v0 }
 0x288   :  { %v784_v14 = vld [vmem:[#allocation6 + $0x1410] sm:$0xff] }
 0x289   :  { %5855 = vmatpush1.bf16.msra.mxu0 %v11268_v10  ;;  %v11317_v10 = vcombine.high %v520_v61, %v524_v62  ;;  %v788_v15 = vld [vmem:[#allocation6 + $0x1430] sm:$0xff] }
 0x28a   :  { %5896 = vmatpush1.bf16.msra.mxu1 %v11396_v11  ;;  %5856 = vmatprep.subr.bf16.mxu0 %v11277_v12  ;;  %v11445_v12 = vcombine.high %v648_v63, %v652_v0  ;;  %v796_v53 = vld [vmem:[#allocation6 + $0x1470] sm:$0xff]  ;;  %v11580_v32 = vcombine.low %v784_v14, %v788_v15 }
 0x28b   :  { %5897 = vmatprep.subr.bf16.mxu1 %v11405_v13  ;;  %v656_v13 = vld [vmem:[#allocation6 + $0x1010] sm:$0xff] }
 0x28c   :  { %v11452_v26 = vcombine.low %v656_v13, %v660_v37  ;;  %v804_v35 = vld [vmem:[#allocation6 + $0x14b0] sm:$0xff] }
 0x28d   :  { %5857 = vmatpush1.bf16.msra.mxu0 %v11276_v17  ;;  %v11453_v17 = vcombine.high %v656_v13, %v660_v37  ;;  %v812_v51 = vld [vmem:[#allocation6 + $0x14f0] sm:$0xff] }
 0x28e   :  { %5898 = vmatpush1.bf16.msra.mxu1 %v11404_v18  ;;  %5858 = vmatprep.subr.bf16.mxu0 %v11285_v23  ;;  %v664_v18 = vld [vmem:[#allocation6 + $0x1050] sm:$0xff] }
 0x28f   :  { %5899 = vmatprep.subr.bf16.mxu1 %v11413_v25  ;;  %v668_v23 = vld [vmem:[#allocation6 + $0x1070] sm:$0xff] }
 0x290   :  { %v792_v25 = vld [vmem:[#allocation6 + $0x1450] sm:$0xff]  ;;  %v11461_v54 = vcombine.high %v664_v18, %v668_v23  ;;  %v11460_v42 = vcombine.low %v664_v18, %v668_v23 }
 0x291   :  { %5859 = vmatpush1.bf16.msra.mxu0 %v11284_v30  ;;  %v11589_v30 = vcombine.high %v792_v25, %v796_v53  ;;  %v11588_v43 = vcombine.low %v792_v25, %v796_v53  ;;  %v704_v37 = vld [vmem:[#allocation6 + $0x1190] sm:$0xff] }
 0x292   :  { %5900 = vmatpush1.bf16.msra.mxu1 %v11412_v31  ;;  %5860 = vmatprep.subr.bf16.mxu0 %v11293_v33  ;;  %v672_v31 = vld [vmem:[#allocation6 + $0x1090] sm:$0xff] }
 0x293   :  { %5901 = vmatprep.subr.bf16.mxu1 %v11421_v34  ;;  %v676_v33 = vld [vmem:[#allocation6 + $0x10b0] sm:$0xff] }
 0x294   :  { %v800_v34 = vld [vmem:[#allocation6 + $0x1490] sm:$0xff]  ;;  %v11469_v44 = vcombine.high %v672_v31, %v676_v33  ;;  %v11468_v5 = vcombine.low %v672_v31, %v676_v33 }
 0x295   :  { %5861 = vmatpush1.bf16.msra.mxu0 %v11292_v45  ;;  %v11597_v45 = vcombine.high %v800_v34, %v804_v35  ;;  %v11596_v52 = vcombine.low %v800_v34, %v804_v35  ;;  %v712_v25 = vld [vmem:[#allocation6 + $0x11d0] sm:$0xff] }
 0x296   :  { %5902 = vmatpush1.bf16.msra.mxu1 %v11420_v47  ;;  %5862 = vmatprep.subr.bf16.mxu0 %v11301_v48  ;;  %v680_v47 = vld [vmem:[#allocation6 + $0x10d0] sm:$0xff] }
 0x297   :  { %5903 = vmatprep.subr.bf16.mxu1 %v11429_v49  ;;  %v684_v48 = vld [vmem:[#allocation6 + $0x10f0] sm:$0xff] }
 0x298   :  { %v5583_v21 = vpop.f32.mrb[16].mxu1  ;;  %v808_v49 = vld [vmem:[#allocation6 + $0x14d0] sm:$0xff]  ;;  %v11477_v55 = vcombine.high %v680_v47, %v684_v48 }
 0x299   :  { %v13037_v27 = vadd.f32 %v5583_v21, %v13031_v38  ;;  %v5585_v1 = vpop.f32.mrb[17].mxu1  ;;  %5863 = vmatpush1.bf16.msra.mxu0 %v11300_v9  ;;  %v11316_v38 = vcombine.low %v520_v61, %v524_v62  ;;  %v11605_v9 = vcombine.high %v808_v49, %v812_v51  ;;  %v820_v61 = vld [vmem:[#allocation6 + $0x1530] sm:$0xff]  ;;  %v11476_v62 = vcombine.low %v680_v47, %v684_v48 }
 0x29a   :  { %v13040_v3 = vadd.f32 %v5585_v1, %v13034_v36  ;;  %v5587_v6 = vpop.f32.mrb[18].mxu1  ;;  %5904 = vmatpush1.bf16.msra.mxu1 %v11428_v56  ;;  %5864 = vmatprep.subr.bf16.mxu0 %v11309_v57  ;;  %v11581_v36 = vcombine.high %v784_v14, %v788_v15  ;;  %v688_v56 = vld [vmem:[#allocation6 + $0x1110] sm:$0xff]  ;;  %v11604_v21 = vcombine.low %v808_v49, %v812_v51 }
 0x29b   :  { %v5588_v11 = vpop.f32.mrb[19].mxu1  ;;  %5905 = vmatprep.subr.bf16.mxu1 %v11437_v60  ;;  %v692_v57 = vld [vmem:[#allocation6 + $0x1130] sm:$0xff] }
 0x29c   :  { %v816_v60 = vld [vmem:[#allocation6 + $0x1510] sm:$0xff]  ;;  %v11485_v63 = vcombine.high %v688_v56, %v692_v57 }
 0x29d   :  { %5865 = vmatpush1.bf16.msra.mxu0 %v11308_v2  ;;  %v11613_v0 = vcombine.high %v816_v60, %v820_v61  ;;  %v696_v1 = vld [vmem:[#allocation6 + $0x1150] sm:$0xff]  ;;  %v11612_v11 = vcombine.low %v816_v60, %v820_v61 }
 0x29e   :  { %5906 = vmatpush1.bf16.msra.mxu1 %v11436_v8  ;;  %5866 = vmatprep.subr.bf16.mxu0 %v11317_v10  ;;  %v700_v2 = vld [vmem:[#allocation6 + $0x1170] sm:$0xff]  ;;  %v11484_v10 = vcombine.low %v688_v56, %v692_v57 }
 0x29f   :  { %5907 = vmatprep.subr.bf16.mxu1 %v11445_v12  ;;  %v824_v6 = vld [vmem:[#allocation6 + $0x1550] sm:$0xff]  ;;  %v11493_v12 = vcombine.high %v696_v1, %v700_v2 }
 0x2a0   :  { %v828_v8 = vld [vmem:[#allocation6 + $0x1570] sm:$0xff] }
 0x2a1   :  { %5867 = vmatpush1.bf16.msra.mxu0 %v11316_v38  ;;  %v11621_v13 = vcombine.high %v824_v6, %v828_v8  ;;  %v708_v14 = vld [vmem:[#allocation6 + $0x11b0] sm:$0xff] }
 0x2a2   :  { %5908 = vmatpush1.bf16.msra.mxu1 %v11444_v39  ;;  %5918 = vmatprep.subr.bf16.mxu0 %v11453_v17  ;;  %v832_v15 = vld [vmem:[#allocation6 + $0x1590] sm:$0xff]  ;;  %v11492_v39 = vcombine.low %v696_v1, %v700_v2  ;;  %v11620_v17 = vcombine.low %v824_v6, %v828_v8  ;;  %v11500_v34 = vcombine.low %v704_v37, %v708_v14 }
 0x2a3   :  { %5959 = vmatprep.subr.bf16.mxu1 %v11581_v36  ;;  %v836_v38 = vld [vmem:[#allocation6 + $0x15b0] sm:$0xff]  ;;  %v11501_v36 = vcombine.high %v704_v37, %v708_v14 }
 0x2a4   :  { %5869 = vmatmul.mubr.bf16.vlgmr.msra.gmra.mrb[32].mxu0 %v12956_v40  ;;  %v11629_v23 = vcombine.high %v832_v15, %v836_v38  ;;  %v716_v53 = vld [vmem:[#allocation6 + $0x11f0] sm:$0xff] }
 0x2a5   :  { %5910 = vmatmul.mubr.bf16.vlgmr.msra.gmra.mrb[32].mxu1 %v12960_v41  ;;  %5919 = vmatpush1.bf16.msra.mxu0 %v11452_v26  ;;  %v724_v47 = vld [vmem:[#allocation6 + $0x1230] sm:$0xff]  ;;  %v11508_v49 = vcombine.low %v712_v25, %v716_v53 }
 0x2a6   :  { %5960 = vmatpush1.bf16.msra.mxu1 %v11580_v32  ;;  %5920 = vmatprep.subr.bf16.mxu0 %v11461_v54  ;;  %v840_v54 = vld [vmem:[#allocation6 + $0x15d0] sm:$0xff] }
 0x2a7   :  { %5961 = vmatprep.subr.bf16.mxu1 %v11589_v30  ;;  %5950 = vmatprep.mubr.bf16.mxu0 %v12964_v19  ;;  %v844_v30 = vld [vmem:[#allocation6 + $0x15f0] sm:$0xff] }
 0x2a8   :  { %5991 = vmatprep.mubr.bf16.mxu1 %v12969_v22  ;;  %v852_v48 = vld [vmem:[#allocation6 + $0x1630] sm:$0xff] }
 0x2a9   :  { %5921 = vmatpush1.bf16.msra.mxu0 %v11460_v42  ;;  %v11628_v42 = vcombine.low %v832_v15, %v836_v38  ;;  %v860_v56 = vld [vmem:[#allocation6 + $0x1670] sm:$0xff] }
 0x2aa   :  { %5962 = vmatpush1.bf16.msra.mxu1 %v11588_v43  ;;  %5922 = vmatprep.subr.bf16.mxu0 %v11469_v44  ;;  %v11509_v43 = vcombine.high %v712_v25, %v716_v53  ;;  %v11637_v44 = vcombine.high %v840_v54, %v844_v30  ;;  %v868_v1 = vld [vmem:[#allocation6 + $0x16b0] sm:$0xff] }
 0x2ab   :  { %5963 = vmatprep.subr.bf16.mxu1 %v11597_v45  ;;  %v720_v45 = vld [vmem:[#allocation6 + $0x1210] sm:$0xff] }
 0x2ac   :  { %v11517_v51 = vcombine.high %v720_v45, %v724_v47  ;;  %v11516_v57 = vcombine.low %v720_v45, %v724_v47  ;;  %v876_v37 = vld [vmem:[#allocation6 + $0x16f0] sm:$0xff] }
 0x2ad   :  { %5923 = vmatpush1.bf16.msra.mxu0 %v11468_v5  ;;  %v768_v47 = vld [vmem:[#allocation6 + $0x1390] sm:$0xff] }
 0x2ae   :  { %5964 = vmatpush1.bf16.msra.mxu1 %v11596_v52  ;;  %5924 = vmatprep.subr.bf16.mxu0 %v11477_v55  ;;  %v728_v52 = vld [vmem:[#allocation6 + $0x1250] sm:$0xff] }
 0x2af   :  { %5965 = vmatprep.subr.bf16.mxu1 %v11605_v9  ;;  %v732_v55 = vld [vmem:[#allocation6 + $0x1270] sm:$0xff] }
 0x2b0   :  { %v856_v9 = vld [vmem:[#allocation6 + $0x1650] sm:$0xff]  ;;  %v11525_v61 = vcombine.high %v728_v52, %v732_v55  ;;  %v11524_v2 = vcombine.low %v728_v52, %v732_v55 }
 0x2b1   :  { %5925 = vmatpush1.bf16.msra.mxu0 %v11476_v62  ;;  %v11653_v62 = vcombine.high %v856_v9, %v860_v56  ;;  %v11652_v6 = vcombine.low %v856_v9, %v860_v56  ;;  %v776_v55 = vld [vmem:[#allocation6 + $0x13d0] sm:$0xff] }
 0x2b2   :  { %5966 = vmatpush1.bf16.msra.mxu1 %v11604_v21  ;;  %5926 = vmatprep.subr.bf16.mxu0 %v11485_v63  ;;  %v736_v21 = vld [vmem:[#allocation6 + $0x1290] sm:$0xff] }
 0x2b3   :  { %5967 = vmatprep.subr.bf16.mxu1 %v11613_v0  ;;  %v740_v63 = vld [vmem:[#allocation6 + $0x12b0] sm:$0xff] }
 0x2b4   :  { %v864_v0 = vld [vmem:[#allocation6 + $0x1690] sm:$0xff]  ;;  %v11533_v8 = vcombine.high %v736_v21, %v740_v63  ;;  %v11532_v14 = vcombine.low %v736_v21, %v740_v63 }
 0x2b5   :  { %5927 = vmatpush1.bf16.msra.mxu0 %v11484_v10  ;;  %v11661_v10 = vcombine.high %v864_v0, %v868_v1  ;;  %v11660_v15 = vcombine.low %v864_v0, %v868_v1  ;;  %v780_v9 = vld [vmem:[#allocation6 + $0x13f0] sm:$0xff] }
 0x2b6   :  { %5968 = vmatpush1.bf16.msra.mxu1 %v11612_v11  ;;  %5928 = vmatprep.subr.bf16.mxu0 %v11493_v12  ;;  %v744_v11 = vld [vmem:[#allocation6 + $0x12d0] sm:$0xff] }
 0x2b7   :  { %v5624_v18 = vpop.f32.mrb[20].mxu0  ;;  %5969 = vmatprep.subr.bf16.mxu1 %v11621_v13  ;;  %v748_v12 = vld [vmem:[#allocation6 + $0x12f0] sm:$0xff] }
 0x2b8   :  { %v13047_v26 = vadd.f32 %v5624_v18, %v13037_v27  ;;  %v5626_v32 = vpop.f32.mrb[21].mxu0  ;;  %v848_v27 = vld [vmem:[#allocation6 + $0x1610] sm:$0xff]  ;;  %v11541_v38 = vcombine.high %v744_v11, %v748_v12  ;;  %v11540_v25 = vcombine.low %v744_v11, %v748_v12  ;;  %v145_v12 = vld [vmem:[#allocation6 + $0x18] sm:$0xff] }
 0x2b9   :  { %v13050_v31 = vadd.f32 %v5626_v32, %v13040_v3  ;;  %v5628_v33 = vpop.f32.mrb[22].mxu0  ;;  %5929 = vmatpush1.bf16.msra.mxu0 %v11492_v39  ;;  %v11636_v3 = vcombine.low %v840_v54, %v844_v30  ;;  %v11645_v5 = vcombine.high %v848_v27, %v852_v48  ;;  %v11644_v60 = vcombine.low %v848_v27, %v852_v48  ;;  %v872_v13 = vld [vmem:[#allocation6 + $0x16d0] sm:$0xff] }
 0x2ba   :  { %5970 = vmatpush1.bf16.msra.mxu1 %v11620_v17  ;;  %v5629_v35 = vpop.f32.mrb[23].mxu0  ;;  %5930 = vmatprep.subr.bf16.mxu0 %v11501_v36  ;;  %v11669_v39 = vcombine.high %v872_v13, %v876_v37  ;;  %v752_v17 = vld [vmem:[#allocation6 + $0x1310] sm:$0xff]  ;;  %v11668_v53 = vcombine.low %v872_v13, %v876_v37  ;;  %v149_v13 = vld [vmem:[#allocation6 + $0x38] sm:$0xff] }
 0x2bb   :  { %5971 = vmatprep.subr.bf16.mxu1 %v11629_v23  ;;  %v756_v36 = vld [vmem:[#allocation6 + $0x1330] sm:$0xff] }
 0x2bc   :  { %v880_v18 = vld [vmem:[#allocation6 + $0x1710] sm:$0xff]  ;;  %v11549_v32 = vcombine.high %v752_v17, %v756_v36 }
 0x2bd   :  { %5931 = vmatpush1.bf16.msra.mxu0 %v11500_v34  ;;  %v884_v23 = vld [vmem:[#allocation6 + $0x1730] sm:$0xff] }
 0x2be   :  { %5972 = vmatpush1.bf16.msra.mxu1 %v11628_v42  ;;  %5932 = vmatprep.subr.bf16.mxu0 %v11509_v43  ;;  %v11677_v54 = vcombine.high %v880_v18, %v884_v23  ;;  %v760_v30 = vld [vmem:[#allocation6 + $0x1350] sm:$0xff]  ;;  %v11548_v42 = vcombine.low %v752_v17, %v756_v36  ;;  %v11676_v43 = vcombine.low %v880_v18, %v884_v23  ;;  %v157_v17 = vld [vmem:[#allocation6 + $0x78] sm:$0xff] }
 0x2bf   :  { %5973 = vmatprep.subr.bf16.mxu1 %v11637_v44  ;;  %v764_v33 = vld [vmem:[#allocation6 + $0x1370] sm:$0xff]  ;;  %v10942_v18 = vcombine.low %v145_v12, %v149_v13 }
 0x2c0   :  { %v888_v34 = vld [vmem:[#allocation6 + $0x1750] sm:$0xff]  ;;  %v11557_v44 = vcombine.high %v760_v30, %v764_v33 }
 0x2c1   :  { %5933 = vmatpush1.bf16.msra.mxu0 %v11508_v49  ;;  %v892_v35 = vld [vmem:[#allocation6 + $0x1770] sm:$0xff] }
 0x2c2   :  { %5974 = vmatpush1.bf16.msra.mxu1 %v11636_v3  ;;  %5934 = vmatprep.subr.bf16.mxu0 %v11517_v51  ;;  %v11685_v45 = vcombine.high %v888_v34, %v892_v35  ;;  %v772_v27 = vld [vmem:[#allocation6 + $0x13b0] sm:$0xff]  ;;  %v11556_v3 = vcombine.low %v760_v30, %v764_v33  ;;  %v11684_v51 = vcombine.low %v888_v34, %v892_v35  ;;  %v165_v30 = vld [vmem:[#allocation6 + $0xb8] sm:$0xff] }
 0x2c3   :  { %5975 = vmatprep.subr.bf16.mxu1 %v11645_v5  ;;  %v896_v48 = vld [vmem:[#allocation6 + $0x1790] sm:$0xff]  ;;  %v11565_v5 = vcombine.high %v768_v47, %v772_v27  ;;  %v11564_v21 = vcombine.low %v768_v47, %v772_v27  ;;  %v173_v47 = vld [vmem:[#allocation6 + $0xf8] sm:$0xff] }
 0x2c4   :  { %v900_v49 = vld [vmem:[#allocation6 + $0x17b0] sm:$0xff] }
 0x2c5   :  { %5935 = vmatpush1.bf16.msra.mxu0 %v11516_v57  ;;  %v11693_v52 = vcombine.high %v896_v48, %v900_v49  ;;  %v904_v57 = vld [vmem:[#allocation6 + $0x17d0] sm:$0xff]  ;;  %v11692_v1 = vcombine.low %v896_v48, %v900_v49 }
 0x2c6   :  { %5976 = vmatpush1.bf16.msra.mxu1 %v11644_v60  ;;  %5936 = vmatprep.subr.bf16.mxu0 %v11525_v61  ;;  %v908_v60 = vld [vmem:[#allocation6 + $0x17f0] sm:$0xff] }
 0x2c7   :  { %5977 = vmatprep.subr.bf16.mxu1 %v11653_v62  ;;  %v916_v11 = vld [vmem:[#allocation6 + $0x1830] sm:$0xff]  ;;  %v11700_v37 = vcombine.low %v904_v57, %v908_v60 }
 0x2c9   :  { %5937 = vmatpush1.bf16.msra.mxu0 %v11524_v2  ;;  %v11573_v2 = vcombine.high %v776_v55, %v780_v9 }
 0x2ca   :  { %5978 = vmatpush1.bf16.msra.mxu1 %v11652_v6  ;;  %5938 = vmatprep.subr.bf16.mxu0 %v11533_v8  ;;  %v11701_v8 = vcombine.high %v904_v57, %v908_v60  ;;  %v952_v60 = vld [vmem:[#allocation6 + $0x1950] sm:$0xff] }
 0x2cb   :  { %5979 = vmatprep.subr.bf16.mxu1 %v11661_v10  ;;  %v912_v10 = vld [vmem:[#allocation6 + $0x1810] sm:$0xff] }
 0x2cc   :  { %v11708_v36 = vcombine.low %v912_v10, %v916_v11 }
 0x2cd   :  { %5939 = vmatpush1.bf16.msra.mxu0 %v11532_v14  ;;  %v11709_v14 = vcombine.high %v912_v10, %v916_v11  ;;  %v960_v10 = vld [vmem:[#allocation6 + $0x1990] sm:$0xff] }
 0x2ce   :  { %5980 = vmatpush1.bf16.msra.mxu1 %v11660_v15  ;;  %5940 = vmatprep.subr.bf16.mxu0 %v11541_v38  ;;  %v920_v15 = vld [vmem:[#allocation6 + $0x1850] sm:$0xff] }
 0x2cf   :  { %5981 = vmatprep.subr.bf16.mxu1 %v11669_v39  ;;  %v924_v38 = vld [vmem:[#allocation6 + $0x1870] sm:$0xff]  ;;  %v153_v39 = vld [vmem:[#allocation6 + $0x58] sm:$0xff] }
 0x2d0   :  { %v11717_v23 = vcombine.high %v920_v15, %v924_v38  ;;  %v11716_v33 = vcombine.low %v920_v15, %v924_v38  ;;  %v10950_v34 = vcombine.low %v153_v39, %v157_v17  ;;  %v964_v11 = vld [vmem:[#allocation6 + $0x19b0] sm:$0xff] }
 0x2d1   :  { %5941 = vmatpush1.bf16.msra.mxu0 %v11540_v25  ;;  %v10951_v25 = vcombine.high %v153_v39, %v157_v17  ;;  %v968_v38 = vld [vmem:[#allocation6 + $0x19d0] sm:$0xff] }
 0x2d2   :  { %5982 = vmatpush1.bf16.msra.mxu1 %v11668_v53  ;;  %5942 = vmatprep.subr.bf16.mxu0 %v11549_v32  ;;  %v928_v53 = vld [vmem:[#allocation6 + $0x1890] sm:$0xff] }
 0x2d3   :  { %5983 = vmatprep.subr.bf16.mxu1 %v11677_v54  ;;  %v932_v32 = vld [vmem:[#allocation6 + $0x18b0] sm:$0xff]  ;;  %v161_v54 = vld [vmem:[#allocation6 + $0x98] sm:$0xff] }
 0x2d4   :  { %v11725_v35 = vcombine.high %v928_v53, %v932_v32  ;;  %v11724_v27 = vcombine.low %v928_v53, %v932_v32  ;;  %v10958_v48 = vcombine.low %v161_v54, %v165_v30  ;;  %v972_v39 = vld [vmem:[#allocation6 + $0x19f0] sm:$0xff] }
 0x2d5   :  { %5943 = vmatpush1.bf16.msra.mxu0 %v11548_v42  ;;  %v10959_v42 = vcombine.high %v161_v54, %v165_v30  ;;  %v11756_v30 = vcombine.low %v960_v10, %v964_v11 }
 0x2d6   :  { %5984 = vmatpush1.bf16.msra.mxu1 %v11676_v43  ;;  %5944 = vmatprep.subr.bf16.mxu0 %v11557_v44  ;;  %v936_v43 = vld [vmem:[#allocation6 + $0x18d0] sm:$0xff] }
 0x2d7   :  { %5985 = vmatprep.subr.bf16.mxu1 %v11685_v45  ;;  %v940_v44 = vld [vmem:[#allocation6 + $0x18f0] sm:$0xff]  ;;  %v169_v45 = vld [vmem:[#allocation6 + $0xd8] sm:$0xff] }
 0x2d8   :  { %v5665_v56 = vpop.f32.mrb[20].mxu1  ;;  %v11733_v49 = vcombine.high %v936_v43, %v940_v44 }
 0x2d9   :  { %v13053_v61 = vadd.f32 %v5665_v56, %v13047_v26  ;;  %v5667_v62 = vpop.f32.mrb[21].mxu1  ;;  %5945 = vmatpush1.bf16.msra.mxu0 %v11556_v3  ;;  %v11572_v26 = vcombine.low %v776_v55, %v780_v9  ;;  %v10967_v3 = vcombine.high %v169_v45, %v173_v47  ;;  %v181_v55 = vld [vmem:[#allocation6 + $0x138] sm:$0xff]  ;;  %v11732_v9 = vcombine.low %v936_v43, %v940_v44 }
 0x2da   :  { %v13056_v63 = vadd.f32 %v5667_v62, %v13050_v31  ;;  %v5669_v0 = vpop.f32.mrb[22].mxu1  ;;  %5986 = vmatpush1.bf16.msra.mxu1 %v11684_v51  ;;  %5946 = vmatprep.subr.bf16.mxu0 %v11565_v5  ;;  %v10943_v31 = vcombine.high %v145_v12, %v149_v13  ;;  %v944_v51 = vld [vmem:[#allocation6 + $0x1910] sm:$0xff]  ;;  %v10966_v56 = vcombine.low %v169_v45, %v173_v47  ;;  %v193_v12 = vld [vmem:[#allocation6 + $0x198] sm:$0xff] }
 0x2db   :  { %v5670_v6 = vpop.f32.mrb[23].mxu1  ;;  %5987 = vmatprep.subr.bf16.mxu1 %v11693_v52  ;;  %v948_v5 = vld [vmem:[#allocation6 + $0x1930] sm:$0xff]  ;;  %v177_v52 = vld [vmem:[#allocation6 + $0x118] sm:$0xff]  ;;  %v11765_v43 = vcombine.high %v968_v38, %v972_v39 }
 0x2dc   :  { %v11741_v57 = vcombine.high %v944_v51, %v948_v5  ;;  %v956_v62 = vld [vmem:[#allocation6 + $0x1970] sm:$0xff]  ;;  %v189_v0 = vld [vmem:[#allocation6 + $0x178] sm:$0xff] }
 0x2dd   :  { %5947 = vmatpush1.bf16.msra.mxu0 %v11564_v21  ;;  %v185_v21 = vld [vmem:[#allocation6 + $0x158] sm:$0xff]  ;;  %v11749_v6 = vcombine.high %v952_v60, %v956_v62 }
 0x2de   :  { %5988 = vmatpush1.bf16.msra.mxu1 %v11692_v1  ;;  %5948 = vmatprep.subr.bf16.mxu0 %v11573_v2  ;;  %v11740_v1 = vcombine.low %v944_v51, %v948_v5  ;;  %v10974_v2 = vcombine.low %v177_v52, %v181_v55  ;;  %v197_v13 = vld [vmem:[#allocation6 + $0x1b8] sm:$0xff] }
 0x2df   :  { %5989 = vmatprep.subr.bf16.mxu1 %v11701_v8  ;;  %v10983_v8 = vcombine.high %v185_v21, %v189_v0  ;;  %v10991_v15 = vcombine.high %v193_v12, %v197_v13  ;;  %v273_v47 = vld [vmem:[#allocation6 + $0x418] sm:$0xff] }
 0x2e1   :  { %5949 = vmatpush1.bf16.msra.mxu0 %v11572_v26  ;;  %v11748_v26 = vcombine.low %v952_v60, %v956_v62 }
 0x2e2   :  { %5990 = vmatpush1.bf16.msra.mxu1 %v11700_v37  ;;  %6000 = vmatprep.subr.bf16.mxu0 %v11709_v14  ;;  %v10982_v37 = vcombine.low %v185_v21, %v189_v0  ;;  %v11757_v14 = vcombine.high %v960_v10, %v964_v11  ;;  %v289_v21 = vld [vmem:[#allocation6 + $0x498] sm:$0xff] }
 0x2e3   :  { %6041 = vmatprep.subr.bf16.mxu1 %v10943_v31  ;;  %v293_v0 = vld [vmem:[#allocation6 + $0x4b8] sm:$0xff] }
 0x2e4   :  { %5951 = vmatmul.mubr.bf16.vlgmr.msra.gmra.mrb[36].mxu0 %v12976_v4  ;;  %v11087_v11 = vcombine.high %v289_v21, %v293_v0 }
 0x2e5   :  { %5992 = vmatmul.mubr.bf16.vlgmr.msra.gmra.mrb[36].mxu1 %v12980_v7  ;;  %6001 = vmatpush1.bf16.msra.mxu0 %v11708_v36 }
 0x2e6   :  { %6042 = vmatpush1.bf16.msra.mxu1 %v10942_v18  ;;  %6002 = vmatprep.subr.bf16.mxu0 %v11717_v23  ;;  %v201_v23 = vld [vmem:[#allocation6 + $0x1d8] sm:$0xff] }
 0x2e7   :  { %6043 = vmatprep.subr.bf16.mxu1 %v10951_v25  ;;  %6032 = vmatprep.mubr.bf16.mxu0 %v12785_v24  ;;  %v205_v25 = vld [vmem:[#allocation6 + $0x1f8] sm:$0xff] }
 0x2e8   :  { %6073 = vmatprep.mubr.bf16.mxu1 %v12918_v58  ;;  %v10975_v58 = vcombine.high %v177_v52, %v181_v55  ;;  %v10999_v45 = vcombine.high %v201_v23, %v205_v25  ;;  %v281_v52 = vld [vmem:[#allocation6 + $0x458] sm:$0xff] }
 0x2e9   :  { %6003 = vmatpush1.bf16.msra.mxu0 %v11716_v33  ;;  %v285_v55 = vld [vmem:[#allocation6 + $0x478] sm:$0xff] }
 0x2ea   :  { %6044 = vmatpush1.bf16.msra.mxu1 %v10950_v34  ;;  %6004 = vmatprep.subr.bf16.mxu0 %v11725_v35  ;;  %v11079_v60 = vcombine.high %v281_v52, %v285_v55 }
 0x2eb   :  { %6045 = vmatprep.subr.bf16.mxu1 %v10959_v42  ;;  %v10990_v42 = vcombine.low %v193_v12, %v197_v13  ;;  %v297_v13 = vld [vmem:[#allocation6 + $0x4d8] sm:$0xff] }
 0x2ed   :  { %6005 = vmatpush1.bf16.msra.mxu0 %v11724_v27  ;;  %v277_v27 = vld [vmem:[#allocation6 + $0x438] sm:$0xff] }
 0x2ee   :  { %6046 = vmatpush1.bf16.msra.mxu1 %v10958_v48  ;;  %6006 = vmatprep.subr.bf16.mxu0 %v11733_v49  ;;  %v213_v48 = vld [vmem:[#allocation6 + $0x238] sm:$0xff]  ;;  %v11764_v49 = vcombine.low %v968_v38, %v972_v39  ;;  %v11071_v51 = vcombine.high %v273_v47, %v277_v27 }
 0x2ef   :  { %6047 = vmatprep.subr.bf16.mxu1 %v10967_v3  ;;  %v10998_v3 = vcombine.low %v201_v23, %v205_v25 }
 0x2f1   :  { %6007 = vmatpush1.bf16.msra.mxu0 %v11732_v9  ;;  %v217_v9 = vld [vmem:[#allocation6 + $0x258] sm:$0xff] }
 0x2f2   :  { %6048 = vmatpush1.bf16.msra.mxu1 %v10966_v56  ;;  %6008 = vmatprep.subr.bf16.mxu0 %v11741_v57  ;;  %v221_v56 = vld [vmem:[#allocation6 + $0x278] sm:$0xff]  ;;  %v11070_v57 = vcombine.low %v273_v47, %v277_v27 }
 0x2f3   :  { %6049 = vmatprep.subr.bf16.mxu1 %v10975_v58  ;;  %v11015_v62 = vcombine.high %v217_v9, %v221_v56  ;;  %v11014_v10 = vcombine.low %v217_v9, %v221_v56  ;;  %v321_v47 = vld [vmem:[#allocation6 + $0x598] sm:$0xff] }
 0x2f4   :  { %v325_v27 = vld [vmem:[#allocation6 + $0x5b8] sm:$0xff] }
 0x2f5   :  { %6009 = vmatpush1.bf16.msra.mxu0 %v11740_v1  ;;  %v12585_v1 = vld [vmem:[#allocation3 + $0x30] ss:$0 sps:$4 sm:$0xff]  }
 0x2f6   :  { %6050 = vmatpush1.bf16.msra.mxu1 %v10974_v2  ;;  %6010 = vmatprep.subr.bf16.mxu0 %v11749_v6  ;;  %v225_v2 = vld [vmem:[#allocation6 + $0x298] sm:$0xff] }
 0x2f7   :  { %v5706_v31 = vpop.f32.mrb[24].mxu0  ;;  %6051 = vmatprep.subr.bf16.mxu1 %v10983_v8  ;;  %v229_v6 = vld [vmem:[#allocation6 + $0x2b8] sm:$0xff]  ;;  %v11078_v8 = vcombine.low %v281_v52, %v285_v55 }
 0x2f8   :  { %v5707_v17 = vadd.f32 %v5706_v31, %v13053_v61  ;;  %v5747_v36 = vpop.f32.mrb[24].mxu1  ;;  %v5708_v18 = vpop.f32.mrb[25].mxu0  ;;  %v11023_v12 = vcombine.high %v225_v2, %v229_v6  ;;  %v11086_v31 = vcombine.low %v289_v21, %v293_v0  ;;  %v329_v52 = vld [vmem:[#allocation6 + $0x5d8] sm:$0xff] }
 0x2f9   :  { %v5709_v53 = vadd.f32 %v5708_v18, %v13056_v63  ;;  %v5749_v32 = vpop.f32.mrb[25].mxu1  ;;  %v5710_v54 = vpop.f32.mrb[26].mxu0  ;;  %6011 = vmatpush1.bf16.msra.mxu0 %v11748_v26  ;;  %v209_v63 = vld [vmem:[#allocation6 + $0x218] sm:$0xff] }
 0x2fa   :  { %v13064_v33 = vadd.f32 %v5747_v36, %v5707_v17  ;;  %v5751_v34 = vpop.f32.mrb[26].mxu1  ;;  %6052 = vmatpush1.bf16.msra.mxu1 %v10982_v37  ;;  %v5711_v35 = vpop.f32.mrb[27].mxu0  ;;  %6012 = vmatprep.subr.bf16.mxu0 %v11757_v14  ;;  %v11007_v5 = vcombine.high %v209_v63, %v213_v48  ;;  %v11006_v58 = vcombine.low %v209_v63, %v213_v48  ;;  %v301_v26 = vld [vmem:[#allocation6 + $0x4f8] sm:$0xff] }
 0x2fb   :  { %v13066_v44 = vadd.f32 %v5749_v32, %v5709_v53  ;;  %v5752_v61 = vpop.f32.mrb[27].mxu1  ;;  %6053 = vmatprep.subr.bf16.mxu1 %v10991_v15  ;;  %v233_v37 = vld [vmem:[#allocation6 + $0x2d8] sm:$0xff]  ;;  %v11022_v15 = vcombine.low %v225_v2, %v229_v6  ;;  %v11095_v38 = vcombine.high %v297_v13, %v301_v26  ;;  %v11094_v23 = vcombine.low %v297_v13, %v301_v26 }
 0x2fc   :  { %v237_v14 = vld [vmem:[#allocation6 + $0x2f8] sm:$0xff] }
 0x2fd   :  { %6013 = vmatpush1.bf16.msra.mxu0 %v11756_v30  ;;  %v11031_v39 = vcombine.high %v233_v37, %v237_v14  ;;  %v305_v17 = vld [vmem:[#allocation6 + $0x518] sm:$0xff]  ;;  %v11030_v25 = vcombine.low %v233_v37, %v237_v14 }
 0x2fe   :  { %6054 = vmatpush1.bf16.msra.mxu1 %v10990_v42  ;;  %6014 = vmatprep.subr.bf16.mxu0 %v11765_v43  ;;  %v241_v36 = vld [vmem:[#allocation6 + $0x318] sm:$0xff] }
 0x2ff   :  { %6055 = vmatprep.subr.bf16.mxu1 %v10999_v45  ;;  %v245_v18 = vld [vmem:[#allocation6 + $0x338] sm:$0xff] }
 0x300   :  { %v11039_v32 = vcombine.high %v241_v36, %v245_v18  ;;  %v313_v54 = vld [vmem:[#allocation6 + $0x558] sm:$0xff]  ;;  %v11038_v43 = vcombine.low %v241_v36, %v245_v18 }
 0x301   :  { %6015 = vmatpush1.bf16.msra.mxu0 %v11764_v49  ;;  %v317_v30 = vld [vmem:[#allocation6 + $0x578] sm:$0xff] }
 0x302   :  { %6056 = vmatpush1.bf16.msra.mxu1 %v10998_v3  ;;  %6082 = vmatprep.subr.bf16.mxu0 %v11071_v51  ;;  %v249_v34 = vld [vmem:[#allocation6 + $0x358] sm:$0xff]  ;;  %v11111_v61 = vcombine.high %v313_v54, %v317_v30  ;;  %v11110_v49 = vcombine.low %v313_v54, %v317_v30  ;;  %v11119_v51 = vcombine.high %v321_v47, %v325_v27 }
 0x303   :  { %6057 = vmatprep.subr.bf16.mxu1 %v11007_v5  ;;  %v253_v35 = vld [vmem:[#allocation6 + $0x378] sm:$0xff] }
 0x304   :  { %6033 = vmatmul.mubr.bf16.vlgmr.msra.gmra.mrb[40].mxu0 %v12585_v1  ;;  %v11047_v45 = vcombine.high %v249_v34, %v253_v35  ;;  %v257_v63 = vld [vmem:[#allocation6 + $0x398] sm:$0xff]  ;;  %v11046_v3 = vcombine.low %v249_v34, %v253_v35 }
 0x305   :  { %6083 = vmatpush1.bf16.msra.mxu0 %v11070_v57  ;;  %6114 = vmatprep.mubr.bf16.mxu0 %v12922_v59  ;;  %v309_v59 = vld [vmem:[#allocation6 + $0x538] sm:$0xff]  ;;  %v11118_v57 = vcombine.low %v321_v47, %v325_v27 }
 0x306   :  { %6058 = vmatpush1.bf16.msra.mxu1 %v11006_v58  ;;  %6084 = vmatprep.subr.bf16.mxu0 %v11079_v60  ;;  %v11103_v53 = vcombine.high %v305_v17, %v309_v59  ;;  %v11102_v42 = vcombine.low %v305_v17, %v309_v59  ;;  %v261_v48 = vld [vmem:[#allocation6 + $0x3b8] sm:$0xff] }
 0x307   :  { %6059 = vmatprep.subr.bf16.mxu1 %v11015_v62  ;;  %v11055_v5 = vcombine.high %v257_v63, %v261_v48  ;;  %v333_v55 = vld [vmem:[#allocation6 + $0x5f8] sm:$0xff]  ;;  %v11054_v58 = vcombine.low %v257_v63, %v261_v48 }
 0x308   :  { %v265_v9 = vld [vmem:[#allocation6 + $0x3d8] sm:$0xff]  ;;  %v11127_v60 = vcombine.high %v329_v52, %v333_v55  ;;  %v11126_v6 = vcombine.low %v329_v52, %v333_v55 }
 0x309   :  { %6085 = vmatpush1.bf16.msra.mxu0 %v11078_v8  ;;  %v269_v56 = vld [vmem:[#allocation6 + $0x3f8] sm:$0xff] }
 0x30a   :  { %6060 = vmatpush1.bf16.msra.mxu1 %v11014_v10  ;;  %6086 = vmatprep.subr.bf16.mxu0 %v11087_v11  ;;  %v11063_v62 = vcombine.high %v265_v9, %v269_v56  ;;  %v337_v21 = vld [vmem:[#allocation6 + $0x618] sm:$0xff]  ;;  %v11062_v8 = vcombine.low %v265_v9, %v269_v56 }
 0x30b   :  { %6061 = vmatprep.subr.bf16.mxu1 %v11023_v12  ;;  %v341_v0 = vld [vmem:[#allocation6 + $0x638] sm:$0xff] }
 0x30c   :  { %v401_v1 = vld [vmem:[#allocation6 + $0x818] sm:$0xff]  ;;  %v11135_v10 = vcombine.high %v337_v21, %v341_v0  ;;  %v11134_v14 = vcombine.low %v337_v21, %v341_v0 }
 0x30d   :  { %6087 = vmatpush1.bf16.msra.mxu0 %v11086_v31  ;;  %v405_v2 = vld [vmem:[#allocation6 + $0x838] sm:$0xff] }
 0x30e   :  { %6062 = vmatpush1.bf16.msra.mxu1 %v11022_v15  ;;  %6088 = vmatprep.subr.bf16.mxu0 %v11095_v38  ;;  %v11199_v11 = vcombine.high %v401_v1, %v405_v2  ;;  %v345_v12 = vld [vmem:[#allocation6 + $0x658] sm:$0xff]  ;;  %v11198_v31 = vcombine.low %v401_v1, %v405_v2 }
 0x30f   :  { %6063 = vmatprep.subr.bf16.mxu1 %v11031_v39  ;;  %v349_v13 = vld [vmem:[#allocation6 + $0x678] sm:$0xff] }
 0x310   :  { %v409_v26 = vld [vmem:[#allocation6 + $0x858] sm:$0xff]  ;;  %v11143_v15 = vcombine.high %v345_v12, %v349_v13  ;;  %v11142_v18 = vcombine.low %v345_v12, %v349_v13 }
 0x311   :  { %6089 = vmatpush1.bf16.msra.mxu0 %v11094_v23  ;;  %v413_v37 = vld [vmem:[#allocation6 + $0x878] sm:$0xff] }
 0x312   :  { %6064 = vmatpush1.bf16.msra.mxu1 %v11030_v25  ;;  %6090 = vmatprep.subr.bf16.mxu0 %v11103_v53  ;;  %v11207_v38 = vcombine.high %v409_v26, %v413_v37  ;;  %v353_v39 = vld [vmem:[#allocation6 + $0x698] sm:$0xff]  ;;  %v11206_v23 = vcombine.low %v409_v26, %v413_v37 }
 0x313   :  { %6065 = vmatprep.subr.bf16.mxu1 %v11039_v32  ;;  %v357_v17 = vld [vmem:[#allocation6 + $0x6b8] sm:$0xff] }
 0x314   :  { %v417_v59 = vld [vmem:[#allocation6 + $0x898] sm:$0xff]  ;;  %v11151_v25 = vcombine.high %v353_v39, %v357_v17  ;;  %v11150_v35 = vcombine.low %v353_v39, %v357_v17 }
 0x315   :  { %6091 = vmatpush1.bf16.msra.mxu0 %v11102_v42  ;;  %v421_v36 = vld [vmem:[#allocation6 + $0x8b8] sm:$0xff] }
 0x316   :  { %6066 = vmatpush1.bf16.msra.mxu1 %v11038_v43  ;;  %6092 = vmatprep.subr.bf16.mxu0 %v11111_v61  ;;  %v11215_v53 = vcombine.high %v417_v59, %v421_v36  ;;  %v361_v32 = vld [vmem:[#allocation6 + $0x6d8] sm:$0xff]  ;;  %v11214_v42 = vcombine.low %v417_v59, %v421_v36 }
 0x317   :  { %6067 = vmatprep.subr.bf16.mxu1 %v11047_v45  ;;  %v365_v54 = vld [vmem:[#allocation6 + $0x6f8] sm:$0xff] }
 0x318   :  { %v425_v30 = vld [vmem:[#allocation6 + $0x8d8] sm:$0xff]  ;;  %v11158_v63 = vcombine.low %v361_v32, %v365_v54 }
 0x319   :  { %6093 = vmatpush1.bf16.msra.mxu0 %v11110_v49  ;;  %v429_v34 = vld [vmem:[#allocation6 + $0x8f8] sm:$0xff] }
 0x31a   :  { %6068 = vmatpush1.bf16.msra.mxu1 %v11046_v3  ;;  %6094 = vmatprep.subr.bf16.mxu0 %v11119_v51  ;;  %v11223_v43 = vcombine.high %v425_v30, %v429_v34  ;;  %v369_v61 = vld [vmem:[#allocation6 + $0x718] sm:$0xff]  ;;  %v11222_v48 = vcombine.low %v425_v30, %v429_v34 }
 0x31b   :  { %6069 = vmatprep.subr.bf16.mxu1 %v11055_v5  ;;  %v373_v45 = vld [vmem:[#allocation6 + $0x738] sm:$0xff] }
 0x31c   :  { %v433_v47 = vld [vmem:[#allocation6 + $0x918] sm:$0xff]  ;;  %v11166_v55 = vcombine.low %v369_v61, %v373_v45 }
 0x31d   :  { %6095 = vmatpush1.bf16.msra.mxu0 %v11118_v57  ;;  %v437_v27 = vld [vmem:[#allocation6 + $0x938] sm:$0xff] }
 0x31e   :  { %6070 = vmatpush1.bf16.msra.mxu1 %v11054_v58  ;;  %6096 = vmatprep.subr.bf16.mxu0 %v11127_v60  ;;  %v11231_v49 = vcombine.high %v433_v47, %v437_v27  ;;  %v377_v3 = vld [vmem:[#allocation6 + $0x758] sm:$0xff]  ;;  %v11230_v9 = vcombine.low %v433_v47, %v437_v27 }
 0x31f   :  { %6071 = vmatprep.subr.bf16.mxu1 %v11063_v62  ;;  %v381_v51 = vld [vmem:[#allocation6 + $0x778] sm:$0xff] }
 0x320   :  { %v441_v5 = vld [vmem:[#allocation6 + $0x958] sm:$0xff]  ;;  %v11175_v56 = vcombine.high %v377_v3, %v381_v51  ;;  %v11174_v0 = vcombine.low %v377_v3, %v381_v51 }
 0x321   :  { %6097 = vmatpush1.bf16.msra.mxu0 %v11126_v6  ;;  %v445_v52 = vld [vmem:[#allocation6 + $0x978] sm:$0xff] }
 0x322   :  { %6072 = vmatpush1.bf16.msra.mxu1 %v11062_v8  ;;  %6098 = vmatprep.subr.bf16.mxu0 %v11135_v10  ;;  %v11239_v57 = vcombine.high %v441_v5, %v445_v52  ;;  %v385_v58 = vld [vmem:[#allocation6 + $0x798] sm:$0xff]  ;;  %v11238_v1 = vcombine.low %v441_v5, %v445_v52 }
 0x323   :  { %6123 = vmatprep.subr.bf16.mxu1 %v11199_v11  ;;  %v389_v60 = vld [vmem:[#allocation6 + $0x7b8] sm:$0xff] }
 0x324   :  { %v449_v62 = vld [vmem:[#allocation6 + $0x998] sm:$0xff]  ;;  %v11183_v2 = vcombine.high %v385_v58, %v389_v60 }
 0x325   :  { %6074 = vmatmul.mubr.bf16.vlgmr.msra.gmra.mrb[40].mxu1 %v12928_v16  ;;  %6099 = vmatpush1.bf16.msra.mxu0 %v11134_v14  ;;  %v11159_v16 = vcombine.high %v361_v32, %v365_v54  ;;  %v453_v21 = vld [vmem:[#allocation6 + $0x9b8] sm:$0xff] }
 0x326   :  { %6124 = vmatpush1.bf16.msra.mxu1 %v11198_v31  ;;  %6100 = vmatprep.subr.bf16.mxu0 %v11143_v15  ;;  %v11247_v8 = vcombine.high %v449_v62, %v453_v21  ;;  %v393_v10 = vld [vmem:[#allocation6 + $0x7d8] sm:$0xff]  ;;  %v11246_v36 = vcombine.low %v449_v62, %v453_v21 }
 0x327   :  { %6125 = vmatprep.subr.bf16.mxu1 %v11207_v38  ;;  %6155 = vmatprep.mubr.bf16.mxu1 %v12940_v28  ;;  %v11167_v28 = vcombine.high %v369_v61, %v373_v45  ;;  %v397_v11 = vld [vmem:[#allocation6 + $0x7f8] sm:$0xff]  ;;  %v11182_v38 = vcombine.low %v385_v58, %v389_v60 }
 0x328   :  { %v457_v26 = vld [vmem:[#allocation6 + $0x9d8] sm:$0xff]  ;;  %v11190_v34 = vcombine.low %v393_v10, %v397_v11 }
 0x329   :  { %6101 = vmatpush1.bf16.msra.mxu0 %v11142_v18  ;;  %v461_v37 = vld [vmem:[#allocation6 + $0x9f8] sm:$0xff]  ;;  %v11191_v18 = vcombine.high %v393_v10, %v397_v11 }
 0x32a   :  { %6126 = vmatpush1.bf16.msra.mxu1 %v11206_v23  ;;  %6102 = vmatprep.subr.bf16.mxu0 %v11151_v25  ;;  %v11255_v25 = vcombine.high %v457_v26, %v461_v37  ;;  %v533_v32 = vld [vmem:[#allocation6 + $0xc38] sm:$0xff] }
 0x32b   :  { %6127 = vmatprep.subr.bf16.mxu1 %v11215_v53  ;;  %v529_v53 = vld [vmem:[#allocation6 + $0xc18] sm:$0xff] }
 0x32c   :  { %v465_v54 = vld [vmem:[#allocation6 + $0xa18] sm:$0xff]  ;;  %v11326_v27 = vcombine.low %v529_v53, %v533_v32 }
 0x32d   :  { %6103 = vmatpush1.bf16.msra.mxu0 %v11150_v35  ;;  %v469_v30 = vld [vmem:[#allocation6 + $0xa38] sm:$0xff]  ;;  %v11254_v35 = vcombine.low %v457_v26, %v461_v37 }
 0x32e   :  { %6128 = vmatpush1.bf16.msra.mxu1 %v11214_v42  ;;  %6104 = vmatprep.subr.bf16.mxu0 %v11159_v16  ;;  %v11327_v42 = vcombine.high %v529_v53, %v533_v32  ;;  %v11263_v16 = vcombine.high %v465_v54, %v469_v30  ;;  %v541_v61 = vld [vmem:[#allocation6 + $0xc78] sm:$0xff] }
 0x32f   :  { %6129 = vmatprep.subr.bf16.mxu1 %v11223_v43  ;;  %v537_v43 = vld [vmem:[#allocation6 + $0xc58] sm:$0xff] }
 0x330   :  { %v473_v45 = vld [vmem:[#allocation6 + $0xa58] sm:$0xff]  ;;  %v11334_v52 = vcombine.low %v537_v43, %v541_v61 }
 0x331   :  { %6105 = vmatpush1.bf16.msra.mxu0 %v11158_v63  ;;  %v477_v47 = vld [vmem:[#allocation6 + $0xa78] sm:$0xff]  ;;  %v11262_v63 = vcombine.low %v465_v54, %v469_v30 }
 0x332   :  { %6130 = vmatpush1.bf16.msra.mxu1 %v11222_v48  ;;  %6106 = vmatprep.subr.bf16.mxu0 %v11167_v28  ;;  %v11335_v48 = vcombine.high %v537_v43, %v541_v61  ;;  %v11271_v28 = vcombine.high %v473_v45, %v477_v47  ;;  %v549_v3 = vld [vmem:[#allocation6 + $0xcb8] sm:$0xff] }
 0x333   :  { %6131 = vmatprep.subr.bf16.mxu1 %v11231_v49  ;;  %v545_v49 = vld [vmem:[#allocation6 + $0xc98] sm:$0xff] }
 0x334   :  { %v481_v51 = vld [vmem:[#allocation6 + $0xa98] sm:$0xff]  ;;  %v11342_v21 = vcombine.low %v545_v49, %v549_v3 }
 0x335   :  { %6107 = vmatpush1.bf16.msra.mxu0 %v11166_v55  ;;  %v485_v5 = vld [vmem:[#allocation6 + $0xab8] sm:$0xff]  ;;  %v11270_v55 = vcombine.low %v473_v45, %v477_v47 }
 0x336   :  { %6132 = vmatpush1.bf16.msra.mxu1 %v11230_v9  ;;  %6108 = vmatprep.subr.bf16.mxu0 %v11175_v56  ;;  %v11343_v9 = vcombine.high %v545_v49, %v549_v3  ;;  %v11279_v56 = vcombine.high %v481_v51, %v485_v5  ;;  %v557_v58 = vld [vmem:[#allocation6 + $0xcf8] sm:$0xff] }
 0x337   :  { %v5788_v6 = vpop.f32.mrb[28].mxu0  ;;  %6133 = vmatprep.subr.bf16.mxu1 %v11239_v57  ;;  %v553_v57 = vld [vmem:[#allocation6 + $0xcd8] sm:$0xff] }
 0x338   :  { %v5829_v12 = vpop.f32.mrb[28].mxu1  ;;  %v5790_v13 = vpop.f32.mrb[29].mxu0  ;;  %v489_v60 = vld [vmem:[#allocation6 + $0xad8] sm:$0xff]  ;;  %v11350_v10 = vcombine.low %v553_v57, %v557_v58 }
 0x339   :  { %v13071_v14 = vadd.f32 %v5829_v12, %v5788_v6  ;;  %v5831_v31 = vpop.f32.mrb[29].mxu1  ;;  %v5792_v15 = vpop.f32.mrb[30].mxu0  ;;  %6109 = vmatpush1.bf16.msra.mxu0 %v11174_v0  ;;  %v493_v62 = vld [vmem:[#allocation6 + $0xaf8] sm:$0xff]  ;;  %v11351_v0 = vcombine.high %v553_v57, %v557_v58 }
 0x33a   :  { %v13073_v39 = vadd.f32 %v5831_v31, %v5790_v13  ;;  %v5833_v17 = vpop.f32.mrb[30].mxu1  ;;  %6134 = vmatpush1.bf16.msra.mxu1 %v11238_v1  ;;  %v5793_v59 = vpop.f32.mrb[31].mxu0  ;;  %6110 = vmatprep.subr.bf16.mxu0 %v11183_v2  ;;  %v11287_v1 = vcombine.high %v489_v60, %v493_v62  ;;  %v561_v2 = vld [vmem:[#allocation6 + $0xd18] sm:$0xff]  ;;  %v11286_v11 = vcombine.low %v489_v60, %v493_v62 }
 0x33b   :  { %v5834_v23 = vpop.f32.mrb[31].mxu1  ;;  %6135 = vmatprep.subr.bf16.mxu1 %v11247_v8  ;;  %v497_v6 = vld [vmem:[#allocation6 + $0xb18] sm:$0xff] }
 0x33c   :  { %v501_v8 = vld [vmem:[#allocation6 + $0xb38] sm:$0xff] }
 0x33d   :  { %6111 = vmatpush1.bf16.msra.mxu0 %v11182_v38  ;;  %v11295_v13 = vcombine.high %v497_v6, %v501_v8  ;;  %v569_v26 = vld [vmem:[#allocation6 + $0xd58] sm:$0xff]  ;;  %v11294_v17 = vcombine.low %v497_v6, %v501_v8 }
 0x33e   :  { %6136 = vmatpush1.bf16.msra.mxu1 %v11246_v36  ;;  %6112 = vmatprep.subr.bf16.mxu0 %v11191_v18  ;;  %v573_v37 = vld [vmem:[#allocation6 + $0xd78] sm:$0xff] }
 0x33f   :  { %6137 = vmatprep.subr.bf16.mxu1 %v11255_v25  ;;  %v505_v31 = vld [vmem:[#allocation6 + $0xb58] sm:$0xff]  ;;  %v11367_v59 = vcombine.high %v569_v26, %v573_v37  ;;  %v11366_v32 = vcombine.low %v569_v26, %v573_v37 }
 0x340   :  { %v509_v15 = vld [vmem:[#allocation6 + $0xb78] sm:$0xff] }
 0x341   :  { %6113 = vmatpush1.bf16.msra.mxu0 %v11190_v34  ;;  %v11303_v36 = vcombine.high %v505_v31, %v509_v15  ;;  %v577_v18 = vld [vmem:[#allocation6 + $0xd98] sm:$0xff]  ;;  %v11302_v54 = vcombine.low %v505_v31, %v509_v15 }
 0x342   :  { %6138 = vmatpush1.bf16.msra.mxu1 %v11254_v35  ;;  %6164 = vmatprep.subr.bf16.mxu0 %v11327_v42  ;;  %v581_v23 = vld [vmem:[#allocation6 + $0xdb8] sm:$0xff] }
 0x343   :  { %6139 = vmatprep.subr.bf16.mxu1 %v11263_v16  ;;  %v513_v25 = vld [vmem:[#allocation6 + $0xb98] sm:$0xff]  ;;  %v11375_v30 = vcombine.high %v577_v18, %v581_v23  ;;  %v11374_v61 = vcombine.low %v577_v18, %v581_v23 }
 0x344   :  { %6115 = vmatmul.mubr.bf16.vlgmr.msra.gmra.mrb[44].mxu0 %v12934_v20  ;;  %v11278_v20 = vcombine.low %v481_v51, %v485_v5  ;;  %v517_v53 = vld [vmem:[#allocation6 + $0xbb8] sm:$0xff] }
 0x345   :  { %6165 = vmatpush1.bf16.msra.mxu0 %v11326_v27  ;;  %6196 = vmatprep.mubr.bf16.mxu0 %v12945_v29  ;;  %v565_v29 = vld [vmem:[#allocation6 + $0xd38] sm:$0xff]  ;;  %v11311_v34 = vcombine.high %v513_v25, %v517_v53  ;;  %v11310_v45 = vcombine.low %v513_v25, %v517_v53 }
 0x346   :  { %6140 = vmatpush1.bf16.msra.mxu1 %v11262_v63  ;;  %6166 = vmatprep.subr.bf16.mxu0 %v11335_v48  ;;  %v11359_v12 = vcombine.high %v561_v2, %v565_v29  ;;  %v11358_v38 = vcombine.low %v561_v2, %v565_v29  ;;  %v585_v35 = vld [vmem:[#allocation6 + $0xdd8] sm:$0xff] }
 0x347   :  { %6141 = vmatprep.subr.bf16.mxu1 %v11271_v28  ;;  %v589_v42 = vld [vmem:[#allocation6 + $0xdf8] sm:$0xff] }
 0x348   :  { %v521_v16 = vld [vmem:[#allocation6 + $0xbd8] sm:$0xff]  ;;  %v11383_v47 = vcombine.high %v585_v35, %v589_v42  ;;  %v11382_v3 = vcombine.low %v585_v35, %v589_v42 }
 0x349   :  { %6167 = vmatpush1.bf16.msra.mxu0 %v11334_v52  ;;  %v525_v43 = vld [vmem:[#allocation6 + $0xbf8] sm:$0xff] }
 0x34a   :  { %6142 = vmatpush1.bf16.msra.mxu1 %v11270_v55  ;;  %6168 = vmatprep.subr.bf16.mxu0 %v11343_v9  ;;  %v11319_v27 = vcombine.high %v521_v16, %v525_v43  ;;  %v593_v63 = vld [vmem:[#allocation6 + $0xe18] sm:$0xff]  ;;  %v11318_v51 = vcombine.low %v521_v16, %v525_v43 }
 0x34b   :  { %6143 = vmatprep.subr.bf16.mxu1 %v11279_v56  ;;  %v597_v48 = vld [vmem:[#allocation6 + $0xe38] sm:$0xff] }
 0x34c   :  { %v657_v28 = vld [vmem:[#allocation6 + $0x1018] sm:$0xff]  ;;  %v11391_v5 = vcombine.high %v593_v63, %v597_v48  ;;  %v11390_v58 = vcombine.low %v593_v63, %v597_v48 }
 0x34d   :  { %6169 = vmatpush1.bf16.msra.mxu0 %v11342_v21  ;;  %v661_v49 = vld [vmem:[#allocation6 + $0x1038] sm:$0xff] }
 0x34e   :  { %6144 = vmatpush1.bf16.msra.mxu1 %v11278_v20  ;;  %6170 = vmatprep.subr.bf16.mxu0 %v11351_v0  ;;  %v11455_v52 = vcombine.high %v657_v28, %v661_v49  ;;  %v601_v55 = vld [vmem:[#allocation6 + $0xe58] sm:$0xff]  ;;  %v11454_v60 = vcombine.low %v657_v28, %v661_v49 }
 0x34f   :  { %6145 = vmatprep.subr.bf16.mxu1 %v11287_v1  ;;  %v605_v9 = vld [vmem:[#allocation6 + $0xe78] sm:$0xff] }
 0x350   :  { %v665_v56 = vld [vmem:[#allocation6 + $0x1058] sm:$0xff]  ;;  %v11399_v62 = vcombine.high %v601_v55, %v605_v9  ;;  %v11398_v29 = vcombine.low %v601_v55, %v605_v9 }
 0x351   :  { %6171 = vmatpush1.bf16.msra.mxu0 %v11350_v10  ;;  %v669_v57 = vld [vmem:[#allocation6 + $0x1078] sm:$0xff] }
 0x352   :  { %6146 = vmatpush1.bf16.msra.mxu1 %v11286_v11  ;;  %6172 = vmatprep.subr.bf16.mxu0 %v11359_v12  ;;  %v11463_v21 = vcombine.high %v665_v56, %v669_v57  ;;  %v609_v20 = vld [vmem:[#allocation6 + $0xe98] sm:$0xff]  ;;  %v11462_v6 = vcombine.low %v665_v56, %v669_v57 }
 0x353   :  { %6147 = vmatprep.subr.bf16.mxu1 %v11295_v13  ;;  %v613_v0 = vld [vmem:[#allocation6 + $0xeb8] sm:$0xff] }
 0x354   :  { %v673_v1 = vld [vmem:[#allocation6 + $0x1098] sm:$0xff]  ;;  %v11407_v8 = vcombine.high %v609_v20, %v613_v0  ;;  %v11406_v37 = vcombine.low %v609_v20, %v613_v0 }
 0x355   :  { %6173 = vmatpush1.bf16.msra.mxu0 %v11358_v38  ;;  %v677_v2 = vld [vmem:[#allocation6 + $0x10b8] sm:$0xff] }
 0x356   :  { %6148 = vmatpush1.bf16.msra.mxu1 %v11294_v17  ;;  %6174 = vmatprep.subr.bf16.mxu0 %v11367_v59  ;;  %v11471_v10 = vcombine.high %v673_v1, %v677_v2  ;;  %v617_v11 = vld [vmem:[#allocation6 + $0xed8] sm:$0xff]  ;;  %v11470_v31 = vcombine.low %v673_v1, %v677_v2 }
 0x357   :  { %6149 = vmatprep.subr.bf16.mxu1 %v11303_v36  ;;  %v621_v12 = vld [vmem:[#allocation6 + $0xef8] sm:$0xff] }
 0x358   :  { %v681_v13 = vld [vmem:[#allocation6 + $0x10d8] sm:$0xff]  ;;  %v11414_v18 = vcombine.low %v617_v11, %v621_v12 }
 0x359   :  { %6175 = vmatpush1.bf16.msra.mxu0 %v11366_v32  ;;  %v685_v26 = vld [vmem:[#allocation6 + $0x10f8] sm:$0xff] }
 0x35a   :  { %6150 = vmatpush1.bf16.msra.mxu1 %v11302_v54  ;;  %6176 = vmatprep.subr.bf16.mxu0 %v11375_v30  ;;  %v11479_v15 = vcombine.high %v681_v13, %v685_v26  ;;  %v625_v38 = vld [vmem:[#allocation6 + $0xf18] sm:$0xff]  ;;  %v11478_v23 = vcombine.low %v681_v13, %v685_v26 }
 0x35b   :  { %6151 = vmatprep.subr.bf16.mxu1 %v11311_v34  ;;  %v629_v17 = vld [vmem:[#allocation6 + $0xf38] sm:$0xff] }
 0x35c   :  { %v689_v59 = vld [vmem:[#allocation6 + $0x1118] sm:$0xff]  ;;  %v11422_v34 = vcombine.low %v625_v38, %v629_v17 }
 0x35d   :  { %6177 = vmatpush1.bf16.msra.mxu0 %v11374_v61  ;;  %v693_v36 = vld [vmem:[#allocation6 + $0x1138] sm:$0xff] }
 0x35e   :  { %6152 = vmatpush1.bf16.msra.mxu1 %v11310_v45  ;;  %6178 = vmatprep.subr.bf16.mxu0 %v11383_v47  ;;  %v11487_v25 = vcombine.high %v689_v59, %v693_v36  ;;  %v633_v53 = vld [vmem:[#allocation6 + $0xf58] sm:$0xff]  ;;  %v11486_v35 = vcombine.low %v689_v59, %v693_v36 }
 0x35f   :  { %6153 = vmatprep.subr.bf16.mxu1 %v11319_v27  ;;  %v637_v32 = vld [vmem:[#allocation6 + $0xf78] sm:$0xff] }
 0x360   :  { %v697_v54 = vld [vmem:[#allocation6 + $0x1158] sm:$0xff]  ;;  %v11431_v42 = vcombine.high %v633_v53, %v637_v32  ;;  %v11430_v27 = vcombine.low %v633_v53, %v637_v32 }
 0x361   :  { %6179 = vmatpush1.bf16.msra.mxu0 %v11382_v3  ;;  %v701_v30 = vld [vmem:[#allocation6 + $0x1178] sm:$0xff] }
 0x362   :  { %6154 = vmatpush1.bf16.msra.mxu1 %v11318_v51  ;;  %6180 = vmatprep.subr.bf16.mxu0 %v11391_v5  ;;  %v11495_v16 = vcombine.high %v697_v54, %v701_v30  ;;  %v641_v43 = vld [vmem:[#allocation6 + $0xf98] sm:$0xff]  ;;  %v11494_v63 = vcombine.low %v697_v54, %v701_v30 }
 0x363   :  { %6205 = vmatprep.subr.bf16.mxu1 %v11455_v52  ;;  %v645_v61 = vld [vmem:[#allocation6 + $0xfb8] sm:$0xff] }
 0x364   :  { %v705_v45 = vld [vmem:[#allocation6 + $0x1198] sm:$0xff]  ;;  %v11439_v48 = vcombine.high %v641_v43, %v645_v61 }
 0x365   :  { %6156 = vmatmul.mubr.bf16.vlgmr.msra.gmra.mrb[44].mxu1 %v12956_v40  ;;  %6181 = vmatpush1.bf16.msra.mxu0 %v11390_v58  ;;  %v11415_v40 = vcombine.high %v617_v11, %v621_v12  ;;  %v709_v47 = vld [vmem:[#allocation6 + $0x11b8] sm:$0xff] }
 0x366   :  { %6206 = vmatpush1.bf16.msra.mxu1 %v11454_v60  ;;  %6182 = vmatprep.subr.bf16.mxu0 %v11399_v62  ;;  %v11503_v49 = vcombine.high %v705_v45, %v709_v47  ;;  %v649_v3 = vld [vmem:[#allocation6 + $0xfd8] sm:$0xff]  ;;  %v11438_v62 = vcombine.low %v641_v43, %v645_v61  ;;  %v11502_v1 = vcombine.low %v705_v45, %v709_v47 }
 0x367   :  { %6207 = vmatprep.subr.bf16.mxu1 %v11463_v21  ;;  %6237 = vmatprep.mubr.bf16.mxu1 %v12964_v19  ;;  %v11423_v19 = vcombine.high %v625_v38, %v629_v17  ;;  %v653_v51 = vld [vmem:[#allocation6 + $0xff8] sm:$0xff] }
 0x368   :  { %v713_v9 = vld [vmem:[#allocation6 + $0x11d8] sm:$0xff]  ;;  %v11447_v2 = vcombine.high %v649_v3, %v653_v51  ;;  %v11446_v12 = vcombine.low %v649_v3, %v653_v51 }
 0x369   :  { %6183 = vmatpush1.bf16.msra.mxu0 %v11398_v29  ;;  %v717_v56 = vld [vmem:[#allocation6 + $0x11f8] sm:$0xff] }
 0x36a   :  { %6208 = vmatpush1.bf16.msra.mxu1 %v11462_v6  ;;  %6184 = vmatprep.subr.bf16.mxu0 %v11407_v8  ;;  %v11511_v6 = vcombine.high %v713_v9, %v717_v56  ;;  %v785_v8 = vld [vmem:[#allocation6 + $0x1418] sm:$0xff]  ;;  %v11510_v13 = vcombine.low %v713_v9, %v717_v56 }
 0x36b   :  { %6209 = vmatprep.subr.bf16.mxu1 %v11471_v10  ;;  %v789_v10 = vld [vmem:[#allocation6 + $0x1438] sm:$0xff] }
 0x36c   :  { %v725_v11 = vld [vmem:[#allocation6 + $0x1238] sm:$0xff]  ;;  %v11583_v26 = vcombine.high %v785_v8, %v789_v10  ;;  %v11582_v17 = vcombine.low %v785_v8, %v789_v10 }
 0x36d   :  { %6185 = vmatpush1.bf16.msra.mxu0 %v11406_v37  ;;  %v733_v38 = vld [vmem:[#allocation6 + $0x1278] sm:$0xff] }
 0x36e   :  { %6210 = vmatpush1.bf16.msra.mxu1 %v11470_v31  ;;  %6186 = vmatprep.subr.bf16.mxu0 %v11415_v40  ;;  %v793_v31 = vld [vmem:[#allocation6 + $0x1458] sm:$0xff] }
 0x36f   :  { %6211 = vmatprep.subr.bf16.mxu1 %v11479_v15  ;;  %v797_v40 = vld [vmem:[#allocation6 + $0x1478] sm:$0xff] }
 0x370   :  { %v729_v15 = vld [vmem:[#allocation6 + $0x1258] sm:$0xff]  ;;  %v11591_v36 = vcombine.high %v793_v31, %v797_v40  ;;  %v11590_v32 = vcombine.low %v793_v31, %v797_v40 }
 0x371   :  { %6187 = vmatpush1.bf16.msra.mxu0 %v11414_v18  ;;  %v11527_v18 = vcombine.high %v729_v15, %v733_v38  ;;  %v741_v53 = vld [vmem:[#allocation6 + $0x12b8] sm:$0xff]  ;;  %v11526_v54 = vcombine.low %v729_v15, %v733_v38 }
 0x372   :  { %6212 = vmatpush1.bf16.msra.mxu1 %v11478_v23  ;;  %6188 = vmatprep.subr.bf16.mxu0 %v11423_v19  ;;  %v801_v23 = vld [vmem:[#allocation6 + $0x1498] sm:$0xff] }
 0x373   :  { %6213 = vmatprep.subr.bf16.mxu1 %v11487_v25  ;;  %v805_v19 = vld [vmem:[#allocation6 + $0x14b8] sm:$0xff] }
 0x374   :  { %v737_v25 = vld [vmem:[#allocation6 + $0x1298] sm:$0xff]  ;;  %v11599_v30 = vcombine.high %v801_v23, %v805_v19  ;;  %v11598_v61 = vcombine.low %v801_v23, %v805_v19 }
 0x375   :  { %6189 = vmatpush1.bf16.msra.mxu0 %v11422_v34  ;;  %v11535_v34 = vcombine.high %v737_v25, %v741_v53  ;;  %v749_v43 = vld [vmem:[#allocation6 + $0x12f8] sm:$0xff] }
 0x376   :  { %6214 = vmatpush1.bf16.msra.mxu1 %v11486_v35  ;;  %6190 = vmatprep.subr.bf16.mxu0 %v11431_v42  ;;  %v809_v35 = vld [vmem:[#allocation6 + $0x14d8] sm:$0xff] }
 0x377   :  { %v5870_v28 = vpop.f32.mrb[32].mxu0  ;;  %6215 = vmatprep.subr.bf16.mxu1 %v11495_v16  ;;  %v813_v42 = vld [vmem:[#allocation6 + $0x14f8] sm:$0xff] }
 0x378   :  { %v5871_v5 = vadd.f32 %v5870_v28, %v13071_v14  ;;  %v5911_v52 = vpop.f32.mrb[32].mxu1  ;;  %v5872_v55 = vpop.f32.mrb[33].mxu0  ;;  %v745_v16 = vld [vmem:[#allocation6 + $0x12d8] sm:$0xff]  ;;  %v11607_v45 = vcombine.high %v809_v35, %v813_v42  ;;  %v11606_v28 = vcombine.low %v809_v35, %v813_v42 }
 0x379   :  { %v5873_v57 = vadd.f32 %v5872_v55, %v13073_v39  ;;  %v5913_v58 = vpop.f32.mrb[33].mxu1  ;;  %v5874_v60 = vpop.f32.mrb[34].mxu0  ;;  %6191 = vmatpush1.bf16.msra.mxu0 %v11430_v27  ;;  %v721_v39 = vld [vmem:[#allocation6 + $0x1218] sm:$0xff]  ;;  %v11543_v47 = vcombine.high %v745_v16, %v749_v43 }
 0x37a   :  { %v13081_v21 = vadd.f32 %v5911_v52, %v5871_v5  ;;  %v5915_v20 = vpop.f32.mrb[34].mxu1  ;;  %6216 = vmatpush1.bf16.msra.mxu1 %v11494_v63  ;;  %v5875_v0 = vpop.f32.mrb[35].mxu0  ;;  %6192 = vmatprep.subr.bf16.mxu0 %v11439_v48  ;;  %v11519_v37 = vcombine.high %v721_v39, %v725_v11  ;;  %v11518_v59 = vcombine.low %v721_v39, %v725_v11  ;;  %v817_v27 = vld [vmem:[#allocation6 + $0x1518] sm:$0xff] }
 0x37b   :  { %v13083_v29 = vadd.f32 %v5913_v58, %v5873_v57  ;;  %v5916_v14 = vpop.f32.mrb[35].mxu1  ;;  %6217 = vmatprep.subr.bf16.mxu1 %v11503_v49  ;;  %v753_v63 = vld [vmem:[#allocation6 + $0x1318] sm:$0xff]  ;;  %v11542_v49 = vcombine.low %v745_v16, %v749_v43 }
 0x37c   :  { %v757_v48 = vld [vmem:[#allocation6 + $0x1338] sm:$0xff] }
 0x37d   :  { %6193 = vmatpush1.bf16.msra.mxu0 %v11438_v62  ;;  %v11551_v51 = vcombine.high %v753_v63, %v757_v48  ;;  %v825_v5 = vld [vmem:[#allocation6 + $0x1558] sm:$0xff]  ;;  %v11550_v57 = vcombine.low %v753_v63, %v757_v48 }
 0x37e   :  { %6218 = vmatpush1.bf16.msra.mxu1 %v11502_v1  ;;  %6194 = vmatprep.subr.bf16.mxu0 %v11447_v2  ;;  %v829_v52 = vld [vmem:[#allocation6 + $0x1578] sm:$0xff] }
 0x37f   :  { %6219 = vmatprep.subr.bf16.mxu1 %v11511_v6  ;;  %v761_v55 = vld [vmem:[#allocation6 + $0x1358] sm:$0xff]  ;;  %v11623_v58 = vcombine.high %v825_v5, %v829_v52  ;;  %v11622_v2 = vcombine.low %v825_v5, %v829_v52 }
 0x380   :  { %v765_v9 = vld [vmem:[#allocation6 + $0x1378] sm:$0xff] }
 0x381   :  { %6195 = vmatpush1.bf16.msra.mxu0 %v11446_v12  ;;  %v11559_v60 = vcombine.high %v761_v55, %v765_v9  ;;  %v833_v62 = vld [vmem:[#allocation6 + $0x1598] sm:$0xff]  ;;  %v11558_v14 = vcombine.low %v761_v55, %v765_v9  ;;  %v6357_v55 = vlaneseq }
 0x382   :  { %6220 = vmatpush1.bf16.msra.mxu1 %v11510_v13  ;;  %6246 = vmatprep.subr.bf16.mxu0 %v11583_v26  ;;  %v837_v20 = vld [vmem:[#allocation6 + $0x15b8] sm:$0xff] }
 0x383   :  { %6221 = vmatprep.subr.bf16.mxu1 %v11519_v37  ;;  %v769_v0 = vld [vmem:[#allocation6 + $0x1398] sm:$0xff]  ;;  %v11631_v6 = vcombine.high %v833_v62, %v837_v20  ;;  %v11630_v13 = vcombine.low %v833_v62, %v837_v20 }
 0x384   :  { %6197 = vmatmul.mubr.bf16.vlgmr.msra.gmra.mrb[48].mxu0 %v12960_v41  ;;  %v11534_v41 = vcombine.low %v737_v25, %v741_v53  ;;  %v773_v1 = vld [vmem:[#allocation6 + $0x13b8] sm:$0xff] }
 0x385   :  { %6247 = vmatpush1.bf16.msra.mxu0 %v11582_v17  ;;  %6278 = vmatprep.mubr.bf16.mxu0 %v12969_v22  ;;  %v821_v22 = vld [vmem:[#allocation6 + $0x1538] sm:$0xff]  ;;  %v11567_v8 = vcombine.high %v769_v0, %v773_v1  ;;  %v11566_v26 = vcombine.low %v769_v0, %v773_v1  ;;  %v13090_v0 = vshrl.u32 %v6357_v55, 7 }
 0x386   :  { %6222 = vmatpush1.bf16.msra.mxu1 %v11518_v59  ;;  %6248 = vmatprep.subr.bf16.mxu0 %v11591_v36  ;;  %v11615_v3 = vcombine.high %v817_v27, %v821_v22  ;;  %v11614_v56 = vcombine.low %v817_v27, %v821_v22  ;;  %v841_v10 = vld [vmem:[#allocation6 + $0x15d8] sm:$0xff] }
 0x387   :  { %6223 = vmatprep.subr.bf16.mxu1 %v11527_v18  ;;  %v845_v39 = vld [vmem:[#allocation6 + $0x15f8] sm:$0xff] }
 0x388   :  { %v777_v11 = vld [vmem:[#allocation6 + $0x13d8] sm:$0xff]  ;;  %v11639_v37 = vcombine.high %v841_v10, %v845_v39  ;;  %v11638_v59 = vcombine.low %v841_v10, %v845_v39 }
 0x389   :  { %6249 = vmatpush1.bf16.msra.mxu0 %v11590_v32  ;;  %v781_v12 = vld [vmem:[#allocation6 + $0x13f8] sm:$0xff] }
 0x38a   :  { %6224 = vmatpush1.bf16.msra.mxu1 %v11526_v54  ;;  %6250 = vmatprep.subr.bf16.mxu0 %v11599_v30  ;;  %v11575_v31 = vcombine.high %v777_v11, %v781_v12  ;;  %v849_v40 = vld [vmem:[#allocation6 + $0x1618] sm:$0xff]  ;;  %v11574_v36 = vcombine.low %v777_v11, %v781_v12  ;;  %v6363_v12 = vsub.s32 1, %v13090_v0 }
 0x38b   :  { %6225 = vmatprep.subr.bf16.mxu1 %v11535_v34  ;;  %v853_v15 = vld [vmem:[#allocation6 + $0x1638] sm:$0xff] }
 0x38c   :  { %v913_v38 = vld [vmem:[#allocation6 + $0x1818] sm:$0xff]  ;;  %v11647_v18 = vcombine.high %v849_v40, %v853_v15  ;;  %v11646_v54 = vcombine.low %v849_v40, %v853_v15 }
 0x38d   :  { %6251 = vmatpush1.bf16.msra.mxu0 %v11598_v61  ;;  %v917_v17 = vld [vmem:[#allocation6 + $0x1838] sm:$0xff] }
 0x38e   :  { %6226 = vmatpush1.bf16.msra.mxu1 %v11534_v41  ;;  %6252 = vmatprep.subr.bf16.mxu0 %v11607_v45  ;;  %v11711_v23 = vcombine.high %v913_v38, %v917_v17  ;;  %v857_v19 = vld [vmem:[#allocation6 + $0x1658] sm:$0xff]  ;;  %v11710_v30 = vcombine.low %v913_v38, %v917_v17 }
 0x38f   :  { %6227 = vmatprep.subr.bf16.mxu1 %v11543_v47  ;;  %v861_v25 = vld [vmem:[#allocation6 + $0x1678] sm:$0xff] }
 0x390   :  { %v921_v53 = vld [vmem:[#allocation6 + $0x1858] sm:$0xff]  ;;  %v11655_v34 = vcombine.high %v857_v19, %v861_v25  ;;  %v11654_v41 = vcombine.low %v857_v19, %v861_v25 }
 0x391   :  { %6253 = vmatpush1.bf16.msra.mxu0 %v11606_v28  ;;  %v925_v32 = vld [vmem:[#allocation6 + $0x1878] sm:$0xff] }
 0x392   :  { %6228 = vmatpush1.bf16.msra.mxu1 %v11542_v49  ;;  %6254 = vmatprep.subr.bf16.mxu0 %v11615_v3  ;;  %v11719_v35 = vcombine.high %v921_v53, %v925_v32  ;;  %v865_v42 = vld [vmem:[#allocation6 + $0x1698] sm:$0xff]  ;;  %v11718_v45 = vcombine.low %v921_v53, %v925_v32 }
 0x393   :  { %6229 = vmatprep.subr.bf16.mxu1 %v11551_v51  ;;  %v869_v16 = vld [vmem:[#allocation6 + $0x16b8] sm:$0xff] }
 0x394   :  { %v929_v43 = vld [vmem:[#allocation6 + $0x1898] sm:$0xff]  ;;  %v11663_v47 = vcombine.high %v865_v42, %v869_v16  ;;  %v11662_v49 = vcombine.low %v865_v42, %v869_v16 }
 0x395   :  { %6255 = vmatpush1.bf16.msra.mxu0 %v11614_v56  ;;  %v933_v61 = vld [vmem:[#allocation6 + $0x18b8] sm:$0xff] }
 0x396   :  { %6230 = vmatpush1.bf16.msra.mxu1 %v11550_v57  ;;  %6256 = vmatprep.subr.bf16.mxu0 %v11623_v58  ;;  %v11727_v27 = vcombine.high %v929_v43, %v933_v61  ;;  %v873_v22 = vld [vmem:[#allocation6 + $0x16d8] sm:$0xff]  ;;  %v11726_v3 = vcombine.low %v929_v43, %v933_v61 }
 0x397   :  { %6231 = vmatprep.subr.bf16.mxu1 %v11559_v60  ;;  %v877_v63 = vld [vmem:[#allocation6 + $0x16f8] sm:$0xff] }
 0x398   :  { %v937_v48 = vld [vmem:[#allocation6 + $0x18d8] sm:$0xff]  ;;  %v11670_v57 = vcombine.low %v873_v22, %v877_v63 }
 0x399   :  { %6257 = vmatpush1.bf16.msra.mxu0 %v11622_v2  ;;  %v941_v28 = vld [vmem:[#allocation6 + $0x18f8] sm:$0xff] }
 0x39a   :  { %6232 = vmatpush1.bf16.msra.mxu1 %v11558_v14  ;;  %6258 = vmatprep.subr.bf16.mxu0 %v11631_v6  ;;  %v11735_v51 = vcombine.high %v937_v48, %v941_v28  ;;  %v881_v5 = vld [vmem:[#allocation6 + $0x1718] sm:$0xff] }
 0x39b   :  { %6233 = vmatprep.subr.bf16.mxu1 %v11567_v8  ;;  %v885_v52 = vld [vmem:[#allocation6 + $0x1738] sm:$0xff] }
 0x39c   :  { %v945_v9 = vld [vmem:[#allocation6 + $0x1918] sm:$0xff]  ;;  %v11679_v58 = vcombine.high %v881_v5, %v885_v52  ;;  %v11678_v14 = vcombine.low %v881_v5, %v885_v52  ;;  %v6429_v5 = vld [vmem:[#allocation9 + $0x40] sm:$0xff] }
 0x39d   :  { %6259 = vmatpush1.bf16.msra.mxu0 %v11630_v13  ;;  %v949_v56 = vld [vmem:[#allocation6 + $0x1938] sm:$0xff]  ;;  %v6433_v52 = vld [vmem:[#allocation9 + $0x60] sm:$0xff] }
 0x39e   :  { %6234 = vmatpush1.bf16.msra.mxu1 %v11566_v26  ;;  %6260 = vmatprep.subr.bf16.mxu0 %v11639_v37  ;;  %v11743_v60 = vcombine.high %v945_v9, %v949_v56  ;;  %v889_v62 = vld [vmem:[#allocation6 + $0x1758] sm:$0xff]  ;;  %v11742_v6 = vcombine.low %v945_v9, %v949_v56  ;;  %v13093_v37 = vld [vmem:[#allocation8] sm:$0xff]  ;;  %v6430_v56 = vld [vmem:[#allocation9 + $0x48] sm:$0xff] }
 0x39f   :  { %6235 = vmatprep.subr.bf16.mxu1 %v11575_v31  ;;  %v893_v20 = vld [vmem:[#allocation6 + $0x1778] sm:$0xff] }
 0x3a0   :  { %v953_v1 = vld [vmem:[#allocation6 + $0x1958] sm:$0xff]  ;;  %v11687_v8 = vcombine.high %v889_v62, %v893_v20  ;;  %v11686_v31 = vcombine.low %v889_v62, %v893_v20 }
 0x3a1   :  { %6261 = vmatpush1.bf16.msra.mxu0 %v11638_v59  ;;  %v957_v2 = vld [vmem:[#allocation6 + $0x1978] sm:$0xff] }
 0x3a2   :  { %6236 = vmatpush1.bf16.msra.mxu1 %v11574_v36  ;;  %6262 = vmatprep.subr.bf16.mxu0 %v11647_v18  ;;  %v11751_v10 = vcombine.high %v953_v1, %v957_v2  ;;  %v897_v39 = vld [vmem:[#allocation6 + $0x1798] sm:$0xff]  ;;  %v11750_v40 = vcombine.low %v953_v1, %v957_v2  ;;  %v6364_v18 = vrot.slane %v13093_v37, %v6363_v12  ;;  %v6438_v1 = vld [vmem:[#allocation9 + $0x88] sm:$0xff] }
 0x3a3   :  { %6287 = vmatprep.subr.bf16.mxu1 %v11711_v23  ;;  %v901_v11 = vld [vmem:[#allocation6 + $0x17b8] sm:$0xff]  ;;  %v6442_v2 = vld [vmem:[#allocation9 + $0xa8] sm:$0xff] }
 0x3a4   :  { %v961_v13 = vld [vmem:[#allocation6 + $0x1998] sm:$0xff]  ;;  %v11695_v15 = vcombine.high %v897_v39, %v901_v11 }
 0x3a5   :  { %6238 = vmatmul.mubr.bf16.vlgmr.msra.gmra.mrb[48].mxu1 %v12976_v4  ;;  %6263 = vmatpush1.bf16.msra.mxu0 %v11646_v54  ;;  %v11671_v4 = vcombine.high %v873_v22, %v877_v63  ;;  %v965_v26 = vld [vmem:[#allocation6 + $0x19b8] sm:$0xff]  ;;  %v6425_v22 = vld [vmem:[#allocation9 + $0x20] sm:$0xff]  ;;  %v6422_v63 = vld [vmem:[#allocation9 + $0x8] sm:$0xff] }
 0x3a6   :  { %6288 = vmatpush1.bf16.msra.mxu1 %v11710_v30  ;;  %6264 = vmatprep.subr.bf16.mxu0 %v11655_v34  ;;  %v11759_v17 = vcombine.high %v961_v13, %v965_v26  ;;  %v905_v59 = vld [vmem:[#allocation6 + $0x17d8] sm:$0xff]  ;;  %v11758_v61 = vcombine.low %v961_v13, %v965_v26  ;;  %v6449_v13 = vld [vmem:[#allocation9 + $0xe0] sm:$0xff]  ;;  %v6450_v26 = vld [vmem:[#allocation9 + $0xe8] sm:$0xff] }
 0x3a7   :  { %6289 = vmatprep.subr.bf16.mxu1 %v11719_v35  ;;  %6319 = vmatprep.mubr.bf16.mxu1 %v12785_v24  ;;  %v11734_v24 = vcombine.low %v937_v48, %v941_v28  ;;  %v909_v36 = vld [vmem:[#allocation6 + $0x17f8] sm:$0xff]  ;;  %v11694_v35 = vcombine.low %v897_v39, %v901_v11  ;;  %v6426_v48 = vld [vmem:[#allocation9 + $0x28] sm:$0xff]  ;;  %v11787_v39 = vcombine.high %v6438_v1, %v6442_v2  ;;  %v6445_v11 = vld [vmem:[#allocation9 + $0xc0] sm:$0xff] }
 0x3a8   :  { %v969_v53 = vld [vmem:[#allocation6 + $0x19d8] sm:$0xff]  ;;  %v11702_v28 = vcombine.low %v905_v59, %v909_v36 }
 0x3a9   :  { %6265 = vmatpush1.bf16.msra.mxu0 %v11654_v41  ;;  %v973_v32 = vld [vmem:[#allocation6 + $0x19f8] sm:$0xff]  ;;  %v11703_v41 = vcombine.high %v905_v59, %v909_v36  ;;  %v6457_v59 = vld [vmem:[#allocation9 + $0x120] sm:$0xff]  ;;  %v6454_v36 = vld [vmem:[#allocation9 + $0x108] sm:$0xff] }
 0x3aa   :  { %6290 = vmatpush1.bf16.msra.mxu1 %v11718_v45  ;;  %6266 = vmatprep.subr.bf16.mxu0 %v11663_v47  ;;  %v11767_v47 = vcombine.high %v969_v53, %v973_v32 }
 0x3ab   :  { %6291 = vmatprep.subr.bf16.mxu1 %v11727_v27  ;;  %v6421_v27 = vld [vmem:[#allocation9] sm:$0xff] }
 0x3ac   :  { %v11768_v9 = vcombine.low %v6421_v27, %v6425_v22 }
 0x3ad   :  { %6267 = vmatpush1.bf16.msra.mxu0 %v11662_v49  ;;  %v11766_v49 = vcombine.low %v969_v53, %v973_v32  ;;  %v6461_v32 = vld [vmem:[#allocation9 + $0x140] sm:$0xff] }
 0x3ae   :  { %6292 = vmatpush1.bf16.msra.mxu1 %v11726_v3  ;;  %6268 = vmatprep.subr.bf16.mxu0 %v11671_v4  ;;  %v11769_v3 = vcombine.high %v6421_v27, %v6425_v22  ;;  %v11771_v4 = vcombine.high %v6422_v63, %v6426_v48  ;;  %v6474_v27 = vld [vmem:[#allocation9 + $0x1a8] sm:$0xff] }
 0x3af   :  { %6293 = vmatprep.subr.bf16.mxu1 %v11735_v51 }
 0x3b1   :  { %6269 = vmatpush1.bf16.msra.mxu0 %v11670_v57  ;;  %v6434_v57 = vld [vmem:[#allocation9 + $0x68] sm:$0xff] }
 0x3b2   :  { %6294 = vmatpush1.bf16.msra.mxu1 %v11734_v24  ;;  %6270 = vmatprep.subr.bf16.mxu0 %v11679_v58  ;;  %v11777_v24 = vcombine.high %v6429_v5, %v6433_v52  ;;  %v6437_v58 = vld [vmem:[#allocation9 + $0x80] sm:$0xff]  ;;  %v11779_v20 = vcombine.high %v6430_v56, %v6434_v57 }
 0x3b3   :  { %6295 = vmatprep.subr.bf16.mxu1 %v11743_v60  ;;  %v6441_v60 = vld [vmem:[#allocation9 + $0xa0] sm:$0xff] }
 0x3b5   :  { %6271 = vmatpush1.bf16.msra.mxu0 %v11678_v14  ;;  %v12586_v14 = vld [vmem:[#allocation3 + $0x30] ss:$0 sps:$4 sm:$0xff]  }
 0x3b6   :  { %6296 = vmatpush1.bf16.msra.mxu1 %v11742_v6  ;;  %6272 = vmatprep.subr.bf16.mxu0 %v11687_v8  ;;  %v11776_v6 = vcombine.low %v6429_v5, %v6433_v52  ;;  %v11778_v8 = vcombine.low %v6430_v56, %v6434_v57  ;;  %v6478_v5 = vld [vmem:[#allocation9 + $0x1c8] sm:$0xff] }
 0x3b7   :  { %v5952_v38 = vpop.f32.mrb[36].mxu0  ;;  %6297 = vmatprep.subr.bf16.mxu1 %v11751_v10  ;;  %v11785_v10 = vcombine.high %v6437_v58, %v6441_v60  ;;  %v6482_v52 = vld [vmem:[#allocation9 + $0x1e8] sm:$0xff] }
 0x3b8   :  { %v5953_v23 = vadd.f32 %v5952_v38, %v13081_v21  ;;  %v5993_v19 = vpop.f32.mrb[36].mxu1  ;;  %v5954_v25 = vpop.f32.mrb[37].mxu0 }
 0x3b9   :  { %v5955_v54 = vadd.f32 %v5954_v25, %v13083_v29  ;;  %v5995_v30 = vpop.f32.mrb[37].mxu1  ;;  %v5956_v34 = vpop.f32.mrb[38].mxu0  ;;  %6273 = vmatpush1.bf16.msra.mxu0 %v11686_v31  ;;  %v6398_v29 = vadd.f32 %v6364_v18, %v13020_v50  ;;  %v11770_v50 = vcombine.low %v6422_v63, %v6426_v48  ;;  %v11784_v31 = vcombine.low %v6437_v58, %v6441_v60  ;;  %v6458_v18 = vld [vmem:[#allocation9 + $0x128] sm:$0xff] }
 0x3ba   :  { %v13100_v42 = vadd.f32 %v5993_v19, %v5953_v23  ;;  %v5997_v16 = vpop.f32.mrb[38].mxu1  ;;  %6298 = vmatpush1.bf16.msra.mxu1 %v11750_v40  ;;  %v5957_v43 = vpop.f32.mrb[39].mxu0  ;;  %6274 = vmatprep.subr.bf16.mxu0 %v11695_v15  ;;  %v11786_v40 = vcombine.low %v6438_v1, %v6442_v2  ;;  %v11793_v15 = vcombine.high %v6445_v11, %v6449_v13  ;;  %v6466_v34 = vld [vmem:[#allocation9 + $0x168] sm:$0xff]  ;;  %v6489_v1 = vld [vmem:[#allocation9 + $0x220] sm:$0xff] }
 0x3bb   :  { %v13102_v45 = vadd.f32 %v5995_v30, %v5955_v54  ;;  %v5998_v21 = vpop.f32.mrb[39].mxu1  ;;  %6299 = vmatprep.subr.bf16.mxu1 %v11759_v17  ;;  %v6406_v51 = vmax.f32 %v6398_v29, 0.0  ;;  %v6453_v17 = vld [vmem:[#allocation9 + $0x100] sm:$0xff]  ;;  %v11792_v23 = vcombine.low %v6445_v11, %v6449_v13  ;;  %v11803_v53 = vcombine.high %v6454_v36, %v6458_v18  ;;  %v6462_v30 = vld [vmem:[#allocation9 + $0x148] sm:$0xff] }
 0x3bc   :  { %v11801_v25 = vcombine.high %v6453_v17, %v6457_v59  ;;  %v6465_v54 = vld [vmem:[#allocation9 + $0x160] sm:$0xff]  ;;  %v11802_v16 = vcombine.low %v6454_v36, %v6458_v18  ;;  %v11810_v29 = vcombine.low %v6462_v30, %v6466_v34  ;;  %v11827_v60 = vcombine.high %v6478_v5, %v6482_v52  ;;  %v6490_v2 = vld [vmem:[#allocation9 + $0x228] sm:$0xff] }
 0x3bd   :  { %6275 = vmatpush1.bf16.msra.mxu0 %v11694_v35  ;;  %v13105_v62 = vpack.c.bf16 %v6406_v51, %v6406_v51  ;;  %v11800_v35 = vcombine.low %v6453_v17, %v6457_v59  ;;  %v11809_v43 = vcombine.high %v6461_v32, %v6465_v54  ;;  %v6473_v21 = vld [vmem:[#allocation9 + $0x1a0] sm:$0xff]  ;;  %v11808_v22 = vcombine.low %v6461_v32, %v6465_v54  ;;  %v6494_v11 = vld [vmem:[#allocation9 + $0x248] sm:$0xff] }
 0x3be   :  { %6300 = vmatpush1.bf16.msra.mxu1 %v11758_v61  ;;  %6276 = vmatprep.subr.bf16.mxu0 %v11703_v41  ;;  %v11811_v61 = vcombine.high %v6462_v30, %v6466_v34  ;;  %v6469_v41 = vld [vmem:[#allocation9 + $0x180] sm:$0xff]  ;;  %v6498_v13 = vld [vmem:[#allocation9 + $0x268] sm:$0xff] }
 0x3bf   :  { %6301 = vmatprep.subr.bf16.mxu1 %v11767_v47  ;;  %v6470_v47 = vld [vmem:[#allocation9 + $0x188] sm:$0xff]  ;;  %v11817_v63 = vcombine.high %v6469_v41, %v6473_v21  ;;  %v11816_v57 = vcombine.low %v6469_v41, %v6473_v21  ;;  %v11842_v18 = vcombine.low %v6494_v11, %v6498_v13 }
 0x3c0   :  { %v6502_v17 = vld [vmem:[#allocation9 + $0x288] sm:$0xff] }
 0x3c1   :  { %6277 = vmatpush1.bf16.msra.mxu0 %v11702_v28  ;;  %v11819_v28 = vcombine.high %v6470_v47, %v6474_v27  ;;  %v6506_v59 = vld [vmem:[#allocation9 + $0x2a8] sm:$0xff] }
 0x3c2   :  { %6302 = vmatpush1.bf16.msra.mxu1 %v11766_v49  ;;  %9535 = vmatprep.subr.bf16.mxu0 %v11769_v3  ;;  %v6477_v49 = vld [vmem:[#allocation9 + $0x1c0] sm:$0xff]  ;;  %v6510_v32 = vld [vmem:[#allocation9 + $0x2c8] sm:$0xff]  ;;  %v11850_v34 = vcombine.low %v6502_v17, %v6506_v59 }
 0x3c3   :  { %9699 = vmatprep.subr.bf16.mxu1 %v11771_v4  ;;  %v6481_v3 = vld [vmem:[#allocation9 + $0x1e0] sm:$0xff]  ;;  %v6514_v54 = vld [vmem:[#allocation9 + $0x2e8] sm:$0xff] }
 0x3c4   :  { %6279 = vmatmul.mubr.bf16.vlgmr.msra.gmra.mrb[52].mxu0 %v12980_v7  ;;  %v6446_v7 = vld [vmem:[#allocation9 + $0xc8] sm:$0xff]  ;;  %v11825_v58 = vcombine.high %v6477_v49, %v6481_v3 }
 0x3c5   :  { %6320 = vmatmul.mubr.bf16.vlgmr.msra.gmra.mrb[52].mxu1 %v12586_v14  ;;  %9536 = vmatpush1.bf16.msra.mxu0 %v11768_v9  ;;  %v11795_v38 = vcombine.high %v6446_v7, %v6450_v26  ;;  %v11794_v19 = vcombine.low %v6446_v7, %v6450_v26  ;;  %v11824_v14 = vcombine.low %v6477_v49, %v6481_v3  ;;  %v6518_v41 = vld [vmem:[#allocation9 + $0x308] sm:$0xff] }
 0x3c6   :  { %9567 = vmatprep.mubr.bf16.mxu0 %v13105_v62  ;;  %9700 = vmatpush1.bf16.msra.mxu1 %v11770_v50  ;;  %v6522_v21 = vld [vmem:[#allocation9 + $0x328] sm:$0xff] }
 0x3c7   :  { %9731 = vmatprep.mubr.bf16.mxu1 %v13105_v62  ;;  %9537 = vmatprep.subr.bf16.mxu0 %v11777_v24  ;;  %v11818_v24 = vcombine.low %v6470_v47, %v6474_v27  ;;  %v11858_v27 = vcombine.low %v6510_v32, %v6514_v54  ;;  %v6530_v49 = vld [vmem:[#allocation9 + $0x368] sm:$0xff] }
 0x3c8   :  { %9701 = vmatprep.subr.bf16.mxu1 %v11779_v20  ;;  %v6485_v20 = vld [vmem:[#allocation9 + $0x200] sm:$0xff] }
 0x3c9   :  { %9538 = vmatpush1.bf16.msra.mxu0 %v11776_v6  ;;  %v11833_v6 = vcombine.high %v6485_v20, %v6489_v1  ;;  %v11832_v7 = vcombine.low %v6485_v20, %v6489_v1 }
 0x3ca   :  { %9702 = vmatpush1.bf16.msra.mxu1 %v11778_v8  ;;  %9539 = vmatprep.subr.bf16.mxu0 %v11785_v10  ;;  %v6493_v10 = vld [vmem:[#allocation9 + $0x240] sm:$0xff] }
 0x3cb   :  { %9703 = vmatprep.subr.bf16.mxu1 %v11787_v39  ;;  %v6497_v39 = vld [vmem:[#allocation9 + $0x260] sm:$0xff] }
 0x3cc   :  { %v11840_v36 = vcombine.low %v6493_v10, %v6497_v39 }
 0x3cd   :  { %9540 = vmatpush1.bf16.msra.mxu0 %v11784_v31  ;;  %v11841_v31 = vcombine.high %v6493_v10, %v6497_v39  ;;  %v6542_v39 = vld [vmem:[#allocation9 + $0x3c8] sm:$0xff] }
 0x3ce   :  { %9704 = vmatpush1.bf16.msra.mxu1 %v11786_v40  ;;  %9541 = vmatprep.subr.bf16.mxu0 %v11793_v15  ;;  %v11843_v40 = vcombine.high %v6494_v11, %v6498_v13  ;;  %v6501_v15 = vld [vmem:[#allocation9 + $0x280] sm:$0xff]  ;;  %v6546_v11 = vld [vmem:[#allocation9 + $0x3e8] sm:$0xff] }
 0x3cf   :  { %9705 = vmatprep.subr.bf16.mxu1 %v11795_v38  ;;  %v6505_v38 = vld [vmem:[#allocation9 + $0x2a0] sm:$0xff] }
 0x3d0   :  { %v11848_v30 = vcombine.low %v6501_v15, %v6505_v38 }
 0x3d1   :  { %9542 = vmatpush1.bf16.msra.mxu0 %v11792_v23  ;;  %v11849_v23 = vcombine.high %v6501_v15, %v6505_v38 }
 0x3d2   :  { %9706 = vmatpush1.bf16.msra.mxu1 %v11794_v19  ;;  %9543 = vmatprep.subr.bf16.mxu0 %v11801_v25  ;;  %v11851_v19 = vcombine.high %v6502_v17, %v6506_v59  ;;  %v6509_v25 = vld [vmem:[#allocation9 + $0x2c0] sm:$0xff]  ;;  %v11891_v17 = vcombine.high %v6542_v39, %v6546_v11 }
 0x3d3   :  { %9707 = vmatprep.subr.bf16.mxu1 %v11803_v53  ;;  %v6513_v53 = vld [vmem:[#allocation9 + $0x2e0] sm:$0xff] }
 0x3d4   :  { %v11856_v47 = vcombine.low %v6509_v25, %v6513_v53  ;;  %v6549_v59 = vld [vmem:[#allocation9 + $0x400] sm:$0xff] }
 0x3d5   :  { %9544 = vmatpush1.bf16.msra.mxu0 %v11800_v35  ;;  %v11857_v35 = vcombine.high %v6509_v25, %v6513_v53 }
 0x3d6   :  { %9708 = vmatpush1.bf16.msra.mxu1 %v11802_v16  ;;  %9545 = vmatprep.subr.bf16.mxu0 %v11809_v43  ;;  %v11859_v16 = vcombine.high %v6510_v32, %v6514_v54  ;;  %v6517_v43 = vld [vmem:[#allocation9 + $0x300] sm:$0xff] }
 0x3d7   :  { %v6034_v48 = vpop.f32.mrb[40].mxu0  ;;  %9709 = vmatprep.subr.bf16.mxu1 %v11811_v61  ;;  %v6521_v61 = vld [vmem:[#allocation9 + $0x320] sm:$0xff] }
 0x3d8   :  { %v13111_v4 = vadd.f32 %v6034_v48, %v13100_v42  ;;  %v6036_v51 = vpop.f32.mrb[41].mxu0  ;;  %v6486_v42 = vld [vmem:[#allocation9 + $0x208] sm:$0xff]  ;;  %v6529_v48 = vld [vmem:[#allocation9 + $0x360] sm:$0xff]  ;;  %v11864_v3 = vcombine.low %v6517_v43, %v6521_v61 }
 0x3d9   :  { %v13114_v9 = vadd.f32 %v6036_v51, %v13102_v45  ;;  %v6038_v56 = vpop.f32.mrb[42].mxu0  ;;  %9546 = vmatpush1.bf16.msra.mxu0 %v11808_v22  ;;  %v11826_v45 = vcombine.low %v6478_v5, %v6482_v52  ;;  %v11835_v8 = vcombine.high %v6486_v42, %v6490_v2  ;;  %v11834_v26 = vcombine.low %v6486_v42, %v6490_v2 }
 0x3da   :  { %9710 = vmatpush1.bf16.msra.mxu1 %v11810_v29  ;;  %v6039_v50 = vpop.f32.mrb[43].mxu0  ;;  %9547 = vmatprep.subr.bf16.mxu0 %v11817_v63  ;;  %v11865_v22 = vcombine.high %v6517_v43, %v6521_v61  ;;  %v11867_v29 = vcombine.high %v6518_v41, %v6522_v21  ;;  %v6525_v63 = vld [vmem:[#allocation9 + $0x340] sm:$0xff]  ;;  %v6359_v51 = vsub.s32 0, %v13090_v0  ;;  %v11866_v5 = vcombine.low %v6518_v41, %v6522_v21  ;;  %v6558_v43 = vld [vmem:[#allocation9 + $0x448] sm:$0xff] }
 0x3db   :  { %9711 = vmatprep.subr.bf16.mxu1 %v11819_v28  ;;  %v6526_v28 = vld [vmem:[#allocation9 + $0x348] sm:$0xff]  ;;  %v11873_v52 = vcombine.high %v6525_v63, %v6529_v48  ;;  %v6537_v50 = vld [vmem:[#allocation9 + $0x3a0] sm:$0xff]  ;;  %v11872_v20 = vcombine.low %v6525_v63, %v6529_v48 }
 0x3dc   :  { %v11875_v56 = vcombine.high %v6526_v28, %v6530_v49  ;;  %v6360_v1 = vrot.slane %v13093_v37, %v6359_v51  ;;  %v11874_v42 = vcombine.low %v6526_v28, %v6530_v49  ;;  %v6562_v61 = vld [vmem:[#allocation9 + $0x468] sm:$0xff] }
 0x3dd   :  { %9548 = vmatpush1.bf16.msra.mxu0 %v11816_v57  ;;  %v6533_v57 = vld [vmem:[#allocation9 + $0x380] sm:$0xff]  ;;  %v6566_v63 = vld [vmem:[#allocation9 + $0x488] sm:$0xff]  ;;  %v11906_v49 = vcombine.low %v6558_v43, %v6562_v61 }
 0x3de   :  { %9712 = vmatpush1.bf16.msra.mxu1 %v11818_v24  ;;  %9549 = vmatprep.subr.bf16.mxu0 %v11825_v58  ;;  %v6371_v24 = vsub.s32 3, %v13090_v0  ;;  %v6534_v58 = vld [vmem:[#allocation9 + $0x388] sm:$0xff]  ;;  %v11881_v2 = vcombine.high %v6533_v57, %v6537_v50 }
 0x3df   :  { %9713 = vmatprep.subr.bf16.mxu1 %v11827_v60  ;;  %v6538_v60 = vld [vmem:[#allocation9 + $0x3a8] sm:$0xff] }
 0x3e0   :  { %v6570_v48 = vld [vmem:[#allocation9 + $0x4a8] sm:$0xff] }
 0x3e1   :  { %9550 = vmatpush1.bf16.msra.mxu0 %v11824_v14  ;;  %v11883_v14 = vcombine.high %v6534_v58, %v6538_v60 }
 0x3e2   :  { %9714 = vmatpush1.bf16.msra.mxu1 %v11826_v45  ;;  %9551 = vmatprep.subr.bf16.mxu0 %v11833_v6  ;;  %v6541_v45 = vld [vmem:[#allocation9 + $0x3c0] sm:$0xff] }
 0x3e3   :  { %9715 = vmatprep.subr.bf16.mxu1 %v11835_v8  ;;  %v6545_v6 = vld [vmem:[#allocation9 + $0x3e0] sm:$0xff]  ;;  %v6372_v8 = vrot.slane %v13093_v37, %v6371_v24 }
 0x3e4   :  { %v11889_v15 = vcombine.high %v6541_v45, %v6545_v6  ;;  %v11888_v25 = vcombine.low %v6541_v45, %v6545_v6  ;;  %v6586_v45 = vld [vmem:[#allocation9 + $0x528] sm:$0xff] }
 0x3e5   :  { %9552 = vmatpush1.bf16.msra.mxu0 %v11832_v7  ;;  %v11880_v7 = vcombine.low %v6533_v57, %v6537_v50  ;;  %v6574_v57 = vld [vmem:[#allocation9 + $0x4c8] sm:$0xff] }
 0x3e6   :  { %9716 = vmatpush1.bf16.msra.mxu1 %v11834_v26  ;;  %9553 = vmatprep.subr.bf16.mxu0 %v11841_v31  ;;  %v6397_v26 = vadd.f32 %v6360_v1, %v13017_v46  ;;  %v11890_v46 = vcombine.low %v6542_v39, %v6546_v11  ;;  %v6578_v50 = vld [vmem:[#allocation9 + $0x4e8] sm:$0xff] }
 0x3e7   :  { %9717 = vmatprep.subr.bf16.mxu1 %v11843_v40  ;;  %v11882_v40 = vcombine.low %v6534_v58, %v6538_v60  ;;  %v11914_v60 = vcombine.low %v6566_v63, %v6570_v48  ;;  %v11923_v1 = vcombine.high %v6574_v57, %v6578_v50 }
 0x3e8   :  { %v6405_v53 = vmax.f32 %v6397_v26, 0.0  ;;  %v6593_v26 = vld [vmem:[#allocation9 + $0x560] sm:$0xff] }
 0x3e9   :  { %9554 = vmatpush1.bf16.msra.mxu0 %v11840_v36  ;;  %v6553_v36 = vld [vmem:[#allocation9 + $0x420] sm:$0xff] }
 0x3ea   :  { %9718 = vmatpush1.bf16.msra.mxu1 %v11842_v18  ;;  %9555 = vmatprep.subr.bf16.mxu0 %v11849_v23  ;;  %v6400_v18 = vadd.f32 %v6372_v8, %v13066_v44  ;;  %v6550_v23 = vld [vmem:[#allocation9 + $0x408] sm:$0xff]  ;;  %v11897_v32 = vcombine.high %v6549_v59, %v6553_v36  ;;  %v13130_v41 = vpack.c.bf16 %v6405_v53, %v6405_v53 }
 0x3eb   :  { %9719 = vmatprep.subr.bf16.mxu1 %v11851_v19  ;;  %v6554_v19 = vld [vmem:[#allocation9 + $0x428] sm:$0xff]  ;;  %v11922_v8 = vcombine.low %v6574_v57, %v6578_v50  ;;  %v6621_v57 = vld [vmem:[#allocation9 + $0x640] sm:$0xff] }
 0x3ec   :  { %v11899_v54 = vcombine.high %v6550_v23, %v6554_v19  ;;  %v11898_v44 = vcombine.low %v6550_v23, %v6554_v19  ;;  %v6598_v23 = vld [vmem:[#allocation9 + $0x588] sm:$0xff]  ;;  %v6625_v50 = vld [vmem:[#allocation9 + $0x660] sm:$0xff] }
 0x3ed   :  { %9556 = vmatpush1.bf16.msra.mxu0 %v11848_v30  ;;  %v6408_v30 = vmax.f32 %v6400_v18, 0.0  ;;  %v6601_v18 = vld [vmem:[#allocation9 + $0x5a0] sm:$0xff]  ;;  %v6602_v19 = vld [vmem:[#allocation9 + $0x5a8] sm:$0xff] }
 0x3ee   :  { %9720 = vmatpush1.bf16.msra.mxu1 %v11850_v34  ;;  %9557 = vmatprep.subr.bf16.mxu0 %v11857_v35  ;;  %v6557_v34 = vld [vmem:[#allocation9 + $0x440] sm:$0xff] }
 0x3ef   :  { %9721 = vmatprep.subr.bf16.mxu1 %v11859_v16  ;;  %v6561_v35 = vld [vmem:[#allocation9 + $0x460] sm:$0xff]  ;;  %v11896_v16 = vcombine.low %v6549_v59, %v6553_v36 }
 0x3f0   :  { %v11905_v21 = vcombine.high %v6557_v34, %v6561_v35  ;;  %v11904_v28 = vcombine.low %v6557_v34, %v6561_v35  ;;  %v6597_v36 = vld [vmem:[#allocation9 + $0x580] sm:$0xff] }
 0x3f1   :  { %9558 = vmatpush1.bf16.msra.mxu0 %v11856_v47  ;;  %v6565_v47 = vld [vmem:[#allocation9 + $0x480] sm:$0xff] }
 0x3f2   :  { %9722 = vmatpush1.bf16.msra.mxu1 %v11858_v27  ;;  %9559 = vmatprep.subr.bf16.mxu0 %v11865_v22  ;;  %v6569_v27 = vld [vmem:[#allocation9 + $0x4a0] sm:$0xff]  ;;  %v13132_v22 = vpack.c.bf16 %v6408_v30, %v6408_v30 }
 0x3f3   :  { %9723 = vmatprep.subr.bf16.mxu1 %v11867_v29  ;;  %v11907_v29 = vcombine.high %v6558_v43, %v6562_v61  ;;  %v11912_v58 = vcombine.low %v6565_v47, %v6569_v27  ;;  %v6605_v30 = vld [vmem:[#allocation9 + $0x5c0] sm:$0xff]  ;;  %v6606_v43 = vld [vmem:[#allocation9 + $0x5c8] sm:$0xff] }
 0x3f4   :  { %v6609_v34 = vld [vmem:[#allocation9 + $0x5e0] sm:$0xff]  ;;  %v6610_v61 = vld [vmem:[#allocation9 + $0x5e8] sm:$0xff] }
 0x3f5   :  { %9560 = vmatpush1.bf16.msra.mxu0 %v11864_v3  ;;  %v11913_v3 = vcombine.high %v6565_v47, %v6569_v27  ;;  %v11944_v47 = vcombine.low %v6597_v36, %v6601_v18 }
 0x3f6   :  { %9724 = vmatpush1.bf16.msra.mxu1 %v11866_v5  ;;  %9561 = vmatprep.subr.bf16.mxu0 %v11873_v52  ;;  %v11915_v5 = vcombine.high %v6566_v63, %v6570_v48  ;;  %v6573_v52 = vld [vmem:[#allocation9 + $0x4c0] sm:$0xff]  ;;  %v11953_v63 = vcombine.high %v6605_v30, %v6609_v34  ;;  %v11955_v48 = vcombine.high %v6606_v43, %v6610_v61 }
 0x3f7   :  { %9725 = vmatprep.subr.bf16.mxu1 %v11875_v56  ;;  %v6577_v56 = vld [vmem:[#allocation9 + $0x4e0] sm:$0xff] }
 0x3f8   :  { %v13124_v10 = vpop.f32.mrb[40].mxu1  ;;  %v11920_v6 = vcombine.low %v6573_v52, %v6577_v56 }
 0x3f9   :  { %v13126_v13 = vpop.f32.mrb[41].mxu1  ;;  %9562 = vmatpush1.bf16.msra.mxu0 %v11872_v20  ;;  %v11921_v20 = vcombine.high %v6573_v52, %v6577_v56 }
 0x3fa   :  { %v6079_v31 = vpop.f32.mrb[42].mxu1  ;;  %9726 = vmatpush1.bf16.msra.mxu1 %v11874_v42  ;;  %9563 = vmatprep.subr.bf16.mxu0 %v11881_v2  ;;  %v6581_v42 = vld [vmem:[#allocation9 + $0x500] sm:$0xff] }
 0x3fb   :  { %v6080_v38 = vpop.f32.mrb[43].mxu1  ;;  %9727 = vmatprep.subr.bf16.mxu1 %v11883_v14  ;;  %v6585_v2 = vld [vmem:[#allocation9 + $0x520] sm:$0xff]  ;;  %v6582_v14 = vld [vmem:[#allocation9 + $0x508] sm:$0xff] }
 0x3fc   :  { %v11929_v39 = vcombine.high %v6581_v42, %v6585_v2  ;;  %v11931_v11 = vcombine.high %v6582_v14, %v6586_v45  ;;  %v6590_v31 = vld [vmem:[#allocation9 + $0x548] sm:$0xff]  ;;  %v11930_v38 = vcombine.low %v6582_v14, %v6586_v45  ;;  %v6629_v14 = vld [vmem:[#allocation9 + $0x680] sm:$0xff] }
 0x3fd   :  { %9564 = vmatpush1.bf16.msra.mxu0 %v11880_v7  ;;  %v6589_v7 = vld [vmem:[#allocation9 + $0x540] sm:$0xff] }
 0x3fe   :  { %9728 = vmatpush1.bf16.msra.mxu1 %v11882_v40  ;;  %9565 = vmatprep.subr.bf16.mxu0 %v11889_v15  ;;  %v6594_v40 = vld [vmem:[#allocation9 + $0x568] sm:$0xff]  ;;  %v11928_v15 = vcombine.low %v6581_v42, %v6585_v2  ;;  %v11969_v42 = vcombine.high %v6621_v57, %v6625_v50  ;;  %v6633_v45 = vld [vmem:[#allocation9 + $0x6a0] sm:$0xff] }
 0x3ff   :  { %9729 = vmatprep.subr.bf16.mxu1 %v11891_v17  ;;  %v11937_v17 = vcombine.high %v6589_v7, %v6593_v26  ;;  %v11939_v59 = vcombine.high %v6590_v31, %v6594_v40  ;;  %v11938_v53 = vcombine.low %v6590_v31, %v6594_v40  ;;  %v6637_v31 = vld [vmem:[#allocation9 + $0x6c0] sm:$0xff] }
 0x400   :  { %v6641_v40 = vld [vmem:[#allocation9 + $0x6e0] sm:$0xff] }
 0x401   :  { %9566 = vmatpush1.bf16.msra.mxu0 %v11888_v25  ;;  %v11936_v25 = vcombine.low %v6589_v7, %v6593_v26  ;;  %v11977_v7 = vcombine.high %v6629_v14, %v6633_v45 }
 0x402   :  { %9730 = vmatpush1.bf16.msra.mxu1 %v11890_v46  ;;  %9576 = vmatprep.subr.bf16.mxu0 %v11897_v32  ;;  %v11945_v46 = vcombine.high %v6597_v36, %v6601_v18  ;;  %v11985_v36 = vcombine.high %v6637_v31, %v6641_v40 }
 0x403   :  { %9740 = vmatprep.subr.bf16.mxu1 %v11899_v54  ;;  %v11947_v54 = vcombine.high %v6598_v23, %v6602_v19 }
 0x404   :  { %9568 = vmatmul.mubr.bf16.vlgmr.msra.gmra.mrb[56].mxu0 %v13130_v41 }
 0x405   :  { %9732 = vmatmul.mubr.bf16.vlgmr.msra.gmra.mrb[56].mxu1 %v13130_v41  ;;  %9577 = vmatpush1.bf16.msra.mxu0 %v11896_v16 }
 0x406   :  { %9608 = vmatprep.mubr.bf16.mxu0 %v13132_v22  ;;  %9741 = vmatpush1.bf16.msra.mxu1 %v11898_v44 }
 0x407   :  { %9772 = vmatprep.mubr.bf16.mxu1 %v13132_v22  ;;  %9578 = vmatprep.subr.bf16.mxu0 %v11905_v21 }
 0x408   :  { %9742 = vmatprep.subr.bf16.mxu1 %v11907_v29  ;;  %v11946_v29 = vcombine.low %v6598_v23, %v6602_v19  ;;  %v6645_v23 = vld [vmem:[#allocation9 + $0x700] sm:$0xff] }
 0x409   :  { %9579 = vmatpush1.bf16.msra.mxu0 %v11904_v28  ;;  %v6613_v28 = vld [vmem:[#allocation9 + $0x600] sm:$0xff] }
 0x40a   :  { %9743 = vmatpush1.bf16.msra.mxu1 %v11906_v49  ;;  %9580 = vmatprep.subr.bf16.mxu0 %v11913_v3  ;;  %v6617_v49 = vld [vmem:[#allocation9 + $0x620] sm:$0xff]  ;;  %v6618_v3 = vld [vmem:[#allocation9 + $0x628] sm:$0xff] }
 0x40b   :  { %9744 = vmatprep.subr.bf16.mxu1 %v11915_v5  ;;  %v11952_v5 = vcombine.low %v6605_v30, %v6609_v34  ;;  %v11961_v52 = vcombine.high %v6613_v28, %v6617_v49  ;;  %v6649_v19 = vld [vmem:[#allocation9 + $0x720] sm:$0xff] }
 0x40c   :  { %v6653_v34 = vld [vmem:[#allocation9 + $0x740] sm:$0xff] }
 0x40d   :  { %9581 = vmatpush1.bf16.msra.mxu0 %v11912_v58  ;;  %v6622_v58 = vld [vmem:[#allocation9 + $0x648] sm:$0xff] }
 0x40e   :  { %9745 = vmatpush1.bf16.msra.mxu1 %v11914_v60  ;;  %9582 = vmatprep.subr.bf16.mxu0 %v11921_v20  ;;  %v6626_v60 = vld [vmem:[#allocation9 + $0x668] sm:$0xff]  ;;  %v11960_v20 = vcombine.low %v6613_v28, %v6617_v49  ;;  %v6665_v28 = vld [vmem:[#allocation9 + $0x7a0] sm:$0xff]  ;;  %v6379_v49 = vsub.s32 5, %v13090_v0 }
 0x40f   :  { %9746 = vmatprep.subr.bf16.mxu1 %v11923_v1  ;;  %v11971_v2 = vcombine.high %v6622_v58, %v6626_v60 }
 0x411   :  { %9583 = vmatpush1.bf16.msra.mxu0 %v11920_v6  ;;  %v6630_v6 = vld [vmem:[#allocation9 + $0x688] sm:$0xff] }
 0x412   :  { %9747 = vmatpush1.bf16.msra.mxu1 %v11922_v8  ;;  %9584 = vmatprep.subr.bf16.mxu0 %v11929_v39  ;;  %v6634_v8 = vld [vmem:[#allocation9 + $0x6a8] sm:$0xff]  ;;  %v11968_v39 = vcombine.low %v6621_v57, %v6625_v50  ;;  %v6669_v50 = vld [vmem:[#allocation9 + $0x7c0] sm:$0xff] }
 0x413   :  { %9748 = vmatprep.subr.bf16.mxu1 %v11931_v11  ;;  %v11970_v11 = vcombine.low %v6622_v58, %v6626_v60  ;;  %v11979_v26 = vcombine.high %v6630_v6, %v6634_v8  ;;  %v6673_v58 = vld [vmem:[#allocation9 + $0x7e0] sm:$0xff]  ;;  %v6380_v60 = vrot.slane %v13093_v37, %v6379_v49 }
 0x415   :  { %9585 = vmatpush1.bf16.msra.mxu0 %v11928_v15  ;;  %v6638_v15 = vld [vmem:[#allocation9 + $0x6c8] sm:$0xff] }
 0x416   :  { %9749 = vmatpush1.bf16.msra.mxu1 %v11930_v38  ;;  %9586 = vmatprep.subr.bf16.mxu0 %v11937_v17  ;;  %v6642_v38 = vld [vmem:[#allocation9 + $0x6e8] sm:$0xff]  ;;  %v11976_v17 = vcombine.low %v6629_v14, %v6633_v45 }
 0x417   :  { %v6116_v32 = vpop.f32.mrb[44].mxu0  ;;  %9750 = vmatprep.subr.bf16.mxu1 %v11939_v59  ;;  %v11978_v59 = vcombine.low %v6630_v6, %v6634_v8  ;;  %v11987_v18 = vcombine.high %v6638_v15, %v6642_v38 }
 0x418   :  { %v13139_v35 = vadd.f32 %v6116_v32, %v13124_v10  ;;  %v6118_v16 = vpop.f32.mrb[45].mxu0  ;;  %v6614_v10 = vld [vmem:[#allocation9 + $0x608] sm:$0xff]  ;;  %v11986_v32 = vcombine.low %v6638_v15, %v6642_v38  ;;  %v12016_v38 = vcombine.low %v6669_v50, %v6673_v58 }
 0x419   :  { %v13142_v44 = vadd.f32 %v6118_v16, %v13126_v13  ;;  %v6120_v21 = vpop.f32.mrb[46].mxu0  ;;  %9587 = vmatpush1.bf16.msra.mxu0 %v11936_v25  ;;  %v11954_v13 = vcombine.low %v6606_v43, %v6610_v61  ;;  %v11963_v56 = vcombine.high %v6614_v10, %v6618_v3  ;;  %v11962_v1 = vcombine.low %v6614_v10, %v6618_v3  ;;  %v6646_v25 = vld [vmem:[#allocation9 + $0x708] sm:$0xff]  ;;  %v6657_v16 = vld [vmem:[#allocation9 + $0x760] sm:$0xff] }
 0x41a   :  { %9751 = vmatpush1.bf16.msra.mxu1 %v11938_v53  ;;  %v6121_v27 = vpop.f32.mrb[47].mxu0  ;;  %9588 = vmatprep.subr.bf16.mxu0 %v11945_v46  ;;  %v6650_v53 = vld [vmem:[#allocation9 + $0x728] sm:$0xff]  ;;  %v11984_v46 = vcombine.low %v6637_v31, %v6641_v40  ;;  %v6367_v21 = vsub.s32 2, %v13090_v0  ;;  %v6677_v31 = vld [vmem:[#allocation9 + $0x800] sm:$0xff] }
 0x41b   :  { %9752 = vmatprep.subr.bf16.mxu1 %v11947_v54  ;;  %v11993_v54 = vcombine.high %v6645_v23, %v6649_v19  ;;  %v11995_v30 = vcombine.high %v6646_v25, %v6650_v53  ;;  %v6654_v43 = vld [vmem:[#allocation9 + $0x748] sm:$0xff]  ;;  %v11994_v27 = vcombine.low %v6646_v25, %v6650_v53  ;;  %v6681_v40 = vld [vmem:[#allocation9 + $0x820] sm:$0xff] }
 0x41c   :  { %v6658_v61 = vld [vmem:[#allocation9 + $0x768] sm:$0xff]  ;;  %v12024_v25 = vcombine.low %v6677_v31, %v6681_v40 }
 0x41d   :  { %9589 = vmatpush1.bf16.msra.mxu0 %v11944_v47  ;;  %v11992_v47 = vcombine.low %v6645_v23, %v6649_v19  ;;  %v6662_v10 = vld [vmem:[#allocation9 + $0x788] sm:$0xff]  ;;  %v6685_v23 = vld [vmem:[#allocation9 + $0x840] sm:$0xff] }
 0x41e   :  { %9753 = vmatpush1.bf16.msra.mxu1 %v11946_v29  ;;  %9590 = vmatprep.subr.bf16.mxu0 %v11953_v63  ;;  %v12001_v29 = vcombine.high %v6653_v34, %v6657_v16  ;;  %v12003_v63 = vcombine.high %v6654_v43, %v6658_v61  ;;  %v6666_v3 = vld [vmem:[#allocation9 + $0x7a8] sm:$0xff]  ;;  %v6689_v19 = vld [vmem:[#allocation9 + $0x860] sm:$0xff] }
 0x41f   :  { %9754 = vmatprep.subr.bf16.mxu1 %v11955_v48  ;;  %v6661_v48 = vld [vmem:[#allocation9 + $0x780] sm:$0xff]  ;;  %v12011_v57 = vcombine.high %v6662_v10, %v6666_v3  ;;  %v6682_v15 = vld [vmem:[#allocation9 + $0x828] sm:$0xff] }
 0x420   :  { %v12008_v6 = vcombine.low %v6661_v48, %v6665_v28  ;;  %v6686_v53 = vld [vmem:[#allocation9 + $0x848] sm:$0xff] }
 0x421   :  { %9591 = vmatpush1.bf16.msra.mxu0 %v11952_v5  ;;  %v6368_v5 = vrot.slane %v13093_v37, %v6367_v21 }
 0x422   :  { %9755 = vmatpush1.bf16.msra.mxu1 %v11954_v13  ;;  %9592 = vmatprep.subr.bf16.mxu0 %v11961_v52  ;;  %v12000_v13 = vcombine.low %v6653_v34, %v6657_v16  ;;  %v12002_v52 = vcombine.low %v6654_v43, %v6658_v61  ;;  %v6697_v34 = vld [vmem:[#allocation9 + $0x8a0] sm:$0xff]  ;;  %v6694_v61 = vld [vmem:[#allocation9 + $0x888] sm:$0xff] }
 0x423   :  { %9756 = vmatprep.subr.bf16.mxu1 %v11963_v56  ;;  %v12009_v56 = vcombine.high %v6661_v48, %v6665_v28  ;;  %v6701_v28 = vld [vmem:[#allocation9 + $0x8c0] sm:$0xff] }
 0x425   :  { %9593 = vmatpush1.bf16.msra.mxu0 %v11960_v20 }
 0x426   :  { %9757 = vmatpush1.bf16.msra.mxu1 %v11962_v1  ;;  %9594 = vmatprep.subr.bf16.mxu0 %v11969_v42  ;;  %v6670_v1 = vld [vmem:[#allocation9 + $0x7c8] sm:$0xff] }
 0x427   :  { %9758 = vmatprep.subr.bf16.mxu1 %v11971_v2  ;;  %v6674_v42 = vld [vmem:[#allocation9 + $0x7e8] sm:$0xff]  ;;  %v6399_v2 = vadd.f32 %v6368_v5, %v13064_v33  ;;  %v6402_v33 = vadd.f32 %v6380_v60, %v13114_v9 }
 0x428   :  { %v6706_v5 = vld [vmem:[#allocation9 + $0x8e8] sm:$0xff] }
 0x429   :  { %9595 = vmatpush1.bf16.msra.mxu0 %v11968_v39  ;;  %v6710_v60 = vld [vmem:[#allocation9 + $0x908] sm:$0xff] }
 0x42a   :  { %9759 = vmatpush1.bf16.msra.mxu1 %v11970_v11  ;;  %9596 = vmatprep.subr.bf16.mxu0 %v11977_v7  ;;  %v12010_v11 = vcombine.low %v6662_v10, %v6666_v3  ;;  %v12017_v7 = vcombine.high %v6669_v50, %v6673_v58  ;;  %v6705_v10 = vld [vmem:[#allocation9 + $0x8e0] sm:$0xff]  ;;  %v6702_v3 = vld [vmem:[#allocation9 + $0x8c8] sm:$0xff] }
 0x42b   :  { %9760 = vmatprep.subr.bf16.mxu1 %v11979_v26  ;;  %v12019_v26 = vcombine.high %v6670_v1, %v6674_v42  ;;  %v6709_v50 = vld [vmem:[#allocation9 + $0x900] sm:$0xff] }
 0x42c   :  { %v6713_v58 = vld [vmem:[#allocation9 + $0x920] sm:$0xff] }
 0x42d   :  { %9597 = vmatpush1.bf16.msra.mxu0 %v11976_v17  ;;  %v6407_v17 = vmax.f32 %v6399_v2, 0.0  ;;  %v12057_v2 = vcombine.high %v6709_v50, %v6713_v58 }
 0x42e   :  { %9761 = vmatpush1.bf16.msra.mxu1 %v11978_v59  ;;  %9598 = vmatprep.subr.bf16.mxu0 %v11985_v36  ;;  %v12025_v59 = vcombine.high %v6677_v31, %v6681_v40 }
 0x42f   :  { %9762 = vmatprep.subr.bf16.mxu1 %v11987_v18  ;;  %v6410_v18 = vmax.f32 %v6402_v33, 0.0  ;;  %v6725_v33 = vld [vmem:[#allocation9 + $0x980] sm:$0xff] }
 0x431   :  { %9599 = vmatpush1.bf16.msra.mxu0 %v11984_v46  ;;  %v6690_v46 = vld [vmem:[#allocation9 + $0x868] sm:$0xff]  ;;  %v13162_v16 = vpack.c.bf16 %v6410_v18, %v6410_v18 }
 0x432   :  { %9763 = vmatpush1.bf16.msra.mxu1 %v11986_v32  ;;  %9600 = vmatprep.subr.bf16.mxu0 %v11993_v54  ;;  %v13160_v32 = vpack.c.bf16 %v6407_v17, %v6407_v17  ;;  %v12033_v54 = vcombine.high %v6685_v23, %v6689_v19  ;;  %v12035_v43 = vcombine.high %v6686_v53, %v6690_v46 }
 0x433   :  { %9764 = vmatprep.subr.bf16.mxu1 %v11995_v30  ;;  %v6693_v30 = vld [vmem:[#allocation9 + $0x880] sm:$0xff] }
 0x435   :  { %9601 = vmatpush1.bf16.msra.mxu0 %v11992_v47  ;;  %v6698_v47 = vld [vmem:[#allocation9 + $0x8a8] sm:$0xff] }
 0x436   :  { %9765 = vmatpush1.bf16.msra.mxu1 %v11994_v27  ;;  %9602 = vmatprep.subr.bf16.mxu0 %v12001_v29  ;;  %v12032_v27 = vcombine.low %v6685_v23, %v6689_v19  ;;  %v12034_v29 = vcombine.low %v6686_v53, %v6690_v46  ;;  %v12043_v48 = vcombine.high %v6694_v61, %v6698_v47  ;;  %v6733_v23 = vld [vmem:[#allocation9 + $0x9c0] sm:$0xff]  ;;  %v6734_v46 = vld [vmem:[#allocation9 + $0x9c8] sm:$0xff] }
 0x437   :  { %9766 = vmatprep.subr.bf16.mxu1 %v12003_v63  ;;  %v12041_v63 = vcombine.high %v6693_v30, %v6697_v34  ;;  %v6737_v19 = vld [vmem:[#allocation9 + $0x9e0] sm:$0xff] }
 0x438   :  { %v6157_v20 = vpop.f32.mrb[44].mxu1 }
 0x439   :  { %v13154_v14 = vadd.f32 %v6157_v20, %v13139_v35  ;;  %v6159_v45 = vpop.f32.mrb[45].mxu1  ;;  %9603 = vmatpush1.bf16.msra.mxu0 %v12000_v13  ;;  %v6678_v35 = vld [vmem:[#allocation9 + $0x808] sm:$0xff]  ;;  %v12040_v13 = vcombine.low %v6693_v30, %v6697_v34 }
 0x43a   :  { %v13157_v8 = vadd.f32 %v6159_v45, %v13142_v44  ;;  %v6161_v39 = vpop.f32.mrb[46].mxu1  ;;  %9767 = vmatpush1.bf16.msra.mxu1 %v12002_v52  ;;  %9604 = vmatprep.subr.bf16.mxu0 %v12009_v56  ;;  %v12018_v44 = vcombine.low %v6670_v1, %v6674_v42  ;;  %v12027_v36 = vcombine.high %v6678_v35, %v6682_v15  ;;  %v6714_v20 = vld [vmem:[#allocation9 + $0x928] sm:$0xff] }
 0x43b   :  { %v6162_v37 = vpop.f32.mrb[47].mxu1  ;;  %9768 = vmatprep.subr.bf16.mxu1 %v12011_v57  ;;  %v12026_v9 = vcombine.low %v6678_v35, %v6682_v15  ;;  %v12042_v52 = vcombine.low %v6694_v61, %v6698_v47  ;;  %v12049_v56 = vcombine.high %v6701_v28, %v6705_v10  ;;  %v12051_v57 = vcombine.high %v6702_v3, %v6706_v5  ;;  %v6721_v39 = vld [vmem:[#allocation9 + $0x960] sm:$0xff]  ;;  %v6726_v15 = vld [vmem:[#allocation9 + $0x988] sm:$0xff] }
 0x43c   :  { %v12048_v1 = vcombine.low %v6701_v28, %v6705_v10  ;;  %v12050_v42 = vcombine.low %v6702_v3, %v6706_v5  ;;  %v12059_v45 = vcombine.high %v6710_v60, %v6714_v20  ;;  %v12056_v37 = vcombine.low %v6709_v50, %v6713_v58  ;;  %v6729_v35 = vld [vmem:[#allocation9 + $0x9a0] sm:$0xff] }
 0x43d   :  { %9605 = vmatpush1.bf16.msra.mxu0 %v12008_v6  ;;  %v6717_v6 = vld [vmem:[#allocation9 + $0x940] sm:$0xff]  ;;  %v12072_v34 = vcombine.low %v6725_v33, %v6729_v35  ;;  %v12081_v47 = vcombine.high %v6733_v23, %v6737_v19  ;;  %v12080_v28 = vcombine.low %v6733_v23, %v6737_v19 }
 0x43e   :  { %9769 = vmatpush1.bf16.msra.mxu1 %v12010_v11  ;;  %9606 = vmatprep.subr.bf16.mxu0 %v12017_v7  ;;  %v6718_v11 = vld [vmem:[#allocation9 + $0x948] sm:$0xff]  ;;  %v12065_v31 = vcombine.high %v6717_v6, %v6721_v39  ;;  %v12064_v17 = vcombine.low %v6717_v6, %v6721_v39  ;;  %v6749_v5 = vld [vmem:[#allocation9 + $0xa40] sm:$0xff] }
 0x43f   :  { %9770 = vmatprep.subr.bf16.mxu1 %v12019_v26  ;;  %v6722_v7 = vld [vmem:[#allocation9 + $0x968] sm:$0xff]  ;;  %v12058_v26 = vcombine.low %v6710_v60, %v6714_v20  ;;  %v6757_v20 = vld [vmem:[#allocation9 + $0xa80] sm:$0xff] }
 0x440   :  { %v12067_v40 = vcombine.high %v6718_v11, %v6722_v7 }
 0x441   :  { %9607 = vmatpush1.bf16.msra.mxu0 %v12016_v38  ;;  %v6730_v38 = vld [vmem:[#allocation9 + $0x9a8] sm:$0xff] }
 0x442   :  { %9771 = vmatpush1.bf16.msra.mxu1 %v12018_v44  ;;  %9617 = vmatprep.subr.bf16.mxu0 %v12025_v59  ;;  %v12066_v44 = vcombine.low %v6718_v11, %v6722_v7  ;;  %v12073_v59 = vcombine.high %v6725_v33, %v6729_v35  ;;  %v12075_v18 = vcombine.high %v6726_v15, %v6730_v38  ;;  %v6765_v7 = vld [vmem:[#allocation9 + $0xac0] sm:$0xff] }
 0x443   :  { %9781 = vmatprep.subr.bf16.mxu1 %v12027_v36  ;;  %v12074_v61 = vcombine.low %v6726_v15, %v6730_v38  ;;  %v6773_v38 = vld [vmem:[#allocation9 + $0xb00] sm:$0xff] }
 0x444   :  { %9609 = vmatmul.mubr.bf16.vlgmr.msra.gmra.mrb[56].mxu0 %v13160_v32 }
 0x445   :  { %9773 = vmatmul.mubr.bf16.vlgmr.msra.gmra.mrb[56].mxu1 %v13160_v32  ;;  %9618 = vmatpush1.bf16.msra.mxu0 %v12024_v25 }
 0x446   :  { %9649 = vmatprep.mubr.bf16.mxu0 %v13162_v16  ;;  %9782 = vmatpush1.bf16.msra.mxu1 %v12026_v9  ;;  %v6738_v9 = vld [vmem:[#allocation9 + $0x9e8] sm:$0xff] }
 0x447   :  { %9813 = vmatprep.mubr.bf16.mxu1 %v13162_v16  ;;  %9619 = vmatprep.subr.bf16.mxu0 %v12033_v54 }
 0x448   :  { %9783 = vmatprep.subr.bf16.mxu1 %v12035_v43 }
 0x449   :  { %9620 = vmatpush1.bf16.msra.mxu0 %v12032_v27  ;;  %v12083_v27 = vcombine.high %v6734_v46, %v6738_v9 }
 0x44a   :  { %9784 = vmatpush1.bf16.msra.mxu1 %v12034_v29  ;;  %9621 = vmatprep.subr.bf16.mxu0 %v12041_v63  ;;  %v6741_v29 = vld [vmem:[#allocation9 + $0xa00] sm:$0xff] }
 0x44b   :  { %9785 = vmatprep.subr.bf16.mxu1 %v12043_v48  ;;  %v6745_v63 = vld [vmem:[#allocation9 + $0xa20] sm:$0xff]  ;;  %v6746_v48 = vld [vmem:[#allocation9 + $0xa28] sm:$0xff] }
 0x44c   :  { %v12089_v10 = vcombine.high %v6741_v29, %v6745_v63 }
 0x44d   :  { %9622 = vmatpush1.bf16.msra.mxu0 %v12040_v13  ;;  %v6753_v13 = vld [vmem:[#allocation9 + $0xa60] sm:$0xff] }
 0x44e   :  { %9786 = vmatpush1.bf16.msra.mxu1 %v12042_v52  ;;  %9623 = vmatprep.subr.bf16.mxu0 %v12049_v56  ;;  %v6750_v52 = vld [vmem:[#allocation9 + $0xa48] sm:$0xff]  ;;  %v12097_v58 = vcombine.high %v6749_v5, %v6753_v13 }
 0x44f   :  { %9787 = vmatprep.subr.bf16.mxu1 %v12051_v57  ;;  %v6754_v56 = vld [vmem:[#allocation9 + $0xa68] sm:$0xff]  ;;  %v12088_v57 = vcombine.low %v6741_v29, %v6745_v63  ;;  %v6789_v29 = vld [vmem:[#allocation9 + $0xb80] sm:$0xff] }
 0x450   :  { %v12099_v60 = vcombine.high %v6750_v52, %v6754_v56  ;;  %v12098_v6 = vcombine.low %v6750_v52, %v6754_v56  ;;  %v6793_v63 = vld [vmem:[#allocation9 + $0xba0] sm:$0xff] }
 0x451   :  { %9624 = vmatpush1.bf16.msra.mxu0 %v12048_v1  ;;  %v6761_v1 = vld [vmem:[#allocation9 + $0xaa0] sm:$0xff] }
 0x452   :  { %9788 = vmatpush1.bf16.msra.mxu1 %v12050_v42  ;;  %9625 = vmatprep.subr.bf16.mxu0 %v12057_v2  ;;  %v6758_v42 = vld [vmem:[#allocation9 + $0xa88] sm:$0xff]  ;;  %v12105_v39 = vcombine.high %v6757_v20, %v6761_v1  ;;  %v6797_v52 = vld [vmem:[#allocation9 + $0xbc0] sm:$0xff] }
 0x453   :  { %9789 = vmatprep.subr.bf16.mxu1 %v12059_v45  ;;  %v6762_v2 = vld [vmem:[#allocation9 + $0xaa8] sm:$0xff]  ;;  %v12096_v45 = vcombine.low %v6749_v5, %v6753_v13  ;;  %v12137_v5 = vcombine.high %v6789_v29, %v6793_v63  ;;  %v6801_v56 = vld [vmem:[#allocation9 + $0xbe0] sm:$0xff] }
 0x454   :  { %v12107_v11 = vcombine.high %v6758_v42, %v6762_v2  ;;  %v12106_v33 = vcombine.low %v6758_v42, %v6762_v2  ;;  %v12136_v42 = vcombine.low %v6789_v29, %v6793_v63  ;;  %v6829_v29 = vld [vmem:[#allocation9 + $0xcc0] sm:$0xff] }
 0x455   :  { %9626 = vmatpush1.bf16.msra.mxu0 %v12056_v37  ;;  %v6769_v37 = vld [vmem:[#allocation9 + $0xae0] sm:$0xff] }
 0x456   :  { %9790 = vmatpush1.bf16.msra.mxu1 %v12058_v26  ;;  %9627 = vmatprep.subr.bf16.mxu0 %v12065_v31  ;;  %v6766_v26 = vld [vmem:[#allocation9 + $0xac8] sm:$0xff]  ;;  %v12113_v35 = vcombine.high %v6765_v7, %v6769_v37  ;;  %v6833_v63 = vld [vmem:[#allocation9 + $0xce0] sm:$0xff] }
 0x457   :  { %v6198_v36 = vpop.f32.mrb[48].mxu0  ;;  %9791 = vmatprep.subr.bf16.mxu1 %v12067_v40  ;;  %v6770_v31 = vld [vmem:[#allocation9 + $0xae8] sm:$0xff]  ;;  %v12104_v40 = vcombine.low %v6757_v20, %v6761_v1 }
 0x458   :  { %v13169_v25 = vadd.f32 %v6198_v36, %v13154_v14  ;;  %v6200_v53 = vpop.f32.mrb[49].mxu0  ;;  %v6742_v14 = vld [vmem:[#allocation9 + $0xa08] sm:$0xff]  ;;  %v12115_v15 = vcombine.high %v6766_v26, %v6770_v31  ;;  %v12112_v36 = vcombine.low %v6765_v7, %v6769_v37  ;;  %v6805_v37 = vld [vmem:[#allocation9 + $0xc00] sm:$0xff] }
 0x459   :  { %v13172_v54 = vadd.f32 %v6200_v53, %v13157_v8  ;;  %v6202_v30 = vpop.f32.mrb[50].mxu0  ;;  %9628 = vmatpush1.bf16.msra.mxu0 %v12064_v17  ;;  %v12082_v8 = vcombine.low %v6734_v46, %v6738_v9  ;;  %v12091_v3 = vcombine.high %v6742_v14, %v6746_v48  ;;  %v12090_v50 = vcombine.low %v6742_v14, %v6746_v48  ;;  %v6777_v17 = vld [vmem:[#allocation9 + $0xb20] sm:$0xff]  ;;  %v6782_v9 = vld [vmem:[#allocation9 + $0xb48] sm:$0xff] }
 0x45a   :  { %9792 = vmatpush1.bf16.msra.mxu1 %v12066_v44  ;;  %v6203_v43 = vpop.f32.mrb[51].mxu0  ;;  %9629 = vmatprep.subr.bf16.mxu0 %v12073_v59  ;;  %v6774_v44 = vld [vmem:[#allocation9 + $0xb08] sm:$0xff]  ;;  %v12121_v23 = vcombine.high %v6773_v38, %v6777_v17  ;;  %v6781_v53 = vld [vmem:[#allocation9 + $0xb40] sm:$0xff] }
 0x45b   :  { %9793 = vmatprep.subr.bf16.mxu1 %v12075_v18  ;;  %v6778_v59 = vld [vmem:[#allocation9 + $0xb28] sm:$0xff]  ;;  %v12114_v18 = vcombine.low %v6766_v26, %v6770_v31  ;;  %v6785_v46 = vld [vmem:[#allocation9 + $0xb60] sm:$0xff]  ;;  %v12120_v43 = vcombine.low %v6773_v38, %v6777_v17 }
 0x45c   :  { %v12123_v19 = vcombine.high %v6774_v44, %v6778_v59  ;;  %v6786_v30 = vld [vmem:[#allocation9 + $0xb68] sm:$0xff]  ;;  %v6809_v26 = vld [vmem:[#allocation9 + $0xc20] sm:$0xff] }
 0x45d   :  { %9630 = vmatpush1.bf16.msra.mxu0 %v12072_v34  ;;  %v6375_v34 = vsub.s32 4, %v13090_v0  ;;  %v6790_v14 = vld [vmem:[#allocation9 + $0xb88] sm:$0xff]  ;;  %v6817_v38 = vld [vmem:[#allocation9 + $0xc60] sm:$0xff] }
 0x45e   :  { %9794 = vmatpush1.bf16.msra.mxu1 %v12074_v61  ;;  %9631 = vmatprep.subr.bf16.mxu0 %v12081_v47  ;;  %v12122_v61 = vcombine.low %v6774_v44, %v6778_v59  ;;  %v12129_v47 = vcombine.high %v6781_v53, %v6785_v46  ;;  %v6794_v48 = vld [vmem:[#allocation9 + $0xba8] sm:$0xff]  ;;  %v12152_v59 = vcombine.low %v6805_v37, %v6809_v26 }
 0x45f   :  { %9795 = vmatprep.subr.bf16.mxu1 %v12083_v27  ;;  %v12131_v27 = vcombine.high %v6782_v9, %v6786_v30  ;;  %v12139_v13 = vcombine.high %v6790_v14, %v6794_v48  ;;  %v6810_v31 = vld [vmem:[#allocation9 + $0xc28] sm:$0xff] }
 0x460   :  { %v6814_v17 = vld [vmem:[#allocation9 + $0xc48] sm:$0xff] }
 0x461   :  { %9632 = vmatpush1.bf16.msra.mxu0 %v12080_v28  ;;  %v13175_v28 = vld [vmem:[#allocation8] sm:$0xff]  ;;  %v6818_v44 = vld [vmem:[#allocation9 + $0xc68] sm:$0xff] }
 0x462   :  { %9796 = vmatpush1.bf16.msra.mxu1 %v12082_v8  ;;  %9633 = vmatprep.subr.bf16.mxu0 %v12089_v10  ;;  %v6376_v8 = vrot.slane %v13175_v28, %v6375_v34  ;;  %v12128_v10 = vcombine.low %v6781_v53, %v6785_v46  ;;  %v6821_v53 = vld [vmem:[#allocation9 + $0xc80] sm:$0xff] }
 0x463   :  { %9797 = vmatprep.subr.bf16.mxu1 %v12091_v3  ;;  %v12130_v3 = vcombine.low %v6782_v9, %v6786_v30  ;;  %v6825_v46 = vld [vmem:[#allocation9 + $0xca0] sm:$0xff]  ;;  %v6822_v9 = vld [vmem:[#allocation9 + $0xc88] sm:$0xff] }
 0x464   :  { %v6826_v30 = vld [vmem:[#allocation9 + $0xca8] sm:$0xff] }
 0x465   :  { %9634 = vmatpush1.bf16.msra.mxu0 %v12088_v57 }
 0x466   :  { %9798 = vmatpush1.bf16.msra.mxu1 %v12090_v50  ;;  %9635 = vmatprep.subr.bf16.mxu0 %v12097_v58  ;;  %v6798_v50 = vld [vmem:[#allocation9 + $0xbc8] sm:$0xff] }
 0x467   :  { %9799 = vmatprep.subr.bf16.mxu1 %v12099_v60  ;;  %v6802_v58 = vld [vmem:[#allocation9 + $0xbe8] sm:$0xff]  ;;  %v6401_v60 = vadd.f32 %v6376_v8, %v13111_v4  ;;  %v12168_v8 = vcombine.low %v6821_v53, %v6825_v46 }
 0x468   :  { %v12147_v7 = vcombine.high %v6798_v50, %v6802_v58  ;;  %v6806_v4 = vld [vmem:[#allocation9 + $0xc08] sm:$0xff] }
 0x469   :  { %9636 = vmatpush1.bf16.msra.mxu0 %v12096_v45 }
 0x46a   :  { %9800 = vmatpush1.bf16.msra.mxu1 %v12098_v6  ;;  %9637 = vmatprep.subr.bf16.mxu0 %v12105_v39  ;;  %v12138_v6 = vcombine.low %v6790_v14, %v6794_v48  ;;  %v12145_v39 = vcombine.high %v6797_v52, %v6801_v56  ;;  %v6830_v14 = vld [vmem:[#allocation9 + $0xcc8] sm:$0xff] }
 0x46b   :  { %9801 = vmatprep.subr.bf16.mxu1 %v12107_v11  ;;  %v6834_v48 = vld [vmem:[#allocation9 + $0xce8] sm:$0xff] }
 0x46d   :  { %9638 = vmatpush1.bf16.msra.mxu0 %v12104_v40  ;;  %v6409_v40 = vmax.f32 %v6401_v60, 0.0 }
 0x46e   :  { %9802 = vmatpush1.bf16.msra.mxu1 %v12106_v33  ;;  %9639 = vmatprep.subr.bf16.mxu0 %v12113_v35  ;;  %v12146_v33 = vcombine.low %v6798_v50, %v6802_v58  ;;  %v12155_v35 = vcombine.high %v6806_v4, %v6810_v31  ;;  %v12176_v50 = vcombine.low %v6829_v29, %v6833_v63 }
 0x46f   :  { %9803 = vmatprep.subr.bf16.mxu1 %v12115_v15  ;;  %v6813_v15 = vld [vmem:[#allocation9 + $0xc40] sm:$0xff]  ;;  %v12178_v58 = vcombine.low %v6830_v14, %v6834_v48 }
 0x471   :  { %9640 = vmatpush1.bf16.msra.mxu0 %v12112_v36  ;;  %v13187_v36 = vpack.c.bf16 %v6409_v40, %v6409_v40  ;;  %v6858_v40 = vld [vmem:[#allocation9 + $0xda8] sm:$0xff] }
 0x472   :  { %9804 = vmatpush1.bf16.msra.mxu1 %v12114_v18  ;;  %9641 = vmatprep.subr.bf16.mxu0 %v12121_v23  ;;  %v12154_v18 = vcombine.low %v6806_v4, %v6810_v31  ;;  %v12161_v23 = vcombine.high %v6813_v15, %v6817_v38  ;;  %v6853_v4 = vld [vmem:[#allocation9 + $0xd80] sm:$0xff] }
 0x473   :  { %9805 = vmatprep.subr.bf16.mxu1 %v12123_v19  ;;  %v12163_v19 = vcombine.high %v6814_v17, %v6818_v44  ;;  %v6857_v31 = vld [vmem:[#allocation9 + $0xda0] sm:$0xff] }
 0x475   :  { %9642 = vmatpush1.bf16.msra.mxu0 %v12120_v43  ;;  %v12160_v43 = vcombine.low %v6813_v15, %v6817_v38  ;;  %v12201_v15 = vcombine.high %v6853_v4, %v6857_v31 }
 0x476   :  { %9806 = vmatpush1.bf16.msra.mxu1 %v12122_v61  ;;  %9643 = vmatprep.subr.bf16.mxu0 %v12129_v47  ;;  %v12162_v61 = vcombine.low %v6814_v17, %v6818_v44  ;;  %v12169_v47 = vcombine.high %v6821_v53, %v6825_v46  ;;  %v6861_v44 = vld [vmem:[#allocation9 + $0xdc0] sm:$0xff]  ;;  %v6862_v53 = vld [vmem:[#allocation9 + $0xdc8] sm:$0xff] }
 0x477   :  { %9807 = vmatprep.subr.bf16.mxu1 %v12131_v27  ;;  %v12171_v27 = vcombine.high %v6822_v9, %v6826_v30  ;;  %v6866_v46 = vld [vmem:[#allocation9 + $0xde8] sm:$0xff] }
 0x478   :  { %v6239_v57 = vpop.f32.mrb[48].mxu1 }
 0x479   :  { %v13182_v20 = vadd.f32 %v6239_v57, %v13169_v25  ;;  %v6241_v1 = vpop.f32.mrb[49].mxu1  ;;  %9644 = vmatpush1.bf16.msra.mxu0 %v12128_v10  ;;  %v12144_v25 = vcombine.low %v6797_v52, %v6801_v56  ;;  %v12170_v10 = vcombine.low %v6822_v9, %v6826_v30  ;;  %v6841_v52 = vld [vmem:[#allocation9 + $0xd20] sm:$0xff]  ;;  %v6838_v56 = vld [vmem:[#allocation9 + $0xd08] sm:$0xff] }
 0x47a   :  { %v13185_v2 = vadd.f32 %v6241_v1, %v13172_v54  ;;  %v6243_v45 = vpop.f32.mrb[50].mxu1  ;;  %9808 = vmatpush1.bf16.msra.mxu1 %v12130_v3  ;;  %9645 = vmatprep.subr.bf16.mxu0 %v12137_v5  ;;  %v12153_v54 = vcombine.high %v6805_v37, %v6809_v26  ;;  %v12177_v3 = vcombine.high %v6829_v29, %v6833_v63  ;;  %v6842_v57 = vld [vmem:[#allocation9 + $0xd28] sm:$0xff] }
 0x47b   :  { %v6244_v11 = vpop.f32.mrb[51].mxu1  ;;  %9809 = vmatprep.subr.bf16.mxu1 %v12139_v13  ;;  %v12179_v5 = vcombine.high %v6830_v14, %v6834_v48  ;;  %v6837_v13 = vld [vmem:[#allocation9 + $0xd00] sm:$0xff]  ;;  %v12187_v1 = vcombine.high %v6838_v56, %v6842_v57 }
 0x47c   :  { %v12185_v60 = vcombine.high %v6837_v13, %v6841_v52  ;;  %v6849_v45 = vld [vmem:[#allocation9 + $0xd60] sm:$0xff]  ;;  %v12184_v11 = vcombine.low %v6837_v13, %v6841_v52  ;;  %v6870_v52 = vld [vmem:[#allocation9 + $0xe08] sm:$0xff] }
 0x47d   :  { %9646 = vmatpush1.bf16.msra.mxu0 %v12136_v42  ;;  %v6845_v42 = vld [vmem:[#allocation9 + $0xd40] sm:$0xff] }
 0x47e   :  { %9810 = vmatpush1.bf16.msra.mxu1 %v12138_v6  ;;  %9647 = vmatprep.subr.bf16.mxu0 %v12145_v39  ;;  %v6846_v6 = vld [vmem:[#allocation9 + $0xd48] sm:$0xff]  ;;  %v12193_v37 = vcombine.high %v6845_v42, %v6849_v45 }
 0x47f   :  { %9811 = vmatprep.subr.bf16.mxu1 %v12147_v7  ;;  %v6850_v39 = vld [vmem:[#allocation9 + $0xd68] sm:$0xff]  ;;  %v12186_v7 = vcombine.low %v6838_v56, %v6842_v57  ;;  %v12210_v57 = vcombine.low %v6862_v53, %v6866_v46 }
 0x480   :  { %v12195_v26 = vcombine.high %v6846_v6, %v6850_v39  ;;  %v6874_v56 = vld [vmem:[#allocation9 + $0xe28] sm:$0xff] }
 0x481   :  { %9648 = vmatpush1.bf16.msra.mxu0 %v12144_v25  ;;  %v6854_v25 = vld [vmem:[#allocation9 + $0xd88] sm:$0xff] }
 0x482   :  { %9812 = vmatpush1.bf16.msra.mxu1 %v12146_v33  ;;  %9658 = vmatprep.subr.bf16.mxu0 %v12153_v54  ;;  %v6387_v33 = vsub.s32 7, %v13090_v0  ;;  %v12192_v54 = vcombine.low %v6845_v42, %v6849_v45  ;;  %v12203_v17 = vcombine.high %v6854_v25, %v6858_v40  ;;  %v12219_v42 = vcombine.high %v6870_v52, %v6874_v56  ;;  %v6878_v45 = vld [vmem:[#allocation9 + $0xe48] sm:$0xff] }
 0x483   :  { %9822 = vmatprep.subr.bf16.mxu1 %v12155_v35  ;;  %v12194_v35 = vcombine.low %v6846_v6, %v6850_v39  ;;  %v6882_v6 = vld [vmem:[#allocation9 + $0xe68] sm:$0xff] }
 0x484   :  { %9650 = vmatmul.mubr.bf16.vlgmr.msra.gmra.mrb[56].mxu0 %v13187_v36 }
 0x485   :  { %9814 = vmatmul.mubr.bf16.vlgmr.msra.gmra.mrb[56].mxu1 %v13187_v36  ;;  %9659 = vmatpush1.bf16.msra.mxu0 %v12152_v59  ;;  %v6865_v59 = vld [vmem:[#allocation9 + $0xde0] sm:$0xff] }
 0x486   :  { %9823 = vmatpush1.bf16.msra.mxu1 %v12154_v18  ;;  %9660 = vmatprep.subr.bf16.mxu0 %v12161_v23  ;;  %v12209_v14 = vcombine.high %v6861_v44, %v6865_v59  ;;  %v12208_v13 = vcombine.low %v6861_v44, %v6865_v59  ;;  %v6897_v44 = vld [vmem:[#allocation9 + $0xee0] sm:$0xff]  ;;  %v6894_v59 = vld [vmem:[#allocation9 + $0xec8] sm:$0xff] }
 0x487   :  { %9824 = vmatprep.subr.bf16.mxu1 %v12163_v19 }
 0x489   :  { %9661 = vmatpush1.bf16.msra.mxu0 %v12160_v43  ;;  %v6388_v43 = vrot.slane %v13175_v28, %v6387_v33 }
 0x48a   :  { %9825 = vmatpush1.bf16.msra.mxu1 %v12162_v61  ;;  %9662 = vmatprep.subr.bf16.mxu0 %v12169_v47  ;;  %v12200_v47 = vcombine.low %v6853_v4, %v6857_v31  ;;  %v6885_v4 = vld [vmem:[#allocation9 + $0xe80] sm:$0xff] }
 0x48b   :  { %9826 = vmatprep.subr.bf16.mxu1 %v12171_v27  ;;  %v6889_v31 = vld [vmem:[#allocation9 + $0xea0] sm:$0xff] }
 0x48d   :  { %9663 = vmatpush1.bf16.msra.mxu0 %v12168_v8 }
 0x48e   :  { %9827 = vmatpush1.bf16.msra.mxu1 %v12170_v10  ;;  %9664 = vmatprep.subr.bf16.mxu0 %v12177_v3  ;;  %v6869_v10 = vld [vmem:[#allocation9 + $0xe00] sm:$0xff] }
 0x48f   :  { %9828 = vmatprep.subr.bf16.mxu1 %v12179_v5  ;;  %v6873_v3 = vld [vmem:[#allocation9 + $0xe20] sm:$0xff] }
 0x491   :  { %9665 = vmatpush1.bf16.msra.mxu0 %v12176_v50  ;;  %v12217_v50 = vcombine.high %v6869_v10, %v6873_v3 }
 0x492   :  { %9829 = vmatpush1.bf16.msra.mxu1 %v12178_v58  ;;  %9666 = vmatprep.subr.bf16.mxu0 %v12185_v60  ;;  %v6877_v60 = vld [vmem:[#allocation9 + $0xe40] sm:$0xff] }
 0x493   :  { %9830 = vmatprep.subr.bf16.mxu1 %v12187_v1  ;;  %v6881_v1 = vld [vmem:[#allocation9 + $0xe60] sm:$0xff] }
 0x495   :  { %9667 = vmatpush1.bf16.msra.mxu0 %v12184_v11  ;;  %v12216_v11 = vcombine.low %v6869_v10, %v6873_v3  ;;  %v6383_v3 = vsub.s32 6, %v13090_v0 }
 0x496   :  { %9831 = vmatpush1.bf16.msra.mxu1 %v12186_v7  ;;  %9668 = vmatprep.subr.bf16.mxu0 %v12193_v37  ;;  %v12218_v7 = vcombine.low %v6870_v52, %v6874_v56  ;;  %v12225_v37 = vcombine.high %v6877_v60, %v6881_v1  ;;  %v6917_v56 = vld [vmem:[#allocation9 + $0xf80] sm:$0xff] }
 0x497   :  { %v6280_v38 = vpop.f32.mrb[52].mxu0  ;;  %9832 = vmatprep.subr.bf16.mxu1 %v12195_v26  ;;  %v12227_v26 = vcombine.high %v6878_v45, %v6882_v6 }
 0x498   :  { %v6281_v18 = vadd.f32 %v6280_v38, %v13182_v20  ;;  %v6321_v23 = vpop.f32.mrb[52].mxu1  ;;  %v6282_v19 = vpop.f32.mrb[53].mxu0  ;;  %v12202_v20 = vcombine.low %v6854_v25, %v6858_v40  ;;  %v6886_v25 = vld [vmem:[#allocation9 + $0xe88] sm:$0xff] }
 0x499   :  { %v6283_v9 = vadd.f32 %v6282_v19, %v13185_v2  ;;  %v6323_v30 = vpop.f32.mrb[53].mxu1  ;;  %v6284_v61 = vpop.f32.mrb[54].mxu0  ;;  %9669 = vmatpush1.bf16.msra.mxu0 %v12192_v54  ;;  %v12211_v2 = vcombine.high %v6862_v53, %v6866_v46  ;;  %v6890_v40 = vld [vmem:[#allocation9 + $0xea8] sm:$0xff]  ;;  %v12224_v54 = vcombine.low %v6877_v60, %v6881_v1  ;;  %v6384_v1 = vrot.slane %v13175_v28, %v6383_v3 }
 0x49a   :  { %v13197_v27 = vadd.f32 %v6321_v23, %v6281_v18  ;;  %v6325_v29 = vpop.f32.mrb[54].mxu1  ;;  %9833 = vmatpush1.bf16.msra.mxu1 %v12194_v35  ;;  %v6285_v63 = vpop.f32.mrb[55].mxu0  ;;  %9670 = vmatprep.subr.bf16.mxu0 %v12201_v15  ;;  %v12226_v35 = vcombine.low %v6878_v45, %v6882_v6  ;;  %v12233_v15 = vcombine.high %v6885_v4, %v6889_v31  ;;  %v6898_v18 = vld [vmem:[#allocation9 + $0xee8] sm:$0xff] }
 0x49b   :  { %v6324_v48 = vadd.f32 %v6323_v30, %v6283_v9  ;;  %v6326_v8 = vpop.f32.mrb[55].mxu1  ;;  %9834 = vmatprep.subr.bf16.mxu1 %v12203_v17  ;;  %v12235_v38 = vcombine.high %v6886_v25, %v6890_v40  ;;  %v6893_v17 = vld [vmem:[#allocation9 + $0xec0] sm:$0xff]  ;;  %v12232_v23 = vcombine.low %v6885_v4, %v6889_v31  ;;  %v12234_v19 = vcombine.low %v6886_v25, %v6890_v40  ;;  %v6906_v61 = vld [vmem:[#allocation9 + $0xf28] sm:$0xff] }
 0x49c   :  { %v12241_v53 = vcombine.high %v6893_v17, %v6897_v44  ;;  %v12243_v46 = vcombine.high %v6894_v59, %v6898_v18  ;;  %v6901_v9 = vld [vmem:[#allocation9 + $0xf00] sm:$0xff]  ;;  %v12242_v29 = vcombine.low %v6894_v59, %v6898_v18  ;;  %v6910_v8 = vld [vmem:[#allocation9 + $0xf48] sm:$0xff]  ;;  %v6403_v31 = vadd.f32 %v6384_v1, %v13197_v27  ;;  %v6431_v27 = vld [vmem:[#allocation9 + $0x50] sm:$0xff] }
 0x49d   :  { %v6404_v5 = vadd.f32 %v6388_v43, %v6324_v48  ;;  %9671 = vmatpush1.bf16.msra.mxu0 %v12200_v47  ;;  %v6905_v30 = vld [vmem:[#allocation9 + $0xf20] sm:$0xff]  ;;  %v6902_v43 = vld [vmem:[#allocation9 + $0xf08] sm:$0xff]  ;;  %v12240_v47 = vcombine.low %v6893_v17, %v6897_v44  ;;  %v6455_v1 = vld [vmem:[#allocation9 + $0x110] sm:$0xff] }
 0x49e   :  { %9835 = vmatpush1.bf16.msra.mxu1 %v12202_v20  ;;  %9672 = vmatprep.subr.bf16.mxu0 %v12209_v14  ;;  %v12249_v63 = vcombine.high %v6901_v9, %v6905_v30  ;;  %v12251_v20 = vcombine.high %v6902_v43, %v6906_v61  ;;  %v6909_v14 = vld [vmem:[#allocation9 + $0xf40] sm:$0xff]  ;;  %v12248_v10 = vcombine.low %v6901_v9, %v6905_v30  ;;  %v6411_v44 = vmax.f32 %v6403_v31, 0.0  ;;  %v6436_v9 = vld [vmem:[#allocation9 + $0x78] sm:$0xff] }
 0x49f   :  { %v6412_v58 = vmax.f32 %v6404_v5, 0.0  ;;  %9836 = vmatprep.subr.bf16.mxu1 %v12211_v2  ;;  %v6913_v48 = vld [vmem:[#allocation9 + $0xf60] sm:$0xff]  ;;  %v6914_v2 = vld [vmem:[#allocation9 + $0xf68] sm:$0xff]  ;;  %v12250_v5 = vcombine.low %v6902_v43, %v6906_v61  ;;  %v6464_v31 = vld [vmem:[#allocation9 + $0x158] sm:$0xff] }
 0x4a0   :  { %v12259_v52 = vcombine.high %v6910_v8, %v6914_v2  ;;  %v12256_v60 = vcombine.low %v6909_v14, %v6913_v48  ;;  %v13208_v30 = vpack.c.bf16 %v6411_v44, %v6411_v44  ;;  %v6476_v44 = vld [vmem:[#allocation9 + $0x1b8] sm:$0xff] }
 0x4a1   :  { %v13199_v39 = vpack.c.bf16 %v6412_v58, %v6412_v58  ;;  %9673 = vmatpush1.bf16.msra.mxu0 %v12208_v13  ;;  %v12257_v13 = vcombine.high %v6909_v14, %v6913_v48  ;;  %v6922_v58 = vld [vmem:[#allocation9 + $0xfa8] sm:$0xff]  ;;  %v6444_v14 = vld [vmem:[#allocation9 + $0xb8] sm:$0xff] }
 0x4a2   :  { %9837 = vmatpush1.bf16.msra.mxu1 %v12210_v57  ;;  %9674 = vmatprep.subr.bf16.mxu0 %v12217_v50  ;;  %v6921_v57 = vld [vmem:[#allocation9 + $0xfa0] sm:$0xff]  ;;  %v6918_v50 = vld [vmem:[#allocation9 + $0xf88] sm:$0xff] }
 0x4a3   :  { %9690 = vmatprep.mubr.bf16.mxu0 %v13199_v39  ;;  %9854 = vmatprep.mubr.bf16.mxu1 %v13199_v39  ;;  %v12265_v45 = vcombine.high %v6917_v56, %v6921_v57  ;;  %v12267_v6 = vcombine.high %v6918_v50, %v6922_v58  ;;  %v12264_v4 = vcombine.low %v6917_v56, %v6921_v57  ;;  %v6452_v56 = vld [vmem:[#allocation9 + $0xf8] sm:$0xff] }
 0x4a4   :  { %9838 = vmatprep.subr.bf16.mxu1 %v12219_v42  ;;  %v12258_v42 = vcombine.low %v6910_v8, %v6914_v2  ;;  %v12266_v25 = vcombine.low %v6918_v50, %v6922_v58 }
 0x4a5   :  { %9675 = vmatpush1.bf16.msra.mxu0 %v12216_v11  ;;  %v6925_v11 = vld [vmem:[#allocation9 + $0xfc0] sm:$0xff] }
 0x4a6   :  { %9839 = vmatpush1.bf16.msra.mxu1 %v12218_v7  ;;  %9676 = vmatprep.subr.bf16.mxu0 %v12225_v37  ;;  %v6929_v7 = vld [vmem:[#allocation9 + $0xfe0] sm:$0xff]  ;;  %v6926_v37 = vld [vmem:[#allocation9 + $0xfc8] sm:$0xff] }
 0x4a7   :  { %9840 = vmatprep.subr.bf16.mxu1 %v12227_v26  ;;  %v6930_v26 = vld [vmem:[#allocation9 + $0xfe8] sm:$0xff]  ;;  %v12273_v40 = vcombine.high %v6925_v11, %v6929_v7  ;;  %v12272_v17 = vcombine.low %v6925_v11, %v6929_v7 }
 0x4a8   :  { %v12275_v28 = vcombine.high %v6926_v37, %v6930_v26  ;;  %v12274_v59 = vcombine.low %v6926_v37, %v6930_v26  ;;  %v6463_v26 = vld [vmem:[#allocation9 + $0x150] sm:$0xff] }
 0x4a9   :  { %9677 = vmatpush1.bf16.msra.mxu0 %v12224_v54  ;;  %v6423_v54 = vld [vmem:[#allocation9 + $0x10] sm:$0xff] }
 0x4aa   :  { %9841 = vmatpush1.bf16.msra.mxu1 %v12226_v35  ;;  %9678 = vmatprep.subr.bf16.mxu0 %v12233_v15  ;;  %v6427_v35 = vld [vmem:[#allocation9 + $0x30] sm:$0xff]  ;;  %v6424_v15 = vld [vmem:[#allocation9 + $0x18] sm:$0xff] }
 0x4ab   :  { %9842 = vmatprep.subr.bf16.mxu1 %v12235_v38  ;;  %v6428_v38 = vld [vmem:[#allocation9 + $0x38] sm:$0xff]  ;;  %v11773_v18 = vcombine.high %v6423_v54, %v6427_v35 }
 0x4ac   :  { %v11774_v43 = vcombine.low %v6424_v15, %v6428_v38 }
 0x4ad   :  { %9679 = vmatpush1.bf16.msra.mxu0 %v12232_v23  ;;  %v11775_v23 = vcombine.high %v6424_v15, %v6428_v38  ;;  %v6471_v15 = vld [vmem:[#allocation9 + $0x190] sm:$0xff] }
 0x4ae   :  { %9843 = vmatpush1.bf16.msra.mxu1 %v12234_v19  ;;  %9680 = vmatprep.subr.bf16.mxu0 %v12241_v53  ;;  %v6435_v19 = vld [vmem:[#allocation9 + $0x70] sm:$0xff]  ;;  %v11772_v53 = vcombine.low %v6423_v54, %v6427_v35 }
 0x4af   :  { %9844 = vmatprep.subr.bf16.mxu1 %v12243_v46  ;;  %v6432_v46 = vld [vmem:[#allocation9 + $0x58] sm:$0xff]  ;;  %v11781_v61 = vcombine.high %v6431_v27, %v6435_v19  ;;  %v11780_v48 = vcombine.low %v6431_v27, %v6435_v19  ;;  %v6475_v38 = vld [vmem:[#allocation9 + $0x1b0] sm:$0xff] }
 0x4b0   :  { %v11782_v8 = vcombine.low %v6432_v46, %v6436_v9  ;;  %v6479_v19 = vld [vmem:[#allocation9 + $0x1d0] sm:$0xff] }
 0x4b1   :  { %9681 = vmatpush1.bf16.msra.mxu0 %v12240_v47  ;;  %v6439_v47 = vld [vmem:[#allocation9 + $0x90] sm:$0xff] }
 0x4b2   :  { %9845 = vmatpush1.bf16.msra.mxu1 %v12242_v29  ;;  %9682 = vmatprep.subr.bf16.mxu0 %v12249_v63  ;;  %v6443_v29 = vld [vmem:[#allocation9 + $0xb0] sm:$0xff]  ;;  %v11783_v63 = vcombine.high %v6432_v46, %v6436_v9  ;;  %v6480_v46 = vld [vmem:[#allocation9 + $0x1d8] sm:$0xff] }
 0x4b3   :  { %9846 = vmatprep.subr.bf16.mxu1 %v12251_v20  ;;  %v6440_v20 = vld [vmem:[#allocation9 + $0x98] sm:$0xff]  ;;  %v11789_v2 = vcombine.high %v6439_v47, %v6443_v29  ;;  %v11788_v57 = vcombine.low %v6439_v47, %v6443_v29 }
 0x4b4   :  { %v11790_v50 = vcombine.low %v6440_v20, %v6444_v14  ;;  %v6484_v9 = vld [vmem:[#allocation9 + $0x1f8] sm:$0xff] }
 0x4b5   :  { %9683 = vmatpush1.bf16.msra.mxu0 %v12248_v10  ;;  %v11791_v10 = vcombine.high %v6440_v20, %v6444_v14  ;;  %v11831_v29 = vcombine.high %v6480_v46, %v6484_v9  ;;  %v6491_v20 = vld [vmem:[#allocation9 + $0x230] sm:$0xff]  ;;  %v6488_v14 = vld [vmem:[#allocation9 + $0x218] sm:$0xff] }
 0x4b6   :  { %9847 = vmatpush1.bf16.msra.mxu1 %v12250_v5  ;;  %9684 = vmatprep.subr.bf16.mxu0 %v12257_v13  ;;  %v6447_v5 = vld [vmem:[#allocation9 + $0xd0] sm:$0xff] }
 0x4b7   :  { %9848 = vmatprep.subr.bf16.mxu1 %v12259_v52  ;;  %v6451_v13 = vld [vmem:[#allocation9 + $0xf0] sm:$0xff]  ;;  %v6448_v52 = vld [vmem:[#allocation9 + $0xd8] sm:$0xff] }
 0x4b8   :  { %v11797_v58 = vcombine.high %v6447_v5, %v6451_v13  ;;  %v11798_v11 = vcombine.low %v6448_v52, %v6452_v56 }
 0x4b9   :  { %9685 = vmatpush1.bf16.msra.mxu0 %v12256_v60  ;;  %v11799_v60 = vcombine.high %v6448_v52, %v6452_v56  ;;  %v6499_v52 = vld [vmem:[#allocation9 + $0x270] sm:$0xff]  ;;  %v6496_v56 = vld [vmem:[#allocation9 + $0x258] sm:$0xff] }
 0x4ba   :  { %9849 = vmatpush1.bf16.msra.mxu1 %v12258_v42  ;;  %9686 = vmatprep.subr.bf16.mxu0 %v12265_v45  ;;  %v6459_v42 = vld [vmem:[#allocation9 + $0x130] sm:$0xff]  ;;  %v6456_v45 = vld [vmem:[#allocation9 + $0x118] sm:$0xff] }
 0x4bb   :  { %9850 = vmatprep.subr.bf16.mxu1 %v12267_v6  ;;  %v6460_v6 = vld [vmem:[#allocation9 + $0x138] sm:$0xff]  ;;  %v11805_v7 = vcombine.high %v6455_v1, %v6459_v42 }
 0x4bc   :  { %v11807_v37 = vcombine.high %v6456_v45, %v6460_v6 }
 0x4bd   :  { %9687 = vmatpush1.bf16.msra.mxu0 %v12264_v4  ;;  %v6467_v4 = vld [vmem:[#allocation9 + $0x170] sm:$0xff] }
 0x4be   :  { %9851 = vmatpush1.bf16.msra.mxu1 %v12266_v25  ;;  %9688 = vmatprep.subr.bf16.mxu0 %v12273_v40  ;;  %v6468_v25 = vld [vmem:[#allocation9 + $0x178] sm:$0xff]  ;;  %v11804_v40 = vcombine.low %v6455_v1, %v6459_v42  ;;  %v11813_v54 = vcombine.high %v6463_v26, %v6467_v4  ;;  %v6503_v42 = vld [vmem:[#allocation9 + $0x290] sm:$0xff] }
 0x4bf   :  { %9852 = vmatprep.subr.bf16.mxu1 %v12275_v28  ;;  %v11806_v28 = vcombine.low %v6456_v45, %v6460_v6  ;;  %v11815_v35 = vcombine.high %v6464_v31, %v6468_v25  ;;  %v6507_v45 = vld [vmem:[#allocation9 + $0x2b0] sm:$0xff]  ;;  %v6504_v6 = vld [vmem:[#allocation9 + $0x298] sm:$0xff] }
 0x4c1   :  { %9689 = vmatpush1.bf16.msra.mxu0 %v12272_v17  ;;  %v6472_v17 = vld [vmem:[#allocation9 + $0x198] sm:$0xff] }
 0x4c2   :  { %9853 = vmatpush1.bf16.msra.mxu1 %v12274_v59  ;;  %9863 = vmatprep.subr.bf16.mxu0 %v11773_v18  ;;  %v11812_v59 = vcombine.low %v6463_v26, %v6467_v4  ;;  %v11814_v18 = vcombine.low %v6464_v31, %v6468_v25  ;;  %v11823_v27 = vcombine.high %v6472_v17, %v6476_v44  ;;  %v6511_v4 = vld [vmem:[#allocation9 + $0x2d0] sm:$0xff]  ;;  %v6512_v25 = vld [vmem:[#allocation9 + $0x2d8] sm:$0xff] }
 0x4c3   :  { %10027 = vmatprep.subr.bf16.mxu1 %v11775_v23  ;;  %v11821_v23 = vcombine.high %v6471_v15, %v6475_v38  ;;  %v6515_v31 = vld [vmem:[#allocation9 + $0x2f0] sm:$0xff] }
 0x4c4   :  { %9691 = vmatmul.mubr.bf16.vlgmr.msra.gmra.mrb[56].mxu0 %v13208_v30 }
 0x4c5   :  { %9855 = vmatmul.mubr.bf16.vlgmr.msra.gmra.mrb[56].mxu1 %v13208_v30  ;;  %9864 = vmatpush1.bf16.msra.mxu0 %v11772_v53  ;;  %v6483_v53 = vld [vmem:[#allocation9 + $0x1f0] sm:$0xff] }
 0x4c6   :  { %9895 = vmatprep.mubr.bf16.mxu0 %v13105_v62  ;;  %10028 = vmatpush1.bf16.msra.mxu1 %v11774_v43  ;;  %v11820_v43 = vcombine.low %v6471_v15, %v6475_v38  ;;  %v11829_v47 = vcombine.high %v6479_v19, %v6483_v53  ;;  %v6519_v38 = vld [vmem:[#allocation9 + $0x310] sm:$0xff] }
 0x4c7   :  { %10059 = vmatprep.mubr.bf16.mxu1 %v13105_v62  ;;  %9865 = vmatprep.subr.bf16.mxu0 %v11781_v61  ;;  %v11796_v62 = vcombine.low %v6447_v5, %v6451_v13  ;;  %v11822_v61 = vcombine.low %v6472_v17, %v6476_v44  ;;  %v6495_v13 = vld [vmem:[#allocation9 + $0x250] sm:$0xff]  ;;  %v6520_v44 = vld [vmem:[#allocation9 + $0x318] sm:$0xff] }
 0x4c8   :  { %10029 = vmatprep.subr.bf16.mxu1 %v11783_v63  ;;  %v6487_v63 = vld [vmem:[#allocation9 + $0x210] sm:$0xff] }
 0x4c9   :  { %9866 = vmatpush1.bf16.msra.mxu0 %v11780_v48  ;;  %v6492_v48 = vld [vmem:[#allocation9 + $0x238] sm:$0xff]  ;;  %v6523_v17 = vld [vmem:[#allocation9 + $0x330] sm:$0xff] }
 0x4ca   :  { %10030 = vmatpush1.bf16.msra.mxu1 %v11782_v8  ;;  %9867 = vmatprep.subr.bf16.mxu0 %v11789_v2  ;;  %v11828_v8 = vcombine.low %v6479_v19, %v6483_v53  ;;  %v11830_v2 = vcombine.low %v6480_v46, %v6484_v9  ;;  %v11839_v5 = vcombine.high %v6488_v14, %v6492_v48  ;;  %v6527_v53 = vld [vmem:[#allocation9 + $0x350] sm:$0xff]  ;;  %v6528_v9 = vld [vmem:[#allocation9 + $0x358] sm:$0xff] }
 0x4cb   :  { %10031 = vmatprep.subr.bf16.mxu1 %v11791_v10  ;;  %v11837_v10 = vcombine.high %v6487_v63, %v6491_v20  ;;  %v6531_v46 = vld [vmem:[#allocation9 + $0x370] sm:$0xff] }
 0x4cd   :  { %9868 = vmatpush1.bf16.msra.mxu0 %v11788_v57  ;;  %v6500_v57 = vld [vmem:[#allocation9 + $0x278] sm:$0xff] }
 0x4ce   :  { %10032 = vmatpush1.bf16.msra.mxu1 %v11790_v50  ;;  %9869 = vmatprep.subr.bf16.mxu0 %v11797_v58  ;;  %v11836_v50 = vcombine.low %v6487_v63, %v6491_v20  ;;  %v11838_v58 = vcombine.low %v6488_v14, %v6492_v48  ;;  %v11847_v1 = vcombine.high %v6496_v56, %v6500_v57  ;;  %v6535_v20 = vld [vmem:[#allocation9 + $0x390] sm:$0xff]  ;;  %v6536_v48 = vld [vmem:[#allocation9 + $0x398] sm:$0xff] }
 0x4cf   :  { %10033 = vmatprep.subr.bf16.mxu1 %v11799_v60  ;;  %v11845_v60 = vcombine.high %v6495_v13, %v6499_v52  ;;  %v6539_v14 = vld [vmem:[#allocation9 + $0x3b0] sm:$0xff] }
 0x4d1   :  { %9870 = vmatpush1.bf16.msra.mxu0 %v11796_v62  ;;  %v6508_v62 = vld [vmem:[#allocation9 + $0x2b8] sm:$0xff] }
 0x4d2   :  { %10034 = vmatpush1.bf16.msra.mxu1 %v11798_v11  ;;  %9871 = vmatprep.subr.bf16.mxu0 %v11805_v7  ;;  %v11844_v11 = vcombine.low %v6495_v13, %v6499_v52  ;;  %v11846_v7 = vcombine.low %v6496_v56, %v6500_v57  ;;  %v11855_v26 = vcombine.high %v6504_v6, %v6508_v62  ;;  %v6543_v52 = vld [vmem:[#allocation9 + $0x3d0] sm:$0xff]  ;;  %v6544_v57 = vld [vmem:[#allocation9 + $0x3d8] sm:$0xff] }
 0x4d3   :  { %10035 = vmatprep.subr.bf16.mxu1 %v11807_v37  ;;  %v11853_v37 = vcombine.high %v6503_v42, %v6507_v45  ;;  %v6547_v56 = vld [vmem:[#allocation9 + $0x3f0] sm:$0xff] }
 0x4d5   :  { %9872 = vmatpush1.bf16.msra.mxu0 %v11804_v40  ;;  %v6516_v40 = vld [vmem:[#allocation9 + $0x2f8] sm:$0xff] }
 0x4d6   :  { %10036 = vmatpush1.bf16.msra.mxu1 %v11806_v28  ;;  %9873 = vmatprep.subr.bf16.mxu0 %v11813_v54  ;;  %v11852_v28 = vcombine.low %v6503_v42, %v6507_v45  ;;  %v11854_v54 = vcombine.low %v6504_v6, %v6508_v62  ;;  %v11863_v15 = vcombine.high %v6512_v25, %v6516_v40  ;;  %v6551_v45 = vld [vmem:[#allocation9 + $0x410] sm:$0xff]  ;;  %v6552_v62 = vld [vmem:[#allocation9 + $0x418] sm:$0xff] }
 0x4d7   :  { %10037 = vmatprep.subr.bf16.mxu1 %v11815_v35  ;;  %v11861_v35 = vcombine.high %v6511_v4, %v6515_v31  ;;  %v6555_v6 = vld [vmem:[#allocation9 + $0x430] sm:$0xff] }
 0x4d9   :  { %9874 = vmatpush1.bf16.msra.mxu0 %v11812_v59  ;;  %v6524_v59 = vld [vmem:[#allocation9 + $0x338] sm:$0xff] }
 0x4da   :  { %10038 = vmatpush1.bf16.msra.mxu1 %v11814_v18  ;;  %9875 = vmatprep.subr.bf16.mxu0 %v11821_v23  ;;  %v11860_v18 = vcombine.low %v6511_v4, %v6515_v31  ;;  %v11862_v23 = vcombine.low %v6512_v25, %v6516_v40  ;;  %v11871_v19 = vcombine.high %v6520_v44, %v6524_v59  ;;  %v6559_v31 = vld [vmem:[#allocation9 + $0x450] sm:$0xff] }
 0x4db   :  { %10039 = vmatprep.subr.bf16.mxu1 %v11823_v27  ;;  %v11869_v27 = vcombine.high %v6519_v38, %v6523_v17  ;;  %v6563_v25 = vld [vmem:[#allocation9 + $0x470] sm:$0xff]  ;;  %v11900_v40 = vcombine.low %v6551_v45, %v6555_v6 }
 0x4dd   :  { %9876 = vmatpush1.bf16.msra.mxu0 %v11820_v43  ;;  %v6532_v43 = vld [vmem:[#allocation9 + $0x378] sm:$0xff] }
 0x4de   :  { %10040 = vmatpush1.bf16.msra.mxu1 %v11822_v61  ;;  %9877 = vmatprep.subr.bf16.mxu0 %v11829_v47  ;;  %v11868_v61 = vcombine.low %v6519_v38, %v6523_v17  ;;  %v11870_v47 = vcombine.low %v6520_v44, %v6524_v59  ;;  %v11879_v63 = vcombine.high %v6528_v9, %v6532_v43  ;;  %v6567_v38 = vld [vmem:[#allocation9 + $0x490] sm:$0xff]  ;;  %v6568_v59 = vld [vmem:[#allocation9 + $0x498] sm:$0xff] }
 0x4df   :  { %10041 = vmatprep.subr.bf16.mxu1 %v11831_v29  ;;  %v11877_v29 = vcombine.high %v6527_v53, %v6531_v46  ;;  %v6571_v17 = vld [vmem:[#allocation9 + $0x4b0] sm:$0xff] }
 0x4e1   :  { %9878 = vmatpush1.bf16.msra.mxu0 %v11828_v8  ;;  %v6540_v8 = vld [vmem:[#allocation9 + $0x3b8] sm:$0xff] }
 0x4e2   :  { %10042 = vmatpush1.bf16.msra.mxu1 %v11830_v2  ;;  %9879 = vmatprep.subr.bf16.mxu0 %v11837_v10  ;;  %v11876_v2 = vcombine.low %v6527_v53, %v6531_v46  ;;  %v11878_v10 = vcombine.low %v6528_v9, %v6532_v43  ;;  %v11887_v13 = vcombine.high %v6536_v48, %v6540_v8  ;;  %v6575_v46 = vld [vmem:[#allocation9 + $0x4d0] sm:$0xff]  ;;  %v6576_v43 = vld [vmem:[#allocation9 + $0x4d8] sm:$0xff] }
 0x4e3   :  { %10043 = vmatprep.subr.bf16.mxu1 %v11839_v5  ;;  %v11885_v5 = vcombine.high %v6535_v20, %v6539_v14  ;;  %v6579_v9 = vld [vmem:[#allocation9 + $0x4f0] sm:$0xff] }
 0x4e5   :  { %9880 = vmatpush1.bf16.msra.mxu0 %v11836_v50  ;;  %v6548_v50 = vld [vmem:[#allocation9 + $0x3f8] sm:$0xff] }
 0x4e6   :  { %10044 = vmatpush1.bf16.msra.mxu1 %v11838_v58  ;;  %9881 = vmatprep.subr.bf16.mxu0 %v11845_v60  ;;  %v11884_v58 = vcombine.low %v6535_v20, %v6539_v14  ;;  %v11886_v60 = vcombine.low %v6536_v48, %v6540_v8  ;;  %v11895_v42 = vcombine.high %v6544_v57, %v6548_v50  ;;  %v6583_v20 = vld [vmem:[#allocation9 + $0x510] sm:$0xff]  ;;  %v6584_v48 = vld [vmem:[#allocation9 + $0x518] sm:$0xff] }
 0x4e7   :  { %10045 = vmatprep.subr.bf16.mxu1 %v11847_v1  ;;  %v11893_v1 = vcombine.high %v6543_v52, %v6547_v56  ;;  %v6587_v14 = vld [vmem:[#allocation9 + $0x530] sm:$0xff]  ;;  %v6588_v8 = vld [vmem:[#allocation9 + $0x538] sm:$0xff] }
 0x4e9   :  { %9882 = vmatpush1.bf16.msra.mxu0 %v11844_v11  ;;  %v6556_v11 = vld [vmem:[#allocation9 + $0x438] sm:$0xff] }
 0x4ea   :  { %10046 = vmatpush1.bf16.msra.mxu1 %v11846_v7  ;;  %9883 = vmatprep.subr.bf16.mxu0 %v11853_v37  ;;  %v11892_v7 = vcombine.low %v6543_v52, %v6547_v56  ;;  %v11894_v37 = vcombine.low %v6544_v57, %v6548_v50  ;;  %v11903_v4 = vcombine.high %v6552_v62, %v6556_v11  ;;  %v6595_v52 = vld [vmem:[#allocation9 + $0x570] sm:$0xff]  ;;  %v6592_v56 = vld [vmem:[#allocation9 + $0x558] sm:$0xff] }
 0x4eb   :  { %10047 = vmatprep.subr.bf16.mxu1 %v11855_v26  ;;  %v11901_v26 = vcombine.high %v6551_v45, %v6555_v6  ;;  %v6596_v57 = vld [vmem:[#allocation9 + $0x578] sm:$0xff]  ;;  %v11932_v50 = vcombine.low %v6583_v20, %v6587_v14  ;;  %v6603_v45 = vld [vmem:[#allocation9 + $0x5b0] sm:$0xff] }
 0x4ec   :  { %v6600_v6 = vld [vmem:[#allocation9 + $0x598] sm:$0xff] }
 0x4ed   :  { %9884 = vmatpush1.bf16.msra.mxu0 %v11852_v28  ;;  %v6560_v28 = vld [vmem:[#allocation9 + $0x458] sm:$0xff] }
 0x4ee   :  { %10048 = vmatpush1.bf16.msra.mxu1 %v11854_v54  ;;  %9885 = vmatprep.subr.bf16.mxu0 %v11861_v35  ;;  %v6564_v54 = vld [vmem:[#allocation9 + $0x478] sm:$0xff]  ;;  %v11902_v35 = vcombine.low %v6552_v62, %v6556_v11 }
 0x4ef   :  { %10049 = vmatprep.subr.bf16.mxu1 %v11863_v15  ;;  %v11909_v15 = vcombine.high %v6559_v31, %v6563_v25  ;;  %v11911_v44 = vcombine.high %v6560_v28, %v6564_v54  ;;  %v6604_v62 = vld [vmem:[#allocation9 + $0x5b8] sm:$0xff] }
 0x4f1   :  { %9886 = vmatpush1.bf16.msra.mxu0 %v11860_v18  ;;  %v6572_v18 = vld [vmem:[#allocation9 + $0x4b8] sm:$0xff] }
 0x4f2   :  { %10050 = vmatpush1.bf16.msra.mxu1 %v11862_v23  ;;  %9887 = vmatprep.subr.bf16.mxu0 %v11869_v27  ;;  %v11908_v23 = vcombine.low %v6559_v31, %v6563_v25  ;;  %v11910_v27 = vcombine.low %v6560_v28, %v6564_v54  ;;  %v11919_v53 = vcombine.high %v6568_v59, %v6572_v18  ;;  %v6611_v31 = vld [vmem:[#allocation9 + $0x5f0] sm:$0xff]  ;;  %v6608_v25 = vld [vmem:[#allocation9 + $0x5d8] sm:$0xff] }
 0x4f3   :  { %10051 = vmatprep.subr.bf16.mxu1 %v11871_v19  ;;  %v11917_v19 = vcombine.high %v6567_v38, %v6571_v17  ;;  %v11950_v54 = vcombine.low %v6600_v6, %v6604_v62 }
 0x4f5   :  { %9888 = vmatpush1.bf16.msra.mxu0 %v11868_v61  ;;  %v6580_v61 = vld [vmem:[#allocation9 + $0x4f8] sm:$0xff] }
 0x4f6   :  { %10052 = vmatpush1.bf16.msra.mxu1 %v11870_v47  ;;  %9889 = vmatprep.subr.bf16.mxu0 %v11877_v29  ;;  %v11916_v47 = vcombine.low %v6567_v38, %v6571_v17  ;;  %v11925_v29 = vcombine.high %v6575_v46, %v6579_v9  ;;  %v6615_v38 = vld [vmem:[#allocation9 + $0x610] sm:$0xff] }
 0x4f7   :  { %10053 = vmatprep.subr.bf16.mxu1 %v11879_v63  ;;  %v11927_v63 = vcombine.high %v6576_v43, %v6580_v61  ;;  %v6619_v17 = vld [vmem:[#allocation9 + $0x630] sm:$0xff] }
 0x4f9   :  { %9890 = vmatpush1.bf16.msra.mxu0 %v11876_v2  ;;  %v11926_v2 = vcombine.low %v6576_v43, %v6580_v61  ;;  %v6628_v43 = vld [vmem:[#allocation9 + $0x678] sm:$0xff]  ;;  %v11964_v61 = vcombine.low %v6615_v38, %v6619_v17 }
 0x4fa   :  { %10054 = vmatpush1.bf16.msra.mxu1 %v11878_v10  ;;  %9891 = vmatprep.subr.bf16.mxu0 %v11885_v5  ;;  %v11933_v10 = vcombine.high %v6583_v20, %v6587_v14  ;;  %v11935_v5 = vcombine.high %v6584_v48, %v6588_v8  ;;  %v6635_v20 = vld [vmem:[#allocation9 + $0x6b0] sm:$0xff]  ;;  %v6632_v14 = vld [vmem:[#allocation9 + $0x698] sm:$0xff] }
 0x4fb   :  { %10055 = vmatprep.subr.bf16.mxu1 %v11887_v13  ;;  %v6591_v13 = vld [vmem:[#allocation9 + $0x550] sm:$0xff] }
 0x4fc   :  { %v11940_v11 = vcombine.low %v6591_v13, %v6595_v52 }
 0x4fd   :  { %9892 = vmatpush1.bf16.msra.mxu0 %v11884_v58  ;;  %v11934_v58 = vcombine.low %v6584_v48, %v6588_v8  ;;  %v6636_v48 = vld [vmem:[#allocation9 + $0x6b8] sm:$0xff] }
 0x4fe   :  { %10056 = vmatpush1.bf16.msra.mxu1 %v11886_v60  ;;  %9893 = vmatprep.subr.bf16.mxu0 %v11893_v1  ;;  %v11941_v60 = vcombine.high %v6591_v13, %v6595_v52  ;;  %v11943_v1 = vcombine.high %v6592_v56, %v6596_v57  ;;  %v6643_v13 = vld [vmem:[#allocation9 + $0x6f0] sm:$0xff]  ;;  %v6640_v52 = vld [vmem:[#allocation9 + $0x6d8] sm:$0xff] }
 0x4ff   :  { %10057 = vmatprep.subr.bf16.mxu1 %v11895_v42  ;;  %v6599_v42 = vld [vmem:[#allocation9 + $0x590] sm:$0xff] }
 0x500   :  { %v11948_v28 = vcombine.low %v6599_v42, %v6603_v45 }
 0x501   :  { %9894 = vmatpush1.bf16.msra.mxu0 %v11892_v7  ;;  %v11942_v7 = vcombine.low %v6592_v56, %v6596_v57  ;;  %v6644_v56 = vld [vmem:[#allocation9 + $0x6f8] sm:$0xff] }
 0x502   :  { %10058 = vmatpush1.bf16.msra.mxu1 %v11894_v37  ;;  %9904 = vmatprep.subr.bf16.mxu0 %v11901_v26  ;;  %v11949_v37 = vcombine.high %v6599_v42, %v6603_v45  ;;  %v11951_v26 = vcombine.high %v6600_v6, %v6604_v62  ;;  %v6651_v42 = vld [vmem:[#allocation9 + $0x730] sm:$0xff]  ;;  %v6648_v45 = vld [vmem:[#allocation9 + $0x718] sm:$0xff] }
 0x503   :  { %10068 = vmatprep.subr.bf16.mxu1 %v11903_v4  ;;  %v6607_v4 = vld [vmem:[#allocation9 + $0x5d0] sm:$0xff]  ;;  %v6652_v6 = vld [vmem:[#allocation9 + $0x738] sm:$0xff] }
 0x504   :  { %9896 = vmatmul.mubr.bf16.vlgmr.msra.gmra.mrb[60].mxu0 %v13130_v41 }
 0x505   :  { %10060 = vmatmul.mubr.bf16.vlgmr.msra.gmra.mrb[60].mxu1 %v13130_v41  ;;  %9905 = vmatpush1.bf16.msra.mxu0 %v11900_v40  ;;  %v11918_v41 = vcombine.low %v6568_v59, %v6572_v18  ;;  %v6612_v40 = vld [vmem:[#allocation9 + $0x5f8] sm:$0xff]  ;;  %v11956_v18 = vcombine.low %v6607_v4, %v6611_v31 }
 0x506   :  { %9936 = vmatprep.mubr.bf16.mxu0 %v13132_v22  ;;  %10069 = vmatpush1.bf16.msra.mxu1 %v11902_v35  ;;  %v11957_v35 = vcombine.high %v6607_v4, %v6611_v31  ;;  %v6620_v59 = vld [vmem:[#allocation9 + $0x638] sm:$0xff]  ;;  %v6659_v4 = vld [vmem:[#allocation9 + $0x770] sm:$0xff] }
 0x507   :  { %10100 = vmatprep.mubr.bf16.mxu1 %v13132_v22  ;;  %9906 = vmatprep.subr.bf16.mxu0 %v11909_v15  ;;  %v11924_v22 = vcombine.low %v6575_v46, %v6579_v9  ;;  %v11959_v15 = vcombine.high %v6608_v25, %v6612_v40  ;;  %v6627_v46 = vld [vmem:[#allocation9 + $0x670] sm:$0xff]  ;;  %v6624_v9 = vld [vmem:[#allocation9 + $0x658] sm:$0xff] }
 0x508   :  { %10070 = vmatprep.subr.bf16.mxu1 %v11911_v44  ;;  %v6616_v44 = vld [vmem:[#allocation9 + $0x618] sm:$0xff] }
 0x509   :  { %9907 = vmatpush1.bf16.msra.mxu0 %v11908_v23  ;;  %v11958_v23 = vcombine.low %v6608_v25, %v6612_v40  ;;  %v6656_v31 = vld [vmem:[#allocation9 + $0x758] sm:$0xff] }
 0x50a   :  { %10071 = vmatpush1.bf16.msra.mxu1 %v11910_v27  ;;  %9908 = vmatprep.subr.bf16.mxu0 %v11917_v19  ;;  %v11965_v27 = vcombine.high %v6615_v38, %v6619_v17  ;;  %v11967_v19 = vcombine.high %v6616_v44, %v6620_v59  ;;  %v6660_v25 = vld [vmem:[#allocation9 + $0x778] sm:$0xff]  ;;  %v6667_v38 = vld [vmem:[#allocation9 + $0x7b0] sm:$0xff] }
 0x50b   :  { %10072 = vmatprep.subr.bf16.mxu1 %v11919_v53  ;;  %v6623_v53 = vld [vmem:[#allocation9 + $0x650] sm:$0xff]  ;;  %v6664_v17 = vld [vmem:[#allocation9 + $0x798] sm:$0xff] }
 0x50c   :  { %v11972_v8 = vcombine.low %v6623_v53, %v6627_v46 }
 0x50d   :  { %9909 = vmatpush1.bf16.msra.mxu0 %v11916_v47  ;;  %v11966_v47 = vcombine.low %v6616_v44, %v6620_v59  ;;  %v6668_v44 = vld [vmem:[#allocation9 + $0x7b8] sm:$0xff] }
 0x50e   :  { %10073 = vmatpush1.bf16.msra.mxu1 %v11918_v41  ;;  %9910 = vmatprep.subr.bf16.mxu0 %v11925_v29  ;;  %v11973_v41 = vcombine.high %v6623_v53, %v6627_v46  ;;  %v11975_v29 = vcombine.high %v6624_v9, %v6628_v43  ;;  %v6675_v53 = vld [vmem:[#allocation9 + $0x7f0] sm:$0xff]  ;;  %v6672_v46 = vld [vmem:[#allocation9 + $0x7d8] sm:$0xff] }
 0x50f   :  { %10074 = vmatprep.subr.bf16.mxu1 %v11927_v63  ;;  %v6631_v63 = vld [vmem:[#allocation9 + $0x690] sm:$0xff] }
 0x510   :  { %v11980_v57 = vcombine.low %v6631_v63, %v6635_v20 }
 0x511   :  { %9911 = vmatpush1.bf16.msra.mxu0 %v11924_v22  ;;  %v11974_v22 = vcombine.low %v6624_v9, %v6628_v43  ;;  %v6676_v9 = vld [vmem:[#allocation9 + $0x7f8] sm:$0xff] }
 0x512   :  { %10075 = vmatpush1.bf16.msra.mxu1 %v11926_v2  ;;  %9912 = vmatprep.subr.bf16.mxu0 %v11933_v10  ;;  %v11981_v2 = vcombine.high %v6631_v63, %v6635_v20  ;;  %v11983_v10 = vcombine.high %v6632_v14, %v6636_v48  ;;  %v6683_v63 = vld [vmem:[#allocation9 + $0x830] sm:$0xff]  ;;  %v6680_v20 = vld [vmem:[#allocation9 + $0x818] sm:$0xff] }
 0x513   :  { %10076 = vmatprep.subr.bf16.mxu1 %v11935_v5  ;;  %v6639_v5 = vld [vmem:[#allocation9 + $0x6d0] sm:$0xff] }
 0x514   :  { %v11988_v62 = vcombine.low %v6639_v5, %v6643_v13 }
 0x515   :  { %9913 = vmatpush1.bf16.msra.mxu0 %v11932_v50  ;;  %v11982_v50 = vcombine.low %v6632_v14, %v6636_v48  ;;  %v6684_v14 = vld [vmem:[#allocation9 + $0x838] sm:$0xff] }
 0x516   :  { %10077 = vmatpush1.bf16.msra.mxu1 %v11934_v58  ;;  %9914 = vmatprep.subr.bf16.mxu0 %v11941_v60  ;;  %v11989_v58 = vcombine.high %v6639_v5, %v6643_v13  ;;  %v11991_v60 = vcombine.high %v6640_v52, %v6644_v56  ;;  %v6691_v5 = vld [vmem:[#allocation9 + $0x870] sm:$0xff] }
 0x517   :  { %10078 = vmatprep.subr.bf16.mxu1 %v11943_v1  ;;  %v6647_v1 = vld [vmem:[#allocation9 + $0x710] sm:$0xff] }
 0x518   :  { %v11996_v40 = vcombine.low %v6647_v1, %v6651_v42 }
 0x519   :  { %9915 = vmatpush1.bf16.msra.mxu0 %v11940_v11  ;;  %v11990_v11 = vcombine.low %v6640_v52, %v6644_v56  ;;  %v6688_v52 = vld [vmem:[#allocation9 + $0x858] sm:$0xff] }
 0x51a   :  { %10079 = vmatpush1.bf16.msra.mxu1 %v11942_v7  ;;  %9916 = vmatprep.subr.bf16.mxu0 %v11949_v37  ;;  %v11997_v7 = vcombine.high %v6647_v1, %v6651_v42  ;;  %v11999_v37 = vcombine.high %v6648_v45, %v6652_v6  ;;  %v6692_v56 = vld [vmem:[#allocation9 + $0x878] sm:$0xff] }
 0x51b   :  { %10080 = vmatprep.subr.bf16.mxu1 %v11951_v26  ;;  %v6655_v26 = vld [vmem:[#allocation9 + $0x750] sm:$0xff]  ;;  %v12039_v1 = vcombine.high %v6688_v52, %v6692_v56  ;;  %v6696_v42 = vld [vmem:[#allocation9 + $0x898] sm:$0xff] }
 0x51c   :  { %v12004_v59 = vcombine.low %v6655_v26, %v6659_v4 }
 0x51d   :  { %9917 = vmatpush1.bf16.msra.mxu0 %v11948_v28  ;;  %v11998_v28 = vcombine.low %v6648_v45, %v6652_v6  ;;  %v6700_v45 = vld [vmem:[#allocation9 + $0x8b8] sm:$0xff] }
 0x51e   :  { %10081 = vmatpush1.bf16.msra.mxu1 %v11950_v54  ;;  %9918 = vmatprep.subr.bf16.mxu0 %v11957_v35  ;;  %v12005_v54 = vcombine.high %v6655_v26, %v6659_v4  ;;  %v12007_v35 = vcombine.high %v6656_v31, %v6660_v25  ;;  %v6707_v26 = vld [vmem:[#allocation9 + $0x8f0] sm:$0xff]  ;;  %v6704_v4 = vld [vmem:[#allocation9 + $0x8d8] sm:$0xff] }
 0x51f   :  { %10082 = vmatprep.subr.bf16.mxu1 %v11959_v15  ;;  %v6663_v15 = vld [vmem:[#allocation9 + $0x790] sm:$0xff] }
 0x520   :  { %v12012_v43 = vcombine.low %v6663_v15, %v6667_v38 }
 0x521   :  { %9919 = vmatpush1.bf16.msra.mxu0 %v11956_v18  ;;  %v12006_v18 = vcombine.low %v6656_v31, %v6660_v25  ;;  %v6708_v31 = vld [vmem:[#allocation9 + $0x8f8] sm:$0xff] }
 0x522   :  { %10083 = vmatpush1.bf16.msra.mxu1 %v11958_v23  ;;  %9920 = vmatprep.subr.bf16.mxu0 %v11965_v27  ;;  %v12013_v23 = vcombine.high %v6663_v15, %v6667_v38  ;;  %v12015_v27 = vcombine.high %v6664_v17, %v6668_v44  ;;  %v6712_v15 = vld [vmem:[#allocation9 + $0x918] sm:$0xff] }
 0x523   :  { %10084 = vmatprep.subr.bf16.mxu1 %v11967_v19  ;;  %v6671_v19 = vld [vmem:[#allocation9 + $0x7d0] sm:$0xff]  ;;  %v6716_v38 = vld [vmem:[#allocation9 + $0x938] sm:$0xff] }
 0x524   :  { %v12020_v48 = vcombine.low %v6671_v19, %v6675_v53 }
 0x525   :  { %9921 = vmatpush1.bf16.msra.mxu0 %v11964_v61  ;;  %v12014_v61 = vcombine.low %v6664_v17, %v6668_v44  ;;  %v12054_v17 = vcombine.low %v6704_v4, %v6708_v31 }
 0x526   :  { %10085 = vmatpush1.bf16.msra.mxu1 %v11966_v47  ;;  %9922 = vmatprep.subr.bf16.mxu0 %v11973_v41  ;;  %v12021_v47 = vcombine.high %v6671_v19, %v6675_v53  ;;  %v12023_v41 = vcombine.high %v6672_v46, %v6676_v9  ;;  %v6724_v19 = vld [vmem:[#allocation9 + $0x978] sm:$0xff] }
 0x527   :  { %10086 = vmatprep.subr.bf16.mxu1 %v11975_v29  ;;  %v6679_v29 = vld [vmem:[#allocation9 + $0x810] sm:$0xff] }
 0x528   :  { %v12028_v13 = vcombine.low %v6679_v29, %v6683_v63 }
 0x529   :  { %9923 = vmatpush1.bf16.msra.mxu0 %v11972_v8  ;;  %v12022_v8 = vcombine.low %v6672_v46, %v6676_v9  ;;  %v12062_v46 = vcombine.low %v6712_v15, %v6716_v38 }
 0x52a   :  { %10087 = vmatpush1.bf16.msra.mxu1 %v11974_v22  ;;  %9924 = vmatprep.subr.bf16.mxu0 %v11981_v2  ;;  %v12029_v22 = vcombine.high %v6679_v29, %v6683_v63  ;;  %v12031_v2 = vcombine.high %v6680_v20, %v6684_v14  ;;  %v6732_v29 = vld [vmem:[#allocation9 + $0x9b8] sm:$0xff] }
 0x52b   :  { %10088 = vmatprep.subr.bf16.mxu1 %v11983_v10  ;;  %v6687_v10 = vld [vmem:[#allocation9 + $0x850] sm:$0xff] }
 0x52c   :  { %v12036_v6 = vcombine.low %v6687_v10, %v6691_v5 }
 0x52d   :  { %9925 = vmatpush1.bf16.msra.mxu0 %v11980_v57  ;;  %v12030_v57 = vcombine.low %v6680_v20, %v6684_v14 }
 0x52e   :  { %10089 = vmatpush1.bf16.msra.mxu1 %v11982_v50  ;;  %9926 = vmatprep.subr.bf16.mxu0 %v11989_v58  ;;  %v12037_v50 = vcombine.high %v6687_v10, %v6691_v5  ;;  %v6695_v58 = vld [vmem:[#allocation9 + $0x890] sm:$0xff]  ;;  %v6740_v10 = vld [vmem:[#allocation9 + $0x9f8] sm:$0xff] }
 0x52f   :  { %10090 = vmatprep.subr.bf16.mxu1 %v11991_v60  ;;  %v6699_v60 = vld [vmem:[#allocation9 + $0x8b0] sm:$0xff] }
 0x530   :  { %v12044_v25 = vcombine.low %v6695_v58, %v6699_v60 }
 0x531   :  { %9927 = vmatpush1.bf16.msra.mxu0 %v11988_v62  ;;  %v12038_v62 = vcombine.low %v6688_v52, %v6692_v56 }
 0x532   :  { %10091 = vmatpush1.bf16.msra.mxu1 %v11990_v11  ;;  %9928 = vmatprep.subr.bf16.mxu0 %v11997_v7  ;;  %v12045_v11 = vcombine.high %v6695_v58, %v6699_v60  ;;  %v12047_v7 = vcombine.high %v6696_v42, %v6700_v45  ;;  %v6744_v58 = vld [vmem:[#allocation9 + $0xa18] sm:$0xff] }
 0x533   :  { %10092 = vmatprep.subr.bf16.mxu1 %v11999_v37  ;;  %v6703_v37 = vld [vmem:[#allocation9 + $0x8d0] sm:$0xff]  ;;  %v6748_v60 = vld [vmem:[#allocation9 + $0xa38] sm:$0xff] }
 0x535   :  { %9929 = vmatpush1.bf16.msra.mxu0 %v11996_v40  ;;  %v12053_v40 = vcombine.high %v6703_v37, %v6707_v26 }
 0x536   :  { %10093 = vmatpush1.bf16.msra.mxu1 %v11998_v28  ;;  %9930 = vmatprep.subr.bf16.mxu0 %v12005_v54  ;;  %v12055_v28 = vcombine.high %v6704_v4, %v6708_v31  ;;  %v6711_v54 = vld [vmem:[#allocation9 + $0x910] sm:$0xff]  ;;  %v12094_v4 = vcombine.low %v6744_v58, %v6748_v60 }
 0x537   :  { %10094 = vmatprep.subr.bf16.mxu1 %v12007_v35  ;;  %v6715_v35 = vld [vmem:[#allocation9 + $0x930] sm:$0xff] }
 0x538   :  { %v12061_v44 = vcombine.high %v6711_v54, %v6715_v35  ;;  %v12060_v53 = vcombine.low %v6711_v54, %v6715_v35  ;;  %v6764_v54 = vld [vmem:[#allocation9 + $0xab8] sm:$0xff] }
 0x539   :  { %9931 = vmatpush1.bf16.msra.mxu0 %v12004_v59  ;;  %v12063_v59 = vcombine.high %v6712_v15, %v6716_v38 }
 0x53a   :  { %10095 = vmatpush1.bf16.msra.mxu1 %v12006_v18  ;;  %9932 = vmatprep.subr.bf16.mxu0 %v12013_v23  ;;  %v6719_v18 = vld [vmem:[#allocation9 + $0x950] sm:$0xff] }
 0x53b   :  { %10096 = vmatprep.subr.bf16.mxu1 %v12015_v27  ;;  %v6723_v23 = vld [vmem:[#allocation9 + $0x970] sm:$0xff]  ;;  %v6720_v27 = vld [vmem:[#allocation9 + $0x958] sm:$0xff] }
 0x53c   :  { %v12069_v9 = vcombine.high %v6719_v18, %v6723_v23  ;;  %v12068_v63 = vcombine.low %v6719_v18, %v6723_v23  ;;  %v12070_v20 = vcombine.low %v6720_v27, %v6724_v19  ;;  %v6772_v18 = vld [vmem:[#allocation9 + $0xaf8] sm:$0xff] }
 0x53d   :  { %9933 = vmatpush1.bf16.msra.mxu0 %v12012_v43  ;;  %v12071_v43 = vcombine.high %v6720_v27, %v6724_v19 }
 0x53e   :  { %10097 = vmatpush1.bf16.msra.mxu1 %v12014_v61  ;;  %9934 = vmatprep.subr.bf16.mxu0 %v12021_v47  ;;  %v6727_v61 = vld [vmem:[#allocation9 + $0x990] sm:$0xff] }
 0x53f   :  { %10098 = vmatprep.subr.bf16.mxu1 %v12023_v41  ;;  %v6731_v47 = vld [vmem:[#allocation9 + $0x9b0] sm:$0xff]  ;;  %v6728_v41 = vld [vmem:[#allocation9 + $0x998] sm:$0xff] }
 0x540   :  { %v12077_v14 = vcombine.high %v6727_v61, %v6731_v47  ;;  %v12076_v5 = vcombine.low %v6727_v61, %v6731_v47  ;;  %v6780_v61 = vld [vmem:[#allocation9 + $0xb38] sm:$0xff] }
 0x541   :  { %9935 = vmatpush1.bf16.msra.mxu0 %v12020_v48  ;;  %v12079_v48 = vcombine.high %v6728_v41, %v6732_v29 }
 0x542   :  { %10099 = vmatpush1.bf16.msra.mxu1 %v12022_v8  ;;  %9945 = vmatprep.subr.bf16.mxu0 %v12029_v22  ;;  %v6735_v8 = vld [vmem:[#allocation9 + $0x9d0] sm:$0xff] }
 0x543   :  { %10109 = vmatprep.subr.bf16.mxu1 %v12031_v2  ;;  %v6739_v22 = vld [vmem:[#allocation9 + $0x9f0] sm:$0xff]  ;;  %v6736_v2 = vld [vmem:[#allocation9 + $0x9d8] sm:$0xff] }
 0x544   :  { %9937 = vmatmul.mubr.bf16.vlgmr.msra.gmra.mrb[60].mxu0 %v13160_v32  ;;  %v12085_v52 = vcombine.high %v6735_v8, %v6739_v22  ;;  %v12087_v56 = vcombine.high %v6736_v2, %v6740_v10 }
 0x545   :  { %10101 = vmatmul.mubr.bf16.vlgmr.msra.gmra.mrb[60].mxu1 %v13160_v32  ;;  %9946 = vmatpush1.bf16.msra.mxu0 %v12028_v13  ;;  %v12046_v32 = vcombine.low %v6696_v42, %v6700_v45  ;;  %v12078_v13 = vcombine.low %v6728_v41, %v6732_v29  ;;  %v12086_v42 = vcombine.low %v6736_v2, %v6740_v10 }
 0x546   :  { %9977 = vmatprep.mubr.bf16.mxu0 %v13162_v16  ;;  %10110 = vmatpush1.bf16.msra.mxu1 %v12030_v57  ;;  %v6743_v57 = vld [vmem:[#allocation9 + $0xa10] sm:$0xff] }
 0x547   :  { %10141 = vmatprep.mubr.bf16.mxu1 %v13162_v16  ;;  %9947 = vmatprep.subr.bf16.mxu0 %v12037_v50  ;;  %v12052_v16 = vcombine.low %v6703_v37, %v6707_v26  ;;  %v6747_v50 = vld [vmem:[#allocation9 + $0xa30] sm:$0xff]  ;;  %v6756_v37 = vld [vmem:[#allocation9 + $0xa78] sm:$0xff] }
 0x548   :  { %10111 = vmatprep.subr.bf16.mxu1 %v12039_v1  ;;  %v12084_v1 = vcombine.low %v6735_v8, %v6739_v22  ;;  %v12093_v45 = vcombine.high %v6743_v57, %v6747_v50  ;;  %v12092_v26 = vcombine.low %v6743_v57, %v6747_v50  ;;  %v6788_v8 = vld [vmem:[#allocation9 + $0xb78] sm:$0xff] }
 0x549   :  { %9948 = vmatpush1.bf16.msra.mxu0 %v12036_v6  ;;  %v12095_v6 = vcombine.high %v6744_v58, %v6748_v60  ;;  %v6796_v57 = vld [vmem:[#allocation9 + $0xbb8] sm:$0xff] }
 0x54a   :  { %10112 = vmatpush1.bf16.msra.mxu1 %v12038_v62  ;;  %9949 = vmatprep.subr.bf16.mxu0 %v12045_v11  ;;  %v6751_v62 = vld [vmem:[#allocation9 + $0xa50] sm:$0xff] }
 0x54b   :  { %10113 = vmatprep.subr.bf16.mxu1 %v12047_v7  ;;  %v6755_v11 = vld [vmem:[#allocation9 + $0xa70] sm:$0xff]  ;;  %v6752_v7 = vld [vmem:[#allocation9 + $0xa58] sm:$0xff] }
 0x54c   :  { %v12101_v31 = vcombine.high %v6751_v62, %v6755_v11  ;;  %v12100_v35 = vcombine.low %v6751_v62, %v6755_v11  ;;  %v12102_v15 = vcombine.low %v6752_v7, %v6756_v37  ;;  %v6804_v62 = vld [vmem:[#allocation9 + $0xbf8] sm:$0xff] }
 0x54d   :  { %9950 = vmatpush1.bf16.msra.mxu0 %v12044_v25  ;;  %v12103_v25 = vcombine.high %v6752_v7, %v6756_v37 }
 0x54e   :  { %10114 = vmatpush1.bf16.msra.mxu1 %v12046_v32  ;;  %9951 = vmatprep.subr.bf16.mxu0 %v12053_v40  ;;  %v6759_v32 = vld [vmem:[#allocation9 + $0xa90] sm:$0xff] }
 0x54f   :  { %10115 = vmatprep.subr.bf16.mxu1 %v12055_v28  ;;  %v6763_v40 = vld [vmem:[#allocation9 + $0xab0] sm:$0xff]  ;;  %v6760_v28 = vld [vmem:[#allocation9 + $0xa98] sm:$0xff] }
 0x550   :  { %v12109_v38 = vcombine.high %v6759_v32, %v6763_v40  ;;  %v12108_v23 = vcombine.low %v6759_v32, %v6763_v40  ;;  %v12110_v27 = vcombine.low %v6760_v28, %v6764_v54  ;;  %v6812_v32 = vld [vmem:[#allocation9 + $0xc38] sm:$0xff] }
 0x551   :  { %9952 = vmatpush1.bf16.msra.mxu0 %v12052_v16  ;;  %v12111_v16 = vcombine.high %v6760_v28, %v6764_v54 }
 0x552   :  { %10116 = vmatpush1.bf16.msra.mxu1 %v12054_v17  ;;  %9953 = vmatprep.subr.bf16.mxu0 %v12061_v44  ;;  %v6767_v17 = vld [vmem:[#allocation9 + $0xad0] sm:$0xff] }
 0x553   :  { %10117 = vmatprep.subr.bf16.mxu1 %v12063_v59  ;;  %v6771_v44 = vld [vmem:[#allocation9 + $0xaf0] sm:$0xff]  ;;  %v6768_v59 = vld [vmem:[#allocation9 + $0xad8] sm:$0xff] }
 0x554   :  { %v12117_v19 = vcombine.high %v6767_v17, %v6771_v44  ;;  %v12116_v47 = vcombine.low %v6767_v17, %v6771_v44  ;;  %v12118_v41 = vcombine.low %v6768_v59, %v6772_v18  ;;  %v6816_v17 = vld [vmem:[#allocation9 + $0xc58] sm:$0xff] }
 0x555   :  { %9954 = vmatpush1.bf16.msra.mxu0 %v12060_v53  ;;  %v12119_v53 = vcombine.high %v6768_v59, %v6772_v18  ;;  %v6820_v44 = vld [vmem:[#allocation9 + $0xc78] sm:$0xff] }
 0x556   :  { %10118 = vmatpush1.bf16.msra.mxu1 %v12062_v46  ;;  %9955 = vmatprep.subr.bf16.mxu0 %v12069_v9  ;;  %v6775_v46 = vld [vmem:[#allocation9 + $0xb10] sm:$0xff] }
 0x557   :  { %10119 = vmatprep.subr.bf16.mxu1 %v12071_v43  ;;  %v6779_v9 = vld [vmem:[#allocation9 + $0xb30] sm:$0xff]  ;;  %v6776_v43 = vld [vmem:[#allocation9 + $0xb18] sm:$0xff] }
 0x558   :  { %v12125_v29 = vcombine.high %v6775_v46, %v6779_v9  ;;  %v12124_v22 = vcombine.low %v6775_v46, %v6779_v9  ;;  %v12126_v2 = vcombine.low %v6776_v43, %v6780_v61  ;;  %v6828_v46 = vld [vmem:[#allocation9 + $0xcb8] sm:$0xff] }
 0x559   :  { %9956 = vmatpush1.bf16.msra.mxu0 %v12068_v63  ;;  %v12127_v63 = vcombine.high %v6776_v43, %v6780_v61  ;;  %v12166_v43 = vcombine.low %v6816_v17, %v6820_v44 }
 0x55a   :  { %10120 = vmatpush1.bf16.msra.mxu1 %v12070_v20  ;;  %9957 = vmatprep.subr.bf16.mxu0 %v12077_v14  ;;  %v6783_v20 = vld [vmem:[#allocation9 + $0xb50] sm:$0xff] }
 0x55b   :  { %10121 = vmatprep.subr.bf16.mxu1 %v12079_v48  ;;  %v6787_v14 = vld [vmem:[#allocation9 + $0xb70] sm:$0xff]  ;;  %v6784_v48 = vld [vmem:[#allocation9 + $0xb58] sm:$0xff] }
 0x55c   :  { %v12133_v10 = vcombine.high %v6783_v20, %v6787_v14  ;;  %v12132_v50 = vcombine.low %v6783_v20, %v6787_v14  ;;  %v12134_v58 = vcombine.low %v6784_v48, %v6788_v8  ;;  %v6836_v20 = vld [vmem:[#allocation9 + $0xcf8] sm:$0xff] }
 0x55d   :  { %9958 = vmatpush1.bf16.msra.mxu0 %v12076_v5  ;;  %v12135_v5 = vcombine.high %v6784_v48, %v6788_v8 }
 0x55e   :  { %10122 = vmatpush1.bf16.msra.mxu1 %v12078_v13  ;;  %9959 = vmatprep.subr.bf16.mxu0 %v12085_v52  ;;  %v6791_v13 = vld [vmem:[#allocation9 + $0xb90] sm:$0xff] }
 0x55f   :  { %10123 = vmatprep.subr.bf16.mxu1 %v12087_v56  ;;  %v6795_v52 = vld [vmem:[#allocation9 + $0xbb0] sm:$0xff]  ;;  %v6792_v56 = vld [vmem:[#allocation9 + $0xb98] sm:$0xff] }
 0x560   :  { %v12141_v60 = vcombine.high %v6791_v13, %v6795_v52  ;;  %v12140_v11 = vcombine.low %v6791_v13, %v6795_v52  ;;  %v12142_v7 = vcombine.low %v6792_v56, %v6796_v57 }
 0x561   :  { %9960 = vmatpush1.bf16.msra.mxu0 %v12084_v1  ;;  %v12143_v1 = vcombine.high %v6792_v56, %v6796_v57  ;;  %v6847_v57 = vld [vmem:[#allocation9 + $0xd50] sm:$0xff] }
 0x562   :  { %10124 = vmatpush1.bf16.msra.mxu1 %v12086_v42  ;;  %9961 = vmatprep.subr.bf16.mxu0 %v12093_v45  ;;  %v6799_v42 = vld [vmem:[#allocation9 + $0xbd0] sm:$0xff] }
 0x563   :  { %10125 = vmatprep.subr.bf16.mxu1 %v12095_v6  ;;  %v6803_v45 = vld [vmem:[#allocation9 + $0xbf0] sm:$0xff]  ;;  %v6800_v6 = vld [vmem:[#allocation9 + $0xbd8] sm:$0xff] }
 0x564   :  { %v12149_v37 = vcombine.high %v6799_v42, %v6803_v45  ;;  %v12148_v40 = vcombine.low %v6799_v42, %v6803_v45  ;;  %v12150_v28 = vcombine.low %v6800_v6, %v6804_v62 }
 0x565   :  { %9962 = vmatpush1.bf16.msra.mxu0 %v12092_v26  ;;  %v12151_v26 = vcombine.high %v6800_v6, %v6804_v62  ;;  %v6855_v62 = vld [vmem:[#allocation9 + $0xd90] sm:$0xff] }
 0x566   :  { %10126 = vmatpush1.bf16.msra.mxu1 %v12094_v4  ;;  %9963 = vmatprep.subr.bf16.mxu0 %v12101_v31  ;;  %v6807_v4 = vld [vmem:[#allocation9 + $0xc10] sm:$0xff] }
 0x567   :  { %10127 = vmatprep.subr.bf16.mxu1 %v12103_v25  ;;  %v6811_v31 = vld [vmem:[#allocation9 + $0xc30] sm:$0xff]  ;;  %v6808_v25 = vld [vmem:[#allocation9 + $0xc18] sm:$0xff] }
 0x568   :  { %v12157_v54 = vcombine.high %v6807_v4, %v6811_v31  ;;  %v12158_v59 = vcombine.low %v6808_v25, %v6812_v32 }
 0x569   :  { %9964 = vmatpush1.bf16.msra.mxu0 %v12100_v35  ;;  %v12159_v35 = vcombine.high %v6808_v25, %v6812_v32 }
 0x56a   :  { %10128 = vmatpush1.bf16.msra.mxu1 %v12102_v15  ;;  %9965 = vmatprep.subr.bf16.mxu0 %v12109_v38  ;;  %v6815_v15 = vld [vmem:[#allocation9 + $0xc50] sm:$0xff] }
 0x56b   :  { %10129 = vmatprep.subr.bf16.mxu1 %v12111_v16  ;;  %v6819_v38 = vld [vmem:[#allocation9 + $0xc70] sm:$0xff]  ;;  %v12156_v16 = vcombine.low %v6807_v4, %v6811_v31 }
 0x56c   :  { %v12165_v18 = vcombine.high %v6815_v15, %v6819_v38  ;;  %v12164_v9 = vcombine.low %v6815_v15, %v6819_v38  ;;  %v6864_v15 = vld [vmem:[#allocation9 + $0xdd8] sm:$0xff] }
 0x56d   :  { %9966 = vmatpush1.bf16.msra.mxu0 %v12108_v23  ;;  %v6823_v23 = vld [vmem:[#allocation9 + $0xc90] sm:$0xff]  ;;  %v6868_v38 = vld [vmem:[#allocation9 + $0xdf8] sm:$0xff] }
 0x56e   :  { %10130 = vmatpush1.bf16.msra.mxu1 %v12110_v27  ;;  %9967 = vmatprep.subr.bf16.mxu0 %v12117_v19  ;;  %v6827_v27 = vld [vmem:[#allocation9 + $0xcb0] sm:$0xff]  ;;  %v12167_v19 = vcombine.high %v6816_v17, %v6820_v44 }
 0x56f   :  { %10131 = vmatprep.subr.bf16.mxu1 %v12119_v53  ;;  %v6824_v53 = vld [vmem:[#allocation9 + $0xc98] sm:$0xff]  ;;  %v12173_v61 = vcombine.high %v6823_v23, %v6827_v27  ;;  %v12172_v14 = vcombine.low %v6823_v23, %v6827_v27 }
 0x571   :  { %9968 = vmatpush1.bf16.msra.mxu0 %v12116_v47  ;;  %v12175_v47 = vcombine.high %v6824_v53, %v6828_v46 }
 0x572   :  { %10132 = vmatpush1.bf16.msra.mxu1 %v12118_v41  ;;  %9969 = vmatprep.subr.bf16.mxu0 %v12125_v29  ;;  %v6831_v41 = vld [vmem:[#allocation9 + $0xcd0] sm:$0xff] }
 0x573   :  { %10133 = vmatprep.subr.bf16.mxu1 %v12127_v63  ;;  %v6835_v29 = vld [vmem:[#allocation9 + $0xcf0] sm:$0xff]  ;;  %v6832_v63 = vld [vmem:[#allocation9 + $0xcd8] sm:$0xff] }
 0x574   :  { %v12181_v48 = vcombine.high %v6831_v41, %v6835_v29  ;;  %v12183_v8 = vcombine.high %v6832_v63, %v6836_v20  ;;  %v12182_v13 = vcombine.low %v6832_v63, %v6836_v20  ;;  %v6879_v20 = vld [vmem:[#allocation9 + $0xe50] sm:$0xff] }
 0x575   :  { %9970 = vmatpush1.bf16.msra.mxu0 %v12124_v22  ;;  %v6839_v22 = vld [vmem:[#allocation9 + $0xd10] sm:$0xff] }
 0x576   :  { %10134 = vmatpush1.bf16.msra.mxu1 %v12126_v2  ;;  %9971 = vmatprep.subr.bf16.mxu0 %v12133_v10  ;;  %v6843_v2 = vld [vmem:[#allocation9 + $0xd30] sm:$0xff]  ;;  %v6840_v10 = vld [vmem:[#allocation9 + $0xd18] sm:$0xff] }
 0x577   :  { %10135 = vmatprep.subr.bf16.mxu1 %v12135_v5  ;;  %v6844_v5 = vld [vmem:[#allocation9 + $0xd38] sm:$0xff]  ;;  %v12189_v52 = vcombine.high %v6839_v22, %v6843_v2 }
 0x578   :  { %v12191_v56 = vcombine.high %v6840_v10, %v6844_v5  ;;  %v12190_v42 = vcombine.low %v6840_v10, %v6844_v5  ;;  %v6887_v5 = vld [vmem:[#allocation9 + $0xe90] sm:$0xff] }
 0x579   :  { %9972 = vmatpush1.bf16.msra.mxu0 %v12132_v50  ;;  %v6851_v50 = vld [vmem:[#allocation9 + $0xd70] sm:$0xff] }
 0x57a   :  { %10136 = vmatpush1.bf16.msra.mxu1 %v12134_v58  ;;  %9973 = vmatprep.subr.bf16.mxu0 %v12141_v60  ;;  %v6848_v58 = vld [vmem:[#allocation9 + $0xd58] sm:$0xff]  ;;  %v12197_v45 = vcombine.high %v6847_v57, %v6851_v50 }
 0x57b   :  { %10137 = vmatprep.subr.bf16.mxu1 %v12143_v1  ;;  %v6852_v60 = vld [vmem:[#allocation9 + $0xd78] sm:$0xff]  ;;  %v12188_v1 = vcombine.low %v6839_v22, %v6843_v2 }
 0x57c   :  { %v12199_v6 = vcombine.high %v6848_v58, %v6852_v60  ;;  %v12198_v4 = vcombine.low %v6848_v58, %v6852_v60  ;;  %v6895_v60 = vld [vmem:[#allocation9 + $0xed0] sm:$0xff] }
 0x57d   :  { %9974 = vmatpush1.bf16.msra.mxu0 %v12140_v11  ;;  %v6859_v11 = vld [vmem:[#allocation9 + $0xdb0] sm:$0xff] }
 0x57e   :  { %10138 = vmatpush1.bf16.msra.mxu1 %v12142_v7  ;;  %9975 = vmatprep.subr.bf16.mxu0 %v12149_v37  ;;  %v6856_v7 = vld [vmem:[#allocation9 + $0xd98] sm:$0xff]  ;;  %v12205_v31 = vcombine.high %v6855_v62, %v6859_v11  ;;  %v12204_v44 = vcombine.low %v6855_v62, %v6859_v11 }
 0x57f   :  { %10139 = vmatprep.subr.bf16.mxu1 %v12151_v26  ;;  %v6860_v37 = vld [vmem:[#allocation9 + $0xdb8] sm:$0xff]  ;;  %v12196_v26 = vcombine.low %v6847_v57, %v6851_v50 }
 0x580   :  { %v12207_v32 = vcombine.high %v6856_v7, %v6860_v37  ;;  %v12206_v23 = vcombine.low %v6856_v7, %v6860_v37  ;;  %v6903_v37 = vld [vmem:[#allocation9 + $0xf10] sm:$0xff] }
 0x581   :  { %9976 = vmatpush1.bf16.msra.mxu0 %v12148_v40  ;;  %v6863_v40 = vld [vmem:[#allocation9 + $0xdd0] sm:$0xff] }
 0x582   :  { %10140 = vmatpush1.bf16.msra.mxu1 %v12150_v28  ;;  %9986 = vmatprep.subr.bf16.mxu0 %v12157_v54  ;;  %v6867_v28 = vld [vmem:[#allocation9 + $0xdf0] sm:$0xff] }
 0x583   :  { %10150 = vmatprep.subr.bf16.mxu1 %v12159_v35  ;;  %v12213_v27 = vcombine.high %v6863_v40, %v6867_v28 }
 0x584   :  { %9978 = vmatmul.mubr.bf16.vlgmr.msra.gmra.mrb[60].mxu0 %v13187_v36 }
 0x585   :  { %10142 = vmatmul.mubr.bf16.vlgmr.msra.gmra.mrb[60].mxu1 %v13187_v36  ;;  %9987 = vmatpush1.bf16.msra.mxu0 %v12156_v16  ;;  %v12174_v36 = vcombine.low %v6824_v53, %v6828_v46  ;;  %v12215_v53 = vcombine.high %v6864_v15, %v6868_v38  ;;  %v6871_v46 = vld [vmem:[#allocation9 + $0xe10] sm:$0xff] }
 0x586   :  { %10018 = vmatprep.mubr.bf16.mxu0 %v13199_v39  ;;  %10151 = vmatpush1.bf16.msra.mxu1 %v12158_v59 }
 0x587   :  { %10182 = vmatprep.mubr.bf16.mxu1 %v13199_v39  ;;  %9988 = vmatprep.subr.bf16.mxu0 %v12165_v18  ;;  %v12180_v39 = vcombine.low %v6831_v41, %v6835_v29  ;;  %v12214_v41 = vcombine.low %v6864_v15, %v6868_v38  ;;  %v6911_v38 = vld [vmem:[#allocation9 + $0xf50] sm:$0xff] }
 0x588   :  { %10152 = vmatprep.subr.bf16.mxu1 %v12167_v19 }
 0x589   :  { %9989 = vmatpush1.bf16.msra.mxu0 %v12164_v9  ;;  %v6875_v9 = vld [vmem:[#allocation9 + $0xe30] sm:$0xff] }
 0x58a   :  { %10153 = vmatpush1.bf16.msra.mxu1 %v12166_v43  ;;  %9990 = vmatprep.subr.bf16.mxu0 %v12173_v61  ;;  %v6872_v43 = vld [vmem:[#allocation9 + $0xe18] sm:$0xff]  ;;  %v12221_v29 = vcombine.high %v6871_v46, %v6875_v9 }
 0x58b   :  { %10154 = vmatprep.subr.bf16.mxu1 %v12175_v47  ;;  %v6876_v61 = vld [vmem:[#allocation9 + $0xe38] sm:$0xff]  ;;  %v12212_v47 = vcombine.low %v6863_v40, %v6867_v28 }
 0x58c   :  { %v12223_v63 = vcombine.high %v6872_v43, %v6876_v61  ;;  %v12222_v22 = vcombine.low %v6872_v43, %v6876_v61  ;;  %v6924_v43 = vld [vmem:[#allocation9 + $0xfb8] sm:$0xff]  ;;  %v13234_v61 = vld [vmem:[#allocation11] sm:$0xff] }
 0x58d   :  { %9991 = vmatpush1.bf16.msra.mxu0 %v12172_v14  ;;  %v6883_v14 = vld [vmem:[#allocation9 + $0xe70] sm:$0xff] }
 0x58e   :  { %10155 = vmatpush1.bf16.msra.mxu1 %v12174_v36  ;;  %9992 = vmatprep.subr.bf16.mxu0 %v12181_v48  ;;  %v6880_v36 = vld [vmem:[#allocation9 + $0xe58] sm:$0xff]  ;;  %v12229_v2 = vcombine.high %v6879_v20, %v6883_v14 }
 0x58f   :  { %10156 = vmatprep.subr.bf16.mxu1 %v12183_v8  ;;  %v6884_v48 = vld [vmem:[#allocation9 + $0xe78] sm:$0xff]  ;;  %v12220_v8 = vcombine.low %v6871_v46, %v6875_v9  ;;  %v6923_v46 = vld [vmem:[#allocation9 + $0xfb0] sm:$0xff] }
 0x590   :  { %v12231_v10 = vcombine.high %v6880_v36, %v6884_v48  ;;  %v12230_v57 = vcombine.low %v6880_v36, %v6884_v48  ;;  %v6920_v9 = vld [vmem:[#allocation9 + $0xf98] sm:$0xff]  ;;  %v6942_v36 = vrot.slane %v13234_v61, %v6363_v12 }
 0x591   :  { %9993 = vmatpush1.bf16.msra.mxu0 %v12180_v39  ;;  %v6891_v39 = vld [vmem:[#allocation9 + $0xeb0] sm:$0xff]  ;;  %v6928_v48 = vld [vmem:[#allocation9 + $0xfd8] sm:$0xff] }
 0x592   :  { %10157 = vmatpush1.bf16.msra.mxu1 %v12182_v13  ;;  %9994 = vmatprep.subr.bf16.mxu0 %v12189_v52  ;;  %v6888_v13 = vld [vmem:[#allocation9 + $0xe98] sm:$0xff]  ;;  %v12237_v50 = vcombine.high %v6887_v5, %v6891_v39 }
 0x593   :  { %10158 = vmatprep.subr.bf16.mxu1 %v12191_v56  ;;  %v6892_v52 = vld [vmem:[#allocation9 + $0xeb8] sm:$0xff]  ;;  %v12228_v56 = vcombine.low %v6879_v20, %v6883_v14  ;;  %v6927_v20 = vld [vmem:[#allocation9 + $0xfd0] sm:$0xff] }
 0x594   :  { %v12239_v58 = vcombine.high %v6888_v13, %v6892_v52  ;;  %v12238_v62 = vcombine.low %v6888_v13, %v6892_v52  ;;  %v6931_v14 = vld [vmem:[#allocation9 + $0xff0] sm:$0xff] }
 0x595   :  { %9995 = vmatpush1.bf16.msra.mxu0 %v12188_v1  ;;  %v6899_v1 = vld [vmem:[#allocation9 + $0xef0] sm:$0xff]  ;;  %v12276_v12 = vcombine.low %v6927_v20, %v6931_v14 }
 0x596   :  { %10159 = vmatpush1.bf16.msra.mxu1 %v12190_v42  ;;  %9996 = vmatprep.subr.bf16.mxu0 %v12197_v45  ;;  %v6896_v42 = vld [vmem:[#allocation9 + $0xed8] sm:$0xff]  ;;  %v12245_v11 = vcombine.high %v6895_v60, %v6899_v1 }
 0x597   :  { %v13226_v25 = vpop.f32.mrb[56].mxu0  ;;  %10160 = vmatprep.subr.bf16.mxu1 %v12199_v6  ;;  %v6900_v45 = vld [vmem:[#allocation9 + $0xef8] sm:$0xff]  ;;  %v12236_v6 = vcombine.low %v6887_v5, %v6891_v39  ;;  %v12277_v5 = vcombine.high %v6927_v20, %v6931_v14  ;;  %v12548_v20 = vld [vmem:[#allocation12 + $0x140] sm:$0xff]  }
 0x598   :  { %v13228_v54 = vpop.f32.mrb[56].mxu1  ;;  %v13230_v35 = vpop.f32.mrb[57].mxu0  ;;  %v12247_v7 = vcombine.high %v6896_v42, %v6900_v45  ;;  %v12246_v40 = vcombine.low %v6896_v42, %v6900_v45  ;;  %v12520_v42 = vld [vmem:[#allocation12 + $0x48] sm:$0xff]  }
 0x599   :  { %v13232_v16 = vpop.f32.mrb[57].mxu1  ;;  %v9696_v17 = vpop.f32.mrb[58].mxu0  ;;  %9997 = vmatpush1.bf16.msra.mxu0 %v12196_v26  ;;  %v6907_v26 = vld [vmem:[#allocation9 + $0xf30] sm:$0xff]  ;;  %v12434_v13 = vadd.f32 %v13230_v35, %v6942_v36  ;;  %v12549_v36 = vld [vmem:[#allocation12 + $0x1c0] sm:$0xff]  }
 0x59a   :  { %v9860_v59 = vpop.f32.mrb[58].mxu1  ;;  %10161 = vmatpush1.bf16.msra.mxu1 %v12198_v4  ;;  %v9697_v18 = vpop.f32.mrb[59].mxu0  ;;  %9998 = vmatprep.subr.bf16.mxu0 %v12205_v31  ;;  %v6904_v4 = vld [vmem:[#allocation9 + $0xf18] sm:$0xff]  ;;  %v12253_v28 = vcombine.high %v6903_v37, %v6907_v26  ;;  %v6915_v17 = vld [vmem:[#allocation9 + $0xf70] sm:$0xff] }
 0x59b   :  { %v9861_v19 = vpop.f32.mrb[59].mxu1  ;;  %10162 = vmatprep.subr.bf16.mxu1 %v12207_v32  ;;  %v6908_v31 = vld [vmem:[#allocation9 + $0xf38] sm:$0xff]  ;;  %v12244_v32 = vcombine.low %v6895_v60, %v6899_v1  ;;  %v12252_v18 = vcombine.low %v6903_v37, %v6907_v26  ;;  %v12518_v60 = vld [vmem:[#allocation12] sm:$0xff]  }
 0x59c   :  { %v12255_v15 = vcombine.high %v6904_v4, %v6908_v31  ;;  %v6916_v59 = vld [vmem:[#allocation9 + $0xf78] sm:$0xff]  ;;  %v12519_v1 = vld [vmem:[#allocation12 + $0x80] sm:$0xff]  }
 0x59d   :  { %9999 = vmatpush1.bf16.msra.mxu0 %v12204_v44  ;;  %v6912_v44 = vld [vmem:[#allocation9 + $0xf58] sm:$0xff] }
 0x59e   :  { %10163 = vmatpush1.bf16.msra.mxu1 %v12206_v23  ;;  %10000 = vmatprep.subr.bf16.mxu0 %v12213_v27  ;;  %v12254_v23 = vcombine.low %v6904_v4, %v6908_v31  ;;  %v12261_v27 = vcombine.high %v6911_v38, %v6915_v17  ;;  %v12263_v19 = vcombine.high %v6912_v44, %v6916_v59  ;;  %v12526_v37 = vld [vmem:[#allocation12 + $0x10] sm:$0xff]   ;;  %v12528_v4 = vld [vmem:[#allocation12 + $0x58] sm:$0xff]  }
 0x59f   :  { %10164 = vmatprep.subr.bf16.mxu1 %v12215_v53  ;;  %v6919_v53 = vld [vmem:[#allocation9 + $0xf90] sm:$0xff]  ;;  %v12527_v26 = vld [vmem:[#allocation12 + $0x90] sm:$0xff]   ;;  %v12529_v31 = vld [vmem:[#allocation12 + $0xd8] sm:$0xff]  }
 0x5a1   :  { %10001 = vmatpush1.bf16.msra.mxu0 %v12212_v47  ;;  %v12260_v47 = vcombine.low %v6911_v38, %v6915_v17  ;;  %v12535_v38 = vld [vmem:[#allocation12 + $0xa0] sm:$0xff]   ;;  %v12536_v17 = vld [vmem:[#allocation12 + $0x68] sm:$0xff]  }
 0x5a2   :  { %10165 = vmatpush1.bf16.msra.mxu1 %v12214_v41  ;;  %10002 = vmatprep.subr.bf16.mxu0 %v12221_v29  ;;  %v12262_v41 = vcombine.low %v6912_v44, %v6916_v59  ;;  %v12269_v29 = vcombine.high %v6919_v53, %v6923_v46  ;;  %v12537_v44 = vld [vmem:[#allocation12 + $0xe8] sm:$0xff]  }
 0x5a3   :  { %10166 = vmatprep.subr.bf16.mxu1 %v12223_v63  ;;  %v12271_v63 = vcombine.high %v6920_v9, %v6924_v43  ;;  %v12538_v59 = vld [vmem:[#allocation12 + $0x28] sm:$0xff]  }
 0x5a5   :  { %10003 = vmatpush1.bf16.msra.mxu0 %v12220_v8  ;;  %v6932_v8 = vld [vmem:[#allocation9 + $0xff8] sm:$0xff] }
 0x5a6   :  { %10167 = vmatpush1.bf16.msra.mxu1 %v12222_v22  ;;  %10004 = vmatprep.subr.bf16.mxu0 %v12229_v2  ;;  %v6950_v22 = vrot.slane %v13234_v61, %v6371_v24  ;;  %v12268_v2 = vcombine.low %v6919_v53, %v6923_v46  ;;  %v12279_v39 = vcombine.high %v6928_v48, %v6932_v8  ;;  %v12517_v24 = vld [vmem:[#allocation12 + $0xc0] sm:$0xff]   ;;  %v12541_v53 = vld [vmem:[#allocation12 + $0xf0] sm:$0xff]  }
 0x5a7   :  { %10168 = vmatprep.subr.bf16.mxu1 %v12231_v10  ;;  %v12270_v10 = vcombine.low %v6920_v9, %v6924_v43  ;;  %v12542_v46 = vld [vmem:[#allocation12 + $0x30] sm:$0xff]  }
 0x5a8   :  { %v12436_v52 = vadd.f32 %v13232_v16, %v6950_v22  ;;  %v12521_v16 = vld [vmem:[#allocation12 + $0xc8] sm:$0xff]   ;;  %v12543_v43 = vld [vmem:[#allocation12 + $0xb0] sm:$0xff]  }
 0x5a9   :  { %10005 = vmatpush1.bf16.msra.mxu0 %v12228_v56  ;;  %v12278_v56 = vcombine.low %v6928_v48, %v6932_v8  ;;  %v12551_v8 = vld [vmem:[#allocation12 + $0x180] sm:$0xff]   ;;  %v12552_v22 = vld [vmem:[#allocation12 + $0x148] sm:$0xff]  }
 0x5aa   :  { %10169 = vmatpush1.bf16.msra.mxu1 %v12230_v57  ;;  %10006 = vmatprep.subr.bf16.mxu0 %v12237_v50  ;;  %v12516_v57 = vld [vmem:[#allocation12 + $0x40] sm:$0xff]   ;;  %v10192_v50 = vmax.f32 %v12434_v13, 0.0  ;;  %v12557_v13 = vld [vmem:[#allocation12 + $0x1d0] sm:$0xff]  }
 0x5ab   :  { %10170 = vmatprep.subr.bf16.mxu1 %v12239_v58  ;;  %v10194_v58 = vmax.f32 %v12436_v52, 0.0  ;;  %v12558_v52 = vld [vmem:[#allocation12 + $0x110] sm:$0xff]  }
 0x5ac   :  { %v10200_v35 = vpack.c.bf16 %v10192_v50, %v10192_v50  ;;  %v12563_v50 = vld [vmem:[#allocation12 + $0x198] sm:$0xff]  }
 0x5ad   :  { %10007 = vmatpush1.bf16.msra.mxu0 %v12236_v6  ;;  %v10202_v45 = vpack.c.bf16 %v10194_v58, %v10194_v58  ;;  %v12522_v6 = vld [vmem:[#allocation12 + $0x8] sm:$0xff]   ;;  %v12564_v58 = vld [vmem:[#allocation12 + $0x160] sm:$0xff]  }
 0x5ae   :  { %10171 = vmatpush1.bf16.msra.mxu1 %v12238_v62  ;;  %10008 = vmatprep.subr.bf16.mxu0 %v12245_v11  ;;  %v12523_v62 = vld [vmem:[#allocation12 + $0x88] sm:$0xff]   ;;  %v12524_v11 = vld [vmem:[#allocation12 + $0x50] sm:$0xff]  }
 0x5af   :  { %10172 = vmatprep.subr.bf16.mxu1 %v12247_v7  ;;  %v12525_v7 = vld [vmem:[#allocation12 + $0xd0] sm:$0xff]  }
 0x5b1   :  { %10009 = vmatpush1.bf16.msra.mxu0 %v12244_v32  ;;  %v12531_v32 = vld [vmem:[#allocation12 + $0x98] sm:$0xff]  }
 0x5b2   :  { %10173 = vmatpush1.bf16.msra.mxu1 %v12246_v40  ;;  %10010 = vmatprep.subr.bf16.mxu0 %v12253_v28  ;;  %v12532_v40 = vld [vmem:[#allocation12 + $0x60] sm:$0xff]  }
 0x5b3   :  { %10174 = vmatprep.subr.bf16.mxu1 %v12255_v15  ;;  %v12533_v28 = vld [vmem:[#allocation12 + $0xe0] sm:$0xff]  }
 0x5b4   :  { %v12534_v15 = vld [vmem:[#allocation12 + $0x20] sm:$0xff]  }
 0x5b5   :  { %10011 = vmatpush1.bf16.msra.mxu0 %v12252_v18  ;;  %v6938_v18 = vrot.slane %v13234_v61, %v6359_v51 }
 0x5b6   :  { %10175 = vmatpush1.bf16.msra.mxu1 %v12254_v23  ;;  %10012 = vmatprep.subr.bf16.mxu0 %v12261_v27  ;;  %v12539_v23 = vld [vmem:[#allocation12 + $0xa8] sm:$0xff]   ;;  %v12540_v27 = vld [vmem:[#allocation12 + $0x70] sm:$0xff]  }
 0x5b7   :  { %10176 = vmatprep.subr.bf16.mxu1 %v12263_v19  ;;  %v6946_v19 = vrot.slane %v13234_v61, %v6367_v21  ;;  %v12433_v9 = vadd.f32 %v13226_v25, %v6938_v18  ;;  %v12547_v21 = vld [vmem:[#allocation12 + $0xb8] sm:$0xff]   ;;  %v12550_v25 = vld [vmem:[#allocation12 + $0x100] sm:$0xff]  }
 0x5b9   :  { %10013 = vmatpush1.bf16.msra.mxu0 %v12260_v47  ;;  %v12544_v47 = vld [vmem:[#allocation12 + $0x78] sm:$0xff]   ;;  %v12435_v51 = vadd.f32 %v13228_v54, %v6946_v19 }
 0x5ba   :  { %10177 = vmatpush1.bf16.msra.mxu1 %v12262_v41  ;;  %10014 = vmatprep.subr.bf16.mxu0 %v12269_v29  ;;  %v12545_v41 = vld [vmem:[#allocation12 + $0xf8] sm:$0xff]  }
 0x5bb   :  { %10178 = vmatprep.subr.bf16.mxu1 %v12271_v63  ;;  %v12546_v29 = vld [vmem:[#allocation12 + $0x38] sm:$0xff]   ;;  %v10191_v63 = vmax.f32 %v12433_v9, 0.0  ;;  %v10193_v14 = vmax.f32 %v12435_v51, 0.0 }
 0x5bd   :  { %10015 = vmatpush1.bf16.msra.mxu0 %v12268_v2  ;;  %v10199_v48 = vpack.c.bf16 %v10191_v63, %v10191_v63  ;;  %v10201_v54 = vpack.c.bf16 %v10193_v14, %v10193_v14  ;;  %v12553_v2 = vld [vmem:[#allocation12 + $0x1c8] sm:$0xff]   ;;  %v12280_v63 = vld [vmem:[#allocation14] ss:$0 sm:$0xff] }
 0x5be   :  { %10179 = vmatpush1.bf16.msra.mxu1 %v12270_v10  ;;  %10016 = vmatprep.subr.bf16.mxu0 %v12277_v5  ;;  %v12554_v10 = vld [vmem:[#allocation12 + $0x108] sm:$0xff]  }
 0x5bf   :  { %10180 = vmatprep.subr.bf16.mxu1 %v12279_v39  ;;  %v12555_v5 = vld [vmem:[#allocation12 + $0x188] sm:$0xff]   ;;  %v12556_v39 = vld [vmem:[#allocation12 + $0x150] sm:$0xff]  }
 0x5c1   :  { %10017 = vmatpush1.bf16.msra.mxu0 %v12276_v12  ;;  %v12559_v12 = vld [vmem:[#allocation12 + $0x190] sm:$0xff]  }
 0x5c2   :  { %10181 = vmatpush1.bf16.msra.mxu1 %v12278_v56  ;;  %12345 = vmatprep.subr.bf16.mxu0 %v12516_v57  ;;  %v12560_v56 = vld [vmem:[#allocation12 + $0x158] sm:$0xff]  }
 0x5c3   :  { %12367 = vmatprep.subr.bf16.mxu1 %v12517_v24  ;;  %v12561_v57 = vld [vmem:[#allocation12 + $0x1d8] sm:$0xff]  }
 0x5c4   :  { %10019 = vmatmul.mubr.bf16.vlgmr.msra.gmra.mrb[60].mxu0 %v13208_v30  ;;  %v12562_v24 = vld [vmem:[#allocation12 + $0x118] sm:$0xff]  }
 0x5c5   :  { %10183 = vmatmul.mubr.bf16.vlgmr.msra.gmra.mrb[60].mxu1 %v13208_v30  ;;  %12346 = vmatpush3.bf16.msra.mxu0 %v12518_v60  ;;  %v12530_v30 = vld [vmem:[#allocation12 + $0x18] sm:$0xff]   ;;  %v12565_v60 = vld [vmem:[#allocation12 + $0x1e0] sm:$0xff]  }
 0x5c6   :  { %10758 = vmatprep.mubr.bf16.mxu0 %v10200_v35  ;;  %12368 = vmatpush3.bf16.msra.mxu1 %v12519_v1  ;;  %v12566_v1 = vld [vmem:[#allocation12 + $0x120] sm:$0xff]   ;;  %v12568_v35 = vld [vmem:[#allocation12 + $0x168] sm:$0xff]  }
 0x5c7   :  { %10798 = vmatprep.mubr.bf16.mxu1 %v10202_v45  ;;  %12347 = vmatprep.subr.bf16.mxu0 %v12520_v42  ;;  %v12567_v42 = vld [vmem:[#allocation12 + $0x1a0] sm:$0xff]   ;;  %v12570_v45 = vld [vmem:[#allocation12 + $0x128] sm:$0xff]  }
 0x5c8   :  { %12369 = vmatprep.subr.bf16.mxu1 %v12521_v16  ;;  %v12569_v16 = vld [vmem:[#allocation12 + $0x1e8] sm:$0xff]  }
 0x5c9   :  { %12348 = vmatpush3.bf16.msra.mxu0 %v12522_v6  ;;  %v12571_v6 = vld [vmem:[#allocation12 + $0x1a8] sm:$0xff]  }
 0x5ca   :  { %12370 = vmatpush3.bf16.msra.mxu1 %v12523_v62  ;;  %12349 = vmatprep.subr.bf16.mxu0 %v12524_v11  ;;  %v12572_v62 = vld [vmem:[#allocation12 + $0x170] sm:$0xff]  }
 0x5cb   :  { %12371 = vmatprep.subr.bf16.mxu1 %v12525_v7  ;;  %v12573_v11 = vld [vmem:[#allocation12 + $0x1f0] sm:$0xff]  }
 0x5cc   :  { %v12574_v7 = vld [vmem:[#allocation12 + $0x130] sm:$0xff]  }
 0x5cd   :  { %12350 = vmatpush3.bf16.msra.mxu0 %v12526_v37  ;;  %v12575_v37 = vld [vmem:[#allocation12 + $0x1b0] sm:$0xff]  }
 0x5ce   :  { %12372 = vmatpush3.bf16.msra.mxu1 %v12527_v26  ;;  %12351 = vmatprep.subr.bf16.mxu0 %v12528_v4  ;;  %v12576_v26 = vld [vmem:[#allocation12 + $0x178] sm:$0xff]  }
 0x5cf   :  { %12373 = vmatprep.subr.bf16.mxu1 %v12529_v31  ;;  %v12577_v4 = vld [vmem:[#allocation12 + $0x1f8] sm:$0xff]  }
 0x5d0   :  { %v12578_v31 = vld [vmem:[#allocation12 + $0x138] sm:$0xff]  }
 0x5d1   :  { %12352 = vmatpush3.bf16.msra.mxu0 %v12530_v30  ;;  %v12579_v30 = vld [vmem:[#allocation12 + $0x1b8] sm:$0xff]  }
 0x5d2   :  { %12374 = vmatpush3.bf16.msra.mxu1 %v12531_v32  ;;  %12353 = vmatprep.subr.bf16.mxu0 %v12532_v40  ;;  %v6954_v32 = vrot.slane %v13234_v61, %v6375_v34  ;;  %v6962_v40 = vrot.slane %v13234_v61, %v6383_v3 }
 0x5d3   :  { %12375 = vmatprep.subr.bf16.mxu1 %v12533_v28  ;;  %v6958_v28 = vrot.slane %v13234_v61, %v6379_v49 }
 0x5d5   :  { %12354 = vmatpush3.bf16.msra.mxu0 %v12534_v15  ;;  %v6966_v15 = vrot.slane %v13234_v61, %v6387_v33 }
 0x5d6   :  { %12376 = vmatpush3.bf16.msra.mxu1 %v12535_v38  ;;  %12355 = vmatprep.subr.bf16.mxu0 %v12536_v17 }
 0x5d7   :  { %12377 = vmatprep.subr.bf16.mxu1 %v12537_v44 }
 0x5d9   :  { %12356 = vmatpush3.bf16.msra.mxu0 %v12538_v59 }
 0x5da   :  { %12378 = vmatpush3.bf16.msra.mxu1 %v12539_v23  ;;  %12357 = vmatprep.subr.bf16.mxu0 %v12540_v27 }
 0x5db   :  { %12379 = vmatprep.subr.bf16.mxu1 %v12541_v53 }
 0x5dd   :  { %12358 = vmatpush3.bf16.msra.mxu0 %v12542_v46 }
 0x5de   :  { %12380 = vmatpush3.bf16.msra.mxu1 %v12543_v43  ;;  %12359 = vmatprep.subr.bf16.mxu0 %v12544_v47 }
 0x5df   :  { %12381 = vmatprep.subr.bf16.mxu1 %v12545_v41 }
 0x5e1   :  { %12360 = vmatpush3.bf16.msra.mxu0 %v12546_v29 }
 0x5e2   :  { %12382 = vmatpush3.bf16.msra.mxu1 %v12547_v21  ;;  %12389 = vmatprep.subr.bf16.mxu0 %v12548_v20 }
 0x5e3   :  { %12411 = vmatprep.subr.bf16.mxu1 %v12549_v36 }
 0x5e4   :  { %10759 = vmatmul.mubr.bf16.vlgmr.msra.gmra.mrb[64].mxu0 %v10199_v48 }
 0x5e5   :  { %10799 = vmatmul.mubr.bf16.vlgmr.msra.gmra.mrb[64].mxu1 %v10201_v54  ;;  %12390 = vmatpush3.bf16.msra.mxu0 %v12550_v25 }
 0x5e6   :  { %12412 = vmatpush3.bf16.msra.mxu1 %v12551_v8  ;;  %12391 = vmatprep.subr.bf16.mxu0 %v12552_v22 }
 0x5e7   :  { %12413 = vmatprep.subr.bf16.mxu1 %v12553_v2 }
 0x5e9   :  { %12392 = vmatpush3.bf16.msra.mxu0 %v12554_v10 }
 0x5ea   :  { %12414 = vmatpush3.bf16.msra.mxu1 %v12555_v5  ;;  %12393 = vmatprep.subr.bf16.mxu0 %v12556_v39 }
 0x5eb   :  { %12415 = vmatprep.subr.bf16.mxu1 %v12557_v13  ;;  %v10887_v13 = vand.u32 127, %v6357_v55 }
 0x5ed   :  { %12394 = vmatpush3.bf16.msra.mxu0 %v12558_v52  ;;  %vm10888_vm0 = vcmp.lt.s32.totalorder %v10887_v13, 8  ;;  %vm10902_vm1 = vcmp.ge.s32.totalorder %v10887_v13, 40 }
 0x5ee   :  { %12416 = vmatpush3.bf16.msra.mxu1 %v12559_v12  ;;  %12395 = vmatprep.subr.bf16.mxu0 %v12560_v56 }
 0x5ef   :  { %12417 = vmatprep.subr.bf16.mxu1 %v12561_v57 }
 0x5f1   :  { %12396 = vmatpush3.bf16.msra.mxu0 %v12562_v24 }
 0x5f2   :  { %12418 = vmatpush3.bf16.msra.mxu1 %v12563_v50  ;;  %12397 = vmatprep.subr.bf16.mxu0 %v12564_v58 }
 0x5f3   :  { %12419 = vmatprep.subr.bf16.mxu1 %v12565_v60 }
 0x5f5   :  { %12398 = vmatpush3.bf16.msra.mxu0 %v12566_v1 }
 0x5f6   :  { %12420 = vmatpush3.bf16.msra.mxu1 %v12567_v42  ;;  %12399 = vmatprep.subr.bf16.mxu0 %v12568_v35 }
 0x5f7   :  { %12421 = vmatprep.subr.bf16.mxu1 %v12569_v16 }
 0x5f9   :  { %12400 = vmatpush3.bf16.msra.mxu0 %v12570_v45 }
 0x5fa   :  { %12422 = vmatpush3.bf16.msra.mxu1 %v12571_v6  ;;  %12401 = vmatprep.subr.bf16.mxu0 %v12572_v62 }
 0x5fb   :  { %12423 = vmatprep.subr.bf16.mxu1 %v12573_v11 }
 0x5fd   :  { %12402 = vmatpush3.bf16.msra.mxu0 %v12574_v7 }
 0x5fe   :  { %12424 = vmatpush3.bf16.msra.mxu1 %v12575_v37  ;;  %12403 = vmatprep.subr.bf16.mxu0 %v12576_v26 }
 0x5ff   :  { %12425 = vmatprep.subr.bf16.mxu1 %v12577_v4 }
 0x601   :  { %12404 = vmatpush3.bf16.msra.mxu0 %v12578_v31 }
 0x602   :  { %12426 = vmatpush3.bf16.msra.mxu1 %v12579_v30 }
 0x697   :  { %v10020_v38 = vpop.f32.mrb[60].mxu0 }
 0x698   :  { %v12437_v17 = vadd.f32 %v10020_v38, %v6954_v32  ;;  %v10184_v44 = vpop.f32.mrb[60].mxu1  ;;  %v10022_v59 = vpop.f32.mrb[61].mxu0 }
 0x699   :  { %v12439_v18 = vadd.f32 %v10184_v44, %v6962_v40  ;;  %v12438_v23 = vadd.f32 %v10022_v59, %v6958_v28  ;;  %v10186_v27 = vpop.f32.mrb[61].mxu1  ;;  %v10024_v34 = vpop.f32.mrb[62].mxu0 }
 0x69a   :  { %v10195_v19 = vmax.f32 %v12437_v17, 0.0  ;;  %v12440_v53 = vadd.f32 %v10186_v27, %v6966_v15  ;;  %v10188_v46 = vpop.f32.mrb[62].mxu1  ;;  %v10025_v3 = vpop.f32.mrb[63].mxu0 }
 0x69b   :  { %v10197_v9 = vmax.f32 %v12439_v18, 0.0  ;;  %v10196_v43 = vmax.f32 %v12438_v23, 0.0  ;;  %v10189_v47 = vpop.f32.mrb[63].mxu1 }
 0x69c   :  { %v10198_v49 = vmax.f32 %v12440_v53, 0.0  ;;  %v10203_v0 = vpack.c.bf16 %v10195_v19, %v10195_v19 }
 0x69d   :  { %v10204_v51 = vpack.c.bf16 %v10196_v43, %v10196_v43  ;;  %v10205_v33 = vpack.c.bf16 %v10197_v9, %v10197_v9 }
 0x69e   :  { %v10206_v41 = vpack.c.bf16 %v10198_v49, %v10198_v49 }
 0x69f   :  { %10838 = vmatprep.mubr.bf16.mxu0 %v10204_v51 }
 0x6a0   :  { %10878 = vmatprep.mubr.bf16.mxu1 %v10206_v41  ;;  %10839 = vmatmul.mubr.bf16.vlgmr.msra.gmra.mrb[68].mxu0 %v10203_v0 }
 0x6a1   :  { %10879 = vmatmul.mubr.bf16.vlgmr.msra.gmra.mrb[68].mxu1 %v10205_v33 }
 0x6b7   :  { %v12361_v61 = vpop.f32.mrb[64].mxu0 }
 0x6b8   :  { %v12383_v29 = vpop.f32.mrb[64].mxu1  ;;  %v12362_v21 = vpop.f32.mrb[65].mxu0 }
 0x6b9   :  { %v12363_v20 = vadd.f32 %v12362_v21, %v12361_v61  ;;  %v12384_v14 = vpop.f32.mrb[65].mxu1  ;;  %v12364_v36 = vpop.f32.mrb[66].mxu0 }
 0x6ba   :  { %v12385_v25 = vadd.f32 %v12384_v14, %v12383_v29  ;;  %v12386_v48 = vpop.f32.mrb[66].mxu1  ;;  %v12365_v8 = vpop.f32.mrb[67].mxu0 }
 0x6bb   :  { %v10761_v22 = vadd.f32 %v12363_v20, %v12280_v63  ;;  %v12387_v54 = vpop.f32.mrb[67].mxu1 }
 0x6bd   :  { %v10801_v2 = vadd.f32 %v12385_v25, %v10761_v22 }
 0x773   :  { %v12405_v10 = vpop.f32.mrb[68].mxu0 }
 0x774   :  { %v12427_v5 = vpop.f32.mrb[68].mxu1  ;;  %v12406_v39 = vpop.f32.mrb[69].mxu0 }
 0x775   :  { %v12407_v52 = vadd.f32 %v12406_v39, %v12405_v10  ;;  %v12428_v12 = vpop.f32.mrb[69].mxu1  ;;  %v12408_v56 = vpop.f32.mrb[70].mxu0 }
 0x776   :  { %v12429_v57 = vadd.f32 %v12428_v12, %v12427_v5  ;;  %v12430_v24 = vpop.f32.mrb[70].mxu1  ;;  %v12409_v50 = vpop.f32.mrb[71].mxu0 }
 0x777   :  { %v10841_v58 = vadd.f32 %v12407_v52, %v10801_v2  ;;  %v12431_v60 = vpop.f32.mrb[71].mxu1 }
 0x779   :  { %v10881_v1 = vadd.f32 %v12429_v57, %v10841_v58 }
 0x77b   :  { %v10889_v42 = vsel %vm10888_vm0, %v10881_v1, -inf }
 0x77c   :  { %10890 = vmax.xlane.f32.xlu0 %v10889_v42 }
 0x809   :  { %v10891_v35 = vpop.xlane.xlu0 %10890 }
 0x80a   :  { %v10892_v16 = vsub.f32 %v10881_v1, %v10891_v35 }
 0x80c   :  { %v10893_v45 = vsel %vm10888_vm0, %v10892_v16, -1e+30 }
 0x80d   :  { %v10894_v6 = vmul.f32 1.442695, %v10893_v45 }
 0x80f   :  { %12580 = vpow2.f32 %v10894_v6 }
 0x819   :  { %v12581_v62 = vpop.eup %12580 }
 0x81a   :  { %10896 = vadd.xlane.f32.xlu0 %v12581_v62 }
 0x8a7   :  { %v10897_v55 = vpop.xlane.xlu0 %10896 }
 0x8a8   :  { %12582 = vrcp.f32 %v10897_v55 }
 0x8b2   :  { %v12583_v11 = vpop.eup %12582 }
 0x8b3   :  { %v10899_v7 = vmul.f32 %v12583_v11, %v12581_v62 }
 0x8b5   :  { %10900 = vrot.lane.b32.xlu1 %v10899_v7, %s12786_s6 }
 0x927   :  { %v10901_v37 = vpop.permute.xlu1 %10900 }
 0x928   :  { %v10903_v26 = vsel %vm10902_vm1, %v10901_v37, %v10881_v1 }
 0x929   :  { %10904 = vst [vmem:[#allocation15] sm:$0xff] %v10903_v26 }
 0x92a   :  { %12753 = shalt.err (!%p12750_p4)
}
 0x92b   :  { %s12754_s12 = scalar_lea.hbm %s13286_s7, 128 }
 0x92c   :  { %p12755_p5 = scmp.ne.s32.totalorder %s13286_s7, %s12754_s12  ;;  %p12758_p6 = scmp.lt.u32.totalorder %s12754_s12, %s13286_s7 }
 0x92e   :  { %p12760_p7 = pnand %p12758_p6, %p12755_p5 }
 0x930   :  { %12763 = shalt.err (!%p12760_p7)
}
 0x931   :  { %10914 = dma.vmem_to_hbm [thread:$0]  %s10912_s14, 128, %s13286_s7, [#allocation5]  }
 0x932   :  { %12772 = dma.done.wait [#allocation5], 128  }
 0x933   :  { %12773 = vsyncadd [#allocation5], 4294967168 }
 0x934   :  { %10918 = vsyncpa [#allocation4], 1 }
 0x935   :  { %10919 = vsyncpa [#allocation7], 1 }
 0x936   :  { %10920 = vsyncpa [#allocation10], 1 }
 0x937   :  { %10921 = vsyncpa [#allocation13], 1 }
 0x938   :  { %10922 = vsyncpa [#allocation5], 1 }

</bundles_post_ra>
